<compile_context>
chip_gen: v6e
topology: v6e:2x2x1
jax: 0.10.0
libtpu: 0.0.40
codegen_flags: <defaults>
</compile_context>

<pallas_src>
import math
from functools import partial

import jax
import jax.numpy as jnp
from jax import lax
from jax.experimental import pallas as pl
from jax.experimental.pallas import tpu as pltpu

TAU = 0.5          # self.tau
K = 4              # self.K
NUM_SAMPLE = 2
IMG = 28
D = IMG * IMG      # 784
H1 = 1024
NCLASS = 10
NCLASS_PAD = 128   # lane-dense padded class dim; wrapper slices [:, :NCLASS]

_COMPILER_PARAMS = pltpu.CompilerParams(
    dimension_semantics=("arbitrary",),
    vmem_limit_bytes=32 << 20,   # leave headroom on v7x (64 MiB physical VMEM)
)


def _full_spec(shape):
    """Whole-array VMEM block (grid has a single step)."""
    n = len(shape)
    return pl.BlockSpec(shape, lambda i, _n=n: (0,) * _n)


# ----------------------------------------------------------------------------
# Kernel 1: encoder MLP  (Linear->ReLU->Linear->LogSoftmax), fused.
# bf16 matmul inputs / weights, f32 accumulation and elementwise math.
# ----------------------------------------------------------------------------
def _encode_kernel(x_ref, w1_ref, b1_ref, w2_ref, b2_ref, out_ref):
    x = x_ref[...].astype(jnp.bfloat16)
    h = jnp.dot(x, w1_ref[...], preferred_element_type=jnp.float32) + b1_ref[...]
    h = jnp.maximum(h, 0.0)
    z = jnp.dot(h.astype(jnp.bfloat16), w2_ref[...],
                preferred_element_type=jnp.float32) + b2_ref[...]
    m = jnp.max(z, axis=-1, keepdims=True)
    s = z - m
    out_ref[...] = s - jnp.log(jnp.sum(jnp.exp(s), axis=-1, keepdims=True))


def encode_mlp(x_flat, params):
    B = x_flat.shape[0]
    return pl.pallas_call(
        _encode_kernel,
        out_shape=jax.ShapeDtypeStruct((B, D), jnp.float32),
        grid=(1,),
        in_specs=[
            _full_spec((B, D)),
            _full_spec((D, H1)),
            _full_spec((1, H1)),
            _full_spec((H1, D)),
            _full_spec((1, D)),
        ],
        out_specs=_full_spec((B, D)),
        compiler_params=_COMPILER_PARAMS,
    )(x_flat, params["enc_w1"], params["enc_b1"], params["enc_w2"], params["enc_b2"])


# ----------------------------------------------------------------------------
# Kernel 2: fused reparameterize + mask + decoder MLP for BOTH paths.
#   inputs : scores = logits + gumbel  (n_sampled, K, D)
#            x_rep  (n_sampled, D)  -- x rows repeated per sample
#            x_flat (n_fixed,  D)
#            v_fixed(n_fixed,  D)   -- top-K indicator mask
#   outputs: Z_hat (n_sampled, D)   -- relaxed one-hot samples, max over K
#            pred  (n_sampled+n_fixed, 128) -- log-softmax logits (cols >=10 junk)
# ----------------------------------------------------------------------------
def _decode_kernel(scores_ref, xs_ref, xf_ref, vfix_ref,
                   w1_ref, b1_ref, w2_ref, b2_ref, w3_ref, b3_ref,
                   zhat_ref, pred_ref, net_ref, *, n_sampled, n_fixed):
    # ---- reparameterize: softmax((logits + g)/tau, axis=-1), max over K ----
    s = scores_ref[...] * (1.0 / TAU)                    # (n_sampled, K, D)
    m = jnp.max(s, axis=-1, keepdims=True)
    e = jnp.exp(s - m)
    sm = e / jnp.sum(e, axis=-1, keepdims=True)          # relaxed one-hot samples
    z = jnp.max(sm, axis=1)                              # (n_sampled, D)
    zhat_ref[...] = z

    # ---- build masked decoder inputs: sampled rows then fixed rows ----
    net_ref[pl.ds(0, n_sampled), :] = xs_ref[...] * z
    net_ref[pl.ds(n_sampled, n_fixed), :] = xf_ref[...] * vfix_ref[...]
    net = net_ref[...].astype(jnp.bfloat16)              # (n_sampled+n_fixed, D)

    # ---- decoder MLP (bf16 matmuls on MXU, f32 accumulate / elementwise) ----
    h = jnp.dot(net, w1_ref[...], preferred_element_type=jnp.float32) + b1_ref[...]
    h = jnp.maximum(h, 0.0)
    h = jnp.dot(h.astype(jnp.bfloat16), w2_ref[...],
                preferred_element_type=jnp.float32) + b2_ref[...]
    h = jnp.maximum(h, 0.0)
    z3 = jnp.dot(h.astype(jnp.bfloat16), w3_ref[...],
                 preferred_element_type=jnp.float32) + b3_ref[...]   # (N, 128)

    # ---- log-softmax over the real 10 classes only (mask padded lanes) ----
    col = lax.broadcasted_iota(jnp.int32, z3.shape, dimension=1)
    zm = jnp.where(col < NCLASS, z3, -jnp.inf)
    mm = jnp.max(zm, axis=-1, keepdims=True)
    lse = jnp.log(jnp.sum(jnp.exp(zm - mm), axis=-1, keepdims=True))
    pred_ref[...] = z3 - mm - lse     # cols >= NCLASS are junk; sliced in wrapper


def decode_fused(scores, x_rep, x_flat, v_fixed, params):
    n_sampled = scores.shape[0]
    n_fixed = x_flat.shape[0]
    n_tot = n_sampled + n_fixed
    kernel = partial(_decode_kernel, n_sampled=n_sampled, n_fixed=n_fixed)
    return pl.pallas_call(
        kernel,
        out_shape=(
            jax.ShapeDtypeStruct((n_sampled, D), jnp.float32),
            jax.ShapeDtypeStruct((n_tot, NCLASS_PAD), jnp.float32),
        ),
        grid=(1,),
        in_specs=[
            _full_spec((n_sampled, K, D)),
            _full_spec((n_sampled, D)),
            _full_spec((n_fixed, D)),
            _full_spec((n_fixed, D)),
            _full_spec((D, H1)),
            _full_spec((1, H1)),
            _full_spec((H1, H1)),
            _full_spec((1, H1)),
            _full_spec((H1, NCLASS_PAD)),
            _full_spec((1, NCLASS_PAD)),
        ],
        out_specs=(
            _full_spec((n_sampled, D)),
            _full_spec((n_tot, NCLASS_PAD)),
        ),
        scratch_shapes=[pltpu.VMEM((n_tot, D), jnp.float32)],
        compiler_params=_COMPILER_PARAMS,
    )(
        scores, x_rep, x_flat, v_fixed,
        params["dec_w1"], params["dec_b1"],
        params["dec_w2"], params["dec_b2"],
        params["dec_w3"], params["dec_b3"],
    )


# ----------------------------------------------------------------------------
# Parameter init (xavier_uniform with relu gain, zero biases) — deterministic.
# Weights are stored (in, out) in bfloat16 so kernels compute x @ W == x @ weight.T.
# dec_w3 / dec_b3 are zero-padded to 128 output columns (lane-dense store).
# ----------------------------------------------------------------------------
def _xavier(key, fan_in, fan_out):
    gain = math.sqrt(2.0)  # nn.init.calculate_gain('relu')
    bound = gain * math.sqrt(6.0 / (fan_in + fan_out))
    w = jax.random.uniform(key, (fan_in, fan_out), jnp.float32, -bound, bound)
    return w.astype(jnp.bfloat16)


def init_params(key):
    ks = jax.random.split(key, 5)
    w3 = _xavier(ks[4], H1, NCLASS)                                   # (1024, 10)
    dec_w3 = jnp.zeros((H1, NCLASS_PAD), jnp.bfloat16).at[:, :NCLASS].set(w3)
    return {
        "enc_w1": _xavier(ks[0], D, H1),   "enc_b1": jnp.zeros((1, H1), jnp.float32),
        "enc_w2": _xavier(ks[1], H1, D),   "enc_b2": jnp.zeros((1, D), jnp.float32),
        "dec_w1": _xavier(ks[2], D, H1),   "dec_b1": jnp.zeros((1, H1), jnp.float32),
        "dec_w2": _xavier(ks[3], H1, H1),  "dec_b2": jnp.zeros((1, H1), jnp.float32),
        "dec_w3": dec_w3,                  "dec_b3": jnp.zeros((1, NCLASS_PAD), jnp.float32),
    }


# ----------------------------------------------------------------------------
# Forward pass (mirrors Explainer.forward)
# ----------------------------------------------------------------------------
@partial(jax.jit, static_argnums=(3,))
def explainer_forward(params, x, gumbel_key, num_sample=NUM_SAMPLE):
    B = x.shape[0]
    x_flat = x.reshape(B, D)

    # ---- encoder ----
    p_i = encode_mlp(x_flat, params)                            # (B, 784) log-probs

    # ---- reparameterize glue ----
    # Faithful to the original: p_i (log-probs) is passed as `probs` to
    # RelaxedOneHotCategorical, so torch renormalizes it (p_i / sum(p_i) is
    # positive and sums to 1 because every term is negative) and takes its log.
    # This deliberately replicates the original module's behavior — do not "fix".
    eps = jnp.finfo(jnp.float32).eps
    probs_norm = p_i / jnp.sum(p_i, axis=-1, keepdims=True)
    logits = jnp.log(jnp.clip(probs_norm, eps, 1.0 - eps))
    g = jax.random.gumbel(gumbel_key, (B, num_sample, K, D), dtype=jnp.float32)
    scores = (logits[:, None, None, :] + g).reshape(B * num_sample, K, D)

    # V_fixed = idxtobool(topk(p_i, K))  -- glue (no clean Pallas top-k)
    _, top_idx = jax.lax.top_k(p_i, K)                          # (B, K)
    V_fixed = jnp.sum(jax.nn.one_hot(top_idx, D, dtype=jnp.float32), axis=-2)  # (B, D)

    # x rows repeated per sample (tiny; B*num_sample x 784 f32)
    x_rep = jnp.broadcast_to(x_flat[:, None, :], (B, num_sample, D)).reshape(
        B * num_sample, D)

    # ---- fused reparam + decoder (sampled and fixed paths in one call) ----
    Z_hat_flat, pred = decode_fused(scores, x_rep, x_flat, V_fixed, params)
    Z_hat = Z_hat_flat.reshape(B, num_sample, D)
    logit = jnp.mean(
        pred[: B * num_sample, :NCLASS].reshape(B, num_sample, NCLASS), axis=1)
    logit_fixed = pred[B * num_sample:, :NCLASS]
    return logit, p_i, Z_hat, logit_fixed


if __name__ == "__main__":
    key = jax.random.PRNGKey(0)
    k_param, k_x, k_g = jax.random.split(key, 3)
    params = init_params(k_param)
    x = jax.random.uniform(k_x, (2, 1, IMG, IMG), dtype=jnp.float32)  # NCHW, like MNIST

    logit, p_i, Z_hat, logit_fixed = explainer_forward(params, x, k_g, NUM_SAMPLE)
    jax.block_until_ready((logit, p_i, Z_hat, logit_fixed))

    assert logit.shape == (2, NCLASS)
    assert p_i.shape == (2, D)
    assert Z_hat.shape == (2, NUM_SAMPLE, D)
    assert logit_fixed.shape == (2, NCLASS)
    assert bool(jnp.all(jnp.isfinite(logit))) and bool(jnp.all(jnp.isfinite(logit_fixed)))
    assert bool(jnp.all(jnp.isfinite(Z_hat))) and bool(jnp.all(jnp.isfinite(p_i)))
    print("KERNEL_OK")
</pallas_src>

<mosaic_0001>
module attributes {stable_mosaic.version = 11 : i64} {
  func.func @_encode_kernel(%arg0: i32, %arg1: memref<2x784xf32, #tpu.memory_space<vmem>>, %arg2: memref<784x1024xbf16, #tpu.memory_space<vmem>>, %arg3: memref<1x1024xf32, #tpu.memory_space<vmem>>, %arg4: memref<1024x784xbf16, #tpu.memory_space<vmem>>, %arg5: memref<1x784xf32, #tpu.memory_space<vmem>>, %arg6: memref<2x784xf32, #tpu.memory_space<vmem>>) attributes {dimension_semantics = [#tpu.dimension_semantics<arbitrary>], iteration_bounds = array<i64: 1>, scalar_prefetch = 0 : i64, scratch_operands = 0 : i64, tpu.core_type = #tpu.core_type<tc>, window_params = [{pipeline_mode = #tpu.pipeline_mode<synchronous>, transform_indices = @transform_0, window_bounds = array<i64: 2, 784>}, {pipeline_mode = #tpu.pipeline_mode<synchronous>, transform_indices = @transform_1, window_bounds = array<i64: 784, 1024>}, {pipeline_mode = #tpu.pipeline_mode<synchronous>, transform_indices = @transform_2, window_bounds = array<i64: 1, 1024>}, {pipeline_mode = #tpu.pipeline_mode<synchronous>, transform_indices = @transform_3, window_bounds = array<i64: 1024, 784>}, {pipeline_mode = #tpu.pipeline_mode<synchronous>, transform_indices = @transform_4, window_bounds = array<i64: 1, 784>}, {pipeline_mode = #tpu.pipeline_mode<synchronous>, transform_indices = @transform_5, window_bounds = array<i64: 2, 784>}]} {
    %c0 = arith.constant 0 : index
    %c0_0 = arith.constant 0 : index
    %0 = vector.load %arg1[%c0, %c0_0] : memref<2x784xf32, #tpu.memory_space<vmem>>, vector<2x784xf32>
    %1 = arith.truncf %0 : vector<2x784xf32> to vector<2x784xbf16>
    %c0_1 = arith.constant 0 : index
    %c0_2 = arith.constant 0 : index
    %2 = vector.load %arg2[%c0_1, %c0_2] : memref<784x1024xbf16, #tpu.memory_space<vmem>>, vector<784x1024xbf16>
    %cst = arith.constant dense<0.000000e+00> : vector<2x1024xf32>
    %3 = tpu.matmul %1, %2, %cst {dimension_numbers = #tpu.dot_dimension_numbers<[1], [0], [0], [1], [0, 0, 1, 1], [], []>} : vector<2x784xbf16>, vector<784x1024xbf16>, vector<2x1024xf32> -> vector<2x1024xf32>
    %c0_3 = arith.constant 0 : index
    %c0_4 = arith.constant 0 : index
    %4 = vector.load %arg3[%c0_3, %c0_4] : memref<1x1024xf32, #tpu.memory_space<vmem>>, vector<1x1024xf32>
    %5 = vector.broadcast %4 : vector<1x1024xf32> to vector<2x1024xf32>
    %6 = arith.addf %3, %5 : vector<2x1024xf32>
    %cst_5 = arith.constant 0.000000e+00 : f32
    %7 = vector.broadcast %cst_5 : f32 to vector<2x1024xf32>
    %8 = arith.maximumf %6, %7 : vector<2x1024xf32>
    %9 = arith.truncf %8 : vector<2x1024xf32> to vector<2x1024xbf16>
    %c0_6 = arith.constant 0 : index
    %c0_7 = arith.constant 0 : index
    %10 = vector.load %arg4[%c0_6, %c0_7] : memref<1024x784xbf16, #tpu.memory_space<vmem>>, vector<1024x784xbf16>
    %cst_8 = arith.constant dense<0.000000e+00> : vector<2x784xf32>
    %11 = tpu.matmul %9, %10, %cst_8 {dimension_numbers = #tpu.dot_dimension_numbers<[1], [0], [0], [1], [0, 0, 1, 1], [], []>} : vector<2x1024xbf16>, vector<1024x784xbf16>, vector<2x784xf32> -> vector<2x784xf32>
    %c0_9 = arith.constant 0 : index
    %c0_10 = arith.constant 0 : index
    %12 = vector.load %arg5[%c0_9, %c0_10] : memref<1x784xf32, #tpu.memory_space<vmem>>, vector<1x784xf32>
    %13 = vector.broadcast %12 : vector<1x784xf32> to vector<2x784xf32>
    %14 = arith.addf %11, %13 : vector<2x784xf32>
    %cst_11 = arith.constant dense<0xFF800000> : vector<2xf32>
    %15 = vector.multi_reduction <maximumf>, %14, %cst_11 [1] : vector<2x784xf32> to vector<2xf32>
    %16 = vector.shape_cast %15 : vector<2xf32> to vector<2x1xf32>
    %17 = vector.broadcast %16 : vector<2x1xf32> to vector<2x784xf32>
    %18 = arith.subf %14, %17 : vector<2x784xf32>
    %19 = math.exp %18 : vector<2x784xf32>
    %cst_12 = arith.constant dense<0.000000e+00> : vector<2xf32>
    %20 = vector.multi_reduction <add>, %19, %cst_12 [1] : vector<2x784xf32> to vector<2xf32>
    %21 = vector.shape_cast %20 : vector<2xf32> to vector<2x1xf32>
    %22 = math.log %21 : vector<2x1xf32>
    %23 = vector.broadcast %22 : vector<2x1xf32> to vector<2x784xf32>
    %24 = arith.subf %18, %23 : vector<2x784xf32>
    %c0_13 = arith.constant 0 : index
    %c0_14 = arith.constant 0 : index
    %25 = vector.load %arg6[%c0_13, %c0_14] : memref<2x784xf32, #tpu.memory_space<vmem>>, vector<2x784xf32>
    tpu.vector_store %arg6[%c0_13, %c0_14], %24 {strides = array<i32>} : memref<2x784xf32, #tpu.memory_space<vmem>>, vector<2x784xf32>,
    return
  }
  func.func @transform_0(%arg0: i32) -> (i32, i32) {
    %c0_i32 = arith.constant 0 : i32
    %c0_i32_0 = arith.constant 0 : i32
    %c0_i32_1 = arith.constant 0 : i32
    return %c0_i32, %c0_i32_0 : i32, i32
  }
  func.func @transform_1(%arg0: i32) -> (i32, i32) {
    %c0_i32 = arith.constant 0 : i32
    %c0_i32_0 = arith.constant 0 : i32
    %c0_i32_1 = arith.constant 0 : i32
    return %c0_i32, %c0_i32_0 : i32, i32
  }
  func.func @transform_2(%arg0: i32) -> (i32, i32) {
    %c0_i32 = arith.constant 0 : i32
    %c0_i32_0 = arith.constant 0 : i32
    %c0_i32_1 = arith.constant 0 : i32
    return %c0_i32, %c0_i32_0 : i32, i32
  }
  func.func @transform_3(%arg0: i32) -> (i32, i32) {
    %c0_i32 = arith.constant 0 : i32
    %c0_i32_0 = arith.constant 0 : i32
    %c0_i32_1 = arith.constant 0 : i32
    return %c0_i32, %c0_i32_0 : i32, i32
  }
  func.func @transform_4(%arg0: i32) -> (i32, i32) {
    %c0_i32 = arith.constant 0 : i32
    %c0_i32_0 = arith.constant 0 : i32
    %c0_i32_1 = arith.constant 0 : i32
    return %c0_i32, %c0_i32_0 : i32, i32
  }
  func.func @transform_5(%arg0: i32) -> (i32, i32) {
    %c0_i32 = arith.constant 0 : i32
    %c0_i32_0 = arith.constant 0 : i32
    %c0_i32_1 = arith.constant 0 : i32
    return %c0_i32, %c0_i32_0 : i32, i32
  }
}

module attributes {stable_mosaic.version = 11 : i64} {
  func.func @_decode_kernel(%arg0: i32, %arg1: memref<4x4x784xf32, #tpu.memory_space<vmem>>, %arg2: memref<4x784xf32, #tpu.memory_space<vmem>>, %arg3: memref<2x784xf32, #tpu.memory_space<vmem>>, %arg4: memref<2x784xf32, #tpu.memory_space<vmem>>, %arg5: memref<784x1024xbf16, #tpu.memory_space<vmem>>, %arg6: memref<1x1024xf32, #tpu.memory_space<vmem>>, %arg7: memref<1024x1024xbf16, #tpu.memory_space<vmem>>, %arg8: memref<1x1024xf32, #tpu.memory_space<vmem>>, %arg9: memref<1024x128xbf16, #tpu.memory_space<vmem>>, %arg10: memref<1x128xf32, #tpu.memory_space<vmem>>, %arg11: memref<4x784xf32, #tpu.memory_space<vmem>>, %arg12: memref<6x128xf32, #tpu.memory_space<vmem>>, %arg13: memref<6x784xf32, #tpu.memory_space<vmem>>) attributes {dimension_semantics = [#tpu.dimension_semantics<arbitrary>], iteration_bounds = array<i64: 1>, scalar_prefetch = 0 : i64, scratch_operands = 1 : i64, tpu.core_type = #tpu.core_type<tc>, window_params = [{pipeline_mode = #tpu.pipeline_mode<synchronous>, transform_indices = @transform_0, window_bounds = array<i64: 4, 4, 784>}, {pipeline_mode = #tpu.pipeline_mode<synchronous>, transform_indices = @transform_1, window_bounds = array<i64: 4, 784>}, {pipeline_mode = #tpu.pipeline_mode<synchronous>, transform_indices = @transform_2, window_bounds = array<i64: 2, 784>}, {pipeline_mode = #tpu.pipeline_mode<synchronous>, transform_indices = @transform_3, window_bounds = array<i64: 2, 784>}, {pipeline_mode = #tpu.pipeline_mode<synchronous>, transform_indices = @transform_4, window_bounds = array<i64: 784, 1024>}, {pipeline_mode = #tpu.pipeline_mode<synchronous>, transform_indices = @transform_5, window_bounds = array<i64: 1, 1024>}, {pipeline_mode = #tpu.pipeline_mode<synchronous>, transform_indices = @transform_6, window_bounds = array<i64: 1024, 1024>}, {pipeline_mode = #tpu.pipeline_mode<synchronous>, transform_indices = @transform_7, window_bounds = array<i64: 1, 1024>}, {pipeline_mode = #tpu.pipeline_mode<synchronous>, transform_indices = @transform_8, window_bounds = array<i64: 1024, 128>}, {pipeline_mode = #tpu.pipeline_mode<synchronous>, transform_indices = @transform_9, window_bounds = array<i64: 1, 128>}, {pipeline_mode = #tpu.pipeline_mode<synchronous>, transform_indices = @transform_10, window_bounds = array<i64: 4, 784>}, {pipeline_mode = #tpu.pipeline_mode<synchronous>, transform_indices = @transform_11, window_bounds = array<i64: 6, 128>}]} {
    %c0 = arith.constant 0 : index
    %c0_0 = arith.constant 0 : index
    %c0_1 = arith.constant 0 : index
    %0 = vector.load %arg1[%c0, %c0_0, %c0_1] : memref<4x4x784xf32, #tpu.memory_space<vmem>>, vector<4x4x784xf32>
    %cst = arith.constant 2.000000e+00 : f32
    %1 = vector.broadcast %cst : f32 to vector<4x4x784xf32>
    %2 = arith.mulf %0, %1 : vector<4x4x784xf32>
    %cst_2 = arith.constant dense<0xFF800000> : vector<4x4xf32>
    %3 = vector.multi_reduction <maximumf>, %2, %cst_2 [2] : vector<4x4x784xf32> to vector<4x4xf32>
    %4 = vector.shape_cast %3 : vector<4x4xf32> to vector<4x4x1xf32>
    %5 = vector.broadcast %4 : vector<4x4x1xf32> to vector<4x4x784xf32>
    %6 = arith.subf %2, %5 : vector<4x4x784xf32>
    %7 = math.exp %6 : vector<4x4x784xf32>
    %cst_3 = arith.constant dense<0.000000e+00> : vector<4x4xf32>
    %8 = vector.multi_reduction <add>, %7, %cst_3 [2] : vector<4x4x784xf32> to vector<4x4xf32>
    %9 = vector.shape_cast %8 : vector<4x4xf32> to vector<4x4x1xf32>
    %10 = vector.broadcast %9 : vector<4x4x1xf32> to vector<4x4x784xf32>
    %11 = arith.divf %7, %10 : vector<4x4x784xf32>
    %cst_4 = arith.constant dense<0xFF800000> : vector<4x784xf32>
    %12 = vector.multi_reduction <maximumf>, %11, %cst_4 [1] : vector<4x4x784xf32> to vector<4x784xf32>
    %c0_5 = arith.constant 0 : index
    %c0_6 = arith.constant 0 : index
    %13 = vector.load %arg11[%c0_5, %c0_6] : memref<4x784xf32, #tpu.memory_space<vmem>>, vector<4x784xf32>
    tpu.vector_store %arg11[%c0_5, %c0_6], %12 {strides = array<i32>} : memref<4x784xf32, #tpu.memory_space<vmem>>, vector<4x784xf32>,
    %c0_7 = arith.constant 0 : index
    %c0_8 = arith.constant 0 : index
    %14 = vector.load %arg2[%c0_7, %c0_8] : memref<4x784xf32, #tpu.memory_space<vmem>>, vector<4x784xf32>
    %15 = arith.mulf %14, %12 : vector<4x784xf32>
    %c0_9 = arith.constant 0 : index
    %c0_10 = arith.constant 0 : index
    %16 = vector.load %arg13[%c0_9, %c0_10] : memref<6x784xf32, #tpu.memory_space<vmem>>, vector<4x784xf32>
    tpu.vector_store %arg13[%c0_9, %c0_10], %15 {strides = array<i32>} : memref<6x784xf32, #tpu.memory_space<vmem>>, vector<4x784xf32>,
    %c0_11 = arith.constant 0 : index
    %c0_12 = arith.constant 0 : index
    %17 = vector.load %arg3[%c0_11, %c0_12] : memref<2x784xf32, #tpu.memory_space<vmem>>, vector<2x784xf32>
    %c0_13 = arith.constant 0 : index
    %c0_14 = arith.constant 0 : index
    %18 = vector.load %arg4[%c0_13, %c0_14] : memref<2x784xf32, #tpu.memory_space<vmem>>, vector<2x784xf32>
    %19 = arith.mulf %17, %18 : vector<2x784xf32>
    %c4 = arith.constant 4 : index
    %c0_15 = arith.constant 0 : index
    %20 = vector.load %arg13[%c4, %c0_15] : memref<6x784xf32, #tpu.memory_space<vmem>>, vector<2x784xf32>
    tpu.vector_store %arg13[%c4, %c0_15], %19 {strides = array<i32>} : memref<6x784xf32, #tpu.memory_space<vmem>>, vector<2x784xf32>,
    %c0_16 = arith.constant 0 : index
    %c0_17 = arith.constant 0 : index
    %21 = vector.load %arg13[%c0_16, %c0_17] : memref<6x784xf32, #tpu.memory_space<vmem>>, vector<6x784xf32>
    %22 = arith.truncf %21 : vector<6x784xf32> to vector<6x784xbf16>
    %c0_18 = arith.constant 0 : index
    %c0_19 = arith.constant 0 : index
    %23 = vector.load %arg5[%c0_18, %c0_19] : memref<784x1024xbf16, #tpu.memory_space<vmem>>, vector<784x1024xbf16>
    %cst_20 = arith.constant dense<0.000000e+00> : vector<6x1024xf32>
    %24 = tpu.matmul %22, %23, %cst_20 {dimension_numbers = #tpu.dot_dimension_numbers<[1], [0], [0], [1], [0, 0, 1, 1], [], []>} : vector<6x784xbf16>, vector<784x1024xbf16>, vector<6x1024xf32> -> vector<6x1024xf32>
    %c0_21 = arith.constant 0 : index
    %c0_22 = arith.constant 0 : index
    %25 = vector.load %arg6[%c0_21, %c0_22] : memref<1x1024xf32, #tpu.memory_space<vmem>>, vector<1x1024xf32>
    %26 = vector.broadcast %25 : vector<1x1024xf32> to vector<6x1024xf32>
    %27 = arith.addf %24, %26 : vector<6x1024xf32>
    %cst_23 = arith.constant 0.000000e+00 : f32
    %28 = vector.broadcast %cst_23 : f32 to vector<6x1024xf32>
    %29 = arith.maximumf %27, %28 : vector<6x1024xf32>
    %30 = arith.truncf %29 : vector<6x1024xf32> to vector<6x1024xbf16>
    %c0_24 = arith.constant 0 : index
    %c0_25 = arith.constant 0 : index
    %31 = vector.load %arg7[%c0_24, %c0_25] : memref<1024x1024xbf16, #tpu.memory_space<vmem>>, vector<1024x1024xbf16>
    %cst_26 = arith.constant dense<0.000000e+00> : vector<6x1024xf32>
    %32 = tpu.matmul %30, %31, %cst_26 {dimension_numbers = #tpu.dot_dimension_numbers<[1], [0], [0], [1], [0, 0, 1, 1], [], []>} : vector<6x1024xbf16>, vector<1024x1024xbf16>, vector<6x1024xf32> -> vector<6x1024xf32>
    %c0_27 = arith.constant 0 : index
    %c0_28 = arith.constant 0 : index
    %33 = vector.load %arg8[%c0_27, %c0_28] : memref<1x1024xf32, #tpu.memory_space<vmem>>, vector<1x1024xf32>
    %34 = vector.broadcast %33 : vector<1x1024xf32> to vector<6x1024xf32>
    %35 = arith.addf %32, %34 : vector<6x1024xf32>
    %cst_29 = arith.constant 0.000000e+00 : f32
    %36 = vector.broadcast %cst_29 : f32 to vector<6x1024xf32>
    %37 = arith.maximumf %35, %36 : vector<6x1024xf32>
    %38 = arith.truncf %37 : vector<6x1024xf32> to vector<6x1024xbf16>
    %c0_30 = arith.constant 0 : index
    %c0_31 = arith.constant 0 : index
    %39 = vector.load %arg9[%c0_30, %c0_31] : memref<1024x128xbf16, #tpu.memory_space<vmem>>, vector<1024x128xbf16>
    %cst_32 = arith.constant dense<0.000000e+00> : vector<6x128xf32>
    %40 = tpu.matmul %38, %39, %cst_32 {dimension_numbers = #tpu.dot_dimension_numbers<[1], [0], [0], [1], [0, 0, 1, 1], [], []>} : vector<6x1024xbf16>, vector<1024x128xbf16>, vector<6x128xf32> -> vector<6x128xf32>
    %c0_33 = arith.constant 0 : index
    %c0_34 = arith.constant 0 : index
    %41 = vector.load %arg10[%c0_33, %c0_34] : memref<1x128xf32, #tpu.memory_space<vmem>>, vector<1x128xf32>
    %42 = vector.broadcast %41 : vector<1x128xf32> to vector<6x128xf32>
    %43 = arith.addf %40, %42 : vector<6x128xf32>
    %44 = tpu.iota {dimensions = array<i32: 1>} : vector<6x128xi32>
    %c10_i32 = arith.constant 10 : i32
    %45 = vector.broadcast %c10_i32 : i32 to vector<6x128xi32>
    %46 = arith.cmpi slt, %44, %45 : vector<6x128xi32>
    %cst_35 = arith.constant 0xFF800000 : f32
    %47 = vector.broadcast %cst_35 : f32 to vector<6x128xf32>
    %48 = arith.select %46, %43, %47 : vector<6x128xi1>, vector<6x128xf32>
    %cst_36 = arith.constant dense<0xFF800000> : vector<6xf32>
    %49 = vector.multi_reduction <maximumf>, %48, %cst_36 [1] : vector<6x128xf32> to vector<6xf32>
    %50 = vector.shape_cast %49 : vector<6xf32> to vector<6x1xf32>
    %51 = vector.broadcast %50 : vector<6x1xf32> to vector<6x128xf32>
    %52 = arith.subf %48, %51 : vector<6x128xf32>
    %53 = math.exp %52 : vector<6x128xf32>
    %cst_37 = arith.constant dense<0.000000e+00> : vector<6xf32>
    %54 = vector.multi_reduction <add>, %53, %cst_37 [1] : vector<6x128xf32> to vector<6xf32>
    %55 = vector.shape_cast %54 : vector<6xf32> to vector<6x1xf32>
    %56 = math.log %55 : vector<6x1xf32>
    %57 = vector.broadcast %50 : vector<6x1xf32> to vector<6x128xf32>
    %58 = arith.subf %43, %57 : vector<6x128xf32>
    %59 = vector.broadcast %56 : vector<6x1xf32> to vector<6x128xf32>
    %60 = arith.subf %58, %59 : vector<6x128xf32>
    %c0_38 = arith.constant 0 : index
    %c0_39 = arith.constant 0 : index
    %61 = vector.load %arg12[%c0_38, %c0_39] : memref<6x128xf32, #tpu.memory_space<vmem>>, vector<6x128xf32>
    tpu.vector_store %arg12[%c0_38, %c0_39], %60 {strides = array<i32>} : memref<6x128xf32, #tpu.memory_space<vmem>>, vector<6x128xf32>,
    return
  }
  func.func @transform_0(%arg0: i32) -> (i32, i32, i32) {
    %c0_i32 = arith.constant 0 : i32
    %c0_i32_0 = arith.constant 0 : i32
    %c0_i32_1 = arith.constant 0 : i32
    %c0_i32_2 = arith.constant 0 : i32
    return %c0_i32, %c0_i32_0, %c0_i32_1 : i32, i32, i32
  }
  func.func @transform_1(%arg0: i32) -> (i32, i32) {
    %c0_i32 = arith.constant 0 : i32
    %c0_i32_0 = arith.constant 0 : i32
    %c0_i32_1 = arith.constant 0 : i32
    return %c0_i32, %c0_i32_0 : i32, i32
  }
  func.func @transform_2(%arg0: i32) -> (i32, i32) {
    %c0_i32 = arith.constant 0 : i32
    %c0_i32_0 = arith.constant 0 : i32
    %c0_i32_1 = arith.constant 0 : i32
    return %c0_i32, %c0_i32_0 : i32, i32
  }
  func.func @transform_3(%arg0: i32) -> (i32, i32) {
    %c0_i32 = arith.constant 0 : i32
    %c0_i32_0 = arith.constant 0 : i32
    %c0_i32_1 = arith.constant 0 : i32
    return %c0_i32, %c0_i32_0 : i32, i32
  }
  func.func @transform_4(%arg0: i32) -> (i32, i32) {
    %c0_i32 = arith.constant 0 : i32
    %c0_i32_0 = arith.constant 0 : i32
    %c0_i32_1 = arith.constant 0 : i32
    return %c0_i32, %c0_i32_0 : i32, i32
  }
  func.func @transform_5(%arg0: i32) -> (i32, i32) {
    %c0_i32 = arith.constant 0 : i32
    %c0_i32_0 = arith.constant 0 : i32
    %c0_i32_1 = arith.constant 0 : i32
    return %c0_i32, %c0_i32_0 : i32, i32
  }
  func.func @transform_6(%arg0: i32) -> (i32, i32) {
    %c0_i32 = arith.constant 0 : i32
    %c0_i32_0 = arith.constant 0 : i32
    %c0_i32_1 = arith.constant 0 : i32
    return %c0_i32, %c0_i32_0 : i32, i32
  }
  func.func @transform_7(%arg0: i32) -> (i32, i32) {
    %c0_i32 = arith.constant 0 : i32
    %c0_i32_0 = arith.constant 0 : i32
    %c0_i32_1 = arith.constant 0 : i32
    return %c0_i32, %c0_i32_0 : i32, i32
  }
  func.func @transform_8(%arg0: i32) -> (i32, i32) {
    %c0_i32 = arith.constant 0 : i32
    %c0_i32_0 = arith.constant 0 : i32
    %c0_i32_1 = arith.constant 0 : i32
    return %c0_i32, %c0_i32_0 : i32, i32
  }
  func.func @transform_9(%arg0: i32) -> (i32, i32) {
    %c0_i32 = arith.constant 0 : i32
    %c0_i32_0 = arith.constant 0 : i32
    %c0_i32_1 = arith.constant 0 : i32
    return %c0_i32, %c0_i32_0 : i32, i32
  }
  func.func @transform_10(%arg0: i32) -> (i32, i32) {
    %c0_i32 = arith.constant 0 : i32
    %c0_i32_0 = arith.constant 0 : i32
    %c0_i32_1 = arith.constant 0 : i32
    return %c0_i32, %c0_i32_0 : i32, i32
  }
  func.func @transform_11(%arg0: i32) -> (i32, i32) {
    %c0_i32 = arith.constant 0 : i32
    %c0_i32_0 = arith.constant 0 : i32
    %c0_i32_1 = arith.constant 0 : i32
    return %c0_i32, %c0_i32_0 : i32, i32
  }
}

</mosaic_0001>

<bundles_post_ra>
// kernel: custom-call
= control target key start
LH: loop header
LB: loop body
LE: loop exit
PB: predicated region body
PF: predicated region fallthrough
CT: control target
= control target key end

     0   :  { %5 = vsyncpa [#allocation9], 0  ;;  %v1091_v0 = vmov 2147483648   ;;  %v1092_v1 = vmov 2147483647   ;;  %s1217_s0 = inlined_call_operand.vmem [shape: f32[2,784], index: 0, kind: input, shape index: {}]   ;;  %s1218_s1 = inlined_call_operand.hbm [shape: f32[2,4], index: 1, kind: output, shape index: {0}]   ;;  %s1219_s2 = inlined_call_operand.vmem [shape: s32[2,4], index: 2, kind: output, shape index: {1}]  }
   0x1   :  { %7 = vst [vmem:[#allocation12] sm:$0xff] %v1091_v0  ;;  %8 = vst [vmem:[#allocation14] sm:$0xff] %v1092_v1 }
   0x2   :  { %v1029_v2 = vld [vmem:[%s1217_s0 + $0x8] sm:$0x3f]  ;;  %v44_v3 = vlaneseq  ;;  %v27_v4 = vld [vmem:[%s1217_s0] sm:$0xff]  ;;  %v1093_v5 = vmov 2147483648   ;;  %v1094_v6 = vmov 2147483647  }
   0x3   :  { %40 = vst [vmem:[#allocation16 + $0x8] sm:$0x3f] %v1029_v2  ;;  %85 = vst [vmem:[#allocation13] sm:$0xff] %v1093_v5  ;;  %v55_v10 = vsub.s32 2147483647, %v27_v4  ;;  %vm54_vm0 = vcmp.lt.s32.totalorder %v27_v4, 0 }
   0x4   :  { %86 = vst [vmem:[#allocation15] sm:$0xff] %v1094_v6  ;;  %v1123_v7 = vshrl.u32 %v44_v3, 7  ;;  %v45_v8 = vand.u32 127, %v44_v3  ;;  %s1127_s0 = smov 0  }
   0x5   :  { %v56_v13 = vsel %vm54_vm0, %v55_v10, %v27_v4 }
   0x6   :  { %v48_v9 = vshrl.u32 %v1123_v7, 1 }
   0x8   :  { %v50_v11 = vmul.u32 128, %v48_v9 }
   0xa   :  { %v51_v12 = vadd.s32 %v50_v11, %v45_v8  ;;  %v62_v14 = vld [vmem:[#allocation16 + $0x8] sm:$0xff] }
   0xb   :  { %vm63_vm1 = vcmp.lt.s32.totalorder %v62_v14, 0  ;;  %v64_v15 = vsub.s32 2147483647, %v62_v14 }
   0xc   :  { %vm58_vm2 = vcmp.lt.s32.totalorder %v51_v12, 784  ;;  %v66_v16 = vadd.s32 512, %v51_v12  ;;  %80 = vst [vmem:[#allocation17] sm:$0xff] %v51_v12 }
   0xd   :  { %v59_v17 = vsel %vm58_vm2, %v56_v13, 2147483648  ;;  %v65_v18 = vsel %vm63_vm1, %v64_v15, %v62_v14 }
   0xe   :  { %60 = vst [vmem:[#allocation16] sm:$0xff] %v59_v17  ;;  %vm67_vm3 = vcmp.lt.s32.totalorder %v66_v16, 784  ;;  %83 = vst [vmem:[#allocation17 + $0x8] sm:$0xff] %v66_v16 }
   0xf   :  { %v68_v19 = vsel %vm67_vm3, %v65_v18, 2147483648 }
  0x10   :  { %69 = vst [vmem:[#allocation16 + $0x8] sm:$0xff] %v68_v19 }
  0x11 LB: > { %s420_s13 = scalar_lea.vmem [#allocation13], %s1089_s0  ;;  %s422_s14 = scalar_lea.vmem [#allocation15], %s1089_s0  ;;  %s1089_s0 = sphi %s1127_s0, %s93_s0  }
  0x12   : > { %s93_s0 = sadd.s32 1, %s1089_s0  }
  0x13   : > { %v95_v21 = vld [vmem:[#allocation17] sm:$0xff]  ;;  %p90_p2 = scmp.ge.s32.totalorder %s93_s0, 4  }
  0x14   :  { %s1100_s0 = smov (%p90_p2), [#allocation8]  }
  0x15   : > { %v94_v20 = vld [vmem:[#allocation16] sm:$0xff]  ;;  %v100_v23 = vld [vmem:[#allocation17 + $0x8] sm:$0xff] }
  0x16   : > { %vm104_vm6 = vcmp.lt.s32.totalorder %v100_v23, %v95_v21 }
  0x17   : > { %v98_v22 = vld [vmem:[#allocation16 + $0x8] sm:$0xff] }
  0x18   : > { %vm102_vm4 = vcmp.gt.s32.totalorder %v98_v22, %v94_v20  ;;  %vm103_vm5 = vcmp.eq.s32.totalorder %v98_v22, %v94_v20 }
  0x19   : > { %vm105_vm7 = vmand %vm103_vm5, %vm104_vm6 }
  0x1a   : > { %vm106_vm8 = vmor %vm102_vm4, %vm105_vm7 }
  0x1b   : > { %v107_v24 = vsel %vm106_vm8, %v98_v22, %v94_v20  ;;  %v108_v25 = vsel %vm106_vm8, %v100_v23, %v95_v21 }
  0x1c   : > { %v110_v26 = vrot.slane %v107_v24, 2  ;;  %v111_v27 = vrot.slane %v108_v25, 2 }
  0x1e   : > { %vm113_vm9 = vcmp.gt.s32.totalorder %v110_v26, %v107_v24  ;;  %vm114_vm10 = vcmp.eq.s32.totalorder %v110_v26, %v107_v24  ;;  %vm115_vm11 = vcmp.lt.s32.totalorder %v111_v27, %v108_v25 }
  0x1f   : > { %vm116_vm12 = vmand %vm114_vm10, %vm115_vm11 }
  0x20   : > { %vm117_vm13 = vmor %vm113_vm9, %vm116_vm12 }
  0x21   : > { %v118_v28 = vsel %vm117_vm13, %v110_v26, %v107_v24  ;;  %v119_v29 = vsel %vm117_vm13, %v111_v27, %v108_v25 }
  0x22   : > { %v121_v30 = vrot.slane %v118_v28, 2  ;;  %v122_v31 = vrot.slane %v119_v29, 2 }
  0x24   : > { %vm124_vm14 = vcmp.gt.s32.totalorder %v121_v30, %v118_v28  ;;  %vm125_vm15 = vcmp.eq.s32.totalorder %v121_v30, %v118_v28  ;;  %vm126_vm0 = vcmp.lt.s32.totalorder %v122_v31, %v119_v29 }
  0x25   : > { %vm127_vm1 = vmand %vm125_vm15, %vm126_vm0 }
  0x26   : > { %vm128_vm2 = vmor %vm124_vm14, %vm127_vm1 }
  0x27   : > { %v129_v32 = vsel %vm128_vm2, %v121_v30, %v118_v28  ;;  %v130_v33 = vsel %vm128_vm2, %v122_v31, %v119_v29 }
  0x28   : > { %v132_v34 = vrot.slane %v129_v32, 2  ;;  %v133_v35 = vrot.slane %v130_v33, 2 }
  0x2a   : > { %vm135_vm3 = vcmp.gt.s32.totalorder %v132_v34, %v129_v32  ;;  %vm136_vm4 = vcmp.eq.s32.totalorder %v132_v34, %v129_v32  ;;  %vm137_vm5 = vcmp.lt.s32.totalorder %v133_v35, %v130_v33 }
  0x2b   : > { %vm138_vm6 = vmand %vm136_vm4, %vm137_vm5 }
  0x2c   : > { %vm139_vm7 = vmor %vm135_vm3, %vm138_vm6 }
  0x2d   : > { %v141_v36 = vsel %vm139_vm7, %v133_v35, %v130_v33  ;;  %v140_v37 = vsel %vm139_vm7, %v132_v34, %v129_v32 }
  0x2e   : > { %175 = vxpose.xlu1.b32.start [1/16] %v141_v36, 128  ;;  %143 = vxpose.xlu0.b32.start [1/16] %v140_v37, 128 }
  0x32   : > { %176 = vxpose.xlu1.b32.cont [2/16] %v141_v36, 128  ;;  %144 = vxpose.xlu0.b32.cont [2/16] %v140_v37, 128 }
  0x36   : > { %177 = vxpose.xlu1.b32.cont [3/16] %v141_v36, 128  ;;  %145 = vxpose.xlu0.b32.cont [3/16] %v140_v37, 128 }
  0x3a   : > { %178 = vxpose.xlu1.b32.cont [4/16] %v141_v36, 128  ;;  %146 = vxpose.xlu0.b32.cont [4/16] %v140_v37, 128 }
  0x3e   : > { %179 = vxpose.xlu1.b32.cont [5/16] %v141_v36, 128  ;;  %147 = vxpose.xlu0.b32.cont [5/16] %v140_v37, 128 }
  0x42   : > { %180 = vxpose.xlu1.b32.cont [6/16] %v141_v36, 128  ;;  %148 = vxpose.xlu0.b32.cont [6/16] %v140_v37, 128 }
  0x46   : > { %181 = vxpose.xlu1.b32.cont [7/16] %v141_v36, 128  ;;  %149 = vxpose.xlu0.b32.cont [7/16] %v140_v37, 128 }
  0x4a   : > { %182 = vxpose.xlu1.b32.cont [8/16] %v141_v36, 128  ;;  %150 = vxpose.xlu0.b32.cont [8/16] %v140_v37, 128 }
  0x4e   : > { %183 = vxpose.xlu1.b32.cont [9/16] %v141_v36, 128  ;;  %151 = vxpose.xlu0.b32.cont [9/16] %v140_v37, 128 }
  0x52   : > { %184 = vxpose.xlu1.b32.cont [10/16] %v141_v36, 128  ;;  %152 = vxpose.xlu0.b32.cont [10/16] %v140_v37, 128 }
  0x56   : > { %185 = vxpose.xlu1.b32.cont [11/16] %v141_v36, 128  ;;  %153 = vxpose.xlu0.b32.cont [11/16] %v140_v37, 128 }
  0x5a   : > { %186 = vxpose.xlu1.b32.cont [12/16] %v141_v36, 128  ;;  %154 = vxpose.xlu0.b32.cont [12/16] %v140_v37, 128 }
  0x5e   : > { %187 = vxpose.xlu1.b32.cont [13/16] %v141_v36, 128  ;;  %155 = vxpose.xlu0.b32.cont [13/16] %v140_v37, 128 }
  0x62   : > { %188 = vxpose.xlu1.b32.cont [14/16] %v141_v36, 128  ;;  %156 = vxpose.xlu0.b32.cont [14/16] %v140_v37, 128 }
  0x66   : > { %189 = vxpose.xlu1.b32.cont [15/16] %v141_v36, 128  ;;  %157 = vxpose.xlu0.b32.cont [15/16] %v140_v37, 128 }
  0x6a   : > { %190 = vxpose.xlu1.b32.end [16/16] %v141_v36, 128  ;;  %158 = vxpose.xlu0.b32.end [16/16] %v140_v37, 128 }
  0xaa   : > { %v191_v38 = vpop.trf.xlu1  ;;  %v159_v39 = vpop.trf.xlu0 }
  0xae   : > { %v192_v40 = vpop.trf.xlu1  ;;  %v160_v41 = vpop.trf.xlu0 }
  0xaf   : > { %vm211_vm8 = vcmp.lt.s32.totalorder %v192_v40, %v191_v38  ;;  %vm209_vm9 = vcmp.gt.s32.totalorder %v160_v41, %v159_v39  ;;  %vm210_vm10 = vcmp.eq.s32.totalorder %v160_v41, %v159_v39 }
  0xb0   : > { %vm212_vm11 = vmand %vm210_vm10, %vm211_vm8 }
  0xb1   : > { %vm213_vm12 = vmor %vm209_vm9, %vm212_vm11 }
  0xb2   : > { %v214_v42 = vsel %vm213_vm12, %v160_v41, %v159_v39  ;;  %v193_v43 = vpop.trf.xlu1  ;;  %v215_v44 = vsel %vm213_vm12, %v192_v40, %v191_v38  ;;  %v161_v45 = vpop.trf.xlu0 }
  0xb3   : > { %vm220_vm13 = vcmp.lt.s32.totalorder %v193_v43, %v215_v44  ;;  %vm218_vm14 = vcmp.gt.s32.totalorder %v161_v45, %v214_v42  ;;  %vm219_vm15 = vcmp.eq.s32.totalorder %v161_v45, %v214_v42 }
  0xb4   : > { %vm221_vm0 = vmand %vm219_vm15, %vm220_vm13 }
  0xb5   : > { %vm222_vm1 = vmor %vm218_vm14, %vm221_vm0 }
  0xb6   : > { %v223_v46 = vsel %vm222_vm1, %v161_v45, %v214_v42  ;;  %v194_v47 = vpop.trf.xlu1  ;;  %v224_v48 = vsel %vm222_vm1, %v193_v43, %v215_v44  ;;  %v162_v49 = vpop.trf.xlu0 }
  0xb7   : > { %vm229_vm2 = vcmp.lt.s32.totalorder %v194_v47, %v224_v48  ;;  %vm227_vm3 = vcmp.gt.s32.totalorder %v162_v49, %v223_v46  ;;  %vm228_vm4 = vcmp.eq.s32.totalorder %v162_v49, %v223_v46 }
  0xb8   : > { %vm230_vm5 = vmand %vm228_vm4, %vm229_vm2 }
  0xb9   : > { %vm231_vm6 = vmor %vm227_vm3, %vm230_vm5 }
  0xba   : > { %v232_v50 = vsel %vm231_vm6, %v162_v49, %v223_v46  ;;  %v195_v51 = vpop.trf.xlu1  ;;  %v233_v52 = vsel %vm231_vm6, %v194_v47, %v224_v48  ;;  %v163_v53 = vpop.trf.xlu0 }
  0xbb   : > { %vm238_vm7 = vcmp.lt.s32.totalorder %v195_v51, %v233_v52  ;;  %vm236_vm8 = vcmp.gt.s32.totalorder %v163_v53, %v232_v50  ;;  %vm237_vm9 = vcmp.eq.s32.totalorder %v163_v53, %v232_v50 }
  0xbc   : > { %vm239_vm10 = vmand %vm237_vm9, %vm238_vm7 }
  0xbd   : > { %vm240_vm11 = vmor %vm236_vm8, %vm239_vm10 }
  0xbe   : > { %v241_v54 = vsel %vm240_vm11, %v163_v53, %v232_v50  ;;  %v196_v55 = vpop.trf.xlu1  ;;  %v242_v56 = vsel %vm240_vm11, %v195_v51, %v233_v52  ;;  %v164_v57 = vpop.trf.xlu0 }
  0xbf   : > { %vm247_vm12 = vcmp.lt.s32.totalorder %v196_v55, %v242_v56  ;;  %vm245_vm13 = vcmp.gt.s32.totalorder %v164_v57, %v241_v54  ;;  %vm246_vm14 = vcmp.eq.s32.totalorder %v164_v57, %v241_v54 }
  0xc0   : > { %vm248_vm15 = vmand %vm246_vm14, %vm247_vm12 }
  0xc1   : > { %vm249_vm0 = vmor %vm245_vm13, %vm248_vm15 }
  0xc2   : > { %v250_v58 = vsel %vm249_vm0, %v164_v57, %v241_v54  ;;  %v197_v59 = vpop.trf.xlu1  ;;  %v251_v60 = vsel %vm249_vm0, %v196_v55, %v242_v56  ;;  %v165_v61 = vpop.trf.xlu0 }
  0xc3   : > { %vm256_vm1 = vcmp.lt.s32.totalorder %v197_v59, %v251_v60  ;;  %vm254_vm2 = vcmp.gt.s32.totalorder %v165_v61, %v250_v58  ;;  %vm255_vm3 = vcmp.eq.s32.totalorder %v165_v61, %v250_v58 }
  0xc4   : > { %vm257_vm4 = vmand %vm255_vm3, %vm256_vm1 }
  0xc5   : > { %vm258_vm5 = vmor %vm254_vm2, %vm257_vm4 }
  0xc6   : > { %v259_v62 = vsel %vm258_vm5, %v165_v61, %v250_v58  ;;  %v198_v63 = vpop.trf.xlu1  ;;  %v260_v0 = vsel %vm258_vm5, %v197_v59, %v251_v60  ;;  %v166_v1 = vpop.trf.xlu0 }
  0xc7   : > { %vm265_vm6 = vcmp.lt.s32.totalorder %v198_v63, %v260_v0  ;;  %vm263_vm7 = vcmp.gt.s32.totalorder %v166_v1, %v259_v62  ;;  %vm264_vm8 = vcmp.eq.s32.totalorder %v166_v1, %v259_v62 }
  0xc8   : > { %vm266_vm9 = vmand %vm264_vm8, %vm265_vm6 }
  0xc9   : > { %vm267_vm10 = vmor %vm263_vm7, %vm266_vm9 }
  0xca   : > { %v268_v2 = vsel %vm267_vm10, %v166_v1, %v259_v62  ;;  %v199_v4 = vpop.trf.xlu1  ;;  %v269_v5 = vsel %vm267_vm10, %v198_v63, %v260_v0  ;;  %v167_v6 = vpop.trf.xlu0 }
  0xcb   : > { %vm274_vm11 = vcmp.lt.s32.totalorder %v199_v4, %v269_v5  ;;  %vm272_vm12 = vcmp.gt.s32.totalorder %v167_v6, %v268_v2  ;;  %vm273_vm13 = vcmp.eq.s32.totalorder %v167_v6, %v268_v2 }
  0xcc   : > { %vm275_vm14 = vmand %vm273_vm13, %vm274_vm11 }
  0xcd   : > { %vm276_vm15 = vmor %vm272_vm12, %vm275_vm14 }
  0xce   : > { %v277_v8 = vsel %vm276_vm15, %v167_v6, %v268_v2  ;;  %v200_v9 = vpop.trf.xlu1  ;;  %v278_v10 = vsel %vm276_vm15, %v199_v4, %v269_v5  ;;  %v168_v11 = vpop.trf.xlu0  ;;  %v1095_v6 = vmov 2147483648  }
  0xcf   : > { %vm283_vm0 = vcmp.lt.s32.totalorder %v200_v9, %v278_v10  ;;  %vm281_vm1 = vcmp.gt.s32.totalorder %v168_v11, %v277_v8  ;;  %vm282_vm2 = vcmp.eq.s32.totalorder %v168_v11, %v277_v8 }
  0xd0   : > { %vm284_vm3 = vmand %vm282_vm2, %vm283_vm0 }
  0xd1   : > { %vm285_vm4 = vmor %vm281_vm1, %vm284_vm3 }
  0xd2   : > { %v286_v12 = vsel %vm285_vm4, %v168_v11, %v277_v8  ;;  %v201_v13 = vpop.trf.xlu1  ;;  %v287_v14 = vsel %vm285_vm4, %v200_v9, %v278_v10  ;;  %v169_v15 = vpop.trf.xlu0  ;;  %v1096_v8 = vmov 2147483647  }
  0xd3   : > { %vm292_vm5 = vcmp.lt.s32.totalorder %v201_v13, %v287_v14  ;;  %vm290_vm6 = vcmp.gt.s32.totalorder %v169_v15, %v286_v12  ;;  %vm291_vm7 = vcmp.eq.s32.totalorder %v169_v15, %v286_v12 }
  0xd4   : > { %vm293_vm8 = vmand %vm291_vm7, %vm292_vm5 }
  0xd5   : > { %vm294_vm9 = vmor %vm290_vm6, %vm293_vm8 }
  0xd6   : > { %v295_v16 = vsel %vm294_vm9, %v169_v15, %v286_v12  ;;  %v202_v17 = vpop.trf.xlu1  ;;  %v296_v18 = vsel %vm294_vm9, %v201_v13, %v287_v14  ;;  %v170_v19 = vpop.trf.xlu0  ;;  %v518_v13 = vld [vmem:[#allocation12] sm:$0xff] (%p90_p2)  ;;  %v519_v14 = vld [vmem:[#allocation14] sm:$0xff] (%p90_p2)  ;;  %v1097_v15 = vmov (%p90_p2), 839939668  }
  0xd7   : > { %vm301_vm10 = vcmp.lt.s32.totalorder %v202_v17, %v296_v18  ;;  %vm299_vm11 = vcmp.gt.s32.totalorder %v170_v19, %v295_v16  ;;  %vm300_vm12 = vcmp.eq.s32.totalorder %v170_v19, %v295_v16 }
  0xd8   : > { %vm302_vm13 = vmand %vm300_vm12, %vm301_vm10 }
  0xd9   : > { %vm303_vm14 = vmor %vm299_vm11, %vm302_vm13 }
  0xda   : > { %v304_v20 = vsel %vm303_vm14, %v170_v19, %v295_v16  ;;  %v203_v21 = vpop.trf.xlu1  ;;  %v305_v22 = vsel %vm303_vm14, %v202_v17, %v296_v18  ;;  %v171_v23 = vpop.trf.xlu0  ;;  %v543_v16 = vunpack.c.l.s4 (%p90_p2), %v1097_v15  ;;  %v1098_v17 = vmov (%p90_p2), 1417023538  }
  0xdb   : > { %vm310_vm15 = vcmp.lt.s32.totalorder %v203_v21, %v305_v22  ;;  %vm308_vm0 = vcmp.gt.s32.totalorder %v171_v23, %v304_v20  ;;  %vm309_vm1 = vcmp.eq.s32.totalorder %v171_v23, %v304_v20  ;;  %v571_v18 = vunpack.c.l.s4 (%p90_p2), %v1098_v17 }
  0xdc   : > { %vm311_vm2 = vmand %vm309_vm1, %vm310_vm15  ;;  %v544_v19 = vunpack.c.0.s8 (%p90_p2), %v543_v16 }
  0xdd   : > { %vm312_vm3 = vmor %vm308_vm0, %vm311_vm2 }
  0xde   : > { %v313_v24 = vsel %vm312_vm3, %v171_v23, %v304_v20  ;;  %v204_v25 = vpop.trf.xlu1  ;;  %v314_v26 = vsel %vm312_vm3, %v203_v21, %v305_v22  ;;  %v172_v27 = vpop.trf.xlu0  ;;  %v564_v23 = vand.u32 (%p90_p2), 4, %v1123_v7 }
  0xdf   : > { %vm319_vm4 = vcmp.lt.s32.totalorder %v204_v25, %v314_v26  ;;  %vm317_vm5 = vcmp.gt.s32.totalorder %v172_v27, %v313_v24  ;;  %vm318_vm6 = vcmp.eq.s32.totalorder %v172_v27, %v313_v24 }
  0xe0   : > { %vm320_vm7 = vmand %vm318_vm6, %vm319_vm4 }
  0xe1   : > { %vm321_vm8 = vmor %vm317_vm5, %vm320_vm7 }
  0xe2   : > { %v322_v28 = vsel %vm321_vm8, %v172_v27, %v313_v24  ;;  %v205_v29 = vpop.trf.xlu1  ;;  %v323_v30 = vsel %vm321_vm8, %v204_v25, %v314_v26  ;;  %v173_v31 = vpop.trf.xlu0  ;;  %v572_v25 = vunpack.c.0.s8 (%p90_p2), %v571_v18 }
  0xe3   : > { %vm328_vm9 = vcmp.lt.s32.totalorder %v205_v29, %v323_v30  ;;  %vm326_vm10 = vcmp.gt.s32.totalorder %v173_v31, %v322_v28  ;;  %vm327_vm11 = vcmp.eq.s32.totalorder %v173_v31, %v322_v28 }
  0xe4   : > { %vm329_vm12 = vmand %vm327_vm11, %vm328_vm9 }
  0xe5   : > { %vm330_vm13 = vmor %vm326_vm10, %vm329_vm12 }
  0xe6   : > { %v331_v32 = vsel %vm330_vm13, %v173_v31, %v322_v28  ;;  %v206_v33 = vpop.trf.xlu1  ;;  %v332_v34 = vsel %vm330_vm13, %v205_v29, %v323_v30  ;;  %v174_v35 = vpop.trf.xlu0  ;;  %v1099_v31 = vmov (%p90_p2), 1732584193  }
  0xe7   : > { %vm337_vm14 = vcmp.lt.s32.totalorder %v206_v33, %v332_v34  ;;  %vm335_vm15 = vcmp.gt.s32.totalorder %v174_v35, %v331_v32  ;;  %vm336_vm0 = vcmp.eq.s32.totalorder %v174_v35, %v331_v32 }
  0xe8   : > { %vm338_vm1 = vmand %vm336_vm0, %vm337_vm14 }
  0xe9   : > { %vm339_vm2 = vmor %vm335_vm15, %vm338_vm1 }
  0xea   : > { %v340_v36 = vsel %vm339_vm2, %v174_v35, %v331_v32  ;;  %v341_v37 = vsel %vm339_vm2, %v206_v33, %v332_v34  ;;  %v599_v32 = vunpack.c.l.s4 (%p90_p2), %v1099_v31  ;;  %v1152_v33 = vsub.s32 (%p90_p2), %v572_v25, %v1123_v7 }
  0xeb   : > { %v343_v38 = vrot.slane %v340_v36, 1  ;;  %v344_v39 = vrot.slane %v341_v37, 1  ;;  %v592_v34 = vand.u32 (%p90_p2), 2, %v1123_v7 }
  0xed   : > { %vm346_vm3 = vcmp.gt.s32.totalorder %v343_v38, %v340_v36  ;;  %vm347_vm4 = vcmp.eq.s32.totalorder %v343_v38, %v340_v36  ;;  %vm348_vm5 = vcmp.lt.s32.totalorder %v344_v39, %v341_v37 }
  0xee   : > { %vm349_vm6 = vmand %vm347_vm4, %vm348_vm5 }
  0xef   : > { %vm350_vm7 = vmor %vm346_vm3, %vm349_vm6 }
  0xf0   : > { %v351_v40 = vsel %vm350_vm7, %v343_v38, %v340_v36  ;;  %v352_v41 = vsel %vm350_vm7, %v344_v39, %v341_v37  ;;  %v600_v37 = vunpack.c.0.s8 (%p90_p2), %v599_v32 }
  0xf1   : > { %v354_v42 = vrot.slane %v351_v40, 1  ;;  %v355_v43 = vrot.slane %v352_v41, 1 }
  0xf3   : > { %vm357_vm8 = vcmp.gt.s32.totalorder %v354_v42, %v351_v40  ;;  %vm358_vm9 = vcmp.eq.s32.totalorder %v354_v42, %v351_v40  ;;  %vm359_vm10 = vcmp.lt.s32.totalorder %v355_v43, %v352_v41 }
  0xf4   : > { %vm360_vm11 = vmand %vm358_vm9, %vm359_vm10 }
  0xf5   : > { %vm361_vm12 = vmor %vm357_vm8, %vm360_vm11 }
  0xf6   : > { %v362_v44 = vsel %vm361_vm12, %v354_v42, %v351_v40  ;;  %v363_v45 = vsel %vm361_vm12, %v355_v43, %v352_v41  ;;  %v1166_v42 = vsub.s32 (%p90_p2), %v600_v37, %v1123_v7 }
  0xf7   : > { %v365_v46 = vrot.slane %v362_v44, 1  ;;  %v366_v47 = vrot.slane %v363_v45, 1 }
  0xf9   : > { %vm370_vm13 = vcmp.lt.s32.totalorder %v366_v47, %v363_v45  ;;  %vm368_vm14 = vcmp.gt.s32.totalorder %v365_v46, %v362_v44  ;;  %vm369_vm15 = vcmp.eq.s32.totalorder %v365_v46, %v362_v44 }
  0xfa   : > { %vm371_vm0 = vmand %vm369_vm15, %vm370_vm13 }
  0xfb   : > { %vm372_vm1 = vmor %vm368_vm14, %vm371_vm0 }
  0xfc   : > { %v373_v48 = vsel %vm372_vm1, %v365_v46, %v362_v44  ;;  %v374_v49 = vsel %vm372_vm1, %v366_v47, %v363_v45  ;;  %v620_v46 = vand.u32 (%p90_p2), 1, %v1123_v7 }
  0xfd   : > { %v376_v50 = vrot.slane %v373_v48, 1  ;;  %v377_v51 = vrot.slane %v374_v49, 1 }
  0xff   : > { %vm379_vm2 = vcmp.gt.s32.totalorder %v376_v50, %v373_v48  ;;  %vm380_vm3 = vcmp.eq.s32.totalorder %v376_v50, %v373_v48  ;;  %vm381_vm4 = vcmp.lt.s32.totalorder %v377_v51, %v374_v49 }
 0x100   : > { %vm382_vm5 = vmand %vm380_vm3, %vm381_vm4 }
 0x101   : > { %vm383_vm6 = vmor %vm379_vm2, %vm382_vm5 }
 0x102   : > { %v384_v52 = vsel %vm383_vm6, %v376_v50, %v373_v48  ;;  %v385_v53 = vsel %vm383_vm6, %v377_v51, %v374_v49 }
 0x103   : > { %v387_v54 = vrot.slane %v384_v52, 1  ;;  %v388_v55 = vrot.slane %v385_v53, 1 }
 0x105   : > { %vm390_vm7 = vcmp.gt.s32.totalorder %v387_v54, %v384_v52  ;;  %vm391_vm8 = vcmp.eq.s32.totalorder %v387_v54, %v384_v52  ;;  %vm392_vm9 = vcmp.lt.s32.totalorder %v388_v55, %v385_v53 }
 0x106   : > { %vm393_vm10 = vmand %vm391_vm8, %vm392_vm9 }
 0x107   : > { %vm394_vm11 = vmor %vm390_vm7, %vm393_vm10 }
 0x108   : > { %v395_v56 = vsel %vm394_vm11, %v387_v54, %v384_v52  ;;  %v396_v57 = vsel %vm394_vm11, %v388_v55, %v385_v53 }
 0x109   : > { %v398_v58 = vrot.slane %v395_v56, 1  ;;  %v399_v59 = vrot.slane %v396_v57, 1 }
 0x10b   : > { %vm401_vm12 = vcmp.gt.s32.totalorder %v398_v58, %v395_v56  ;;  %vm402_vm13 = vcmp.eq.s32.totalorder %v398_v58, %v395_v56  ;;  %vm403_vm14 = vcmp.lt.s32.totalorder %v399_v59, %v396_v57 }
 0x10c   : > { %vm404_vm15 = vmand %vm402_vm13, %vm403_vm14  ;;  %vm1146_vm13 = vcmp.ne.s32.totalorder (%p90_p2), %v564_v23, 0 }
 0x10d   : > { %vm405_vm0 = vmor %vm401_vm12, %vm404_vm15 }
 0x10e   : > { %v406_v60 = vsel %vm405_vm0, %v398_v58, %v395_v56  ;;  %v407_v61 = vsel %vm405_vm0, %v399_v59, %v396_v57 }
 0x10f   : > { %v409_v62 = vrot.slane %v406_v60, 1  ;;  %v410_v63 = vrot.slane %v407_v61, 1 }
 0x111   : > { %vm412_vm1 = vcmp.gt.s32.totalorder %v409_v62, %v406_v60  ;;  %vm413_vm2 = vcmp.eq.s32.totalorder %v409_v62, %v406_v60  ;;  %vm414_vm3 = vcmp.lt.s32.totalorder %v410_v63, %v407_v61 }
 0x112   : > { %vm415_vm4 = vmand %vm413_vm2, %vm414_vm3 }
 0x113   : > { %vm416_vm5 = vmor %vm412_vm1, %vm415_vm4 }
 0x114   : > { %v418_v0 = vsel %vm416_vm5, %v410_v63, %v407_v61  ;;  %v417_v1 = vsel %vm416_vm5, %v409_v62, %v406_v60 }
 0x115   : > { %425 = vxpose.xlu0.b32.start.end [1/1] (short) (narrow) %v418_v0, 8  ;;  %421 = vst [vmem:[%s420_s13] sm:$0x1] %v417_v1  ;;  %423 = vst [vmem:[%s422_s14] sm:$0x1] %v418_v0  ;;  %s963_s13 = sshll.u32 (%p90_p2), %s1100_s0, 4  ;;  %s964_s13 = int_to_ptr.vmem [resolvable:$true] %s963_s13 }
 0x116   :  { %s1061_s14 = scalar_lea.vmem (%p90_p2), %s964_s13, 32  ;;  %p1066_p4 = scmp.lt.s32.totalorder (%p90_p2), %s964_s13, %s964_s13 }
 0x117   :  { %p1062_p3 = scmp.ne.s32.totalorder (%p90_p2), %s964_s13, %s1061_s14  ;;  %p1067_p5 = scmp.lt.s32.totalorder (%p90_p2), %s1061_s14, %s1061_s14 }
 0x119   :  { %p1068_p6 = por (%p90_p2), %p1067_p5, %p1066_p4 }
 0x11b   :  { %p1069_p7 = pnand (%p90_p2), %p1068_p6, %p1062_p3 }
 0x11c   :  { %v506_v11 = vld [vmem:[#allocation13 + $0x7] ss:$-1 sm:$0xff] (%p90_p2)  ;;  %v512_v12 = vld [vmem:[#allocation15 + $0x7] ss:$-1 sm:$0xff] (%p90_p2) }
 0x11d   :  { %vm524_vm8 = vcmp.gt.s32.totalorder (%p90_p2), %v518_v13, %v506_v11  ;;  %vm525_vm9 = vcmp.eq.s32.totalorder (%p90_p2), %v518_v13, %v506_v11  ;;  %vm526_vm10 = vcmp.lt.s32.totalorder (%p90_p2), %v519_v14, %v512_v12 }
 0x11e   :  { %vm527_vm11 = vmand (%p90_p2), %vm525_vm9, %vm526_vm10  ;;  %vm1159_vm9 = vcmp.ne.s32.totalorder (%p90_p2), %v592_v34, 0 }
 0x11f   :  { %vm528_vm12 = vmor (%p90_p2), %vm524_vm8, %vm527_vm11 }
 0x120   :  { %v529_v20 = vsel (%p90_p2), %vm528_vm12, %v518_v13, %v506_v11  ;;  %v531_v21 = vsel (%p90_p2), %vm528_vm12, %v506_v11, %v518_v13  ;;  %v533_v22 = vsel (%p90_p2), %vm528_vm12, %v519_v14, %v512_v12  ;;  %v535_v24 = vsel (%p90_p2), %vm528_vm12, %v512_v12, %v519_v14 }
 0x191   : > { %v441_v2 = vpop.trf.xlu0 }
 0x192   : > { %v480_v4 = vrot.slane %v441_v2, 1  ;;  %1038 = vpush %v441_v2 }
 0x194   : > { %1040 = vpush %v480_v4 }
 0x1c3   : > { %s1039_s15 = spop %1038 }
 0x1c4   : > { %s458_s16 = sshrl.u32 %s1039_s15, 9  ;;  %s460_s17 = ssub.s32 0, %s1039_s15 }
 0x1c5   : > { %p459_p0 = scmp.lt.s32.totalorder %s1039_s15, 0  ;;  %s1030_s18 = smin.u32 %s1039_s15, %s460_s17 }
 0x1c6   : > { %s462_s19 = sand.u32 511, %s1030_s18   ;;  %s1032_s20 = sshll.u32 %s458_s16, 3 }
 0x1c7   : > { %s463_s21 = ssub.s32 0, %s462_s19  ;;  %s1041_s22 = spop %1040 }
 0x1c8   : > { %s1227_s21 = smov (!%p459_p0, %s463_s21), %s462_s19  ;;  %s484_s26 = ssub.s32 0, %s1041_s22 }
 0x1c9   : > { %s465_s23 = sshrl.u32 %s1227_s21, 7  ;;  %s467_s24 = sand.u32 127, %s1227_s21  }
 0x1ca   : > { %s1031_s25 = sshll.u32 %s465_s23, 8  ;;  %s1034_s28 = smin.u32 %s1041_s22, %s484_s26 }
 0x1cb   : > { %s468_s27 = sadd.s32 %s1031_s25, %s467_s24  ;;  %p483_p1 = scmp.lt.s32.totalorder %s1041_s22, 0 }
 0x1cc   : > { %v470_v5 = vstv %s468_s27  ;;  %s486_s29 = sand.u32 511, %s1034_s28   ;;  %s474_s3 = scalar_lea.vmem [#allocation16], %s1032_s20 }
 0x1cd   : > { %vm472_vm6 = vcmp.eq.s32.totalorder %v44_v3, %v470_v5  ;;  %s487_s30 = ssub.s32 0, %s486_s29  ;;  %s477_s4 = scalar_lea.vmem [#allocation17], %s1032_s20 }
 0x1ce   : > { %475 = vst.msk [vmem:[%s474_s3] sm:$0xff] %vm472_vm6, %v1095_v6  ;;  %478 = vst.msk [vmem:[%s477_s4] sm:$0xff] %vm472_vm6, %v1096_v8  ;;  %s1229_s30 = smov (!%p483_p1, %s487_s30), %s486_s29  ;;  %s482_s5 = sshrl.u32 %s1041_s22, 9 }
 0x1cf   : > { %s489_s6 = sshrl.u32 %s1229_s30, 7  ;;  %s491_s7 = sand.u32 127, %s1229_s30  }
 0x1d0   : > { %s1035_s8 = sshll.u32 %s489_s6, 8  ;;  %s1036_s10 = sshll.u32 %s482_s5, 3 }
 0x1d1   : > { %s492_s9 = sadd.s32 %s1035_s8, %s491_s7  ;;  %s498_s11 = scalar_lea.vmem [#allocation16], %s1036_s10 }
 0x1d2   : > { %v494_v9 = vstv %s492_s9  ;;  %s501_s12 = scalar_lea.vmem [#allocation17], %s1036_s10  ;;  %92 = sbr.rel (!%p90_p2) target bundleno = 17 (0x11), region = 107 }
 0x1d3   : > { %v495_v10 = vadd.s32 128, %v494_v9 }
 0x1d5   : > { %vm496_vm7 = vcmp.eq.s32.totalorder %v44_v3, %v495_v10  ;;  %v1141_v3 = vsub.s32 (%p90_p2), %v544_v19, %v1123_v7 }
 0x1d6   : > { %499 = vst.msk [vmem:[%s498_s11] sm:$0xff] %vm496_vm7, %v1095_v6  ;;  %502 = vst.msk [vmem:[%s501_s12] sm:$0xff] %vm496_vm7, %v1096_v8 }
 0x1d7   :  { %v548_v26 = vrot.slane %v529_v20, %v1141_v3  ;;  %v555_v27 = vrot.slane %v533_v22, %v1141_v3  ;;  %v729_v28 = vrot.slane %v531_v21, %v1141_v3  ;;  %v736_v30 = vrot.slane %v535_v24, %v1141_v3 }
 0x1d9   :  { %vm557_vm14 = vcmp.gt.s32.totalorder %v529_v20, %v548_v26  ;;  %vm558_vm15 = vcmp.eq.s32.totalorder %v529_v20, %v548_v26  ;;  %vm559_vm0 = vcmp.lt.s32.totalorder %v533_v22, %v555_v27  ;;  %vm739_vm2 = vcmp.eq.s32.totalorder %v531_v21, %v729_v28 }
 0x1da   :  { %vm560_vm1 = vmand %vm558_vm15, %vm559_vm0  ;;  %vm740_vm3 = vcmp.lt.s32.totalorder %v535_v24, %v736_v30  ;;  %vm738_vm5 = vcmp.gt.s32.totalorder %v531_v21, %v729_v28 }
 0x1db   :  { %vm561_vm4 = vmor %vm557_vm14, %vm560_vm1 }
 0x1dc   :  { %vm566_vm6 = vmxor %vm561_vm4, %vm1146_vm13 }
 0x1dd   :  { %v567_v35 = vsel %vm566_vm6, %v529_v20, %v548_v26  ;;  %v568_v36 = vsel %vm566_vm6, %v533_v22, %v555_v27  ;;  %vm741_vm7 = vmand %vm739_vm2, %vm740_vm3 }
 0x1de   :  { %v576_v38 = vrot.slane %v567_v35, %v1152_v33  ;;  %v583_v39 = vrot.slane %v568_v36, %v1152_v33  ;;  %vm742_vm8 = vmor %vm738_vm5, %vm741_vm7 }
 0x1df   :  { %vm747_vm10 = vmxor %vm742_vm8, %vm1146_vm13 }
 0x1e0   :  { %vm585_vm11 = vcmp.gt.s32.totalorder %v567_v35, %v576_v38  ;;  %vm586_vm12 = vcmp.eq.s32.totalorder %v567_v35, %v576_v38  ;;  %vm587_vm14 = vcmp.lt.s32.totalorder %v568_v36, %v583_v39  ;;  %v748_v41 = vsel %vm747_vm10, %v531_v21, %v729_v28 }
 0x1e1   :  { %vm588_vm15 = vmand %vm586_vm12, %vm587_vm14  ;;  %v749_v43 = vsel %vm747_vm10, %v535_v24, %v736_v30  ;;  %v757_v44 = vrot.slane %v748_v41, %v1152_v33 }
 0x1e2   :  { %vm589_vm0 = vmor %vm585_vm11, %vm588_vm15  ;;  %v764_v45 = vrot.slane %v749_v43, %v1152_v33  ;;  %vm1175_vm11 = vcmp.ne.s32.totalorder %v620_v46, 0 }
 0x1e3   :  { %vm594_vm1 = vmxor %vm589_vm0, %vm1159_vm9  ;;  %vm766_vm2 = vcmp.gt.s32.totalorder %v748_v41, %v757_v44  ;;  %vm767_vm3 = vcmp.eq.s32.totalorder %v748_v41, %v757_v44 }
 0x1e4   :  { %v595_v47 = vsel %vm594_vm1, %v567_v35, %v576_v38  ;;  %v596_v48 = vsel %vm594_vm1, %v568_v36, %v583_v39  ;;  %vm768_vm4 = vcmp.lt.s32.totalorder %v749_v43, %v764_v45 }
 0x1e5   :  { %v604_v49 = vrot.slane %v595_v47, %v1166_v42  ;;  %v611_v50 = vrot.slane %v596_v48, %v1166_v42  ;;  %vm769_vm5 = vmand %vm767_vm3, %vm768_vm4 }
 0x1e6   :  { %vm770_vm6 = vmor %vm766_vm2, %vm769_vm5 }
 0x1e7   :  { %vm613_vm7 = vcmp.gt.s32.totalorder %v595_v47, %v604_v49  ;;  %vm614_vm8 = vcmp.eq.s32.totalorder %v595_v47, %v604_v49  ;;  %vm615_vm10 = vcmp.lt.s32.totalorder %v596_v48, %v611_v50  ;;  %vm775_vm12 = vmxor %vm770_vm6, %vm1159_vm9 }
 0x1e8   :  { %vm616_vm14 = vmand %vm614_vm8, %vm615_vm10  ;;  %v776_v7 = vsel %vm775_vm12, %v748_v41, %v757_v44  ;;  %v777_v52 = vsel %vm775_vm12, %v749_v43, %v764_v45 }
 0x1e9   :  { %vm617_vm15 = vmor %vm613_vm7, %vm616_vm14  ;;  %v785_v53 = vrot.slane %v776_v7, %v1166_v42  ;;  %v792_v54 = vrot.slane %v777_v52, %v1166_v42 }
 0x1ea   :  { %vm622_vm0 = vmxor %vm617_vm15, %vm1175_vm11 }
 0x1eb   :  { %v623_v55 = vsel %vm622_vm0, %v595_v47, %v604_v49  ;;  %v624_v56 = vsel %vm622_vm0, %v596_v48, %v611_v50  ;;  %vm794_vm1 = vcmp.gt.s32.totalorder %v776_v7, %v785_v53  ;;  %vm795_vm2 = vcmp.eq.s32.totalorder %v776_v7, %v785_v53 }
 0x1ec   :  { %v638_v57 = vrot.slane %v623_v55, %v1141_v3  ;;  %v645_v58 = vrot.slane %v624_v56, %v1141_v3  ;;  %vm796_vm3 = vcmp.lt.s32.totalorder %v777_v52, %v792_v54 }
 0x1ed   :  { %vm797_vm4 = vmand %vm795_vm2, %vm796_vm3 }
 0x1ee   :  { %vm647_vm5 = vcmp.gt.s32.totalorder %v623_v55, %v638_v57  ;;  %vm648_vm6 = vcmp.eq.s32.totalorder %v623_v55, %v638_v57  ;;  %vm649_vm7 = vcmp.lt.s32.totalorder %v624_v56, %v645_v58  ;;  %vm798_vm8 = vmor %vm794_vm1, %vm797_vm4 }
 0x1ef   :  { %vm650_vm10 = vmand %vm648_vm6, %vm649_vm7 }
 0x1f0   :  { %vm651_vm12 = vmor %vm647_vm5, %vm650_vm10 }
 0x1f1   :  { %vm656_vm14 = vmxor %vm651_vm12, %vm1146_vm13 }
 0x1f2   :  { %v657_v59 = vsel %vm656_vm14, %v623_v55, %v638_v57  ;;  %v658_v60 = vsel %vm656_vm14, %v624_v56, %v645_v58  ;;  %vm803_vm15 = vmxor %vm798_vm8, %vm1175_vm11 }
 0x1f3   :  { %v666_v61 = vrot.slane %v657_v59, %v1152_v33  ;;  %v673_v62 = vrot.slane %v658_v60, %v1152_v33  ;;  %v804_v63 = vsel %vm803_vm15, %v776_v7, %v785_v53  ;;  %v805_v0 = vsel %vm803_vm15, %v777_v52, %v792_v54 }
 0x1f4   :  { %v819_v1 = vrot.slane %v804_v63, %v1141_v3  ;;  %v826_v2 = vrot.slane %v805_v0, %v1141_v3 }
 0x1f5   :  { %vm675_vm0 = vcmp.gt.s32.totalorder %v657_v59, %v666_v61  ;;  %vm676_vm1 = vcmp.eq.s32.totalorder %v657_v59, %v666_v61  ;;  %vm677_vm2 = vcmp.lt.s32.totalorder %v658_v60, %v673_v62 }
 0x1f6   :  { %vm678_vm3 = vmand %vm676_vm1, %vm677_vm2  ;;  %vm829_vm4 = vcmp.eq.s32.totalorder %v804_v63, %v819_v1  ;;  %vm830_vm5 = vcmp.lt.s32.totalorder %v805_v0, %v826_v2  ;;  %vm828_vm7 = vcmp.gt.s32.totalorder %v804_v63, %v819_v1 }
 0x1f7   :  { %vm679_vm6 = vmor %vm675_vm0, %vm678_vm3 }
 0x1f8   :  { %vm684_vm8 = vmxor %vm679_vm6, %vm1159_vm9 }
 0x1f9   :  { %v685_v4 = vsel %vm684_vm8, %v657_v59, %v666_v61  ;;  %v686_v5 = vsel %vm684_vm8, %v658_v60, %v673_v62  ;;  %vm831_vm10 = vmand %vm829_vm4, %vm830_vm5 }
 0x1fa   :  { %v694_v6 = vrot.slane %v685_v4, %v1166_v42  ;;  %v701_v8 = vrot.slane %v686_v5, %v1166_v42  ;;  %vm832_vm12 = vmor %vm828_vm7, %vm831_vm10 }
 0x1fb   :  { %vm837_vm14 = vmxor %vm832_vm12, %vm1146_vm13 }
 0x1fc   :  { %vm703_vm15 = vcmp.gt.s32.totalorder %v685_v4, %v694_v6  ;;  %vm704_vm1 = vcmp.eq.s32.totalorder %v685_v4, %v694_v6  ;;  %vm705_vm2 = vcmp.lt.s32.totalorder %v686_v5, %v701_v8  ;;  %v838_v9 = vsel %vm837_vm14, %v804_v63, %v819_v1 }
 0x1fd   :  { %vm706_vm0 = vmand %vm704_vm1, %vm705_vm2  ;;  %v839_v10 = vsel %vm837_vm14, %v805_v0, %v826_v2  ;;  %v847_v11 = vrot.slane %v838_v9, %v1152_v33 }
 0x1fe   :  { %vm707_vm3 = vmor %vm703_vm15, %vm706_vm0  ;;  %v854_v12 = vrot.slane %v839_v10, %v1152_v33 }
 0x1ff   :  { %vm712_vm4 = vmxor %vm707_vm3, %vm1175_vm11  ;;  %vm856_vm5 = vcmp.gt.s32.totalorder %v838_v9, %v847_v11  ;;  %vm857_vm6 = vcmp.eq.s32.totalorder %v838_v9, %v847_v11 }
 0x200   :  { %v713_v13 = vsel %vm712_vm4, %v685_v4, %v694_v6  ;;  %v714_v14 = vsel %vm712_vm4, %v686_v5, %v701_v8  ;;  %vm858_vm7 = vcmp.lt.s32.totalorder %v839_v10, %v854_v12 }
 0x201   :  { %716 = vst [vmem:[#allocation12] sm:$0xff] %v713_v13  ;;  %717 = vst [vmem:[#allocation14] sm:$0xff] %v714_v14 }
 0x202   :  { %vm859_vm13 = vmand %vm857_vm6, %vm858_vm7 }
 0x203   :  { %vm860_vm8 = vmor %vm856_vm5, %vm859_vm13 }
 0x204   :  { %vm865_vm10 = vmxor %vm860_vm8, %vm1159_vm9 }
 0x205   :  { %v866_v15 = vsel %vm865_vm10, %v838_v9, %v847_v11  ;;  %v867_v16 = vsel %vm865_vm10, %v839_v10, %v854_v12 }
 0x206   :  { %v875_v17 = vrot.slane %v866_v15, %v1166_v42  ;;  %v882_v18 = vrot.slane %v867_v16, %v1166_v42 }
 0x208   :  { %vm884_vm12 = vcmp.gt.s32.totalorder %v866_v15, %v875_v17  ;;  %vm885_vm14 = vcmp.eq.s32.totalorder %v866_v15, %v875_v17  ;;  %vm886_vm15 = vcmp.lt.s32.totalorder %v867_v16, %v882_v18  ;;  %v924_v21 = vld [vmem:[#allocation14] sm:$0xff]  ;;  %v900_v22 = vld [vmem:[#allocation12] sm:$0xff] }
 0x209   :  { %vm887_vm1 = vmand %vm885_vm14, %vm886_vm15  ;;  %925 = vxpose.xlu0.b32.start.end [1/1] (short) (narrow) %v924_v21, 8  ;;  %vm901_vm9 = vcmp.lt.s32.totalorder %v900_v22, 0  ;;  %v902_v23 = vsub.s32 2147483647, %v900_v22 }
 0x20a   :  { %vm888_vm2 = vmor %vm884_vm12, %vm887_vm1 }
 0x20b   :  { %vm893_vm0 = vmxor %vm888_vm2, %vm1175_vm11  ;;  %v903_v24 = vsel %vm901_vm9, %v902_v23, %v900_v22 }
 0x20c   :  { %v894_v19 = vsel %vm893_vm0, %v866_v15, %v875_v17  ;;  %v895_v20 = vsel %vm893_vm0, %v867_v16, %v882_v18  ;;  %904 = vst [vmem:[#allocation12] sm:$0xff] %v903_v24 }
 0x20d   :  { %897 = vst [vmem:[#allocation13] sm:$0xff] %v894_v19  ;;  %898 = vst [vmem:[#allocation15] sm:$0xff] %v895_v20  ;;  %906 = vxpose.xlu0.b32.start.end [1/1] (short) (narrow) %v903_v24, 8 }
 0x285   :  { %v926_v3 = vpop.trf.xlu0 }
 0x286   :  { %942 = vst [vmem:[#allocation10] sm:$0xff] %v926_v3 }
 0x289   :  { %v907_v25 = vpop.trf.xlu0 }
 0x28a   :  { %923 = vst [vmem:[#allocation7] sm:$0xff] %v907_v25 }
 0x28d   :  { %v955_v26 = vld [vmem:[#allocation10] sm:$0x3] }
 0x28e   :  { %958 = vst [vmem:[#allocation11] sm:$0x3] %v955_v26 }
 0x291   :  { %v947_v27 = vld [vmem:[#allocation7] sm:$0x3] }
 0x292   :  { %950 = vst [vmem:[#allocation8] sm:$0x3] %v947_v27 }
 0x293   :  { %1072 = shalt.err (!%p1069_p7)
}
 0x294   :  { %966 = dma.vmem_to_hbm [thread:$0]  %s964_s13, 32, %s1218_s1, [#allocation9]  }
 0x295   :  { %v983_v28 = vld [vmem:[#allocation11] sm:$0x3] }
 0x296   :  { %984 = vst [vmem:[%s1219_s2] sm:$0x3] %v983_v28 }
 0x297   :  { %1085 = dma.done.wait [#allocation9], 32  }
 0x298   :  { %1086 = vsyncadd [#allocation9], 4294967264 }
 0x299   :  { %1001 = vsyncpa [#allocation9], 1 }

// kernel: explainer_forward.2
= control target key start
LH: loop header
LB: loop body
LE: loop exit
PB: predicated region body
PF: predicated region fallthrough
CT: control target
= control target key end

     0   :  { %v8356_v32 = vmov 1983009808   ;;  %v29_v34 = vlaneseq  ;;  %vm2466_vm0 = vcmask 130048   ;;  %vm6647_vm1 = vcmask 1041408   ;;  %s11218_s1 = inlined_call_operand.vmem [shape: bf16[784,1024], index: 1, kind: input, shape index: {}]   ;;  %s11219_s0 = inlined_call_operand.vmem [shape: f32[2,784], index: 0, kind: input, shape index: {}]   ;;  %s11220_s2 = inlined_call_operand.vmem [shape: f32[1,1024], index: 2, kind: input, shape index: {}]   ;;  %s11221_s3 = inlined_call_operand.vmem [shape: bf16[1024,784], index: 3, kind: input, shape index: {}]   ;;  %s11222_s4 = inlined_call_operand.vmem [shape: f32[1,784], index: 4, kind: input, shape index: {}]   ;;  %s11223_s5 = inlined_call_operand.vmem [shape: f32[2,784], index: 5, kind: output, shape index: {}]  }
   0x1   :  { %v128_v0 = vld [vmem:[%s11218_s1 + $0x1c0] sm:$0xff]  ;;  %v27_v33 = vunpack.c.l.s4 %v8356_v32  ;;  %vm6656_vm2 = vcmask 123904   ;;  %vm6752_vm3 = vcmask 1043458   ;;  %vm6754_vm5 = vcmask 128004  }
   0x2   :  { %v132_v1 = vld [vmem:[%s11218_s1 + $0x1e0] sm:$0xff]  ;;  %v8454_v44 = vshrl.u32 %v29_v34, 7  ;;  %vm6753_vm4 = vmor %vm6752_vm3, %vm6647_vm1 }
   0x3   :  { %v256_v2 = vld [vmem:[%s11218_s1 + $0x5c0] sm:$0xff]  ;;  %v6818_v3 = vcombine.high %v128_v0, %v132_v1  ;;  %v6817_v5 = vcombine.low %v128_v0, %v132_v1  ;;  %v28_v43 = vunpack.c.0.s8 %v27_v33  ;;  %vm6755_vm6 = vmor %vm6754_vm5, %vm6753_vm4 }
   0x4   :  { %v260_v4 = vld [vmem:[%s11218_s1 + $0x5e0] sm:$0xff] }
   0x5   :  { %v120_v6 = vld [vmem:[%s11218_s1 + $0x180] sm:$0xff]  ;;  %v6946_v8 = vcombine.high %v256_v2, %v260_v4  ;;  %v6945_v9 = vcombine.low %v256_v2, %v260_v4  ;;  %2470 = vmatprep.subr.bf16.mxu0 %v6818_v3  ;;  %v8469_v53 = vsub.s32 %v28_v43, %v8454_v44 }
   0x6   :  { %v124_v7 = vld [vmem:[%s11218_s1 + $0x1a0] sm:$0xff]  ;;  %2471 = vmatpush1.bf16.msra.mxu0 %v6817_v5 }
   0x7   :  { %v6810_v10 = vcombine.high %v120_v6, %v124_v7  ;;  %v248_v11 = vld [vmem:[%s11218_s1 + $0x580] sm:$0xff]  ;;  %2511 = vmatprep.subr.bf16.mxu1 %v6946_v8  ;;  %v6809_v18 = vcombine.low %v120_v6, %v124_v7 }
   0x8   :  { %v252_v12 = vld [vmem:[%s11218_s1 + $0x5a0] sm:$0xff]  ;;  %2512 = vmatpush1.bf16.msra.mxu1 %v6945_v9 }
   0x9   :  { %v112_v13 = vld [vmem:[%s11218_s1 + $0x140] sm:$0xff]  ;;  %v6938_v14 = vcombine.high %v248_v11, %v252_v12  ;;  %2472 = vmatprep.subr.bf16.mxu0 %v6810_v10  ;;  %v6937_v19 = vcombine.low %v248_v11, %v252_v12 }
   0xa   :  { %v116_v15 = vld [vmem:[%s11218_s1 + $0x160] sm:$0xff]  ;;  %2473 = vmatpush1.bf16.msra.mxu0 %v6809_v18 }
   0xb   :  { %v240_v16 = vld [vmem:[%s11218_s1 + $0x540] sm:$0xff]  ;;  %v6802_v20 = vcombine.high %v112_v13, %v116_v15  ;;  %2513 = vmatprep.subr.bf16.mxu1 %v6938_v14  ;;  %v6801_v26 = vcombine.low %v112_v13, %v116_v15 }
   0xc   :  { %v244_v17 = vld [vmem:[%s11218_s1 + $0x560] sm:$0xff]  ;;  %2514 = vmatpush1.bf16.msra.mxu1 %v6937_v19 }
   0xd   :  { %v6930_v21 = vcombine.high %v240_v16, %v244_v17  ;;  %v104_v22 = vld [vmem:[%s11218_s1 + $0x100] sm:$0xff]  ;;  %2474 = vmatprep.subr.bf16.mxu0 %v6802_v20  ;;  %v6929_v27 = vcombine.low %v240_v16, %v244_v17 }
   0xe   :  { %v108_v23 = vld [vmem:[%s11218_s1 + $0x120] sm:$0xff]  ;;  %2475 = vmatpush1.bf16.msra.mxu0 %v6801_v26 }
   0xf   :  { %v232_v24 = vld [vmem:[%s11218_s1 + $0x500] sm:$0xff]  ;;  %v6794_v28 = vcombine.high %v104_v22, %v108_v23  ;;  %2515 = vmatprep.subr.bf16.mxu1 %v6930_v21  ;;  %v6793_v37 = vcombine.low %v104_v22, %v108_v23 }
  0x10   :  { %v236_v25 = vld [vmem:[%s11218_s1 + $0x520] sm:$0xff]  ;;  %2516 = vmatpush1.bf16.msra.mxu1 %v6929_v27 }
  0x11   :  { %v6922_v29 = vcombine.high %v232_v24, %v236_v25  ;;  %v96_v30 = vld [vmem:[%s11218_s1 + $0xc0] sm:$0xff]  ;;  %2476 = vmatprep.subr.bf16.mxu0 %v6794_v28  ;;  %v6921_v38 = vcombine.low %v232_v24, %v236_v25 }
  0x12   :  { %v100_v31 = vld [vmem:[%s11218_s1 + $0xe0] sm:$0xff]  ;;  %2477 = vmatpush1.bf16.msra.mxu0 %v6793_v37 }
  0x13   :  { %v224_v35 = vld [vmem:[%s11218_s1 + $0x4c0] sm:$0xff]  ;;  %v6786_v39 = vcombine.high %v96_v30, %v100_v31  ;;  %2517 = vmatprep.subr.bf16.mxu1 %v6922_v29  ;;  %v6785_v47 = vcombine.low %v96_v30, %v100_v31 }
  0x14   :  { %v228_v36 = vld [vmem:[%s11218_s1 + $0x4e0] sm:$0xff]  ;;  %2518 = vmatpush1.bf16.msra.mxu1 %v6921_v38 }
  0x15   :  { %v6914_v40 = vcombine.high %v224_v35, %v228_v36  ;;  %v88_v41 = vld [vmem:[%s11218_s1 + $0x80] sm:$0xff]  ;;  %2478 = vmatprep.subr.bf16.mxu0 %v6786_v39  ;;  %v6913_v48 = vcombine.low %v224_v35, %v228_v36 }
  0x16   :  { %v92_v42 = vld [vmem:[%s11218_s1 + $0xa0] sm:$0xff]  ;;  %2479 = vmatpush1.bf16.msra.mxu0 %v6785_v47 }
  0x17   :  { %v216_v45 = vld [vmem:[%s11218_s1 + $0x480] sm:$0xff]  ;;  %v6778_v49 = vcombine.high %v88_v41, %v92_v42  ;;  %2519 = vmatprep.subr.bf16.mxu1 %v6914_v40  ;;  %v6777_v56 = vcombine.low %v88_v41, %v92_v42 }
  0x18   :  { %v220_v46 = vld [vmem:[%s11218_s1 + $0x4a0] sm:$0xff]  ;;  %2520 = vmatpush1.bf16.msra.mxu1 %v6913_v48 }
  0x19   :  { %v6906_v50 = vcombine.high %v216_v45, %v220_v46  ;;  %v80_v51 = vld [vmem:[%s11218_s1 + $0x40] sm:$0xff]  ;;  %2480 = vmatprep.subr.bf16.mxu0 %v6778_v49  ;;  %v6905_v57 = vcombine.low %v216_v45, %v220_v46 }
  0x1a   :  { %v84_v52 = vld [vmem:[%s11218_s1 + $0x60] sm:$0xff]  ;;  %2481 = vmatpush1.bf16.msra.mxu0 %v6777_v56 }
  0x1b   :  { %v208_v54 = vld [vmem:[%s11218_s1 + $0x440] sm:$0xff]  ;;  %v6770_v58 = vcombine.high %v80_v51, %v84_v52  ;;  %2521 = vmatprep.subr.bf16.mxu1 %v6906_v50  ;;  %v6769_v3 = vcombine.low %v80_v51, %v84_v52 }
  0x1c   :  { %v212_v55 = vld [vmem:[%s11218_s1 + $0x460] sm:$0xff]  ;;  %2522 = vmatpush1.bf16.msra.mxu1 %v6905_v57 }
  0x1d   :  { %v21_v59 = vld [vmem:[%s11219_s0] sm:$0xff]  ;;  %v6898_v60 = vcombine.high %v208_v54, %v212_v55  ;;  %2482 = vmatprep.subr.bf16.mxu0 %v6770_v58  ;;  %v6897_v5 = vcombine.low %v208_v54, %v212_v55 }
  0x1e   :  { %v72_v61 = vld [vmem:[%s11218_s1] sm:$0xff]  ;;  %v8487_v63 = vrot.slane %v21_v59, %v8469_v53  ;;  %v25_v2 = vcombine.high %v21_v59, %v21_v59  ;;  %2483 = vmatpush1.bf16.msra.mxu0 %v6769_v3 }
  0x1f   :  { %v76_v62 = vld [vmem:[%s11218_s1 + $0x20] sm:$0xff]  ;;  %2523 = vmatprep.subr.bf16.mxu1 %v6898_v60 }
  0x20   :  { %v200_v0 = vld [vmem:[%s11218_s1 + $0x400] sm:$0xff]  ;;  %v40_v4 = vcombine.high %v8487_v63, %v8487_v63  ;;  %v6762_v6 = vcombine.high %v72_v61, %v76_v62  ;;  %v8498_v7 = vrot.slane %v25_v2, %v8469_v53  ;;  %v6761_v15 = vcombine.low %v72_v61, %v76_v62  ;;  %2524 = vmatpush1.bf16.msra.mxu1 %v6897_v5 }
  0x21   :  { %v204_v1 = vld [vmem:[%s11218_s1 + $0x420] sm:$0xff] }
  0x22   :  { %v6890_v8 = vcombine.high %v200_v0, %v204_v1  ;;  %v192_v9 = vld [vmem:[%s11218_s1 + $0x3c0] sm:$0xff]  ;;  %v8506_v11 = vpack.c.bf16 %v40_v4, %v40_v4  ;;  %v41_v14 = vcombine.high %v8498_v7, %v8498_v7  ;;  %2484 = vmatprep.subr.bf16.mxu0 %v6762_v6  ;;  %v6889_v16 = vcombine.low %v200_v0, %v204_v1 }
  0x23   :  { %v196_v10 = vld [vmem:[%s11218_s1 + $0x3e0] sm:$0xff]  ;;  %2485 = vmatpush1.bf16.msra.mxu0 %v6761_v15 }
  0x24   :  { %v320_v12 = vld [vmem:[%s11218_s1 + $0x7c0] sm:$0xff]  ;;  %2502 = vmatprep.mubr.bf16.mxu0 %v8506_v11  ;;  %v6882_v17 = vcombine.high %v192_v9, %v196_v10  ;;  %v8517_v18 = vpack.c.bf16 %v41_v14, %v41_v14  ;;  %2525 = vmatprep.subr.bf16.mxu1 %v6890_v8  ;;  %v6881_v24 = vcombine.low %v192_v9, %v196_v10 }
  0x25   :  { %v324_v13 = vld [vmem:[%s11218_s1 + $0x7e0] sm:$0xff]  ;;  %2526 = vmatpush1.bf16.msra.mxu1 %v6889_v16 }
  0x26   :  { %v7010_v19 = vcombine.high %v320_v12, %v324_v13  ;;  %v184_v20 = vld [vmem:[%s11218_s1 + $0x380] sm:$0xff]  ;;  %2543 = vmatprep.mubr.bf16.mxu1 %v8517_v18  ;;  %2486 = vmatprep.subr.bf16.mxu0 %v6882_v17  ;;  %v7009_v25 = vcombine.low %v320_v12, %v324_v13  ;;  %v22_v17 = vld [vmem:[%s11219_s0 + $0x8] sm:$0x3f] }
  0x27   :  { %v188_v21 = vld [vmem:[%s11218_s1 + $0x3a0] sm:$0xff]  ;;  %2487 = vmatpush2.bf16.msra.mxu0 %v6881_v24 }
  0x28   :  { %v312_v22 = vld [vmem:[%s11218_s1 + $0x780] sm:$0xff]  ;;  %v6874_v26 = vcombine.high %v184_v20, %v188_v21  ;;  %2527 = vmatprep.subr.bf16.mxu1 %v7010_v19  ;;  %v6873_v32 = vcombine.low %v184_v20, %v188_v21 }
  0x29   :  { %v316_v23 = vld [vmem:[%s11218_s1 + $0x7a0] sm:$0xff]  ;;  %2528 = vmatpush2.bf16.msra.mxu1 %v7009_v25 }
  0x2a   :  { %v7002_v27 = vcombine.high %v312_v22, %v316_v23  ;;  %v176_v28 = vld [vmem:[%s11218_s1 + $0x340] sm:$0xff]  ;;  %2488 = vmatprep.subr.bf16.mxu0 %v6874_v26  ;;  %v7001_v33 = vcombine.low %v312_v22, %v316_v23  ;;  %v8620_v23 = vrot.slane %v22_v17, %v8469_v53 }
  0x2b   :  { %v180_v29 = vld [vmem:[%s11218_s1 + $0x360] sm:$0xff]  ;;  %2489 = vmatpush2.bf16.msra.mxu0 %v6873_v32  ;;  %v133_v32 = vld [vmem:[%s11218_s1 + $0x1e8] sm:$0xff] }
  0x2c   :  { %v304_v30 = vld [vmem:[%s11218_s1 + $0x740] sm:$0xff]  ;;  %v6866_v34 = vcombine.high %v176_v28, %v180_v29  ;;  %2529 = vmatprep.subr.bf16.mxu1 %v7002_v27  ;;  %v6865_v40 = vcombine.low %v176_v28, %v180_v29 }
  0x2d   :  { %v308_v31 = vld [vmem:[%s11218_s1 + $0x760] sm:$0xff]  ;;  %2530 = vmatpush2.bf16.msra.mxu1 %v7001_v33  ;;  %v57_v33 = vcombine.high %v8620_v23, %v8620_v23 }
  0x2e   :  { %v6994_v35 = vcombine.high %v304_v30, %v308_v31  ;;  %v168_v36 = vld [vmem:[%s11218_s1 + $0x300] sm:$0xff]  ;;  %2490 = vmatprep.subr.bf16.mxu0 %v6866_v34  ;;  %v6993_v41 = vcombine.low %v304_v30, %v308_v31  ;;  %v8630_v30 = vpack.c.bf16 %v8487_v63, %v8487_v63  ;;  %v129_v31 = vld [vmem:[%s11218_s1 + $0x1c8] sm:$0xff]  ;;  %v42_v34 = vcombine.high %v22_v17, %v22_v17 }
  0x2f   :  { %v172_v37 = vld [vmem:[%s11218_s1 + $0x320] sm:$0xff]  ;;  %2491 = vmatpush2.bf16.msra.mxu0 %v6865_v40 }
  0x30   :  { %v296_v38 = vld [vmem:[%s11218_s1 + $0x700] sm:$0xff]  ;;  %v6858_v42 = vcombine.high %v168_v36, %v172_v37  ;;  %2531 = vmatprep.subr.bf16.mxu1 %v6994_v35  ;;  %v6857_v49 = vcombine.low %v168_v36, %v172_v37  ;;  %v8642_v35 = vpack.c.bf16 %v8498_v7, %v8498_v7 }
  0x31   :  { %v300_v39 = vld [vmem:[%s11218_s1 + $0x720] sm:$0xff]  ;;  %2532 = vmatpush2.bf16.msra.mxu1 %v6993_v41  ;;  %v8651_v41 = vpack.c.bf16 %v57_v33, %v57_v33  ;;  %v85_v33 = vld [vmem:[%s11218_s1 + $0x68] sm:$0xff] }
  0x32   :  { %v6986_v43 = vcombine.high %v296_v38, %v300_v39  ;;  %v160_v45 = vld [vmem:[%s11218_s1 + $0x2c0] sm:$0xff]  ;;  %2492 = vmatprep.subr.bf16.mxu0 %v6858_v42  ;;  %v6985_v50 = vcombine.low %v296_v38, %v300_v39  ;;  %v6820_v38 = vcombine.high %v129_v31, %v133_v32  ;;  %v56_v42 = vrot.slane %v42_v34, %v8469_v53 }
  0x33   :  { %v164_v46 = vld [vmem:[%s11218_s1 + $0x2e0] sm:$0xff]  ;;  %2493 = vmatpush2.bf16.msra.mxu0 %v6857_v49  ;;  %v125_v49 = vld [vmem:[%s11218_s1 + $0x1a8] sm:$0xff] }
  0x34   :  { %v288_v47 = vld [vmem:[%s11218_s1 + $0x6c0] sm:$0xff]  ;;  %v6850_v51 = vcombine.high %v160_v45, %v164_v46  ;;  %2533 = vmatprep.subr.bf16.mxu1 %v6986_v43  ;;  %v6849_v58 = vcombine.low %v160_v45, %v164_v46  ;;  %v8357_v45 = vmov 0  }
  0x35   :  { %v292_v48 = vld [vmem:[%s11218_s1 + $0x6e0] sm:$0xff]  ;;  %2534 = vmatpush2.bf16.msra.mxu1 %v6985_v50 }
  0x36   :  { %v6978_v52 = vcombine.high %v288_v47, %v292_v48  ;;  %v152_v54 = vld [vmem:[%s11218_s1 + $0x280] sm:$0xff]  ;;  %2494 = vmatprep.subr.bf16.mxu0 %v6850_v51  ;;  %v6977_v59 = vcombine.low %v288_v47, %v292_v48  ;;  %v121_v48 = vld [vmem:[%s11218_s1 + $0x188] sm:$0xff]  ;;  %v8669_v51 = vpack.c.bf16 %v56_v42, %v56_v42 }
  0x37   :  { %v156_v55 = vld [vmem:[%s11218_s1 + $0x2a0] sm:$0xff]  ;;  %2495 = vmatpush2.bf16.msra.mxu0 %v6849_v58  ;;  %v113_v58 = vld [vmem:[%s11218_s1 + $0x148] sm:$0xff] }
  0x38   :  { %v280_v56 = vld [vmem:[%s11218_s1 + $0x680] sm:$0xff]  ;;  %v6842_v60 = vcombine.high %v152_v54, %v156_v55  ;;  %2535 = vmatprep.subr.bf16.mxu1 %v6978_v52  ;;  %v6841_v3 = vcombine.low %v152_v54, %v156_v55  ;;  %v6819_v52 = vcombine.low %v129_v31, %v133_v32  ;;  %v6812_v55 = vcombine.high %v121_v48, %v125_v49  ;;  %v81_v32 = vld [vmem:[%s11218_s1 + $0x48] sm:$0xff] }
  0x39   :  { %v284_v57 = vld [vmem:[%s11218_s1 + $0x6a0] sm:$0xff]  ;;  %2536 = vmatpush2.bf16.msra.mxu1 %v6977_v59  ;;  %v117_v59 = vld [vmem:[%s11218_s1 + $0x168] sm:$0xff] }
  0x3a   :  { %v6970_v61 = vcombine.high %v280_v56, %v284_v57  ;;  %v144_v62 = vld [vmem:[%s11218_s1 + $0x240] sm:$0xff]  ;;  %2496 = vmatprep.subr.bf16.mxu0 %v6842_v60  ;;  %v6969_v4 = vcombine.low %v280_v56, %v284_v57 }
  0x3b   :  { %v148_v0 = vld [vmem:[%s11218_s1 + $0x260] sm:$0xff]  ;;  %2497 = vmatpush2.bf16.msra.mxu0 %v6841_v3  ;;  %v105_v3 = vld [vmem:[%s11218_s1 + $0x108] sm:$0xff] }
  0x3c   :  { %v272_v1 = vld [vmem:[%s11218_s1 + $0x640] sm:$0xff]  ;;  %v6834_v5 = vcombine.high %v144_v62, %v148_v0  ;;  %2537 = vmatprep.subr.bf16.mxu1 %v6970_v61  ;;  %v6833_v13 = vcombine.low %v144_v62, %v148_v0  ;;  %v6811_v61 = vcombine.low %v121_v48, %v125_v49  ;;  %v6804_v0 = vcombine.high %v113_v58, %v117_v59 }
  0x3d   :  { %v276_v2 = vld [vmem:[%s11218_s1 + $0x660] sm:$0xff]  ;;  %2538 = vmatpush2.bf16.msra.mxu1 %v6969_v4  ;;  %v109_v4 = vld [vmem:[%s11218_s1 + $0x128] sm:$0xff] }
  0x3e   :  { %v6962_v6 = vcombine.high %v272_v1, %v276_v2  ;;  %v136_v8 = vld [vmem:[%s11218_s1 + $0x200] sm:$0xff]  ;;  %2498 = vmatprep.subr.bf16.mxu0 %v6834_v5  ;;  %v6961_v14 = vcombine.low %v272_v1, %v276_v2 }
  0x3f   :  { %v140_v9 = vld [vmem:[%s11218_s1 + $0x220] sm:$0xff]  ;;  %2499 = vmatpush2.bf16.msra.mxu0 %v6833_v13  ;;  %v97_v13 = vld [vmem:[%s11218_s1 + $0xc8] sm:$0xff] }
  0x40   :  { %v264_v10 = vld [vmem:[%s11218_s1 + $0x600] sm:$0xff]  ;;  %v6826_v15 = vcombine.high %v136_v8, %v140_v9  ;;  %2539 = vmatprep.subr.bf16.mxu1 %v6962_v6  ;;  %v6825_v24 = vcombine.low %v136_v8, %v140_v9  ;;  %v6803_v6 = vcombine.low %v113_v58, %v117_v59  ;;  %v6796_v9 = vcombine.high %v105_v3, %v109_v4 }
  0x41   :  { %v268_v12 = vld [vmem:[%s11218_s1 + $0x620] sm:$0xff]  ;;  %2540 = vmatpush2.bf16.msra.mxu1 %v6961_v14  ;;  %v101_v14 = vld [vmem:[%s11218_s1 + $0xe8] sm:$0xff] }
  0x42   :  { %v6954_v16 = vcombine.high %v264_v10, %v268_v12  ;;  %v384_v19 = vld [vmem:[%s11218_s1 + $0x9c0] sm:$0xff]  ;;  %2500 = vmatprep.subr.bf16.mxu0 %v6826_v15  ;;  %v6953_v25 = vcombine.low %v264_v10, %v268_v12 }
  0x43   :  { %v388_v20 = vld [vmem:[%s11218_s1 + $0x9e0] sm:$0xff]  ;;  %2501 = vmatpush2.bf16.msra.mxu0 %v6825_v24  ;;  %v93_v24 = vld [vmem:[%s11218_s1 + $0xa8] sm:$0xff] }
  0x44   :  { %v456_v21 = vld [vmem:[%s11218_s1 + $0xc00] sm:$0xff]  ;;  %v7074_v26 = vcombine.high %v384_v19, %v388_v20  ;;  %2541 = vmatprep.subr.bf16.mxu1 %v6954_v16  ;;  %v7073_v36 = vcombine.low %v384_v19, %v388_v20  ;;  %v6795_v16 = vcombine.low %v105_v3, %v109_v4  ;;  %v6788_v19 = vcombine.high %v97_v13, %v101_v14 }
  0x45   :  { %v460_v22 = vld [vmem:[%s11218_s1 + $0xc20] sm:$0xff]  ;;  %2542 = vmatpush2.bf16.msra.mxu1 %v6953_v25 }
  0x46   :  { %v7146_v27 = vcombine.high %v456_v21, %v460_v22  ;;  %v376_v28 = vld [vmem:[%s11218_s1 + $0x980] sm:$0xff]  ;;  %2552 = vmatprep.subr.bf16.mxu0 %v7074_v26  ;;  %v7145_v63 = vcombine.low %v456_v21, %v460_v22  ;;  %2503 = vmatmul.mubr.bf16.vlgmr.msra.gmra.mxu0 %v8630_v30  ;;  %v89_v22 = vld [vmem:[%s11218_s1 + $0x88] sm:$0xff]  ;;  %v6787_v26 = vcombine.low %v97_v13, %v101_v14 }
  0x47   :  { %v380_v29 = vld [vmem:[%s11218_s1 + $0x9a0] sm:$0xff]  ;;  %2553 = vmatpush1.bf16.msra.mxu0 %v7073_v36  ;;  %2584 = vmatprep.mubr.bf16.mxu0 %v8651_v41  ;;  %v6779_v36 = vcombine.low %v89_v22, %v93_v24 }
  0x48   :  { %v7066_v37 = vcombine.high %v376_v28, %v380_v29  ;;  %2607 = vmatprep.subr.bf16.mxu1 %v7146_v27  ;;  %v368_v39 = vld [vmem:[%s11218_s1 + $0x940] sm:$0xff]  ;;  %2544 = vmatmul.mubr.bf16.vlgmr.msra.gmra.mxu1 %v8642_v35  ;;  %v7065_v7 = vcombine.low %v376_v28, %v380_v29  ;;  %v6780_v28 = vcombine.high %v89_v22, %v93_v24 }
  0x49   :  { %v372_v40 = vld [vmem:[%s11218_s1 + $0x960] sm:$0xff]  ;;  %2608 = vmatpush1.bf16.msra.mxu1 %v7145_v63  ;;  %2625 = vmatprep.mubr.bf16.mxu1 %v8357_v45 }
  0x4a   :  { %2554 = vmatprep.subr.bf16.mxu0 %v7066_v37  ;;  %v7058_v43 = vcombine.high %v368_v39, %v372_v40  ;;  %2634 = vmatprep.subr.bf16.mxu1 %v6820_v38  ;;  %v360_v46 = vld [vmem:[%s11218_s1 + $0x900] sm:$0xff]  ;;  %v7057_v50 = vcombine.low %v368_v39, %v372_v40  ;;  %v6772_v37 = vcombine.high %v81_v32, %v85_v33  ;;  %v73_v40 = vld [vmem:[%s11218_s1 + $0x8] sm:$0xff] }
  0x4b   :  { %v364_v47 = vld [vmem:[%s11218_s1 + $0x920] sm:$0xff]  ;;  %2555 = vmatpush1.bf16.msra.mxu0 %v7065_v7  ;;  %v77_v7 = vld [vmem:[%s11218_s1 + $0x28] sm:$0xff] }
  0x4c   :  { %2556 = vmatprep.subr.bf16.mxu0 %v7058_v43  ;;  %v7050_v54 = vcombine.high %v360_v46, %v364_v47  ;;  %v352_v56 = vld [vmem:[%s11218_s1 + $0x8c0] sm:$0xff]  ;;  %v7049_v60 = vcombine.low %v360_v46, %v364_v47  ;;  %v6771_v43 = vcombine.low %v81_v32, %v85_v33  ;;  %v6764_v47 = vcombine.high %v73_v40, %v77_v7 }
  0x4d   :  { %v356_v57 = vld [vmem:[%s11218_s1 + $0x8e0] sm:$0xff] }
  0x4e   :  { %v7042_v62 = vcombine.high %v352_v56, %v356_v57  ;;  %v344_v1 = vld [vmem:[%s11218_s1 + $0x880] sm:$0xff]  ;;  %v7041_v5 = vcombine.low %v352_v56, %v356_v57 }
  0x4f   :  { %2557 = vmatpush1.bf16.msra.mxu0 %v7057_v50  ;;  %v348_v2 = vld [vmem:[%s11218_s1 + $0x8a0] sm:$0xff]  ;;  %v193_v50 = vld [vmem:[%s11218_s1 + $0x3c8] sm:$0xff] }
  0x50   :  { %7153 = vmatmul.mubr.msk.bf16.vlgmr.msra.gmra.mxu1 %vm2466_vm0, %v8669_v51  ;;  %2558 = vmatprep.subr.bf16.mxu0 %v7050_v54  ;;  %v7034_v8 = vcombine.high %v344_v1, %v348_v2  ;;  %v336_v10 = vld [vmem:[%s11218_s1 + $0x840] sm:$0xff]  ;;  %v7033_v15 = vcombine.low %v344_v1, %v348_v2 }
  0x51   :  { %2635 = vmatpush1.bf16.msra.mxu1 %v6819_v52  ;;  %2666 = vmatprep.mubr.bf16.mxu1 %v8506_v11  ;;  %v340_v12 = vld [vmem:[%s11218_s1 + $0x860] sm:$0xff]  ;;  %v197_v52 = vld [vmem:[%s11218_s1 + $0x3e8] sm:$0xff] }
  0x52   :  { %2636 = vmatprep.subr.bf16.mxu1 %v6812_v55  ;;  %v7026_v17 = vcombine.high %v336_v10, %v340_v12  ;;  %v328_v20 = vld [vmem:[%s11218_s1 + $0x800] sm:$0xff]  ;;  %v7025_v25 = vcombine.low %v336_v10, %v340_v12  ;;  %v6763_v55 = vcombine.low %v73_v40, %v77_v7  ;;  %v6884_v57 = vcombine.high %v193_v50, %v197_v52  ;;  %v257_v40 = vld [vmem:[%s11218_s1 + $0x5c8] sm:$0xff] }
  0x53   :  { %2559 = vmatpush1.bf16.msra.mxu0 %v7049_v60  ;;  %v332_v21 = vld [vmem:[%s11218_s1 + $0x820] sm:$0xff]  ;;  %v185_v60 = vld [vmem:[%s11218_s1 + $0x388] sm:$0xff] }
  0x54   :  { %2560 = vmatprep.subr.bf16.mxu0 %v7042_v62  ;;  %v7018_v27 = vcombine.high %v328_v20, %v332_v21  ;;  %v448_v29 = vld [vmem:[%s11218_s1 + $0xbc0] sm:$0xff]  ;;  %v7017_v34 = vcombine.low %v328_v20, %v332_v21  ;;  %v261_v7 = vld [vmem:[%s11218_s1 + $0x5e8] sm:$0xff] }
  0x55   :  { %2637 = vmatpush1.bf16.msra.mxu1 %v6811_v61  ;;  %v452_v31 = vld [vmem:[%s11218_s1 + $0xbe0] sm:$0xff]  ;;  %v189_v61 = vld [vmem:[%s11218_s1 + $0x3a8] sm:$0xff] }
  0x56   :  { %2638 = vmatprep.subr.bf16.mxu1 %v6804_v0  ;;  %v7138_v63 = vcombine.high %v448_v29, %v452_v31  ;;  %v440_v38 = vld [vmem:[%s11218_s1 + $0xb80] sm:$0xff]  ;;  %v7137_v42 = vcombine.low %v448_v29, %v452_v31  ;;  %v6883_v0 = vcombine.low %v193_v50, %v197_v52  ;;  %v6876_v2 = vcombine.high %v185_v60, %v189_v61  ;;  %v249_v50 = vld [vmem:[%s11218_s1 + $0x588] sm:$0xff] }
  0x57   :  { %2561 = vmatpush1.bf16.msra.mxu0 %v7041_v5  ;;  %v444_v39 = vld [vmem:[%s11218_s1 + $0xba0] sm:$0xff]  ;;  %v177_v5 = vld [vmem:[%s11218_s1 + $0x348] sm:$0xff] }
  0x58   :  { %2562 = vmatprep.subr.bf16.mxu0 %v7034_v8  ;;  %v7130_v46 = vcombine.high %v440_v38, %v444_v39  ;;  %v432_v48 = vld [vmem:[%s11218_s1 + $0xb40] sm:$0xff]  ;;  %v7129_v54 = vcombine.low %v440_v38, %v444_v39  ;;  %v253_v52 = vld [vmem:[%s11218_s1 + $0x5a8] sm:$0xff] }
  0x59   :  { %2639 = vmatpush1.bf16.msra.mxu1 %v6803_v6  ;;  %v436_v49 = vld [vmem:[%s11218_s1 + $0xb60] sm:$0xff]  ;;  %v181_v6 = vld [vmem:[%s11218_s1 + $0x368] sm:$0xff] }
  0x5a   :  { %2640 = vmatprep.subr.bf16.mxu1 %v6796_v9  ;;  %v7122_v56 = vcombine.high %v432_v48, %v436_v49  ;;  %v424_v58 = vld [vmem:[%s11218_s1 + $0xb00] sm:$0xff]  ;;  %v7121_v62 = vcombine.low %v432_v48, %v436_v49  ;;  %v6875_v9 = vcombine.low %v185_v60, %v189_v61  ;;  %v6868_v12 = vcombine.high %v177_v5, %v181_v6  ;;  %v245_v61 = vld [vmem:[%s11218_s1 + $0x568] sm:$0xff] }
  0x5b   :  { %2563 = vmatpush1.bf16.msra.mxu0 %v7033_v15  ;;  %v428_v59 = vld [vmem:[%s11218_s1 + $0xb20] sm:$0xff]  ;;  %v169_v15 = vld [vmem:[%s11218_s1 + $0x308] sm:$0xff]  ;;  %v6948_v48 = vcombine.high %v257_v40, %v261_v7 }
  0x5c   :  { %2564 = vmatprep.subr.bf16.mxu0 %v7026_v17  ;;  %v7114_v1 = vcombine.high %v424_v58, %v428_v59  ;;  %v416_v3 = vld [vmem:[%s11218_s1 + $0xac0] sm:$0xff]  ;;  %v7113_v8 = vcombine.low %v424_v58, %v428_v59  ;;  %v6940_v59 = vcombine.high %v249_v50, %v253_v52 }
  0x5d   :  { %2641 = vmatpush1.bf16.msra.mxu1 %v6795_v16  ;;  %v420_v4 = vld [vmem:[%s11218_s1 + $0xae0] sm:$0xff]  ;;  %v173_v16 = vld [vmem:[%s11218_s1 + $0x328] sm:$0xff] }
  0x5e   :  { %2642 = vmatprep.subr.bf16.mxu1 %v6788_v19  ;;  %v7106_v10 = vcombine.high %v416_v3, %v420_v4  ;;  %v408_v13 = vld [vmem:[%s11218_s1 + $0xa80] sm:$0xff]  ;;  %v7105_v17 = vcombine.low %v416_v3, %v420_v4  ;;  %v6867_v19 = vcombine.low %v177_v5, %v181_v6  ;;  %v6860_v21 = vcombine.high %v169_v15, %v173_v16  ;;  %v233_v5 = vld [vmem:[%s11218_s1 + $0x508] sm:$0xff] }
  0x5f   :  { %2565 = vmatpush1.bf16.msra.mxu0 %v7025_v25  ;;  %v412_v14 = vld [vmem:[%s11218_s1 + $0xaa0] sm:$0xff]  ;;  %v161_v25 = vld [vmem:[%s11218_s1 + $0x2c8] sm:$0xff] }
  0x60   :  { %2566 = vmatprep.subr.bf16.mxu0 %v7018_v27  ;;  %v7098_v20 = vcombine.high %v408_v13, %v412_v14  ;;  %v400_v22 = vld [vmem:[%s11218_s1 + $0xa40] sm:$0xff]  ;;  %v7097_v27 = vcombine.low %v408_v13, %v412_v14  ;;  %v237_v6 = vld [vmem:[%s11218_s1 + $0x528] sm:$0xff] }
  0x61   :  { %2643 = vmatpush1.bf16.msra.mxu1 %v6787_v26  ;;  %v404_v24 = vld [vmem:[%s11218_s1 + $0xa60] sm:$0xff]  ;;  %v165_v26 = vld [vmem:[%s11218_s1 + $0x2e8] sm:$0xff]  ;;  %v6924_v13 = vcombine.high %v233_v5, %v237_v6 }
  0x62   :  { %2644 = vmatprep.subr.bf16.mxu1 %v6780_v28  ;;  %v6859_v28 = vcombine.low %v169_v15, %v173_v16  ;;  %v7090_v29 = vcombine.high %v400_v22, %v404_v24  ;;  %v6852_v31 = vcombine.high %v161_v25, %v165_v26  ;;  %v392_v32 = vld [vmem:[%s11218_s1 + $0xa00] sm:$0xff]  ;;  %v225_v15 = vld [vmem:[%s11218_s1 + $0x4c8] sm:$0xff] }
  0x63   :  { %2567 = vmatpush1.bf16.msra.mxu0 %v7017_v34  ;;  %v396_v33 = vld [vmem:[%s11218_s1 + $0xa20] sm:$0xff]  ;;  %v153_v34 = vld [vmem:[%s11218_s1 + $0x288] sm:$0xff] }
  0x64   :  { %2568 = vmatprep.subr.bf16.mxu0 %v7138_v63  ;;  %v7089_v63 = vcombine.low %v400_v22, %v404_v24  ;;  %v7082_v38 = vcombine.high %v392_v32, %v396_v33  ;;  %v229_v16 = vld [vmem:[%s11218_s1 + $0x4e8] sm:$0xff] }
  0x65   :  { %2645 = vmatpush1.bf16.msra.mxu1 %v6779_v36  ;;  %v157_v36 = vld [vmem:[%s11218_s1 + $0x2a8] sm:$0xff]  ;;  %v6916_v22 = vcombine.high %v225_v15, %v229_v16 }
  0x66   :  { %2646 = vmatprep.subr.bf16.mxu1 %v6772_v37  ;;  %v6851_v37 = vcombine.low %v161_v25, %v165_v26  ;;  %v6844_v39 = vcombine.high %v153_v34, %v157_v36  ;;  %v217_v25 = vld [vmem:[%s11218_s1 + $0x488] sm:$0xff] }
  0x67   :  { %2569 = vmatpush2.bf16.msra.mxu0 %v7137_v42  ;;  %v145_v42 = vld [vmem:[%s11218_s1 + $0x248] sm:$0xff] }
  0x68   :  { %2570 = vmatprep.subr.bf16.mxu0 %v7130_v46  ;;  %v7081_v46 = vcombine.low %v392_v32, %v396_v33  ;;  %v221_v26 = vld [vmem:[%s11218_s1 + $0x4a8] sm:$0xff] }
  0x69   :  { %2647 = vmatpush1.bf16.msra.mxu1 %v6771_v43  ;;  %v149_v43 = vld [vmem:[%s11218_s1 + $0x268] sm:$0xff]  ;;  %v6908_v32 = vcombine.high %v217_v25, %v221_v26 }
  0x6a   :  { %2648 = vmatprep.subr.bf16.mxu1 %v6764_v47  ;;  %v6843_v47 = vcombine.low %v153_v34, %v157_v36  ;;  %v6836_v49 = vcombine.high %v145_v42, %v149_v43  ;;  %v6835_v58 = vcombine.low %v145_v42, %v149_v43  ;;  %v209_v34 = vld [vmem:[%s11218_s1 + $0x448] sm:$0xff] }
  0x6b   :  { %2571 = vmatpush2.bf16.msra.mxu0 %v7129_v54  ;;  %v8838_v54 = vpack.c.bf16 %v8620_v23, %v8620_v23  ;;  %v241_v23 = vld [vmem:[%s11218_s1 + $0x548] sm:$0xff] }
  0x6c   :  { %2572 = vmatprep.subr.bf16.mxu0 %v7122_v56  ;;  %v141_v56 = vld [vmem:[%s11218_s1 + $0x228] sm:$0xff]  ;;  %v6932_v3 = vcombine.high %v241_v23, %v245_v61 }
  0x6d   :  { %2649 = vmatpush1.bf16.msra.mxu1 %v6763_v55  ;;  %v137_v55 = vld [vmem:[%s11218_s1 + $0x208] sm:$0xff] }
  0x6e   :  { %2650 = vmatprep.subr.bf16.mxu1 %v6884_v57  ;;  %v6947_v57 = vcombine.low %v257_v40, %v261_v7  ;;  %v6828_v60 = vcombine.high %v137_v55, %v141_v56  ;;  %v213_v36 = vld [vmem:[%s11218_s1 + $0x468] sm:$0xff] }
  0x6f   :  { %2573 = vmatpush2.bf16.msra.mxu0 %v7121_v62  ;;  %v385_v62 = vld [vmem:[%s11218_s1 + $0x9c8] sm:$0xff]  ;;  %v6900_v40 = vcombine.high %v209_v34, %v213_v36 }
  0x70   :  { %2574 = vmatprep.subr.bf16.mxu0 %v7114_v1  ;;  %v6939_v1 = vcombine.low %v249_v50, %v253_v52  ;;  %v201_v42 = vld [vmem:[%s11218_s1 + $0x408] sm:$0xff] }
  0x71   :  { %2651 = vmatpush2.bf16.msra.mxu1 %v6883_v0  ;;  %v389_v0 = vld [vmem:[%s11218_s1 + $0x9e8] sm:$0xff] }
  0x72   :  { %2652 = vmatprep.subr.bf16.mxu1 %v6876_v2  ;;  %v6827_v2 = vcombine.low %v137_v55, %v141_v56  ;;  %v7076_v4 = vcombine.high %v385_v62, %v389_v0  ;;  %v205_v43 = vld [vmem:[%s11218_s1 + $0x428] sm:$0xff] }
  0x73   :  { %2575 = vmatpush2.bf16.msra.mxu0 %v7113_v8  ;;  %v377_v8 = vld [vmem:[%s11218_s1 + $0x988] sm:$0xff]  ;;  %v6892_v50 = vcombine.high %v201_v42, %v205_v43 }
  0x74   :  { %2576 = vmatprep.subr.bf16.mxu0 %v7106_v10  ;;  %v6931_v10 = vcombine.low %v241_v23, %v245_v61  ;;  %v321_v55 = vld [vmem:[%s11218_s1 + $0x7c8] sm:$0xff] }
  0x75   :  { %2653 = vmatpush2.bf16.msra.mxu1 %v6875_v9  ;;  %v381_v9 = vld [vmem:[%s11218_s1 + $0x9a8] sm:$0xff] }
  0x76   :  { %2654 = vmatprep.subr.bf16.mxu1 %v6868_v12  ;;  %v7075_v12 = vcombine.low %v385_v62, %v389_v0  ;;  %v7068_v14 = vcombine.high %v377_v8, %v381_v9  ;;  %v325_v56 = vld [vmem:[%s11218_s1 + $0x7e8] sm:$0xff] }
  0x77   :  { %2577 = vmatpush2.bf16.msra.mxu0 %v7105_v17  ;;  %v369_v17 = vld [vmem:[%s11218_s1 + $0x948] sm:$0xff]  ;;  %v7012_v23 = vcombine.high %v321_v55, %v325_v56 }
  0x78   :  { %2578 = vmatprep.subr.bf16.mxu0 %v7098_v20  ;;  %v6923_v20 = vcombine.low %v233_v5, %v237_v6  ;;  %v313_v62 = vld [vmem:[%s11218_s1 + $0x788] sm:$0xff] }
  0x79   :  { %2655 = vmatpush2.bf16.msra.mxu1 %v6867_v19  ;;  %v373_v19 = vld [vmem:[%s11218_s1 + $0x968] sm:$0xff] }
  0x7a   :  { %2656 = vmatprep.subr.bf16.mxu1 %v6860_v21  ;;  %v7067_v21 = vcombine.low %v377_v8, %v381_v9  ;;  %v7060_v24 = vcombine.high %v369_v17, %v373_v19  ;;  %v317_v0 = vld [vmem:[%s11218_s1 + $0x7a8] sm:$0xff] }
  0x7b   :  { %2579 = vmatpush2.bf16.msra.mxu0 %v7097_v27  ;;  %v361_v27 = vld [vmem:[%s11218_s1 + $0x908] sm:$0xff]  ;;  %v7004_v5 = vcombine.high %v313_v62, %v317_v0 }
  0x7c   :  { %2580 = vmatprep.subr.bf16.mxu0 %v7090_v29  ;;  %v6915_v29 = vcombine.low %v225_v15, %v229_v16  ;;  %v305_v8 = vld [vmem:[%s11218_s1 + $0x748] sm:$0xff] }
  0x7d   :  { %2657 = vmatpush2.bf16.msra.mxu1 %v6859_v28  ;;  %v365_v28 = vld [vmem:[%s11218_s1 + $0x928] sm:$0xff] }
  0x7e   :  { %2658 = vmatprep.subr.bf16.mxu1 %v6852_v31  ;;  %v7059_v31 = vcombine.low %v369_v17, %v373_v19  ;;  %v7052_v33 = vcombine.high %v361_v27, %v365_v28  ;;  %v309_v9 = vld [vmem:[%s11218_s1 + $0x768] sm:$0xff] }
  0x7f   :  { %2581 = vmatpush2.bf16.msra.mxu0 %v7089_v63  ;;  %v353_v63 = vld [vmem:[%s11218_s1 + $0x8c8] sm:$0xff]  ;;  %v6996_v15 = vcombine.high %v305_v8, %v309_v9 }
  0x80   :  { %2582 = vmatprep.subr.bf16.mxu0 %v7082_v38  ;;  %v6907_v38 = vcombine.low %v217_v25, %v221_v26  ;;  %v297_v17 = vld [vmem:[%s11218_s1 + $0x708] sm:$0xff] }
  0x81   :  { %2659 = vmatpush2.bf16.msra.mxu1 %v6851_v37  ;;  %v357_v37 = vld [vmem:[%s11218_s1 + $0x8e8] sm:$0xff] }
  0x82   :  { %2660 = vmatprep.subr.bf16.mxu1 %v6844_v39  ;;  %v7051_v39 = vcombine.low %v361_v27, %v365_v28  ;;  %v7044_v7 = vcombine.high %v353_v63, %v357_v37  ;;  %v301_v19 = vld [vmem:[%s11218_s1 + $0x728] sm:$0xff] }
  0x83   :  { %2583 = vmatpush2.bf16.msra.mxu0 %v7081_v46  ;;  %v345_v46 = vld [vmem:[%s11218_s1 + $0x888] sm:$0xff]  ;;  %v6988_v25 = vcombine.high %v297_v17, %v301_v19 }
  0x84   :  { %2675 = vmatprep.subr.bf16.mxu0 %v6948_v48  ;;  %v6899_v48 = vcombine.low %v209_v34, %v213_v36  ;;  %v289_v27 = vld [vmem:[%s11218_s1 + $0x6c8] sm:$0xff] }
  0x85   :  { %2661 = vmatpush2.bf16.msra.mxu1 %v6843_v47  ;;  %v349_v47 = vld [vmem:[%s11218_s1 + $0x8a8] sm:$0xff] }
  0x86   :  { %2662 = vmatprep.subr.bf16.mxu1 %v6836_v49  ;;  %2585 = vmatmul.mubr.bf16.vlgmr.msra.gmra.mxu0 %v8838_v54  ;;  %v7043_v49 = vcombine.low %v353_v63, %v357_v37  ;;  %v7036_v52 = vcombine.high %v345_v46, %v349_v47  ;;  %v293_v28 = vld [vmem:[%s11218_s1 + $0x6e8] sm:$0xff] }
  0x87   :  { %2676 = vmatpush1.bf16.msra.mxu0 %v6947_v57  ;;  %2707 = vmatprep.mubr.bf16.mxu0 %v8517_v18  ;;  %v337_v57 = vld [vmem:[%s11218_s1 + $0x848] sm:$0xff]  ;;  %v6980_v34 = vcombine.high %v289_v27, %v293_v28 }
  0x88   :  { %2677 = vmatprep.subr.bf16.mxu0 %v6940_v59  ;;  %v6891_v59 = vcombine.low %v201_v42, %v205_v43  ;;  %v281_v63 = vld [vmem:[%s11218_s1 + $0x688] sm:$0xff] }
  0x89   :  { %2663 = vmatpush2.bf16.msra.mxu1 %v6835_v58  ;;  %v341_v58 = vld [vmem:[%s11218_s1 + $0x868] sm:$0xff] }
  0x8a   :  { %2664 = vmatprep.subr.bf16.mxu1 %v6828_v60  ;;  %v7035_v60 = vcombine.low %v345_v46, %v349_v47  ;;  %v7028_v61 = vcombine.high %v337_v57, %v341_v58  ;;  %v285_v37 = vld [vmem:[%s11218_s1 + $0x6a8] sm:$0xff] }
  0x8b   :  { %2678 = vmatpush1.bf16.msra.mxu0 %v6939_v1  ;;  %v329_v1 = vld [vmem:[%s11218_s1 + $0x808] sm:$0xff]  ;;  %v6972_v42 = vcombine.high %v281_v63, %v285_v37 }
  0x8c   :  { %2679 = vmatprep.subr.bf16.mxu0 %v6932_v3  ;;  %v7011_v3 = vcombine.low %v321_v55, %v325_v56  ;;  %v273_v46 = vld [vmem:[%s11218_s1 + $0x648] sm:$0xff] }
  0x8d   :  { %2665 = vmatpush2.bf16.msra.mxu1 %v6827_v2  ;;  %v333_v2 = vld [vmem:[%s11218_s1 + $0x828] sm:$0xff] }
  0x8e   :  { %2716 = vmatprep.subr.bf16.mxu1 %v7076_v4  ;;  %v7027_v4 = vcombine.low %v337_v57, %v341_v58  ;;  %v7020_v6 = vcombine.high %v329_v1, %v333_v2  ;;  %v277_v47 = vld [vmem:[%s11218_s1 + $0x668] sm:$0xff] }
  0x8f   :  { %2680 = vmatpush1.bf16.msra.mxu0 %v6931_v10  ;;  %v449_v10 = vld [vmem:[%s11218_s1 + $0xbc8] sm:$0xff]  ;;  %v6964_v55 = vcombine.high %v273_v46, %v277_v47 }
  0x90   :  { %2667 = vmatmul.mubr.bf16.vlgmr.msra.gmra.mxu1 %v8630_v30  ;;  %2681 = vmatprep.subr.bf16.mxu0 %v6924_v13  ;;  %v7003_v13 = vcombine.low %v313_v62, %v317_v0  ;;  %v265_v57 = vld [vmem:[%s11218_s1 + $0x608] sm:$0xff] }
  0x91   :  { %2717 = vmatpush1.bf16.msra.mxu1 %v7075_v12  ;;  %2748 = vmatprep.mubr.bf16.mxu1 %v8651_v41  ;;  %v453_v12 = vld [vmem:[%s11218_s1 + $0xbe8] sm:$0xff] }
  0x92   :  { %2718 = vmatprep.subr.bf16.mxu1 %v7068_v14  ;;  %v7019_v14 = vcombine.low %v329_v1, %v333_v2  ;;  %v7140_v16 = vcombine.high %v449_v10, %v453_v12  ;;  %v269_v58 = vld [vmem:[%s11218_s1 + $0x628] sm:$0xff] }
  0x93   :  { %2682 = vmatpush1.bf16.msra.mxu0 %v6923_v20  ;;  %v441_v20 = vld [vmem:[%s11218_s1 + $0xb88] sm:$0xff]  ;;  %v6956_v62 = vcombine.high %v265_v57, %v269_v58 }
  0x94   :  { %2683 = vmatprep.subr.bf16.mxu0 %v6916_v22  ;;  %v6995_v22 = vcombine.low %v305_v8, %v309_v9  ;;  %v457_v1 = vld [vmem:[%s11218_s1 + $0xc08] sm:$0xff] }
  0x95   :  { %2719 = vmatpush1.bf16.msra.mxu1 %v7067_v21  ;;  %v445_v21 = vld [vmem:[%s11218_s1 + $0xba8] sm:$0xff] }
  0x96   :  { %2720 = vmatprep.subr.bf16.mxu1 %v7060_v24  ;;  %v7139_v24 = vcombine.low %v449_v10, %v453_v12  ;;  %v7132_v26 = vcombine.high %v441_v20, %v445_v21  ;;  %v461_v2 = vld [vmem:[%s11218_s1 + $0xc28] sm:$0xff]  ;;  %v130_v10 = vld [vmem:[%s11218_s1 + $0x1d0] sm:$0xff] }
  0x97   :  { %2684 = vmatpush1.bf16.msra.mxu0 %v6915_v29  ;;  %v433_v29 = vld [vmem:[%s11218_s1 + $0xb48] sm:$0xff]  ;;  %v7148_v8 = vcombine.high %v457_v1, %v461_v2  ;;  %v134_v12 = vld [vmem:[%s11218_s1 + $0x1f0] sm:$0xff] }
  0x98   :  { %2685 = vmatprep.subr.bf16.mxu0 %v6908_v32  ;;  %v6987_v32 = vcombine.low %v297_v17, %v301_v19  ;;  %v6822_v17 = vcombine.high %v130_v10, %v134_v12 }
  0x99   :  { %2721 = vmatpush1.bf16.msra.mxu1 %v7059_v31  ;;  %v437_v31 = vld [vmem:[%s11218_s1 + $0xb68] sm:$0xff] }
  0x9a   :  { %2722 = vmatprep.subr.bf16.mxu1 %v7052_v33  ;;  %v7131_v33 = vcombine.low %v441_v20, %v445_v21  ;;  %v7124_v36 = vcombine.high %v433_v29, %v437_v31  ;;  %v258_v20 = vld [vmem:[%s11218_s1 + $0x5d0] sm:$0xff] }
  0x9b   :  { %2686 = vmatpush1.bf16.msra.mxu0 %v6907_v38  ;;  %v425_v38 = vld [vmem:[%s11218_s1 + $0xb08] sm:$0xff]  ;;  %v262_v21 = vld [vmem:[%s11218_s1 + $0x5f0] sm:$0xff] }
  0x9c   :  { %2687 = vmatprep.subr.bf16.mxu0 %v6900_v40  ;;  %v6979_v40 = vcombine.low %v289_v27, %v293_v28  ;;  %v250_v27 = vld [vmem:[%s11218_s1 + $0x590] sm:$0xff] }
  0x9d   :  { %2723 = vmatpush1.bf16.msra.mxu1 %v7051_v39  ;;  %v429_v39 = vld [vmem:[%s11218_s1 + $0xb28] sm:$0xff]  ;;  %v254_v28 = vld [vmem:[%s11218_s1 + $0x5b0] sm:$0xff] }
  0x9e   :  { %2724 = vmatprep.subr.bf16.mxu1 %v7044_v7  ;;  %v7123_v7 = vcombine.low %v433_v29, %v437_v31  ;;  %v7116_v43 = vcombine.high %v425_v38, %v429_v39  ;;  %v6821_v29 = vcombine.low %v130_v10, %v134_v12  ;;  %v6949_v31 = vcombine.low %v258_v20, %v262_v21  ;;  %v210_v10 = vld [vmem:[%s11218_s1 + $0x450] sm:$0xff] }
  0x9f   :  { %2688 = vmatpush1.bf16.msra.mxu0 %v6899_v48  ;;  %v417_v48 = vld [vmem:[%s11218_s1 + $0xac8] sm:$0xff]  ;;  %v214_v12 = vld [vmem:[%s11218_s1 + $0x470] sm:$0xff] }
  0xa0   :  { %2689 = vmatprep.subr.bf16.mxu0 %v6892_v50  ;;  %v6971_v50 = vcombine.low %v281_v63, %v285_v37  ;;  %v242_v63 = vld [vmem:[%s11218_s1 + $0x550] sm:$0xff] }
  0xa1   :  { %2725 = vmatpush1.bf16.msra.mxu1 %v7043_v49  ;;  %v421_v49 = vld [vmem:[%s11218_s1 + $0xae8] sm:$0xff]  ;;  %v246_v37 = vld [vmem:[%s11218_s1 + $0x570] sm:$0xff] }
  0xa2   :  { %2726 = vmatprep.subr.bf16.mxu1 %v7036_v52  ;;  %v7115_v52 = vcombine.low %v425_v38, %v429_v39  ;;  %v7108_v56 = vcombine.high %v417_v48, %v421_v49  ;;  %v6941_v39 = vcombine.low %v250_v27, %v254_v28 }
  0xa3   :  { %2690 = vmatpush1.bf16.msra.mxu0 %v6891_v59  ;;  %v409_v59 = vld [vmem:[%s11218_s1 + $0xa88] sm:$0xff] }
  0xa4   :  { %2691 = vmatprep.subr.bf16.mxu0 %v7012_v23  ;;  %v6963_v23 = vcombine.low %v273_v46, %v277_v47  ;;  %v234_v46 = vld [vmem:[%s11218_s1 + $0x510] sm:$0xff] }
  0xa5   :  { %2727 = vmatpush1.bf16.msra.mxu1 %v7035_v60  ;;  %v413_v60 = vld [vmem:[%s11218_s1 + $0xaa8] sm:$0xff]  ;;  %v238_v47 = vld [vmem:[%s11218_s1 + $0x530] sm:$0xff] }
  0xa6   :  { %2728 = vmatprep.subr.bf16.mxu1 %v7028_v61  ;;  %v7107_v61 = vcombine.low %v417_v48, %v421_v49  ;;  %v7100_v0 = vcombine.high %v409_v59, %v413_v60  ;;  %v6933_v49 = vcombine.low %v242_v63, %v246_v37 }
  0xa7   :  { %2692 = vmatpush2.bf16.msra.mxu0 %v7011_v3  ;;  %v401_v3 = vld [vmem:[%s11218_s1 + $0xa48] sm:$0xff] }
  0xa8   :  { %2693 = vmatprep.subr.bf16.mxu0 %v7004_v5  ;;  %v6955_v5 = vcombine.low %v265_v57, %v269_v58  ;;  %v226_v57 = vld [vmem:[%s11218_s1 + $0x4d0] sm:$0xff] }
  0xa9   :  { %2729 = vmatpush1.bf16.msra.mxu1 %v7027_v4  ;;  %v405_v4 = vld [vmem:[%s11218_s1 + $0xa68] sm:$0xff]  ;;  %v230_v58 = vld [vmem:[%s11218_s1 + $0x4f0] sm:$0xff] }
  0xaa   :  { %2730 = vmatprep.subr.bf16.mxu1 %v7020_v6  ;;  %v7099_v6 = vcombine.low %v409_v59, %v413_v60  ;;  %v7092_v9 = vcombine.high %v401_v3, %v405_v4  ;;  %v6925_v60 = vcombine.low %v234_v46, %v238_v47 }
  0xab   :  { %2694 = vmatpush2.bf16.msra.mxu0 %v7003_v13  ;;  %v393_v13 = vld [vmem:[%s11218_s1 + $0xa08] sm:$0xff] }
  0xac   :  { %2695 = vmatprep.subr.bf16.mxu0 %v6996_v15  ;;  %v7147_v15 = vcombine.low %v457_v1, %v461_v2  ;;  %v218_v1 = vld [vmem:[%s11218_s1 + $0x490] sm:$0xff] }
  0xad   :  { %2731 = vmatpush1.bf16.msra.mxu1 %v7019_v14  ;;  %v397_v14 = vld [vmem:[%s11218_s1 + $0xa28] sm:$0xff]  ;;  %v222_v2 = vld [vmem:[%s11218_s1 + $0x4b0] sm:$0xff] }
  0xae   :  { %2732 = vmatprep.subr.bf16.mxu1 %v7140_v16  ;;  %v7091_v16 = vcombine.low %v401_v3, %v405_v4  ;;  %v7084_v19 = vcombine.high %v393_v13, %v397_v14  ;;  %v6917_v4 = vcombine.low %v226_v57, %v230_v58 }
  0xaf   :  { %2696 = vmatpush2.bf16.msra.mxu0 %v6995_v22  ;;  %v7083_v22 = vcombine.low %v393_v13, %v397_v14  ;;  %v6909_v14 = vcombine.low %v218_v1, %v222_v2 }
  0xb0   :  { %2697 = vmatprep.subr.bf16.mxu0 %v6988_v25  ;;  %v122_v25 = vld [vmem:[%s11218_s1 + $0x190] sm:$0xff] }
  0xb1   :  { %2733 = vmatpush2.bf16.msra.mxu1 %v7139_v24  ;;  %v6950_v24 = vcombine.high %v258_v20, %v262_v21  ;;  %v202_v20 = vld [vmem:[%s11218_s1 + $0x410] sm:$0xff] }
  0xb2   :  { %2734 = vmatprep.subr.bf16.mxu1 %v7132_v26  ;;  %v126_v26 = vld [vmem:[%s11218_s1 + $0x1b0] sm:$0xff] }
  0xb3   :  { %2698 = vmatpush2.bf16.msra.mxu0 %v6987_v32  ;;  %v6814_v32 = vcombine.high %v122_v25, %v126_v26  ;;  %v6813_v38 = vcombine.low %v122_v25, %v126_v26  ;;  %v206_v21 = vld [vmem:[%s11218_s1 + $0x430] sm:$0xff] }
  0xb4   :  { %2699 = vmatprep.subr.bf16.mxu0 %v6980_v34  ;;  %v114_v34 = vld [vmem:[%s11218_s1 + $0x150] sm:$0xff]  ;;  %v6894_v26 = vcombine.high %v202_v20, %v206_v21 }
  0xb5   :  { %2735 = vmatpush2.bf16.msra.mxu1 %v7131_v33  ;;  %v6942_v33 = vcombine.high %v250_v27, %v254_v28  ;;  %v194_v27 = vld [vmem:[%s11218_s1 + $0x3d0] sm:$0xff] }
  0xb6   :  { %2736 = vmatprep.subr.bf16.mxu1 %v7124_v36  ;;  %v118_v36 = vld [vmem:[%s11218_s1 + $0x170] sm:$0xff] }
  0xb7   :  { %2700 = vmatpush2.bf16.msra.mxu0 %v6979_v40  ;;  %v6806_v40 = vcombine.high %v114_v34, %v118_v36  ;;  %v6805_v48 = vcombine.low %v114_v34, %v118_v36  ;;  %v198_v28 = vld [vmem:[%s11218_s1 + $0x3f0] sm:$0xff] }
  0xb8   :  { %2701 = vmatprep.subr.bf16.mxu0 %v6972_v42  ;;  %v106_v42 = vld [vmem:[%s11218_s1 + $0x110] sm:$0xff]  ;;  %v6886_v34 = vcombine.high %v194_v27, %v198_v28 }
  0xb9   :  { %2737 = vmatpush2.bf16.msra.mxu1 %v7123_v7  ;;  %v6934_v7 = vcombine.high %v242_v63, %v246_v37  ;;  %v186_v63 = vld [vmem:[%s11218_s1 + $0x390] sm:$0xff] }
  0xba   :  { %2738 = vmatprep.subr.bf16.mxu1 %v7116_v43  ;;  %v110_v43 = vld [vmem:[%s11218_s1 + $0x130] sm:$0xff] }
  0xbb   :  { %2702 = vmatpush2.bf16.msra.mxu0 %v6971_v50  ;;  %v6798_v50 = vcombine.high %v106_v42, %v110_v43  ;;  %v6797_v59 = vcombine.low %v106_v42, %v110_v43  ;;  %v190_v37 = vld [vmem:[%s11218_s1 + $0x3b0] sm:$0xff] }
  0xbc   :  { %2703 = vmatprep.subr.bf16.mxu0 %v6964_v55  ;;  %v98_v55 = vld [vmem:[%s11218_s1 + $0xd0] sm:$0xff]  ;;  %v6878_v42 = vcombine.high %v186_v63, %v190_v37 }
  0xbd   :  { %2739 = vmatpush2.bf16.msra.mxu1 %v7115_v52  ;;  %v6926_v52 = vcombine.high %v234_v46, %v238_v47  ;;  %v178_v46 = vld [vmem:[%s11218_s1 + $0x350] sm:$0xff] }
  0xbe   :  { %2740 = vmatprep.subr.bf16.mxu1 %v7108_v56  ;;  %v102_v56 = vld [vmem:[%s11218_s1 + $0xf0] sm:$0xff] }
  0xbf   :  { %2704 = vmatpush2.bf16.msra.mxu0 %v6963_v23  ;;  %v6790_v23 = vcombine.high %v98_v55, %v102_v56  ;;  %v6789_v3 = vcombine.low %v98_v55, %v102_v56  ;;  %v182_v47 = vld [vmem:[%s11218_s1 + $0x370] sm:$0xff] }
  0xc0   :  { %2705 = vmatprep.subr.bf16.mxu0 %v6956_v62  ;;  %v90_v62 = vld [vmem:[%s11218_s1 + $0x90] sm:$0xff]  ;;  %v6870_v55 = vcombine.high %v178_v46, %v182_v47 }
  0xc1   :  { %2741 = vmatpush2.bf16.msra.mxu1 %v7107_v61  ;;  %v6918_v61 = vcombine.high %v226_v57, %v230_v58  ;;  %v170_v57 = vld [vmem:[%s11218_s1 + $0x310] sm:$0xff] }
  0xc2   :  { %2742 = vmatprep.subr.bf16.mxu1 %v7100_v0  ;;  %v94_v0 = vld [vmem:[%s11218_s1 + $0xb0] sm:$0xff] }
  0xc3   :  { %2706 = vmatpush2.bf16.msra.mxu0 %v6955_v5  ;;  %v6782_v5 = vcombine.high %v90_v62, %v94_v0  ;;  %v6781_v13 = vcombine.low %v90_v62, %v94_v0  ;;  %v174_v58 = vld [vmem:[%s11218_s1 + $0x330] sm:$0xff] }
  0xc4   :  { %2771 = vmatprep.subr.bf16.mxu0 %v7148_v8  ;;  %v82_v8 = vld [vmem:[%s11218_s1 + $0x50] sm:$0xff]  ;;  %v6862_v62 = vcombine.high %v170_v57, %v174_v58 }
  0xc5   :  { %2743 = vmatpush2.bf16.msra.mxu1 %v7099_v6  ;;  %v6910_v6 = vcombine.high %v218_v1, %v222_v2  ;;  %v162_v1 = vld [vmem:[%s11218_s1 + $0x2d0] sm:$0xff] }
  0xc6   :  { %2744 = vmatprep.subr.bf16.mxu1 %v7092_v9  ;;  %2708 = vmatmul.mubr.bf16.vlgmr.msra.gmra.mxu0 %v8642_v35  ;;  %v86_v9 = vld [vmem:[%s11218_s1 + $0x70] sm:$0xff] }
  0xc7   :  { %2772 = vmatpush1.bf16.msra.mxu0 %v7147_v15  ;;  %2789 = vmatprep.mubr.bf16.mxu0 %v8357_v45  ;;  %v6774_v15 = vcombine.high %v82_v8, %v86_v9  ;;  %v166_v2 = vld [vmem:[%s11218_s1 + $0x2f0] sm:$0xff] }
  0xc8   :  { %2798 = vmatprep.subr.bf16.mxu0 %v6822_v17  ;;  %v74_v17 = vld [vmem:[%s11218_s1 + $0x10] sm:$0xff] }
  0xc9   :  { %2745 = vmatpush2.bf16.msra.mxu1 %v7091_v16  ;;  %v6902_v16 = vcombine.high %v210_v10, %v214_v12 }
  0xca   :  { %2746 = vmatprep.subr.bf16.mxu1 %v7084_v19  ;;  %v78_v19 = vld [vmem:[%s11218_s1 + $0x30] sm:$0xff] }
  0xcb   :  { %v6766_v25 = vcombine.high %v74_v17, %v78_v19 }
  0xcd   :  { %2747 = vmatpush2.bf16.msra.mxu1 %v7083_v22  ;;  %v6773_v22 = vcombine.low %v82_v8, %v86_v9  ;;  %v6854_v8 = vcombine.high %v162_v1, %v166_v2 }
  0xce   :  { %2839 = vmatprep.subr.bf16.mxu1 %v6950_v24  ;;  %7154 = vmatmul.mubr.msk.bf16.vlgmr.msra.gmra.mxu0 %vm2466_vm0, %v8669_v51  ;;  %v6901_v24 = vcombine.low %v210_v10, %v214_v12  ;;  %v154_v10 = vld [vmem:[%s11218_s1 + $0x290] sm:$0xff] }
  0xcf   :  { %2799 = vmatpush1.bf16.msra.mxu0 %v6821_v29  ;;  %2830 = vmatprep.mubr.bf16.mxu0 %v8506_v11  ;;  %v322_v29 = vld [vmem:[%s11218_s1 + $0x7d0] sm:$0xff] }
  0xd0   :  { %2749 = vmatmul.mubr.bf16.vlgmr.msra.gmra.mxu1 %v8838_v54  ;;  %2800 = vmatprep.subr.bf16.mxu0 %v6814_v32  ;;  %v6765_v32 = vcombine.low %v74_v17, %v78_v19  ;;  %v158_v12 = vld [vmem:[%s11218_s1 + $0x2b0] sm:$0xff] }
  0xd1   :  { %2840 = vmatpush1.bf16.msra.mxu1 %v6949_v31  ;;  %2871 = vmatprep.mubr.bf16.mxu1 %v8517_v18  ;;  %v326_v31 = vld [vmem:[%s11218_s1 + $0x7f0] sm:$0xff]  ;;  %v6846_v17 = vcombine.high %v154_v10, %v158_v12 }
  0xd2   :  { %2841 = vmatprep.subr.bf16.mxu1 %v6942_v33  ;;  %v6893_v33 = vcombine.low %v202_v20, %v206_v21  ;;  %v7014_v36 = vcombine.high %v322_v29, %v326_v31  ;;  %v146_v20 = vld [vmem:[%s11218_s1 + $0x250] sm:$0xff] }
  0xd3   :  { %2801 = vmatpush1.bf16.msra.mxu0 %v6813_v38  ;;  %v314_v38 = vld [vmem:[%s11218_s1 + $0x790] sm:$0xff] }
  0xd4   :  { %2802 = vmatprep.subr.bf16.mxu0 %v6806_v40  ;;  %v6885_v40 = vcombine.low %v194_v27, %v198_v28  ;;  %v150_v21 = vld [vmem:[%s11218_s1 + $0x270] sm:$0xff] }
  0xd5   :  { %2842 = vmatpush1.bf16.msra.mxu1 %v6941_v39  ;;  %v318_v39 = vld [vmem:[%s11218_s1 + $0x7b0] sm:$0xff]  ;;  %v6838_v28 = vcombine.high %v146_v20, %v150_v21 }
  0xd6   :  { %2843 = vmatprep.subr.bf16.mxu1 %v6934_v7  ;;  %v7013_v7 = vcombine.low %v322_v29, %v326_v31  ;;  %v7006_v43 = vcombine.high %v314_v38, %v318_v39  ;;  %v464_v29 = vld [vmem:[%s11220_s2] sm:$0xff] }
  0xd7   :  { %2803 = vmatpush1.bf16.msra.mxu0 %v6805_v48  ;;  %v306_v48 = vld [vmem:[%s11218_s1 + $0x750] sm:$0xff] }
  0xd8   :  { %2804 = vmatprep.subr.bf16.mxu0 %v6798_v50  ;;  %v6877_v50 = vcombine.low %v186_v63, %v190_v37  ;;  %v270_v63 = vld [vmem:[%s11218_s1 + $0x630] sm:$0xff]  ;;  %v6837_v37 = vcombine.low %v146_v20, %v150_v21 }
  0xd9   :  { %2844 = vmatpush1.bf16.msra.mxu1 %v6933_v49  ;;  %v310_v49 = vld [vmem:[%s11218_s1 + $0x770] sm:$0xff] }
  0xda   :  { %2845 = vmatprep.subr.bf16.mxu1 %v6926_v52  ;;  %v7005_v52 = vcombine.low %v314_v38, %v318_v39  ;;  %v6998_v56 = vcombine.high %v306_v48, %v310_v49  ;;  %v362_v21 = vld [vmem:[%s11218_s1 + $0x910] sm:$0xff] }
  0xdb   :  { %2805 = vmatpush1.bf16.msra.mxu0 %v6797_v59  ;;  %v298_v59 = vld [vmem:[%s11218_s1 + $0x710] sm:$0xff] }
  0xdc   :  { %2806 = vmatprep.subr.bf16.mxu0 %v6790_v23  ;;  %v6869_v23 = vcombine.low %v178_v46, %v182_v47  ;;  %v390_v46 = vld [vmem:[%s11218_s1 + $0x9f0] sm:$0xff] }
  0xdd   :  { %2846 = vmatpush1.bf16.msra.mxu1 %v6925_v60  ;;  %v302_v60 = vld [vmem:[%s11218_s1 + $0x730] sm:$0xff] }
  0xde   :  { %2847 = vmatprep.subr.bf16.mxu1 %v6918_v61  ;;  %v6997_v61 = vcombine.low %v306_v48, %v310_v49  ;;  %v6990_v0 = vcombine.high %v298_v59, %v302_v60  ;;  %v458_v48 = vld [vmem:[%s11218_s1 + $0xc10] sm:$0xff] }
  0xdf   :  { %2807 = vmatpush1.bf16.msra.mxu0 %v6789_v3  ;;  %v290_v3 = vld [vmem:[%s11218_s1 + $0x6d0] sm:$0xff] }
  0xe0   :  { %2808 = vmatprep.subr.bf16.mxu0 %v6782_v5  ;;  %v6861_v5 = vcombine.low %v170_v57, %v174_v58  ;;  %v462_v49 = vld [vmem:[%s11218_s1 + $0xc30] sm:$0xff] }
  0xe1   :  { %2848 = vmatpush1.bf16.msra.mxu1 %v6917_v4  ;;  %v294_v4 = vld [vmem:[%s11218_s1 + $0x6f0] sm:$0xff] }
  0xe2   :  { %2849 = vmatprep.subr.bf16.mxu1 %v6910_v6  ;;  %v6989_v6 = vcombine.low %v298_v59, %v302_v60  ;;  %v6982_v9 = vcombine.high %v290_v3, %v294_v4 }
  0xe3   :  { %2809 = vmatpush1.bf16.msra.mxu0 %v6781_v13  ;;  %v282_v13 = vld [vmem:[%s11218_s1 + $0x690] sm:$0xff] }
  0xe4   :  { %2810 = vmatprep.subr.bf16.mxu0 %v6774_v15  ;;  %v6853_v15 = vcombine.low %v162_v1, %v166_v2  ;;  %v131_v2 = vld [vmem:[%s11218_s1 + $0x1d8] sm:$0xff] }
  0xe5   :  { %2850 = vmatpush1.bf16.msra.mxu1 %v6909_v14  ;;  %v286_v14 = vld [vmem:[%s11218_s1 + $0x6b0] sm:$0xff] }
  0xe6   :  { %2851 = vmatprep.subr.bf16.mxu1 %v6902_v16  ;;  %v6981_v16 = vcombine.low %v290_v3, %v294_v4  ;;  %v6974_v19 = vcombine.high %v282_v13, %v286_v14  ;;  %v6973_v27 = vcombine.low %v282_v13, %v286_v14  ;;  %v135_v3 = vld [vmem:[%s11218_s1 + $0x1f8] sm:$0xff]  ;;  %v370_v14 = vld [vmem:[%s11218_s1 + $0x950] sm:$0xff] }
  0xe7   :  { %2811 = vmatpush1.bf16.msra.mxu0 %v6773_v22  ;;  %v274_v22 = vld [vmem:[%s11218_s1 + $0x650] sm:$0xff]  ;;  %v6824_v13 = vcombine.high %v131_v2, %v135_v3 }
  0xe8   :  { %2812 = vmatprep.subr.bf16.mxu0 %v6766_v25  ;;  %v6845_v25 = vcombine.low %v154_v10, %v158_v12 }
  0xe9   :  { %2852 = vmatpush1.bf16.msra.mxu1 %v6901_v24  ;;  %v278_v24 = vld [vmem:[%s11218_s1 + $0x670] sm:$0xff] }
  0xea   :  { %2853 = vmatprep.subr.bf16.mxu1 %v6894_v26  ;;  %v468_v26 = vsub.s32 0, %v8454_v44  ;;  %v6966_v31 = vcombine.high %v274_v22, %v278_v24  ;;  %v6965_v39 = vcombine.low %v274_v22, %v278_v24  ;;  %v366_v22 = vld [vmem:[%s11218_s1 + $0x930] sm:$0xff]  ;;  %v123_v24 = vld [vmem:[%s11218_s1 + $0x198] sm:$0xff] }
  0xeb   :  { %2813 = vmatpush1.bf16.msra.mxu0 %v6765_v32  ;;  %v472_v32 = vsub.s32 1, %v8454_v44 }
  0xec   :  { %2814 = vmatprep.subr.bf16.mxu0 %v6886_v34  ;;  %v142_v34 = vld [vmem:[%s11218_s1 + $0x230] sm:$0xff]  ;;  %v469_v38 = vrot.slane %v464_v29, %v468_v26 }
  0xed   :  { %2854 = vmatpush1.bf16.msra.mxu1 %v6893_v33  ;;  %v138_v33 = vld [vmem:[%s11218_s1 + $0x210] sm:$0xff] }
  0xee   :  { %2855 = vmatprep.subr.bf16.mxu1 %v7014_v36  ;;  %v266_v36 = vld [vmem:[%s11218_s1 + $0x610] sm:$0xff] }
  0xef   :  { %2815 = vmatpush2.bf16.msra.mxu0 %v6885_v40  ;;  %v6830_v40 = vcombine.high %v138_v33, %v142_v34  ;;  %v6957_v57 = vcombine.low %v266_v36, %v270_v63 }
  0xf0   :  { %2816 = vmatprep.subr.bf16.mxu0 %v6878_v42  ;;  %v6958_v42 = vcombine.high %v266_v36, %v270_v63 }
  0xf1   :  { %2856 = vmatpush2.bf16.msra.mxu1 %v7013_v7  ;;  %v473_v7 = vrot.slane %v464_v29, %v472_v32  ;;  %v6823_v29 = vcombine.low %v131_v2, %v135_v3  ;;  %v334_v3 = vld [vmem:[%s11218_s1 + $0x830] sm:$0xff] }
  0xf2   :  { %2857 = vmatprep.subr.bf16.mxu1 %v7006_v43  ;;  %v386_v43 = vld [vmem:[%s11218_s1 + $0x9d0] sm:$0xff] }
  0xf3   :  { %2817 = vmatpush2.bf16.msra.mxu0 %v6877_v50  ;;  %v7078_v58 = vcombine.high %v386_v43, %v390_v46 }
  0xf4   :  { %2818 = vmatprep.subr.bf16.mxu0 %v6870_v55  ;;  %v6829_v55 = vcombine.low %v138_v33, %v142_v34  ;;  %v115_v33 = vld [vmem:[%s11218_s1 + $0x158] sm:$0xff]  ;;  %v354_v34 = vld [vmem:[%s11218_s1 + $0x8d0] sm:$0xff] }
  0xf5   :  { %2858 = vmatpush2.bf16.msra.mxu1 %v7005_v52 }
  0xf6   :  { %2859 = vmatprep.subr.bf16.mxu1 %v6998_v56 }
  0xf7   :  { %2819 = vmatpush2.bf16.msra.mxu0 %v6869_v23 }
  0xf8   :  { %2820 = vmatprep.subr.bf16.mxu0 %v6862_v62  ;;  %v378_v62 = vld [vmem:[%s11218_s1 + $0x990] sm:$0xff] }
  0xf9   :  { %2860 = vmatpush2.bf16.msra.mxu1 %v6997_v61  ;;  %v7150_v61 = vcombine.high %v458_v48, %v462_v49 }
  0xfa   :  { %2861 = vmatprep.subr.bf16.mxu1 %v6990_v0  ;;  %v382_v0 = vld [vmem:[%s11218_s1 + $0x9b0] sm:$0xff] }
  0xfb   :  { %2821 = vmatpush2.bf16.msra.mxu0 %v6861_v5  ;;  %v7070_v10 = vcombine.high %v378_v62, %v382_v0 }
  0xfc   :  { %2822 = vmatprep.subr.bf16.mxu0 %v6854_v8 }
  0xfd   :  { %2862 = vmatpush2.bf16.msra.mxu1 %v6989_v6  ;;  %v7077_v6 = vcombine.low %v386_v43, %v390_v46  ;;  %v346_v43 = vld [vmem:[%s11218_s1 + $0x890] sm:$0xff] }
  0xfe   :  { %2863 = vmatprep.subr.bf16.mxu1 %v6982_v9  ;;  %v7149_v9 = vcombine.low %v458_v48, %v462_v49  ;;  %v111_v48 = vld [vmem:[%s11218_s1 + $0x138] sm:$0xff] }
  0xff   :  { %2823 = vmatpush2.bf16.msra.mxu0 %v6853_v15  ;;  %v374_v15 = vld [vmem:[%s11218_s1 + $0x970] sm:$0xff] }
 0x100   :  { %2824 = vmatprep.subr.bf16.mxu0 %v6846_v17  ;;  %v7069_v17 = vcombine.low %v378_v62, %v382_v0  ;;  %v91_v62 = vld [vmem:[%s11218_s1 + $0x98] sm:$0xff] }
 0x101   :  { %2864 = vmatpush2.bf16.msra.mxu1 %v6981_v16  ;;  %v95_v0 = vld [vmem:[%s11218_s1 + $0xb8] sm:$0xff] }
 0x102   :  { %2865 = vmatprep.subr.bf16.mxu1 %v6974_v19  ;;  %v7062_v19 = vcombine.high %v370_v14, %v374_v15 }
 0x103   :  { %2825 = vmatpush2.bf16.msra.mxu0 %v6845_v25  ;;  %v127_v25 = vld [vmem:[%s11218_s1 + $0x1b8] sm:$0xff] }
 0x104   :  { %2826 = vmatprep.subr.bf16.mxu0 %v6838_v28  ;;  %v7061_v28 = vcombine.low %v370_v14, %v374_v15  ;;  %v6816_v63 = vcombine.high %v123_v24, %v127_v25  ;;  %v454_v14 = vld [vmem:[%s11218_s1 + $0xbf0] sm:$0xff] }
 0x105   :  { %2866 = vmatpush2.bf16.msra.mxu1 %v6973_v27 }
 0x106   :  { %2867 = vmatprep.subr.bf16.mxu1 %v6966_v31  ;;  %v2504_v47 = vpop.f32.mrf.mxu0  ;;  %v7054_v31 = vcombine.high %v362_v21, %v366_v22 }
 0x107   :  { %v2505_v50 = vadd.f32 %v2504_v47, %v469_v38  ;;  %2827 = vmatpush2.bf16.msra.mxu0 %v6837_v37  ;;  %v358_v37 = vld [vmem:[%s11218_s1 + $0x8f0] sm:$0xff]  ;;  %v119_v38 = vld [vmem:[%s11218_s1 + $0x178] sm:$0xff] }
 0x108   :  { %v2545_v52 = vpop.f32.mrf.mxu1  ;;  %v2506_v56 = vpop.f32.mrf.mxu0  ;;  %2828 = vmatprep.subr.bf16.mxu0 %v6830_v40  ;;  %v6815_v40 = vcombine.low %v123_v24, %v127_v25  ;;  %v6808_v46 = vcombine.high %v115_v33, %v119_v38  ;;  %v350_v47 = vld [vmem:[%s11218_s1 + $0x8b0] sm:$0xff]  ;;  %v7045_v49 = vcombine.low %v354_v34, %v358_v37 }
 0x109   :  { %2868 = vmatpush2.bf16.msra.mxu1 %v6965_v39  ;;  %v9256_v59 = vadd.f32 %v2545_v52, %v2505_v50  ;;  %v2507_v60 = vadd.f32 %v2506_v56, %v473_v7  ;;  %v7053_v39 = vcombine.low %v362_v21, %v366_v22  ;;  %v7046_v7 = vcombine.high %v354_v34, %v358_v37  ;;  %v103_v56 = vld [vmem:[%s11218_s1 + $0xf8] sm:$0xff]  ;;  %v442_v24 = vld [vmem:[%s11218_s1 + $0xb90] sm:$0xff] }
 0x10a   :  { %v2547_v23 = vpop.f32.mrf.mxu1  ;;  %2869 = vmatprep.subr.bf16.mxu1 %v6958_v42  ;;  %v2508_v1 = vpop.f32.mrf.mxu0  ;;  %v107_v42 = vld [vmem:[%s11218_s1 + $0x118] sm:$0xff]  ;;  %v6807_v50 = vcombine.low %v115_v33, %v119_v38  ;;  %v7038_v52 = vcombine.high %v346_v43, %v350_v47  ;;  %v438_v37 = vld [vmem:[%s11218_s1 + $0xb70] sm:$0xff] }
 0x10b   :  { %v9270_v4 = vadd.f32 %v2547_v23, %v2507_v60  ;;  %2829 = vmatpush2.bf16.msra.mxu0 %v6829_v55  ;;  %v99_v55 = vld [vmem:[%s11218_s1 + $0xd8] sm:$0xff]  ;;  %v7037_v60 = vcombine.low %v346_v43, %v350_v47  ;;  %v6799_v23 = vcombine.low %v107_v42, %v111_v48  ;;  %v330_v1 = vld [vmem:[%s11218_s1 + $0x810] sm:$0xff] }
 0x10c   :  { %v2549_v5 = vpop.f32.mrf.mxu1  ;;  %v2509_v8 = vpop.f32.mrf.mxu0  ;;  %2880 = vmatprep.subr.bf16.mxu0 %v7078_v58  ;;  %v342_v58 = vld [vmem:[%s11218_s1 + $0x870] sm:$0xff]  ;;  %v6792_v2 = vcombine.high %v99_v55, %v103_v56  ;;  %v7021_v15 = vcombine.low %v330_v1, %v334_v3  ;;  %v75_v21 = vld [vmem:[%s11218_s1 + $0x18] sm:$0xff] }
 0x10d   :  { %2870 = vmatpush2.bf16.msra.mxu1 %v6957_v57  ;;  %v6800_v57 = vcombine.high %v107_v42, %v111_v48  ;;  %v7022_v8 = vcombine.high %v330_v1, %v334_v3  ;;  %v79_v22 = vld [vmem:[%s11218_s1 + $0x38] sm:$0xff]  ;;  %v426_v43 = vld [vmem:[%s11218_s1 + $0xb10] sm:$0xff] }
 0x10e   :  { %v2550_v12 = vpop.f32.mrf.mxu1  ;;  %2935 = vmatprep.subr.bf16.mxu1 %v7150_v61  ;;  %2831 = vmatmul.mubr.bf16.vlgmr.msra.gmra.mxu0 %v8630_v30  ;;  %v195_v33 = vld [vmem:[%s11218_s1 + $0x3d8] sm:$0xff]  ;;  %v430_v47 = vld [vmem:[%s11218_s1 + $0xb30] sm:$0xff] }
 0x10f   :  { %2881 = vmatpush1.bf16.msra.mxu0 %v7077_v6  ;;  %2912 = vmatprep.mubr.bf16.mxu0 %v8651_v41  ;;  %v6791_v6 = vcombine.low %v99_v55, %v103_v56  ;;  %v450_v12 = vld [vmem:[%s11218_s1 + $0xbd0] sm:$0xff]  ;;  %v199_v34 = vld [vmem:[%s11218_s1 + $0x3f8] sm:$0xff] }
 0x110   :  { %2872 = vmatmul.mubr.bf16.vlgmr.msra.gmra.mxu1 %v8642_v35  ;;  %v9280_v16 = vpop.f32.mrf.mxu1  ;;  %2882 = vmatprep.subr.bf16.mxu0 %v7070_v10  ;;  %v87_v10 = vld [vmem:[%s11218_s1 + $0x78] sm:$0xff]  ;;  %v418_v56 = vld [vmem:[%s11218_s1 + $0xad0] sm:$0xff] }
 0x111   :  { %2936 = vmatpush1.bf16.msra.mxu1 %v7149_v9  ;;  %2953 = vmatprep.mubr.bf16.mxu1 %v8357_v45  ;;  %v83_v9 = vld [vmem:[%s11218_s1 + $0x58] sm:$0xff] }
 0x112   :  { %v9282_v20 = vpop.f32.mrf.mxu1  ;;  %2962 = vmatprep.subr.bf16.mxu1 %v6824_v13  ;;  %v6784_v13 = vcombine.high %v91_v62, %v95_v0  ;;  %v6776_v25 = vcombine.high %v83_v9, %v87_v10  ;;  %v191_v42 = vld [vmem:[%s11218_s1 + $0x3b8] sm:$0xff] }
 0x113   :  { %2883 = vmatpush1.bf16.msra.mxu0 %v7069_v17  ;;  %v6783_v17 = vcombine.low %v91_v62, %v95_v0  ;;  %v183_v55 = vld [vmem:[%s11218_s1 + $0x378] sm:$0xff]  ;;  %v410_v0 = vld [vmem:[%s11218_s1 + $0xa90] sm:$0xff] }
 0x114   :  { %v2631_v27 = vpop.f32.mrf.mxu1  ;;  %2884 = vmatprep.subr.bf16.mxu0 %v7062_v19  ;;  %v7142_v19 = vcombine.high %v450_v12, %v454_v14  ;;  %v175_v62 = vld [vmem:[%s11218_s1 + $0x338] sm:$0xff] }
 0x115   :  { %v446_v27 = vld [vmem:[%s11218_s1 + $0xbb0] sm:$0xff] }
 0x116   :  { %v2632_v36 = vpop.f32.mrf.mxu1  ;;  %v7133_v38 = vcombine.low %v442_v24, %v446_v27 }
 0x117   :  { %2885 = vmatpush1.bf16.msra.mxu0 %v7061_v28  ;;  %v7141_v28 = vcombine.low %v450_v12, %v454_v14  ;;  %v434_v36 = vld [vmem:[%s11218_s1 + $0xb50] sm:$0xff] }
 0x118   :  { %7155 = vmatmul.mubr.msk.bf16.vlgmr.msra.gmra.mxu1 %vm2466_vm0, %v8669_v51  ;;  %2886 = vmatprep.subr.bf16.mxu0 %v7054_v31  ;;  %v7134_v31 = vcombine.high %v442_v24, %v446_v27  ;;  %v7125_v48 = vcombine.low %v434_v36, %v438_v37 }
 0x119   :  { %2963 = vmatpush1.bf16.msra.mxu1 %v6823_v29  ;;  %2994 = vmatprep.mubr.bf16.mxu1 %v8506_v11  ;;  %v338_v11 = vld [vmem:[%s11218_s1 + $0x850] sm:$0xff]  ;;  %v6775_v29 = vcombine.low %v83_v9, %v87_v10  ;;  %v167_v9 = vld [vmem:[%s11218_s1 + $0x2f8] sm:$0xff] }
 0x11a   :  { %2964 = vmatprep.subr.bf16.mxu1 %v6816_v63  ;;  %v7030_v61 = vcombine.high %v338_v11, %v342_v58  ;;  %v7029_v5 = vcombine.low %v338_v11, %v342_v58  ;;  %v6768_v63 = vcombine.high %v75_v21, %v79_v22  ;;  %v7117_v58 = vcombine.low %v426_v43, %v430_v47  ;;  %v402_v10 = vld [vmem:[%s11218_s1 + $0xa50] sm:$0xff] }
 0x11b   :  { %2887 = vmatpush1.bf16.msra.mxu0 %v7053_v39  ;;  %v6767_v39 = vcombine.low %v75_v21, %v79_v22  ;;  %v159_v21 = vld [vmem:[%s11218_s1 + $0x2b8] sm:$0xff]  ;;  %v394_v22 = vld [vmem:[%s11218_s1 + $0xa10] sm:$0xff] }
 0x11c   :  { %2888 = vmatprep.subr.bf16.mxu0 %v7046_v7  ;;  %v187_v7 = vld [vmem:[%s11218_s1 + $0x398] sm:$0xff] }
 0x11d   :  { %2965 = vmatpush1.bf16.msra.mxu1 %v6815_v40  ;;  %v7126_v40 = vcombine.high %v434_v36, %v438_v37  ;;  %v6880_v11 = vcombine.high %v187_v7, %v191_v42 }
 0x11e   :  { %2966 = vmatprep.subr.bf16.mxu1 %v6808_v46  ;;  %v6888_v46 = vcombine.high %v195_v33, %v199_v34 }
 0x11f   :  { %2889 = vmatpush1.bf16.msra.mxu0 %v7045_v49  ;;  %v6887_v49 = vcombine.low %v195_v33, %v199_v34  ;;  %v151_v33 = vld [vmem:[%s11218_s1 + $0x278] sm:$0xff] }
 0x120   :  { %2890 = vmatprep.subr.bf16.mxu0 %v7038_v52  ;;  %v179_v52 = vld [vmem:[%s11218_s1 + $0x358] sm:$0xff] }
 0x121   :  { %2967 = vmatpush1.bf16.msra.mxu1 %v6807_v50  ;;  %v7118_v50 = vcombine.high %v426_v43, %v430_v47  ;;  %v6872_v1 = vcombine.high %v179_v52, %v183_v55  ;;  %v259_v34 = vld [vmem:[%s11218_s1 + $0x5d8] sm:$0xff] }
 0x122   :  { %2968 = vmatprep.subr.bf16.mxu1 %v6800_v57  ;;  %v422_v57 = vld [vmem:[%s11218_s1 + $0xaf0] sm:$0xff]  ;;  %v139_v43 = vld [vmem:[%s11218_s1 + $0x218] sm:$0xff] }
 0x123   :  { %2891 = vmatpush1.bf16.msra.mxu0 %v7037_v60  ;;  %v6879_v60 = vcombine.low %v187_v7, %v191_v42  ;;  %v7109_v3 = vcombine.low %v418_v56, %v422_v57  ;;  %v251_v47 = vld [vmem:[%s11218_s1 + $0x598] sm:$0xff] }
 0x124   :  { %2892 = vmatprep.subr.bf16.mxu0 %v7030_v61  ;;  %v171_v61 = vld [vmem:[%s11218_s1 + $0x318] sm:$0xff] }
 0x125   :  { %2969 = vmatpush1.bf16.msra.mxu1 %v6799_v23  ;;  %v7110_v23 = vcombine.high %v418_v56, %v422_v57  ;;  %v6864_v12 = vcombine.high %v171_v61, %v175_v62 }
 0x126   :  { %2970 = vmatprep.subr.bf16.mxu1 %v6792_v2  ;;  %v414_v2 = vld [vmem:[%s11218_s1 + $0xab0] sm:$0xff] }
 0x127   :  { %2893 = vmatpush1.bf16.msra.mxu0 %v7029_v5  ;;  %v6871_v5 = vcombine.low %v179_v52, %v183_v55  ;;  %v7101_v14 = vcombine.low %v410_v0, %v414_v2 }
 0x128   :  { %2894 = vmatprep.subr.bf16.mxu0 %v7022_v8  ;;  %v163_v8 = vld [vmem:[%s11218_s1 + $0x2d8] sm:$0xff] }
 0x129   :  { %2971 = vmatpush1.bf16.msra.mxu1 %v6791_v6  ;;  %v7102_v6 = vcombine.high %v410_v0, %v414_v2  ;;  %v6856_v24 = vcombine.high %v163_v8, %v167_v9 }
 0x12a   :  { %2972 = vmatprep.subr.bf16.mxu1 %v6784_v13  ;;  %v406_v13 = vld [vmem:[%s11218_s1 + $0xa70] sm:$0xff] }
 0x12b   :  { %2895 = vmatpush1.bf16.msra.mxu0 %v7021_v15  ;;  %v6863_v15 = vcombine.low %v171_v61, %v175_v62  ;;  %v7093_v27 = vcombine.low %v402_v10, %v406_v13 }
 0x12c   :  { %2896 = vmatprep.subr.bf16.mxu0 %v7142_v19  ;;  %v155_v19 = vld [vmem:[%s11218_s1 + $0x298] sm:$0xff] }
 0x12d   :  { %2973 = vmatpush1.bf16.msra.mxu1 %v6783_v17  ;;  %v7094_v17 = vcombine.high %v402_v10, %v406_v13  ;;  %v6848_v36 = vcombine.high %v155_v19, %v159_v21  ;;  %v6847_v7 = vcombine.low %v155_v19, %v159_v21  ;;  %v231_v13 = vld [vmem:[%s11218_s1 + $0x4f8] sm:$0xff] }
 0x12e   :  { %2974 = vmatprep.subr.bf16.mxu1 %v6776_v25  ;;  %v398_v25 = vld [vmem:[%s11218_s1 + $0xa30] sm:$0xff]  ;;  %v375_v19 = vld [vmem:[%s11218_s1 + $0x978] sm:$0xff] }
 0x12f   :  { %2897 = vmatpush2.bf16.msra.mxu0 %v7141_v28  ;;  %v6855_v28 = vcombine.low %v163_v8, %v167_v9  ;;  %v383_v8 = vld [vmem:[%s11218_s1 + $0x9b8] sm:$0xff] }
 0x130   :  { %2898 = vmatprep.subr.bf16.mxu0 %v7134_v31  ;;  %v147_v31 = vld [vmem:[%s11218_s1 + $0x258] sm:$0xff] }
 0x131   :  { %2975 = vmatpush1.bf16.msra.mxu1 %v6775_v29  ;;  %v7086_v29 = vcombine.high %v394_v22, %v398_v25  ;;  %v6839_v57 = vcombine.low %v147_v31, %v151_v33 }
 0x132   :  { %2976 = vmatprep.subr.bf16.mxu1 %v6768_v63  ;;  %v263_v63 = vld [vmem:[%s11218_s1 + $0x5f8] sm:$0xff] }
 0x133   :  { %2899 = vmatpush2.bf16.msra.mxu0 %v7133_v38  ;;  %v6952_v42 = vcombine.high %v259_v34, %v263_v63  ;;  %v6951_v56 = vcombine.low %v259_v34, %v263_v63 }
 0x134   :  { %2900 = vmatprep.subr.bf16.mxu0 %v7126_v40 }
 0x135   :  { %2977 = vmatpush1.bf16.msra.mxu1 %v6767_v39  ;;  %v7085_v39 = vcombine.low %v394_v22, %v398_v25 }
 0x136   :  { %2978 = vmatprep.subr.bf16.mxu1 %v6888_v46  ;;  %v143_v46 = vld [vmem:[%s11218_s1 + $0x238] sm:$0xff] }
 0x137   :  { %2901 = vmatpush2.bf16.msra.mxu0 %v7125_v48  ;;  %v6831_v0 = vcombine.low %v139_v43, %v143_v46 }
 0x138   :  { %2902 = vmatprep.subr.bf16.mxu0 %v7118_v50  ;;  %v255_v50 = vld [vmem:[%s11218_s1 + $0x5b8] sm:$0xff] }
 0x139   :  { %2979 = vmatpush2.bf16.msra.mxu1 %v6887_v49  ;;  %v6840_v49 = vcombine.high %v147_v31, %v151_v33  ;;  %v6943_v62 = vcombine.low %v251_v47, %v255_v50  ;;  %v223_v33 = vld [vmem:[%s11218_s1 + $0x4b8] sm:$0xff] }
 0x13a   :  { %2980 = vmatprep.subr.bf16.mxu1 %v6880_v11 }
 0x13b   :  { %2903 = vmatpush2.bf16.msra.mxu0 %v7117_v58  ;;  %v391_v58 = vld [vmem:[%s11218_s1 + $0x9f8] sm:$0xff] }
 0x13c   :  { %2904 = vmatprep.subr.bf16.mxu0 %v7110_v23  ;;  %v247_v23 = vld [vmem:[%s11218_s1 + $0x578] sm:$0xff] }
 0x13d   :  { %2981 = vmatpush2.bf16.msra.mxu1 %v6879_v60  ;;  %v6832_v60 = vcombine.high %v139_v43, %v143_v46  ;;  %v207_v43 = vld [vmem:[%s11218_s1 + $0x438] sm:$0xff] }
 0x13e   :  { %2982 = vmatprep.subr.bf16.mxu1 %v6872_v1 }
 0x13f   :  { %2905 = vmatpush2.bf16.msra.mxu0 %v7109_v3 }
 0x140   :  { %2906 = vmatprep.subr.bf16.mxu0 %v7102_v6  ;;  %v239_v6 = vld [vmem:[%s11218_s1 + $0x538] sm:$0xff] }
 0x141   :  { %2983 = vmatpush2.bf16.msra.mxu1 %v6871_v5  ;;  %v235_v5 = vld [vmem:[%s11218_s1 + $0x518] sm:$0xff] }
 0x142   :  { %2984 = vmatprep.subr.bf16.mxu1 %v6864_v12  ;;  %v227_v12 = vld [vmem:[%s11218_s1 + $0x4d8] sm:$0xff] }
 0x143   :  { %2907 = vmatpush2.bf16.msra.mxu0 %v7101_v14  ;;  %v6919_v34 = vcombine.low %v227_v12, %v231_v13 }
 0x144   :  { %2908 = vmatprep.subr.bf16.mxu0 %v7094_v17  ;;  %v371_v17 = vld [vmem:[%s11218_s1 + $0x958] sm:$0xff] }
 0x145   :  { %2985 = vmatpush2.bf16.msra.mxu1 %v6863_v15  ;;  %v6928_v15 = vcombine.high %v235_v5, %v239_v6  ;;  %v7064_v31 = vcombine.high %v371_v17, %v375_v19 }
 0x146   :  { %2986 = vmatprep.subr.bf16.mxu1 %v6856_v24  ;;  %v2586_v37 = vpop.f32.mrf.mxu0  ;;  %v6927_v24 = vcombine.low %v235_v5, %v239_v6  ;;  %v335_v5 = vld [vmem:[%s11218_s1 + $0x838] sm:$0xff] }
 0x147   :  { %v2587_v38 = vadd.f32 %v2586_v37, %v9256_v59  ;;  %2909 = vmatpush2.bf16.msra.mxu0 %v7093_v27  ;;  %v6920_v27 = vcombine.high %v227_v12, %v231_v13  ;;  %v451_v13 = vld [vmem:[%s11218_s1 + $0xbd8] sm:$0xff] }
 0x148   :  { %v2588_v40 = vpop.f32.mrf.mxu0  ;;  %2910 = vmatprep.subr.bf16.mxu0 %v7086_v29  ;;  %v367_v29 = vld [vmem:[%s11218_s1 + $0x938] sm:$0xff] }
 0x149   :  { %2987 = vmatpush2.bf16.msra.mxu1 %v6855_v28  ;;  %v9468_v59 = vadd.f32 %v9280_v16, %v2587_v38  ;;  %v2589_v48 = vadd.f32 %v2588_v40, %v9270_v4  ;;  %v6944_v16 = vcombine.high %v251_v47, %v255_v50  ;;  %v387_v4 = vld [vmem:[%s11218_s1 + $0x9d8] sm:$0xff] }
 0x14a   :  { %2988 = vmatprep.subr.bf16.mxu1 %v6848_v36  ;;  %v2590_v52 = vpop.f32.mrf.mxu0  ;;  %v7080_v3 = vcombine.high %v387_v4, %v391_v58  ;;  %v7079_v14 = vcombine.low %v387_v4, %v391_v58  ;;  %v363_v28 = vld [vmem:[%s11218_s1 + $0x918] sm:$0xff]  ;;  %v7063_v36 = vcombine.low %v371_v17, %v375_v19 }
 0x14b   :  { %v9475_v55 = vadd.f32 %v9282_v20, %v2589_v48  ;;  %2911 = vmatpush2.bf16.msra.mxu0 %v7085_v39  ;;  %v243_v20 = vld [vmem:[%s11218_s1 + $0x558] sm:$0xff]  ;;  %v7056_v37 = vcombine.high %v363_v28, %v367_v29  ;;  %v7055_v46 = vcombine.low %v363_v28, %v367_v29 }
 0x14c   :  { %v2591_v11 = vpop.f32.mrf.mxu0  ;;  %3003 = vmatprep.subr.bf16.mxu0 %v6952_v42  ;;  %v6936_v1 = vcombine.high %v243_v20, %v247_v23  ;;  %v6935_v10 = vcombine.low %v243_v20, %v247_v23  ;;  %v355_v38 = vld [vmem:[%s11218_s1 + $0x8d8] sm:$0xff] }
 0x14d   :  { %2989 = vmatpush2.bf16.msra.mxu1 %v6847_v7  ;;  %v211_v39 = vld [vmem:[%s11218_s1 + $0x458] sm:$0xff] }
 0x14e   :  { %2990 = vmatprep.subr.bf16.mxu1 %v6840_v49  ;;  %2913 = vmatmul.mubr.bf16.vlgmr.msra.gmra.mxu0 %v8838_v54  ;;  %v359_v40 = vld [vmem:[%s11218_s1 + $0x8f8] sm:$0xff] }
 0x14f   :  { %3004 = vmatpush1.bf16.msra.mxu0 %v6951_v56  ;;  %3035 = vmatprep.mubr.bf16.mxu0 %v8517_v18  ;;  %v379_v18 = vld [vmem:[%s11218_s1 + $0x998] sm:$0xff]  ;;  %v7048_v50 = vcombine.high %v355_v38, %v359_v40 }
 0x150   :  { %v9490_v61 = vpop.f32.mrf.mxu1  ;;  %3005 = vmatprep.subr.bf16.mxu0 %v6944_v16  ;;  %v7072_v22 = vcombine.high %v379_v18, %v383_v8  ;;  %v7071_v25 = vcombine.low %v379_v18, %v383_v8  ;;  %v203_v42 = vld [vmem:[%s11218_s1 + $0x418] sm:$0xff] }
 0x151   :  { %2991 = vmatpush2.bf16.msra.mxu1 %v6839_v57  ;;  %v347_v48 = vld [vmem:[%s11218_s1 + $0x898] sm:$0xff]  ;;  %v7047_v57 = vcombine.low %v355_v38, %v359_v40  ;;  %v6896_v16 = vcombine.high %v203_v42, %v207_v43 }
 0x152   :  { %v9493_v2 = vpop.f32.mrf.mxu1  ;;  %2992 = vmatprep.subr.bf16.mxu1 %v6832_v60  ;;  %v351_v49 = vld [vmem:[%s11218_s1 + $0x8b8] sm:$0xff]  ;;  %v6895_v60 = vcombine.low %v203_v42, %v207_v43 }
 0x153   :  { %3006 = vmatpush1.bf16.msra.mxu0 %v6943_v62  ;;  %v323_v56 = vld [vmem:[%s11218_s1 + $0x7d8] sm:$0xff]  ;;  %v7040_v20 = vcombine.high %v347_v48, %v351_v49 }
 0x154   :  { %v2672_v9 = vpop.f32.mrf.mxu1  ;;  %3007 = vmatprep.subr.bf16.mxu0 %v6936_v1  ;;  %v327_v11 = vld [vmem:[%s11218_s1 + $0x7f8] sm:$0xff] }
 0x155   :  { %2993 = vmatpush2.bf16.msra.mxu1 %v6831_v0  ;;  %v339_v4 = vld [vmem:[%s11218_s1 + $0x858] sm:$0xff]  ;;  %v7039_v0 = vcombine.low %v347_v48, %v351_v49  ;;  %v7016_v1 = vcombine.high %v323_v56, %v327_v11  ;;  %v7015_v18 = vcombine.low %v323_v56, %v327_v11 }
 0x156   :  { %v2673_v21 = vpop.f32.mrf.mxu1  ;;  %3044 = vmatprep.subr.bf16.mxu1 %v7080_v3  ;;  %v343_v58 = vld [vmem:[%s11218_s1 + $0x878] sm:$0xff] }
 0x157   :  { %3008 = vmatpush1.bf16.msra.mxu0 %v6935_v10  ;;  %v315_v23 = vld [vmem:[%s11218_s1 + $0x798] sm:$0xff]  ;;  %v7032_v6 = vcombine.high %v339_v4, %v343_v58  ;;  %v7031_v10 = vcombine.low %v339_v4, %v343_v58 }
 0x158   :  { %2995 = vmatmul.mubr.bf16.vlgmr.msra.gmra.mxu1 %v8630_v30  ;;  %3009 = vmatprep.subr.bf16.mxu0 %v6928_v15  ;;  %v219_v30 = vld [vmem:[%s11218_s1 + $0x498] sm:$0xff] }
 0x159   :  { %3045 = vmatpush1.bf16.msra.mxu1 %v7079_v14  ;;  %3076 = vmatprep.mubr.bf16.mxu1 %v8651_v41  ;;  %v6912_v63 = vcombine.high %v219_v30, %v223_v33  ;;  %v215_v41 = vld [vmem:[%s11218_s1 + $0x478] sm:$0xff]  ;;  %v6911_v7 = vcombine.low %v219_v30, %v223_v33 }
 0x15a   :  { %3046 = vmatprep.subr.bf16.mxu1 %v7072_v22  ;;  %v6904_v47 = vcombine.high %v211_v39, %v215_v41  ;;  %v6903_v52 = vcombine.low %v211_v39, %v215_v41  ;;  %v319_v62 = vld [vmem:[%s11218_s1 + $0x7b8] sm:$0xff] }
 0x15b   :  { %3010 = vmatpush1.bf16.msra.mxu0 %v6927_v24  ;;  %v331_v3 = vld [vmem:[%s11218_s1 + $0x818] sm:$0xff]  ;;  %v7008_v12 = vcombine.high %v315_v23, %v319_v62  ;;  %v7007_v17 = vcombine.low %v315_v23, %v319_v62 }
 0x15c   :  { %3011 = vmatprep.subr.bf16.mxu0 %v6920_v27  ;;  %v307_v8 = vld [vmem:[%s11218_s1 + $0x758] sm:$0xff]  ;;  %v7024_v15 = vcombine.high %v331_v3, %v335_v5  ;;  %v7023_v22 = vcombine.low %v331_v3, %v335_v5 }
 0x15d   :  { %3047 = vmatpush1.bf16.msra.mxu1 %v7071_v25  ;;  %v311_v9 = vld [vmem:[%s11218_s1 + $0x778] sm:$0xff] }
 0x15e   :  { %3048 = vmatprep.subr.bf16.mxu1 %v7064_v31  ;;  %v455_v14 = vld [vmem:[%s11218_s1 + $0xbf8] sm:$0xff]  ;;  %v7000_v24 = vcombine.high %v307_v8, %v311_v9  ;;  %v6999_v29 = vcombine.low %v307_v8, %v311_v9 }
 0x15f   :  { %3012 = vmatpush1.bf16.msra.mxu0 %v6919_v34  ;;  %v299_v19 = vld [vmem:[%s11218_s1 + $0x718] sm:$0xff]  ;;  %v7144_v28 = vcombine.high %v451_v13, %v455_v14  ;;  %v7143_v33 = vcombine.low %v451_v13, %v455_v14 }
 0x160   :  { %3013 = vmatprep.subr.bf16.mxu0 %v6912_v63  ;;  %v303_v21 = vld [vmem:[%s11218_s1 + $0x738] sm:$0xff] }
 0x161   :  { %3049 = vmatpush1.bf16.msra.mxu1 %v7063_v36  ;;  %v443_v25 = vld [vmem:[%s11218_s1 + $0xb98] sm:$0xff]  ;;  %v6992_v34 = vcombine.high %v299_v19, %v303_v21  ;;  %v6991_v38 = vcombine.low %v299_v19, %v303_v21 }
 0x162   :  { %3050 = vmatprep.subr.bf16.mxu1 %v7056_v37  ;;  %v447_v27 = vld [vmem:[%s11218_s1 + $0xbb8] sm:$0xff] }
 0x163   :  { %3014 = vmatpush1.bf16.msra.mxu0 %v6911_v7  ;;  %v291_v31 = vld [vmem:[%s11218_s1 + $0x6d8] sm:$0xff]  ;;  %v7136_v37 = vcombine.high %v443_v25, %v447_v27  ;;  %v7135_v40 = vcombine.low %v443_v25, %v447_v27 }
 0x164   :  { %3015 = vmatprep.subr.bf16.mxu0 %v6904_v47  ;;  %v295_v30 = vld [vmem:[%s11218_s1 + $0x6f8] sm:$0xff] }
 0x165   :  { %3051 = vmatpush1.bf16.msra.mxu1 %v7055_v46  ;;  %v435_v36 = vld [vmem:[%s11218_s1 + $0xb58] sm:$0xff]  ;;  %v6984_v7 = vcombine.high %v291_v31, %v295_v30  ;;  %v6983_v47 = vcombine.low %v291_v31, %v295_v30 }
 0x166   :  { %3052 = vmatprep.subr.bf16.mxu1 %v7048_v50  ;;  %v439_v63 = vld [vmem:[%s11218_s1 + $0xb78] sm:$0xff] }
 0x167   :  { %3016 = vmatpush1.bf16.msra.mxu0 %v6903_v52  ;;  %v283_v39 = vld [vmem:[%s11218_s1 + $0x698] sm:$0xff]  ;;  %v7128_v46 = vcombine.high %v435_v36, %v439_v63  ;;  %v7127_v50 = vcombine.low %v435_v36, %v439_v63 }
 0x168   :  { %3017 = vmatprep.subr.bf16.mxu0 %v6896_v16  ;;  %v287_v41 = vld [vmem:[%s11218_s1 + $0x6b8] sm:$0xff] }
 0x169   :  { %3053 = vmatpush1.bf16.msra.mxu1 %v7047_v57  ;;  %v427_v42 = vld [vmem:[%s11218_s1 + $0xb18] sm:$0xff]  ;;  %v6976_v52 = vcombine.high %v283_v39, %v287_v41  ;;  %v476_v57 = vsub.s32 2, %v8454_v44  ;;  %v6975_v4 = vcombine.low %v283_v39, %v287_v41 }
 0x16a   :  { %3054 = vmatprep.subr.bf16.mxu1 %v7040_v20  ;;  %v431_v43 = vld [vmem:[%s11218_s1 + $0xb38] sm:$0xff] }
 0x16b   :  { %3018 = vmatpush1.bf16.msra.mxu0 %v6895_v60  ;;  %v275_v48 = vld [vmem:[%s11218_s1 + $0x658] sm:$0xff]  ;;  %v7120_v16 = vcombine.high %v427_v42, %v431_v43  ;;  %v7119_v60 = vcombine.low %v427_v42, %v431_v43 }
 0x16c   :  { %3019 = vmatprep.subr.bf16.mxu0 %v7016_v1  ;;  %v279_v49 = vld [vmem:[%s11218_s1 + $0x678] sm:$0xff]  ;;  %v8353_v1 = vld [vmem:[%s11220_s2] sm:$0xff] }
 0x16d   :  { %3055 = vmatpush1.bf16.msra.mxu1 %v7039_v0  ;;  %v419_v56 = vld [vmem:[%s11218_s1 + $0xad8] sm:$0xff]  ;;  %v6968_v23 = vcombine.high %v275_v48, %v279_v49  ;;  %v477_v3 = vrot.slane %v8353_v1, %v476_v57 }
 0x16e   :  { %3056 = vmatprep.subr.bf16.mxu1 %v7032_v6  ;;  %v423_v11 = vld [vmem:[%s11218_s1 + $0xaf8] sm:$0xff]  ;;  %v6967_v6 = vcombine.low %v275_v48, %v279_v49 }
 0x16f   :  { %3020 = vmatpush2.bf16.msra.mxu0 %v7015_v18  ;;  %v267_v58 = vld [vmem:[%s11218_s1 + $0x618] sm:$0xff]  ;;  %v7112_v5 = vcombine.high %v419_v56, %v423_v11  ;;  %v7111_v9 = vcombine.low %v419_v56, %v423_v11  ;;  %v2669_v14 = vadd.f32 %v9490_v61, %v477_v3  ;;  %v7705_v56 = vld [vmem:[%s11221_s3 + $0x154] ss:$28 sps:$4 sm:$0xff]   ;;  %v7717_v3 = vld [vmem:[%s11221_s3 + $0xe4] ss:$28 sps:$4 sm:$0xff]  }
 0x170   :  { %3021 = vmatprep.subr.bf16.mxu0 %v7008_v12  ;;  %v271_v20 = vld [vmem:[%s11218_s1 + $0x638] sm:$0xff] }
 0x171   :  { %3057 = vmatpush1.bf16.msra.mxu1 %v7031_v10  ;;  %v411_v62 = vld [vmem:[%s11218_s1 + $0xa98] sm:$0xff]  ;;  %v6960_v10 = vcombine.high %v267_v58, %v271_v20 }
 0x172   :  { %3058 = vmatprep.subr.bf16.mxu1 %v7024_v15  ;;  %v415_v0 = vld [vmem:[%s11218_s1 + $0xab8] sm:$0xff] }
 0x173   :  { %3022 = vmatpush2.bf16.msra.mxu0 %v7007_v17  ;;  %v459_v18 = vld [vmem:[%s11218_s1 + $0xc18] sm:$0xff]  ;;  %v7104_v15 = vcombine.high %v411_v62, %v415_v0  ;;  %v480_v17 = vsub.s32 3, %v8454_v44  ;;  %v7103_v25 = vcombine.low %v411_v62, %v415_v0 }
 0x174   :  { %3023 = vmatprep.subr.bf16.mxu0 %v7000_v24  ;;  %v463_v8 = vld [vmem:[%s11218_s1 + $0xc38] sm:$0xff] }
 0x175   :  { %3059 = vmatpush1.bf16.msra.mxu1 %v7023_v22  ;;  %v403_v12 = vld [vmem:[%s11218_s1 + $0xa58] sm:$0xff]  ;;  %v6959_v22 = vcombine.low %v267_v58, %v271_v20  ;;  %v7152_v27 = vcombine.high %v459_v18, %v463_v8  ;;  %v481_v31 = vrot.slane %v8353_v1, %v480_v17  ;;  %v7708_v58 = vld [vmem:[%s11221_s3 + $0x4d4] ss:$28 sps:$4 sm:$0xff]  }
 0x176   :  { %3060 = vmatprep.subr.bf16.mxu1 %v7144_v28  ;;  %v407_v13 = vld [vmem:[%s11218_s1 + $0xa78] sm:$0xff] }
 0x177   :  { %3024 = vmatpush2.bf16.msra.mxu0 %v6999_v29  ;;  %v395_v28 = vld [vmem:[%s11218_s1 + $0xa18] sm:$0xff]  ;;  %v7096_v29 = vcombine.high %v403_v12, %v407_v13  ;;  %v7095_v63 = vcombine.low %v403_v12, %v407_v13  ;;  %v7724_v12 = vld [vmem:[%s11221_s3 + $0x428] ss:$28 sps:$4 sm:$0xff]   ;;  %v7729_v13 = vld [vmem:[%s11221_s3 + $0x74] ss:$28 sps:$4 sm:$0xff]  }
 0x178   :  { %3025 = vmatprep.subr.bf16.mxu0 %v6992_v34  ;;  %v399_v61 = vld [vmem:[%s11218_s1 + $0xa38] sm:$0xff]  ;;  %v7151_v34 = vcombine.low %v459_v18, %v463_v8  ;;  %v7723_v8 = vld [vmem:[%s11221_s3 + $0xac] ss:$28 sps:$4 sm:$0xff]  }
 0x179   :  { %3061 = vmatpush2.bf16.msra.mxu1 %v7143_v33  ;;  %v7699_v33 = vld [vmem:[%s11221_s3 + $0x18c] ss:$28 sps:$4 sm:$0xff]   ;;  %v7087_v43 = vcombine.low %v395_v28, %v399_v61  ;;  %v7711_v62 = vld [vmem:[%s11221_s3 + $0x11c] ss:$28 sps:$4 sm:$0xff]  }
 0x17a   :  { %3062 = vmatprep.subr.bf16.mxu1 %v7136_v37  ;;  %v7088_v37 = vcombine.high %v395_v28, %v399_v61  ;;  %v7714_v1 = vld [vmem:[%s11221_s3 + $0x49c] ss:$28 sps:$4 sm:$0xff]   ;;  %v7744_v28 = vld [vmem:[%s11221_s3 + $0x384] ss:$28 sps:$4 sm:$0xff]  }
 0x17b   :  { %3026 = vmatpush2.bf16.msra.mxu0 %v6991_v38  ;;  %v2671_v38 = vadd.f32 %v9493_v2, %v481_v31  ;;  %v3127_v2 = vmax.f32 %v9475_v55, 0.0  ;;  %v7703_v55 = vld [vmem:[%s11221_s3 + $0x150] ss:$28 sps:$4 sm:$0xff]   ;;  %v7718_v18 = vld [vmem:[%s11221_s3 + $0x460] ss:$28 sps:$4 sm:$0xff]  }
 0x17c   :  { %3027 = vmatprep.subr.bf16.mxu0 %v6984_v7  ;;  %v7739_v61 = vld [vmem:[%s11221_s3] ss:$28 sps:$4 sm:$0xff]   ;;  %v7747_v31 = vld [vmem:[%s11221_s3 + $0x34c] ss:$28 sps:$4 sm:$0xff]  }
 0x17d   :  { %3063 = vmatpush2.bf16.msra.mxu1 %v7135_v40  ;;  %v9708_v20 = vpack.c.bf16 %v3127_v2, %v3127_v2  ;;  %v7774_v2 = vld [vmem:[%s11221_s3 + $0x5ec] ss:$28 sps:$4 sm:$0xff]  }
 0x17e   :  { %3064 = vmatprep.subr.bf16.mxu1 %v7128_v46 }
 0x17f   :  { %3028 = vmatpush2.bf16.msra.mxu0 %v6983_v47  ;;  %v7697_v47 = vld [vmem:[%s11221_s3 + $0x188] ss:$28 sps:$4 sm:$0xff]  }
 0x180   :  { %3029 = vmatprep.subr.bf16.mxu0 %v6976_v52 }
 0x181   :  { %3065 = vmatpush2.bf16.msra.mxu1 %v7127_v50  ;;  %v7700_v50 = vld [vmem:[%s11221_s3 + $0x508] ss:$28 sps:$4 sm:$0xff]  }
 0x182   :  { %3066 = vmatprep.subr.bf16.mxu1 %v7120_v16 }
 0x183   :  { %3030 = vmatpush2.bf16.msra.mxu0 %v6975_v4 }
 0x184   :  { %3031 = vmatprep.subr.bf16.mxu0 %v6968_v23  ;;  %v7706_v23 = vld [vmem:[%s11221_s3 + $0x4d0] ss:$28 sps:$4 sm:$0xff]  }
 0x185   :  { %3067 = vmatpush2.bf16.msra.mxu1 %v7119_v60 }
 0x186   :  { %3068 = vmatprep.subr.bf16.mxu1 %v7112_v5  ;;  %v2709_v19 = vpop.f32.mrf.mxu0  ;;  %v7720_v5 = vld [vmem:[%s11221_s3 + $0x464] ss:$28 sps:$4 sm:$0xff]  }
 0x187   :  { %v2710_v21 = vadd.f32 %v2709_v19, %v2669_v14  ;;  %3032 = vmatpush2.bf16.msra.mxu0 %v6967_v6  ;;  %v7715_v6 = vld [vmem:[%s11221_s3 + $0xe0] ss:$28 sps:$4 sm:$0xff]   ;;  %v7732_v14 = vld [vmem:[%s11221_s3 + $0x3f4] ss:$28 sps:$4 sm:$0xff]  }
 0x188   :  { %v2711_v24 = vpop.f32.mrf.mxu0  ;;  %3033 = vmatprep.subr.bf16.mxu0 %v6960_v10  ;;  %v7721_v10 = vld [vmem:[%s11221_s3 + $0xa8] ss:$28 sps:$4 sm:$0xff]   ;;  %v7730_v19 = vld [vmem:[%s11221_s3 + $0x3f0] ss:$28 sps:$4 sm:$0xff]  }
 0x189   :  { %3069 = vmatpush2.bf16.msra.mxu1 %v7111_v9  ;;  %v2712_v40 = vadd.f32 %v2711_v24, %v2671_v38  ;;  %v7726_v9 = vld [vmem:[%s11221_s3 + $0x42c] ss:$28 sps:$4 sm:$0xff]   ;;  %v7733_v24 = vld [vmem:[%s11221_s3 + $0x38] ss:$28 sps:$4 sm:$0xff]  }
 0x18a   :  { %3070 = vmatprep.subr.bf16.mxu1 %v7104_v15  ;;  %v2713_v30 = vpop.f32.mrf.mxu0  ;;  %v7727_v15 = vld [vmem:[%s11221_s3 + $0x70] ss:$28 sps:$4 sm:$0xff]  }
 0x18b   :  { %3034 = vmatpush2.bf16.msra.mxu0 %v6959_v22  ;;  %v7738_v22 = vld [vmem:[%s11221_s3 + $0x3bc] ss:$28 sps:$4 sm:$0xff]   ;;  %v7750_v30 = vld [vmem:[%s11221_s3 + $0x6cc] ss:$28 sps:$4 sm:$0xff]  }
 0x18c   :  { %v2714_v36 = vpop.f32.mrf.mxu0  ;;  %3099 = vmatprep.subr.bf16.mxu0 %v7152_v27  ;;  %v7741_v27 = vld [vmem:[%s11221_s3 + $0x4] ss:$28 sps:$4 sm:$0xff]   ;;  %v7754_v38 = vld [vmem:[%s11221_s3 + $0x690] ss:$28 sps:$4 sm:$0xff]  }
 0x18d   :  { %3071 = vmatpush2.bf16.msra.mxu1 %v7103_v25  ;;  %v7736_v25 = vld [vmem:[%s11221_s3 + $0x3b8] ss:$28 sps:$4 sm:$0xff]  }
 0x18e   :  { %3072 = vmatprep.subr.bf16.mxu1 %v7096_v29  ;;  %3036 = vmatmul.mubr.bf16.vlgmr.msra.gmra.mxu0 %v8642_v35  ;;  %v2791_v39 = vpop.f32.mrf.mxu0  ;;  %v7702_v35 = vld [vmem:[%s11221_s3 + $0x50c] ss:$28 sps:$4 sm:$0xff]   ;;  %v7742_v29 = vld [vmem:[%s11221_s3 + $0x380] ss:$28 sps:$4 sm:$0xff]   ;;  %v7753_v36 = vld [vmem:[%s11221_s3 + $0x314] ss:$28 sps:$4 sm:$0xff]  }
 0x18f   :  { %3100 = vmatpush1.bf16.msra.mxu0 %v7151_v34  ;;  %3117 = vmatprep.mubr.bf16.mxu0 %v8357_v45  ;;  %v7748_v34 = vld [vmem:[%s11221_s3 + $0x6c8] ss:$28 sps:$4 sm:$0xff]  }
 0x190   :  { %v2750_v41 = vpop.f32.mrf.mxu1  ;;  %v2793_v42 = vpop.f32.mrf.mxu0  ;;  %5995 = vmatprep.subr.bf16.mxu0 %v7699_v33  ;;  %v7745_v33 = vld [vmem:[%s11221_s3 + $0x348] ss:$28 sps:$4 sm:$0xff]  }
 0x191   :  { %v2751_v7 = vadd.f32 %v2750_v41, %v2710_v21  ;;  %3073 = vmatpush2.bf16.msra.mxu1 %v7095_v63  ;;  %v7735_v21 = vld [vmem:[%s11221_s3 + $0x3c] ss:$28 sps:$4 sm:$0xff]   ;;  %v7756_v63 = vld [vmem:[%s11221_s3 + $0x694] ss:$28 sps:$4 sm:$0xff]  }
 0x192   :  { %v2752_v46 = vpop.f32.mrf.mxu1  ;;  %3074 = vmatprep.subr.bf16.mxu1 %v7088_v37  ;;  %v2795_v49 = vpop.f32.mrf.mxu0  ;;  %v7751_v37 = vld [vmem:[%s11221_s3 + $0x310] ss:$28 sps:$4 sm:$0xff]   ;;  %v7762_v41 = vld [vmem:[%s11221_s3 + $0x65c] ss:$28 sps:$4 sm:$0xff]  }
 0x193   :  { %v9694_v48 = vadd.f32 %v2791_v39, %v2751_v7  ;;  %v2753_v45 = vadd.f32 %v2752_v46, %v2712_v40  ;;  %v7759_v39 = vld [vmem:[%s11221_s3 + $0x2dc] ss:$28 sps:$4 sm:$0xff]   ;;  %v7772_v49 = vld [vmem:[%s11221_s3 + $0x5e8] ss:$28 sps:$4 sm:$0xff]  }
 0x194   :  { %v2754_v52 = vpop.f32.mrf.mxu1  ;;  %v2796_v16 = vpop.f32.mrf.mxu0  ;;  %v7757_v40 = vld [vmem:[%s11221_s3 + $0x2d8] ss:$28 sps:$4 sm:$0xff]   ;;  %v7763_v46 = vld [vmem:[%s11221_s3 + $0x2a0] ss:$28 sps:$4 sm:$0xff]  }
 0x195   :  { %v2794_v11 = vadd.f32 %v2793_v42, %v2753_v45  ;;  %3075 = vmatpush2.bf16.msra.mxu1 %v7087_v43  ;;  %v7760_v7 = vld [vmem:[%s11221_s3 + $0x658] ss:$28 sps:$4 sm:$0xff]   ;;  %v7765_v42 = vld [vmem:[%s11221_s3 + $0x2a4] ss:$28 sps:$4 sm:$0xff]  }
 0x196   :  { %v2755_v4 = vpop.f32.mrf.mxu1  ;;  %6036 = vmatprep.subr.bf16.mxu1 %v7702_v35  ;;  %7156 = vmatmul.mubr.msk.bf16.vlgmr.msra.gmra.mxu0 %vm2466_vm0, %v8669_v51  ;;  %v7709_v51 = vld [vmem:[%s11221_s3 + $0x118] ss:$28 sps:$4 sm:$0xff]   ;;  %v7768_v43 = vld [vmem:[%s11221_s3 + $0x624] ss:$28 sps:$4 sm:$0xff]   ;;  %v7771_v35 = vld [vmem:[%s11221_s3 + $0x26c] ss:$28 sps:$4 sm:$0xff]  }
 0x197   :  { %v3129_v60 = vmax.f32 %v2794_v11, 0.0  ;;  %5996 = vmatpush1.bf16.msra.mxu0 %v7697_v47  ;;  %6027 = vmatprep.mubr.bf16.mxu0 %v9708_v20  ;;  %v7766_v47 = vld [vmem:[%s11221_s3 + $0x620] ss:$28 sps:$4 sm:$0xff]   ;;  %v7769_v45 = vld [vmem:[%s11221_s3 + $0x268] ss:$28 sps:$4 sm:$0xff]  }
 0x198   :  { %3077 = vmatmul.mubr.bf16.vlgmr.msra.gmra.mxu1 %v8838_v54  ;;  %5997 = vmatprep.subr.bf16.mxu0 %v7705_v56  ;;  %v7712_v54 = vld [vmem:[%s11221_s3 + $0x498] ss:$28 sps:$4 sm:$0xff]   ;;  %v7775_v56 = vld [vmem:[%s11221_s3 + $0x230] ss:$28 sps:$4 sm:$0xff]  }
 0x199   :  { %v9719_v0 = vpack.c.bf16 %v3129_v60, %v3129_v60  ;;  %6037 = vmatpush1.bf16.msra.mxu1 %v7700_v50  ;;  %v7777_v50 = vld [vmem:[%s11221_s3 + $0x234] ss:$28 sps:$4 sm:$0xff]   ;;  %v7783_v16 = vld [vmem:[%s11221_s3 + $0x1fc] ss:$28 sps:$4 sm:$0xff]   ;;  %v7789_v60 = vld [vmem:[%s11221_s3 + $0x1c4] ss:$28 sps:$4 sm:$0xff]  }
 0x19a   :  { %6038 = vmatprep.subr.bf16.mxu1 %v7708_v58  ;;  %v7780_v52 = vld [vmem:[%s11221_s3 + $0x5b4] ss:$28 sps:$4 sm:$0xff]   ;;  %v7786_v4 = vld [vmem:[%s11221_s3 + $0x57c] ss:$28 sps:$4 sm:$0xff]  }
 0x19b   :  { %6068 = vmatprep.mubr.bf16.mxu1 %v9719_v0  ;;  %5998 = vmatpush1.bf16.msra.mxu0 %v7703_v55  ;;  %v7778_v11 = vld [vmem:[%s11221_s3 + $0x5b0] ss:$28 sps:$4 sm:$0xff]   ;;  %v7781_v55 = vld [vmem:[%s11221_s3 + $0x1f8] ss:$28 sps:$4 sm:$0xff]  }
 0x19c   :  { %5999 = vmatprep.subr.bf16.mxu0 %v7711_v62  ;;  %v7784_v58 = vld [vmem:[%s11221_s3 + $0x578] ss:$28 sps:$4 sm:$0xff]   ;;  %v7787_v62 = vld [vmem:[%s11221_s3 + $0x1c0] ss:$28 sps:$4 sm:$0xff]  }
 0x19d   :  { %6039 = vmatpush1.bf16.msra.mxu1 %v7706_v23  ;;  %v7792_v23 = vld [vmem:[%s11221_s3 + $0x544] ss:$28 sps:$4 sm:$0xff]  }
 0x19e   :  { %6040 = vmatprep.subr.bf16.mxu1 %v7714_v1  ;;  %v7790_v1 = vld [vmem:[%s11221_s3 + $0x540] ss:$28 sps:$4 sm:$0xff]  }
 0x19f   :  { %6000 = vmatpush1.bf16.msra.mxu0 %v7709_v51 }
 0x1a0   :  { %6001 = vmatprep.subr.bf16.mxu0 %v7717_v3  ;;  %v3126_v3 = vmax.f32 %v9468_v59, 0.0  ;;  %v7849_v59 = vld [vmem:[%s11221_s3 + $0xc0c] ss:$28 sps:$4 sm:$0xff]  }
 0x1a1   :  { %6041 = vmatpush1.bf16.msra.mxu1 %v7712_v54 }
 0x1a2   :  { %6042 = vmatprep.subr.bf16.mxu1 %v7720_v5 }
 0x1a3   :  { %6002 = vmatpush1.bf16.msra.mxu0 %v7715_v6  ;;  %v7795_v6 = vld [vmem:[%s11221_s3 + $0x88c] ss:$28 sps:$4 sm:$0xff]  }
 0x1a4   :  { %6003 = vmatprep.subr.bf16.mxu0 %v7723_v8 }
 0x1a5   :  { %6043 = vmatpush1.bf16.msra.mxu1 %v7718_v18  ;;  %v3128_v18 = vmax.f32 %v9694_v48, 0.0  ;;  %v7798_v48 = vld [vmem:[%s11221_s3 + $0x854] ss:$28 sps:$4 sm:$0xff]  }
 0x1a6   :  { %6044 = vmatprep.subr.bf16.mxu1 %v7726_v9  ;;  %v7793_v9 = vld [vmem:[%s11221_s3 + $0x888] ss:$28 sps:$4 sm:$0xff]  }
 0x1a7   :  { %6004 = vmatpush1.bf16.msra.mxu0 %v7721_v10 }
 0x1a8   :  { %6005 = vmatprep.subr.bf16.mxu0 %v7729_v13  ;;  %v9907_v13 = vpack.c.bf16 %v3126_v3, %v3126_v3  ;;  %v7901_v3 = vld [vmem:[%s11221_s3 + $0xd90] ss:$28 sps:$4 sm:$0xff]  }
 0x1a9   :  { %6045 = vmatpush1.bf16.msra.mxu1 %v7724_v12 }
 0x1aa   :  { %6046 = vmatprep.subr.bf16.mxu1 %v7732_v14 }
 0x1ab   :  { %6006 = vmatpush1.bf16.msra.mxu0 %v7727_v15  ;;  %v7847_v15 = vld [vmem:[%s11221_s3 + $0xc08] ss:$28 sps:$4 sm:$0xff]  }
 0x1ac   :  { %6007 = vmatprep.subr.bf16.mxu0 %v7735_v21 }
 0x1ad   :  { %6047 = vmatpush1.bf16.msra.mxu1 %v7730_v19  ;;  %v9915_v19 = vpack.c.bf16 %v3128_v18, %v3128_v18  ;;  %v7823_v18 = vld [vmem:[%s11221_s3 + $0x9d8] ss:$28 sps:$4 sm:$0xff]  }
 0x1ae   :  { %6048 = vmatprep.subr.bf16.mxu1 %v7738_v22  ;;  %v7796_v22 = vld [vmem:[%s11221_s3 + $0x850] ss:$28 sps:$4 sm:$0xff]  }
 0x1af   :  { %6008 = vmatpush1.bf16.msra.mxu0 %v7733_v24  ;;  %v7855_v24 = vld [vmem:[%s11221_s3 + $0xbd4] ss:$28 sps:$4 sm:$0xff]  }
 0x1b0   :  { %6009 = vmatprep.subr.bf16.mxu0 %v7741_v27 }
 0x1b1   :  { %6049 = vmatpush1.bf16.msra.mxu1 %v7736_v25  ;;  %v7801_v25 = vld [vmem:[%s11221_s3 + $0x81c] ss:$28 sps:$4 sm:$0xff]  }
 0x1b2   :  { %6050 = vmatprep.subr.bf16.mxu1 %v7744_v28  ;;  %v7853_v28 = vld [vmem:[%s11221_s3 + $0xbd0] ss:$28 sps:$4 sm:$0xff]  }
 0x1b3   :  { %6010 = vmatpush1.bf16.msra.mxu0 %v7739_v61 }
 0x1b4   :  { %6011 = vmatprep.subr.bf16.mxu0 %v7747_v31  ;;  %v7861_v31 = vld [vmem:[%s11221_s3 + $0xb9c] ss:$28 sps:$4 sm:$0xff]  }
 0x1b5   :  { %6051 = vmatpush1.bf16.msra.mxu1 %v7742_v29  ;;  %v7799_v29 = vld [vmem:[%s11221_s3 + $0x818] ss:$28 sps:$4 sm:$0xff]  }
 0x1b6   :  { %6052 = vmatprep.subr.bf16.mxu1 %v7750_v30  ;;  %v7804_v30 = vld [vmem:[%s11221_s3 + $0x7e4] ss:$28 sps:$4 sm:$0xff]  }
 0x1b7   :  { %6012 = vmatpush2.bf16.msra.mxu0 %v7745_v33 }
 0x1b8   :  { %6013 = vmatprep.subr.bf16.mxu0 %v7753_v36 }
 0x1b9   :  { %6053 = vmatpush2.bf16.msra.mxu1 %v7748_v34  ;;  %v7859_v34 = vld [vmem:[%s11221_s3 + $0xb98] ss:$28 sps:$4 sm:$0xff]  }
 0x1ba   :  { %6054 = vmatprep.subr.bf16.mxu1 %v7756_v63  ;;  %v7802_v63 = vld [vmem:[%s11221_s3 + $0x7e0] ss:$28 sps:$4 sm:$0xff]  }
 0x1bb   :  { %6014 = vmatpush2.bf16.msra.mxu0 %v7751_v37  ;;  %v7867_v37 = vld [vmem:[%s11221_s3 + $0xb64] ss:$28 sps:$4 sm:$0xff]  }
 0x1bc   :  { %6015 = vmatprep.subr.bf16.mxu0 %v7759_v39  ;;  %v7865_v39 = vld [vmem:[%s11221_s3 + $0xb60] ss:$28 sps:$4 sm:$0xff]  }
 0x1bd   :  { %6055 = vmatpush2.bf16.msra.mxu1 %v7754_v38  ;;  %v7807_v38 = vld [vmem:[%s11221_s3 + $0x7ac] ss:$28 sps:$4 sm:$0xff]  }
 0x1be   :  { %6056 = vmatprep.subr.bf16.mxu1 %v7762_v41  ;;  %v7873_v41 = vld [vmem:[%s11221_s3 + $0xb2c] ss:$28 sps:$4 sm:$0xff]  }
 0x1bf   :  { %6016 = vmatpush2.bf16.msra.mxu0 %v7757_v40  ;;  %v7805_v40 = vld [vmem:[%s11221_s3 + $0x7a8] ss:$28 sps:$4 sm:$0xff]  }
 0x1c0   :  { %6017 = vmatprep.subr.bf16.mxu0 %v7765_v42  ;;  %v7871_v42 = vld [vmem:[%s11221_s3 + $0xb28] ss:$28 sps:$4 sm:$0xff]  }
 0x1c1   :  { %6057 = vmatpush2.bf16.msra.mxu1 %v7760_v7  ;;  %v7810_v7 = vld [vmem:[%s11221_s3 + $0x774] ss:$28 sps:$4 sm:$0xff]  }
 0x1c2   :  { %6058 = vmatprep.subr.bf16.mxu1 %v7768_v43  ;;  %v7879_v43 = vld [vmem:[%s11221_s3 + $0xaf4] ss:$28 sps:$4 sm:$0xff]  }
 0x1c3   :  { %6018 = vmatpush2.bf16.msra.mxu0 %v7763_v46  ;;  %v7808_v46 = vld [vmem:[%s11221_s3 + $0x770] ss:$28 sps:$4 sm:$0xff]  }
 0x1c4   :  { %6019 = vmatprep.subr.bf16.mxu0 %v7771_v35  ;;  %v7877_v35 = vld [vmem:[%s11221_s3 + $0xaf0] ss:$28 sps:$4 sm:$0xff]  }
 0x1c5   :  { %6059 = vmatpush2.bf16.msra.mxu1 %v7766_v47  ;;  %v7813_v47 = vld [vmem:[%s11221_s3 + $0x73c] ss:$28 sps:$4 sm:$0xff]  }
 0x1c6   :  { %6060 = vmatprep.subr.bf16.mxu1 %v7774_v2  ;;  %v7885_v2 = vld [vmem:[%s11221_s3 + $0xabc] ss:$28 sps:$4 sm:$0xff]  }
 0x1c7   :  { %6020 = vmatpush2.bf16.msra.mxu0 %v7769_v45  ;;  %v7811_v45 = vld [vmem:[%s11221_s3 + $0x738] ss:$28 sps:$4 sm:$0xff]  }
 0x1c8   :  { %6021 = vmatprep.subr.bf16.mxu0 %v7777_v50  ;;  %v7883_v50 = vld [vmem:[%s11221_s3 + $0xab8] ss:$28 sps:$4 sm:$0xff]  }
 0x1c9   :  { %6061 = vmatpush2.bf16.msra.mxu1 %v7772_v49  ;;  %v7816_v49 = vld [vmem:[%s11221_s3 + $0x704] ss:$28 sps:$4 sm:$0xff]  }
 0x1ca   :  { %6062 = vmatprep.subr.bf16.mxu1 %v7780_v52  ;;  %v7891_v52 = vld [vmem:[%s11221_s3 + $0xa84] ss:$28 sps:$4 sm:$0xff]  }
 0x1cb   :  { %6022 = vmatpush2.bf16.msra.mxu0 %v7775_v56  ;;  %v7814_v56 = vld [vmem:[%s11221_s3 + $0x700] ss:$28 sps:$4 sm:$0xff]  }
 0x1cc   :  { %6023 = vmatprep.subr.bf16.mxu0 %v7783_v16  ;;  %v7889_v16 = vld [vmem:[%s11221_s3 + $0xa80] ss:$28 sps:$4 sm:$0xff]  }
 0x1cd   :  { %6063 = vmatpush2.bf16.msra.mxu1 %v7778_v11  ;;  %v7819_v11 = vld [vmem:[%s11221_s3 + $0xa4c] ss:$28 sps:$4 sm:$0xff]  }
 0x1ce   :  { %6064 = vmatprep.subr.bf16.mxu1 %v7786_v4  ;;  %v9885_v51 = vpop.f32.mrf.mxu0  ;;  %v7897_v4 = vld [vmem:[%s11221_s3 + $0xdcc] ss:$28 sps:$4 sm:$0xff]  }
 0x1cf   :  { %6024 = vmatpush2.bf16.msra.mxu0 %v7781_v55  ;;  %v7817_v55 = vld [vmem:[%s11221_s3 + $0xa48] ss:$28 sps:$4 sm:$0xff]  }
 0x1d0   :  { %v9890_v54 = vpop.f32.mrf.mxu1  ;;  %v9893_v5 = vpop.f32.mrf.mxu0  ;;  %6025 = vmatprep.subr.bf16.mxu0 %v7789_v60  ;;  %v7895_v60 = vld [vmem:[%s11221_s3 + $0xdc8] ss:$28 sps:$4 sm:$0xff]  }
 0x1d1   :  { %6065 = vmatpush2.bf16.msra.mxu1 %v7784_v58  ;;  %v7822_v58 = vld [vmem:[%s11221_s3 + $0xa14] ss:$28 sps:$4 sm:$0xff]  }
 0x1d2   :  { %v9899_v8 = vpop.f32.mrf.mxu1  ;;  %6066 = vmatprep.subr.bf16.mxu1 %v7792_v23  ;;  %v2836_v10 = vpop.f32.mrf.mxu0  ;;  %v7903_v23 = vld [vmem:[%s11221_s3 + $0xd94] ss:$28 sps:$4 sm:$0xff]  }
 0x1d3   :  { %6026 = vmatpush2.bf16.msra.mxu0 %v7787_v62  ;;  %v7820_v62 = vld [vmem:[%s11221_s3 + $0xa10] ss:$28 sps:$4 sm:$0xff]   ;;  %v7915_v10 = vld [vmem:[%s11221_s3 + $0xd24] ss:$28 sps:$4 sm:$0xff]  }
 0x1d4   :  { %v2877_v12 = vpop.f32.mrf.mxu1  ;;  %v2837_v14 = vpop.f32.mrf.mxu0  ;;  %6077 = vmatprep.subr.bf16.mxu0 %v7795_v6  ;;  %v7909_v6 = vld [vmem:[%s11221_s3 + $0xd5c] ss:$28 sps:$4 sm:$0xff]  }
 0x1d5   :  { %6067 = vmatpush2.bf16.msra.mxu1 %v7790_v1  ;;  %v7825_v1 = vld [vmem:[%s11221_s3 + $0x9dc] ss:$28 sps:$4 sm:$0xff]   ;;  %v484_v12 = vsub.s32 4, %v8454_v44 }
 0x1d6   :  { %v2878_v21 = vpop.f32.mrf.mxu1  ;;  %6118 = vmatprep.subr.bf16.mxu1 %v7849_v59  ;;  %6028 = vmatmul.mubr.bf16.vlgmr.msra.gmra.mxu0 %v9907_v13  ;;  %v7907_v59 = vld [vmem:[%s11221_s3 + $0xd58] ss:$28 sps:$4 sm:$0xff]   ;;  %v7826_v14 = vld [vmem:[%s11221_s3 + $0x9a0] ss:$28 sps:$4 sm:$0xff]  }
 0x1d7   :  { %6078 = vmatpush1.bf16.msra.mxu0 %v7793_v9  ;;  %v7828_v9 = vld [vmem:[%s11221_s3 + $0x9a4] ss:$28 sps:$4 sm:$0xff]   ;;  %v7921_v21 = vld [vmem:[%s11221_s3 + $0xcec] ss:$28 sps:$4 sm:$0xff]  }
 0x1d8   :  { %6069 = vmatmul.mubr.bf16.vlgmr.msra.gmra.mxu1 %v9915_v19  ;;  %v9928_v27 = vpop.f32.mrf.mxu1  ;;  %6079 = vmatprep.subr.bf16.mxu0 %v7798_v48  ;;  %v7831_v48 = vld [vmem:[%s11221_s3 + $0x96c] ss:$28 sps:$4 sm:$0xff]  }
 0x1d9   :  { %6119 = vmatpush1.bf16.msra.mxu1 %v7847_v15  ;;  %v7913_v15 = vld [vmem:[%s11221_s3 + $0xd20] ss:$28 sps:$4 sm:$0xff]  }
 0x1da   :  { %v9933_v61 = vpop.f32.mrf.mxu1  ;;  %6120 = vmatprep.subr.bf16.mxu1 %v7855_v24  ;;  %v7829_v24 = vld [vmem:[%s11221_s3 + $0x968] ss:$28 sps:$4 sm:$0xff]  }
 0x1db   :  { %6080 = vmatpush1.bf16.msra.mxu0 %v7796_v22  ;;  %v488_v22 = vsub.s32 5, %v8454_v44 }
 0x1dc   :  { %v2959_v33 = vpop.f32.mrf.mxu1  ;;  %6081 = vmatprep.subr.bf16.mxu0 %v7801_v25  ;;  %v7834_v25 = vld [vmem:[%s11221_s3 + $0x934] ss:$28 sps:$4 sm:$0xff]  }
 0x1dd   :  { %6121 = vmatpush1.bf16.msra.mxu1 %v7853_v28  ;;  %v7919_v28 = vld [vmem:[%s11221_s3 + $0xce8] ss:$28 sps:$4 sm:$0xff]  }
 0x1de   :  { %v2960_v36 = vpop.f32.mrf.mxu1  ;;  %6122 = vmatprep.subr.bf16.mxu1 %v7861_v31 }
 0x1df   :  { %6082 = vmatpush1.bf16.msra.mxu0 %v7799_v29  ;;  %v10072_v29 = vld [vmem:[%s11220_s2] sm:$0xff]  ;;  %v7837_v36 = vld [vmem:[%s11221_s3 + $0x8fc] ss:$28 sps:$4 sm:$0xff]  }
 0x1e0   :  { %6083 = vmatprep.subr.bf16.mxu0 %v7804_v30  ;;  %v485_v31 = vrot.slane %v10072_v29, %v484_v12  ;;  %v7927_v30 = vld [vmem:[%s11221_s3 + $0xcb4] ss:$28 sps:$4 sm:$0xff]   ;;  %v489_v33 = vrot.slane %v10072_v29, %v488_v22 }
 0x1e1   :  { %6123 = vmatpush1.bf16.msra.mxu1 %v7859_v34  ;;  %v7832_v34 = vld [vmem:[%s11221_s3 + $0x930] ss:$28 sps:$4 sm:$0xff]  }
 0x1e2   :  { %6124 = vmatprep.subr.bf16.mxu1 %v7867_v37  ;;  %v2833_v37 = vadd.f32 %v9885_v51, %v485_v31  ;;  %v7931_v51 = vld [vmem:[%s11221_s3 + $0xc78] ss:$28 sps:$4 sm:$0xff]   ;;  %v7886_v31 = vld [vmem:[%s11221_s3 + $0x350] ss:$28 sps:$4 sm:$0xff]  }
 0x1e3   :  { %6084 = vmatpush1.bf16.msra.mxu0 %v7802_v63  ;;  %v7925_v63 = vld [vmem:[%s11221_s3 + $0xcb0] ss:$28 sps:$4 sm:$0xff]  }
 0x1e4   :  { %6085 = vmatprep.subr.bf16.mxu0 %v7807_v38  ;;  %v7933_v38 = vld [vmem:[%s11221_s3 + $0xc7c] ss:$28 sps:$4 sm:$0xff]  }
 0x1e5   :  { %6125 = vmatpush1.bf16.msra.mxu1 %v7865_v39  ;;  %v2835_v39 = vadd.f32 %v9893_v5, %v489_v33  ;;  %v7939_v5 = vld [vmem:[%s11221_s3 + $0xc44] ss:$28 sps:$4 sm:$0xff]   ;;  %v7892_v33 = vld [vmem:[%s11221_s3 + $0x318] ss:$28 sps:$4 sm:$0xff]  }
 0x1e6   :  { %6126 = vmatprep.subr.bf16.mxu1 %v7873_v41  ;;  %v7835_v41 = vld [vmem:[%s11221_s3 + $0x8f8] ss:$28 sps:$4 sm:$0xff]  }
 0x1e7   :  { %6086 = vmatpush1.bf16.msra.mxu0 %v7805_v40  ;;  %v7840_v40 = vld [vmem:[%s11221_s3 + $0x8c4] ss:$28 sps:$4 sm:$0xff]  }
 0x1e8   :  { %6087 = vmatprep.subr.bf16.mxu0 %v7810_v7  ;;  %v2874_v7 = vadd.f32 %v9890_v54, %v2833_v37  ;;  %v7843_v54 = vld [vmem:[%s11221_s3 + $0x194] ss:$28 sps:$4 sm:$0xff]   ;;  %v7904_v37 = vld [vmem:[%s11221_s3 + $0x2a8] ss:$28 sps:$4 sm:$0xff]  }
 0x1e9   :  { %6127 = vmatpush1.bf16.msra.mxu1 %v7871_v42 }
 0x1ea   :  { %6128 = vmatprep.subr.bf16.mxu1 %v7879_v43  ;;  %v2876_v43 = vadd.f32 %v9899_v8, %v2835_v39  ;;  %v7910_v39 = vld [vmem:[%s11221_s3 + $0x270] ss:$28 sps:$4 sm:$0xff]  }
 0x1eb   :  { %6088 = vmatpush1.bf16.msra.mxu0 %v7808_v46 }
 0x1ec   :  { %6089 = vmatprep.subr.bf16.mxu0 %v7813_v47  ;;  %v7838_v47 = vld [vmem:[%s11221_s3 + $0x8c0] ss:$28 sps:$4 sm:$0xff]  }
 0x1ed   :  { %6129 = vmatpush1.bf16.msra.mxu1 %v7877_v35 }
 0x1ee   :  { %6130 = vmatprep.subr.bf16.mxu1 %v7885_v2  ;;  %v7937_v2 = vld [vmem:[%s11221_s3 + $0xc40] ss:$28 sps:$4 sm:$0xff]  }
 0x1ef   :  { %6090 = vmatpush1.bf16.msra.mxu0 %v7811_v45 }
 0x1f0   :  { %6091 = vmatprep.subr.bf16.mxu0 %v7816_v49  ;;  %v7945_v49 = vld [vmem:[%s11221_s3 + $0x514] ss:$28 sps:$4 sm:$0xff]  }
 0x1f1   :  { %6131 = vmatpush1.bf16.msra.mxu1 %v7883_v50 }
 0x1f2   :  { %6132 = vmatprep.subr.bf16.mxu1 %v7891_v52 }
 0x1f3   :  { %6092 = vmatpush1.bf16.msra.mxu0 %v7814_v56 }
 0x1f4   :  { %6093 = vmatprep.subr.bf16.mxu0 %v7819_v11 }
 0x1f5   :  { %6133 = vmatpush1.bf16.msra.mxu1 %v7889_v16 }
 0x1f6   :  { %6134 = vmatprep.subr.bf16.mxu1 %v7897_v4 }
 0x1f7   :  { %6094 = vmatpush2.bf16.msra.mxu0 %v7817_v55 }
 0x1f8   :  { %6095 = vmatprep.subr.bf16.mxu0 %v7822_v58 }
 0x1f9   :  { %6135 = vmatpush2.bf16.msra.mxu1 %v7895_v60 }
 0x1fa   :  { %6136 = vmatprep.subr.bf16.mxu1 %v7903_v23 }
 0x1fb   :  { %6096 = vmatpush2.bf16.msra.mxu0 %v7820_v62  ;;  %v7844_v62 = vld [vmem:[%s11221_s3 + $0x158] ss:$28 sps:$4 sm:$0xff]  }
 0x1fc   :  { %6097 = vmatprep.subr.bf16.mxu0 %v7825_v1  ;;  %v7852_v1 = vld [vmem:[%s11221_s3 + $0x124] ss:$28 sps:$4 sm:$0xff]  }
 0x1fd   :  { %6137 = vmatpush2.bf16.msra.mxu1 %v7901_v3 }
 0x1fe   :  { %6138 = vmatprep.subr.bf16.mxu1 %v7909_v6  ;;  %v7850_v6 = vld [vmem:[%s11221_s3 + $0x120] ss:$28 sps:$4 sm:$0xff]  }
 0x1ff   :  { %6098 = vmatpush2.bf16.msra.mxu0 %v7823_v18  ;;  %v7858_v18 = vld [vmem:[%s11221_s3 + $0xec] ss:$28 sps:$4 sm:$0xff]  }
 0x200   :  { %6099 = vmatprep.subr.bf16.mxu0 %v7828_v9  ;;  %v7856_v9 = vld [vmem:[%s11221_s3 + $0xe8] ss:$28 sps:$4 sm:$0xff]  }
 0x201   :  { %6139 = vmatpush2.bf16.msra.mxu1 %v7907_v59  ;;  %v7864_v59 = vld [vmem:[%s11221_s3 + $0xb4] ss:$28 sps:$4 sm:$0xff]  }
 0x202   :  { %6140 = vmatprep.subr.bf16.mxu1 %v7915_v10  ;;  %v7862_v10 = vld [vmem:[%s11221_s3 + $0xb0] ss:$28 sps:$4 sm:$0xff]  }
 0x203   :  { %6100 = vmatpush2.bf16.msra.mxu0 %v7826_v14  ;;  %v7870_v14 = vld [vmem:[%s11221_s3 + $0x7c] ss:$28 sps:$4 sm:$0xff]  }
 0x204   :  { %6101 = vmatprep.subr.bf16.mxu0 %v7831_v48  ;;  %v7868_v48 = vld [vmem:[%s11221_s3 + $0x78] ss:$28 sps:$4 sm:$0xff]  }
 0x205   :  { %6141 = vmatpush2.bf16.msra.mxu1 %v7913_v15  ;;  %v7876_v15 = vld [vmem:[%s11221_s3 + $0x44] ss:$28 sps:$4 sm:$0xff]  }
 0x206   :  { %6142 = vmatprep.subr.bf16.mxu1 %v7921_v21  ;;  %v7874_v21 = vld [vmem:[%s11221_s3 + $0x40] ss:$28 sps:$4 sm:$0xff]  }
 0x207   :  { %6102 = vmatpush2.bf16.msra.mxu0 %v7829_v24  ;;  %v7882_v24 = vld [vmem:[%s11221_s3 + $0xc] ss:$28 sps:$4 sm:$0xff]  }
 0x208   :  { %6103 = vmatprep.subr.bf16.mxu0 %v7834_v25  ;;  %v7880_v25 = vld [vmem:[%s11221_s3 + $0x8] ss:$28 sps:$4 sm:$0xff]  }
 0x209   :  { %6143 = vmatpush2.bf16.msra.mxu1 %v7919_v28  ;;  %v7888_v28 = vld [vmem:[%s11221_s3 + $0x354] ss:$28 sps:$4 sm:$0xff]  }
 0x20a   :  { %6144 = vmatprep.subr.bf16.mxu1 %v7927_v30  ;;  %v7894_v30 = vld [vmem:[%s11221_s3 + $0x31c] ss:$28 sps:$4 sm:$0xff]  }
 0x20b   :  { %6104 = vmatpush2.bf16.msra.mxu0 %v7832_v34  ;;  %v7900_v34 = vld [vmem:[%s11221_s3 + $0x2e4] ss:$28 sps:$4 sm:$0xff]  }
 0x20c   :  { %6105 = vmatprep.subr.bf16.mxu0 %v7837_v36  ;;  %v7898_v36 = vld [vmem:[%s11221_s3 + $0x2e0] ss:$28 sps:$4 sm:$0xff]  }
 0x20d   :  { %6145 = vmatpush2.bf16.msra.mxu1 %v7925_v63  ;;  %v7906_v63 = vld [vmem:[%s11221_s3 + $0x2ac] ss:$28 sps:$4 sm:$0xff]  }
 0x20e   :  { %6146 = vmatprep.subr.bf16.mxu1 %v7933_v38  ;;  %v2914_v42 = vpop.f32.mrf.mxu0  ;;  %v7912_v38 = vld [vmem:[%s11221_s3 + $0x274] ss:$28 sps:$4 sm:$0xff]  }
 0x20f   :  { %v2915_v46 = vadd.f32 %v2914_v42, %v2874_v7  ;;  %6106 = vmatpush2.bf16.msra.mxu0 %v7835_v41  ;;  %v7918_v41 = vld [vmem:[%s11221_s3 + $0x23c] ss:$28 sps:$4 sm:$0xff]   ;;  %v7924_v7 = vld [vmem:[%s11221_s3 + $0x204] ss:$28 sps:$4 sm:$0xff]  }
 0x210   :  { %v2916_v35 = vpop.f32.mrf.mxu0  ;;  %6107 = vmatprep.subr.bf16.mxu0 %v7840_v40  ;;  %v7916_v40 = vld [vmem:[%s11221_s3 + $0x238] ss:$28 sps:$4 sm:$0xff]  }
 0x211   :  { %6147 = vmatpush2.bf16.msra.mxu1 %v7931_v51  ;;  %v2956_v45 = vadd.f32 %v9928_v27, %v2915_v46  ;;  %v2917_v8 = vadd.f32 %v2916_v35, %v2876_v43  ;;  %v7841_v27 = vld [vmem:[%s11221_s3 + $0x190] ss:$28 sps:$4 sm:$0xff]   ;;  %v492_v51 = vsub.s32 6, %v8454_v44  ;;  %v7922_v43 = vld [vmem:[%s11221_s3 + $0x200] ss:$28 sps:$4 sm:$0xff]  }
 0x212   :  { %6148 = vmatprep.subr.bf16.mxu1 %v7939_v5  ;;  %v2918_v50 = vpop.f32.mrf.mxu0  ;;  %v496_v5 = vsub.s32 7, %v8454_v44  ;;  %v7930_v35 = vld [vmem:[%s11221_s3 + $0x1cc] ss:$28 sps:$4 sm:$0xff]  }
 0x213   :  { %v2958_v52 = vadd.f32 %v9933_v61, %v2917_v8  ;;  %6108 = vmatpush2.bf16.msra.mxu0 %v7838_v47  ;;  %v3130_v56 = vmax.f32 %v2956_v45, 0.0  ;;  %v7846_v61 = vld [vmem:[%s11221_s3 + $0x15c] ss:$28 sps:$4 sm:$0xff]   ;;  %v493_v46 = vrot.slane %v10072_v29, %v492_v51  ;;  %v7928_v45 = vld [vmem:[%s11221_s3 + $0x1c8] ss:$28 sps:$4 sm:$0xff]  }
 0x214   :  { %v2919_v11 = vpop.f32.mrf.mxu0  ;;  %6159 = vmatprep.subr.bf16.mxu0 %v7843_v54  ;;  %v497_v54 = vrot.slane %v10072_v29, %v496_v5  ;;  %v7936_v50 = vld [vmem:[%s11221_s3 + $0x894] ss:$28 sps:$4 sm:$0xff]   ;;  %v7972_v5 = vld [vmem:[%s11221_s3 + $0x744] ss:$28 sps:$4 sm:$0xff]  }
 0x215   :  { %6149 = vmatpush2.bf16.msra.mxu1 %v7937_v2  ;;  %v3131_v16 = vmax.f32 %v2958_v52, 0.0  ;;  %v10132_v58 = vpack.c.bf16 %v3130_v56, %v3130_v56  ;;  %v7934_v29 = vld [vmem:[%s11221_s3 + $0x890] ss:$28 sps:$4 sm:$0xff]  }
 0x216   :  { %6200 = vmatprep.subr.bf16.mxu1 %v7945_v49 }
 0x217   :  { %v10125_v4 = vpack.c.bf16 %v3131_v16, %v3131_v16 }
 0x218   :  { %v10127_v55 = vpop.f32.mrf.mxu1 }
 0x219   :  { %6109 = vmatprep.mubr.bf16.mxu0 %v10125_v4  ;;  %v2997_v8 = vadd.f32 %v10127_v55, %v493_v46  ;;  %v7942_v55 = vld [vmem:[%s11221_s3 + $0x85c] ss:$28 sps:$4 sm:$0xff]   ;;  %v7967_v46 = vld [vmem:[%s11221_s3 + $0x430] ss:$28 sps:$4 sm:$0xff]  }
 0x21a   :  { %v10137_v60 = vpop.f32.mrf.mxu1  ;;  %6110 = vmatmul.mubr.bf16.vlgmr.msra.gmra.mxu0 %v10132_v58 }
 0x21b   :  { %6160 = vmatpush1.bf16.msra.mxu0 %v7841_v27  ;;  %6191 = vmatprep.mubr.bf16.mxu0 %v9708_v20  ;;  %v2999_v52 = vadd.f32 %v10137_v60, %v497_v54  ;;  %v7976_v54 = vld [vmem:[%s11221_s3 + $0x708] ss:$28 sps:$4 sm:$0xff]  }
 0x21c   :  { %v3000_v23 = vpop.f32.mrf.mxu1  ;;  %6161 = vmatprep.subr.bf16.mxu0 %v7846_v61 }
 0x21e   :  { %v3001_v3 = vpop.f32.mrf.mxu1 }
 0x21f   :  { %6162 = vmatpush1.bf16.msra.mxu0 %v7844_v62 }
 0x220   :  { %6163 = vmatprep.subr.bf16.mxu0 %v7852_v1 }
 0x223   :  { %6164 = vmatpush1.bf16.msra.mxu0 %v7850_v6 }
 0x224   :  { %6165 = vmatprep.subr.bf16.mxu0 %v7858_v18  ;;  %v7940_v18 = vld [vmem:[%s11221_s3 + $0x858] ss:$28 sps:$4 sm:$0xff]  }
 0x227   :  { %6166 = vmatpush1.bf16.msra.mxu0 %v7856_v9 }
 0x228   :  { %6167 = vmatprep.subr.bf16.mxu0 %v7864_v59 }
 0x22b   :  { %6168 = vmatpush1.bf16.msra.mxu0 %v7862_v10  ;;  %v7948_v10 = vld [vmem:[%s11221_s3 + $0x824] ss:$28 sps:$4 sm:$0xff]  }
 0x22c   :  { %6169 = vmatprep.subr.bf16.mxu0 %v7870_v14 }
 0x22f   :  { %6170 = vmatpush1.bf16.msra.mxu0 %v7868_v48 }
 0x230   :  { %6171 = vmatprep.subr.bf16.mxu0 %v7876_v15 }
 0x233   :  { %6172 = vmatpush1.bf16.msra.mxu0 %v7874_v21  ;;  %v7946_v21 = vld [vmem:[%s11221_s3 + $0x820] ss:$28 sps:$4 sm:$0xff]  }
 0x234   :  { %6173 = vmatprep.subr.bf16.mxu0 %v7882_v24 }
 0x237   :  { %6174 = vmatpush1.bf16.msra.mxu0 %v7880_v25  ;;  %v7943_v25 = vld [vmem:[%s11221_s3 + $0x510] ss:$28 sps:$4 sm:$0xff]  }
 0x238   :  { %6175 = vmatprep.subr.bf16.mxu0 %v7888_v28 }
 0x23b   :  { %6176 = vmatpush2.bf16.msra.mxu0 %v7886_v31  ;;  %v7951_v31 = vld [vmem:[%s11221_s3 + $0x4dc] ss:$28 sps:$4 sm:$0xff]  }
 0x23c   :  { %6177 = vmatprep.subr.bf16.mxu0 %v7894_v30  ;;  %v7954_v30 = vld [vmem:[%s11221_s3 + $0x7ec] ss:$28 sps:$4 sm:$0xff]  }
 0x23f   :  { %6178 = vmatpush2.bf16.msra.mxu0 %v7892_v33  ;;  %v7952_v33 = vld [vmem:[%s11221_s3 + $0x7e8] ss:$28 sps:$4 sm:$0xff]  }
 0x240   :  { %6179 = vmatprep.subr.bf16.mxu0 %v7900_v34  ;;  %v7949_v34 = vld [vmem:[%s11221_s3 + $0x4d8] ss:$28 sps:$4 sm:$0xff]  }
 0x243   :  { %6180 = vmatpush2.bf16.msra.mxu0 %v7898_v36  ;;  %v7960_v36 = vld [vmem:[%s11221_s3 + $0x7b4] ss:$28 sps:$4 sm:$0xff]  }
 0x244   :  { %6181 = vmatprep.subr.bf16.mxu0 %v7906_v63  ;;  %v7957_v63 = vld [vmem:[%s11221_s3 + $0x4a4] ss:$28 sps:$4 sm:$0xff]  }
 0x247   :  { %6182 = vmatpush2.bf16.msra.mxu0 %v7904_v37  ;;  %v7958_v37 = vld [vmem:[%s11221_s3 + $0x7b0] ss:$28 sps:$4 sm:$0xff]  }
 0x248   :  { %6183 = vmatprep.subr.bf16.mxu0 %v7912_v38  ;;  %v7955_v38 = vld [vmem:[%s11221_s3 + $0x4a0] ss:$28 sps:$4 sm:$0xff]  }
 0x24b   :  { %6184 = vmatpush2.bf16.msra.mxu0 %v7910_v39  ;;  %v7966_v39 = vld [vmem:[%s11221_s3 + $0x77c] ss:$28 sps:$4 sm:$0xff]  }
 0x24c   :  { %6185 = vmatprep.subr.bf16.mxu0 %v7918_v41  ;;  %v7963_v41 = vld [vmem:[%s11221_s3 + $0x46c] ss:$28 sps:$4 sm:$0xff]  }
 0x24e   :  { %v3037_v42 = vpop.f32.mrf.mxu0 }
 0x24f   :  { %6186 = vmatpush2.bf16.msra.mxu0 %v7916_v40  ;;  %v3038_v56 = vadd.f32 %v3037_v42, %v2997_v8  ;;  %v7964_v40 = vld [vmem:[%s11221_s3 + $0x778] ss:$28 sps:$4 sm:$0xff]   ;;  %v7981_v8 = vld [vmem:[%s11221_s3 + $0x3c4] ss:$28 sps:$4 sm:$0xff]  }
 0x250   :  { %v3039_v47 = vpop.f32.mrf.mxu0  ;;  %6187 = vmatprep.subr.bf16.mxu0 %v7924_v7  ;;  %v7961_v7 = vld [vmem:[%s11221_s3 + $0x468] ss:$28 sps:$4 sm:$0xff]   ;;  %v7969_v42 = vld [vmem:[%s11221_s3 + $0x434] ss:$28 sps:$4 sm:$0xff]  }
 0x251   :  { %v3040_v27 = vadd.f32 %v3039_v47, %v2999_v52  ;;  %v7978_v47 = vld [vmem:[%s11221_s3 + $0x70c] ss:$28 sps:$4 sm:$0xff]   ;;  %v7990_v52 = vld [vmem:[%s11221_s3 + $0xa1c] ss:$28 sps:$4 sm:$0xff]  }
 0x252   :  { %v3041_v2 = vpop.f32.mrf.mxu0 }
 0x253   :  { %6188 = vmatpush2.bf16.msra.mxu0 %v7922_v43  ;;  %v7970_v43 = vld [vmem:[%s11221_s3 + $0x740] ss:$28 sps:$4 sm:$0xff]   ;;  %v7973_v2 = vld [vmem:[%s11221_s3 + $0x3f8] ss:$28 sps:$4 sm:$0xff]  }
 0x254   :  { %v3042_v49 = vpop.f32.mrf.mxu0  ;;  %6189 = vmatprep.subr.bf16.mxu0 %v7930_v35  ;;  %v7975_v35 = vld [vmem:[%s11221_s3 + $0x3fc] ss:$28 sps:$4 sm:$0xff]  }
 0x255   :  { %v7982_v49 = vld [vmem:[%s11221_s3 + $0xa50] ss:$28 sps:$4 sm:$0xff]  }
 0x256   :  { %v3119_v11 = vpop.f32.mrf.mxu0 }
 0x257   :  { %6190 = vmatpush2.bf16.msra.mxu0 %v7928_v45  ;;  %v7984_v45 = vld [vmem:[%s11221_s3 + $0xa54] ss:$28 sps:$4 sm:$0xff]  }
 0x258   :  { %v3078_v16 = vpop.f32.mrf.mxu1  ;;  %v3121_v23 = vpop.f32.mrf.mxu0  ;;  %6241 = vmatprep.subr.bf16.mxu0 %v7936_v50  ;;  %v7979_v50 = vld [vmem:[%s11221_s3 + $0x3c0] ss:$28 sps:$4 sm:$0xff]  }
 0x259   :  { %v3079_v61 = vadd.f32 %v3078_v16, %v3038_v56  ;;  %v7987_v56 = vld [vmem:[%s11221_s3 + $0x38c] ss:$28 sps:$4 sm:$0xff]  }
 0x25a   :  { %v3080_v62 = vpop.f32.mrf.mxu1  ;;  %6192 = vmatmul.mubr.bf16.vlgmr.msra.gmra.mxu0 %v9907_v13  ;;  %v3123_v60 = vpop.f32.mrf.mxu0  ;;  %v7985_v16 = vld [vmem:[%s11221_s3 + $0x388] ss:$28 sps:$4 sm:$0xff]  }
 0x25b   :  { %v3120_v1 = vadd.f32 %v3119_v11, %v3079_v61  ;;  %v3081_v3 = vadd.f32 %v3080_v62, %v3040_v27  ;;  %6242 = vmatpush1.bf16.msra.mxu0 %v7934_v29  ;;  %6273 = vmatprep.mubr.bf16.mxu0 %v10125_v4  ;;  %v7988_v11 = vld [vmem:[%s11221_s3 + $0xa18] ss:$28 sps:$4 sm:$0xff]   ;;  %v7996_v29 = vld [vmem:[%s11221_s3 + $0x9e4] ss:$28 sps:$4 sm:$0xff]  }
 0x25c   :  { %v3082_v6 = vpop.f32.mrf.mxu1  ;;  %v3124_v59 = vpop.f32.mrf.mxu0  ;;  %6243 = vmatprep.subr.bf16.mxu0 %v7942_v55  ;;  %v7993_v27 = vld [vmem:[%s11221_s3 + $0x6d4] ss:$28 sps:$4 sm:$0xff]   ;;  %v7994_v61 = vld [vmem:[%s11221_s3 + $0x9e0] ss:$28 sps:$4 sm:$0xff]   ;;  %v8002_v55 = vld [vmem:[%s11221_s3 + $0x9ac] ss:$28 sps:$4 sm:$0xff]  }
 0x25d   :  { %v3122_v9 = vadd.f32 %v3121_v23, %v3081_v3  ;;  %v3132_v14 = vmax.f32 %v3120_v1, 0.0  ;;  %v7991_v23 = vld [vmem:[%s11221_s3 + $0x6d0] ss:$28 sps:$4 sm:$0xff]   ;;  %v7999_v62 = vld [vmem:[%s11221_s3 + $0x69c] ss:$28 sps:$4 sm:$0xff]  }
 0x25e   :  { %v3083_v48 = vpop.f32.mrf.mxu1  ;;  %v8000_v1 = vld [vmem:[%s11221_s3 + $0x9a8] ss:$28 sps:$4 sm:$0xff]   ;;  %v7997_v3 = vld [vmem:[%s11221_s3 + $0x698] ss:$28 sps:$4 sm:$0xff]  }
 0x25f   :  { %v3133_v15 = vmax.f32 %v3122_v9, 0.0  ;;  %6244 = vmatpush1.bf16.msra.mxu0 %v7940_v18  ;;  %v10262_v28 = vpack.c.bf16 %v3132_v14, %v3132_v14  ;;  %v8008_v60 = vld [vmem:[%s11221_s3 + $0x974] ss:$28 sps:$4 sm:$0xff]   ;;  %v8005_v6 = vld [vmem:[%s11221_s3 + $0x664] ss:$28 sps:$4 sm:$0xff]  }
 0x260   :  { %6245 = vmatprep.subr.bf16.mxu0 %v7948_v10  ;;  %v8006_v18 = vld [vmem:[%s11221_s3 + $0x970] ss:$28 sps:$4 sm:$0xff]   ;;  %v8003_v9 = vld [vmem:[%s11221_s3 + $0x660] ss:$28 sps:$4 sm:$0xff]   ;;  %v8012_v14 = vld [vmem:[%s11221_s3 + $0x938] ss:$28 sps:$4 sm:$0xff]  }
 0x261   :  { %v10257_v24 = vpack.c.bf16 %v3133_v15, %v3133_v15  ;;  %v8014_v59 = vld [vmem:[%s11221_s3 + $0x93c] ss:$28 sps:$4 sm:$0xff]   ;;  %v8011_v10 = vld [vmem:[%s11221_s3 + $0x62c] ss:$28 sps:$4 sm:$0xff]   ;;  %v8020_v15 = vld [vmem:[%s11221_s3 + $0x904] ss:$28 sps:$4 sm:$0xff]  }
 0x262   :  { %v8009_v48 = vld [vmem:[%s11221_s3 + $0x628] ss:$28 sps:$4 sm:$0xff]  }
 0x263   :  { %6150 = vmatprep.mubr.bf16.mxu1 %v10257_v24  ;;  %6246 = vmatpush1.bf16.msra.mxu0 %v7946_v21  ;;  %v8017_v21 = vld [vmem:[%s11221_s3 + $0x5f4] ss:$28 sps:$4 sm:$0xff]  }
 0x264   :  { %6151 = vmatmul.mubr.bf16.vlgmr.msra.gmra.mxu1 %v10262_v28  ;;  %6247 = vmatprep.subr.bf16.mxu0 %v7954_v30  ;;  %v10414_v30 = vld [vmem:[%s11222_s4] sm:$0x7f] }
 0x265   :  { %6201 = vmatpush1.bf16.msra.mxu1 %v7943_v25  ;;  %6232 = vmatprep.mubr.bf16.mxu1 %v9719_v0  ;;  %v8018_v25 = vld [vmem:[%s11221_s3 + $0x900] ss:$28 sps:$4 sm:$0xff]  }
 0x266   :  { %6202 = vmatprep.subr.bf16.mxu1 %v7951_v31  ;;  %v8015_v31 = vld [vmem:[%s11221_s3 + $0x5f0] ss:$28 sps:$4 sm:$0xff]  }
 0x267   :  { %6248 = vmatpush1.bf16.msra.mxu0 %v7952_v33  ;;  %v8026_v33 = vld [vmem:[%s11221_s3 + $0x8cc] ss:$28 sps:$4 sm:$0xff]  }
 0x268   :  { %6249 = vmatprep.subr.bf16.mxu0 %v7960_v36  ;;  %v3659_v36 = vrot.slane %v10414_v30, %v468_v26  ;;  %v8029_v26 = vld [vmem:[%s11221_s3 + $0x584] ss:$28 sps:$4 sm:$0xff]  }
 0x269   :  { %6203 = vmatpush1.bf16.msra.mxu1 %v7949_v34  ;;  %v8023_v34 = vld [vmem:[%s11221_s3 + $0x5bc] ss:$28 sps:$4 sm:$0xff]  }
 0x26a   :  { %6204 = vmatprep.subr.bf16.mxu1 %v7957_v63  ;;  %v8024_v63 = vld [vmem:[%s11221_s3 + $0x8c8] ss:$28 sps:$4 sm:$0xff]  }
 0x26b   :  { %6250 = vmatpush1.bf16.msra.mxu0 %v7958_v37  ;;  %v8021_v37 = vld [vmem:[%s11221_s3 + $0x5b8] ss:$28 sps:$4 sm:$0xff]  }
 0x26c   :  { %6251 = vmatprep.subr.bf16.mxu0 %v7966_v39  ;;  %v3663_v39 = vrot.slane %v10414_v30, %v472_v32  ;;  %v8038_v32 = vld [vmem:[%s11221_s3 + $0x164] ss:$28 sps:$4 sm:$0xff]  }
 0x26d   :  { %6205 = vmatpush1.bf16.msra.mxu1 %v7955_v38  ;;  %v8032_v38 = vld [vmem:[%s11221_s3 + $0x19c] ss:$28 sps:$4 sm:$0xff]  }
 0x26e   :  { %6206 = vmatprep.subr.bf16.mxu1 %v7963_v41 }
 0x26f   :  { %6252 = vmatpush1.bf16.msra.mxu0 %v7964_v40 }
 0x270   :  { %6253 = vmatprep.subr.bf16.mxu0 %v7972_v5  ;;  %v8030_v5 = vld [vmem:[%s11221_s3 + $0x198] ss:$28 sps:$4 sm:$0xff]  }
 0x271   :  { %6207 = vmatpush1.bf16.msra.mxu1 %v7961_v7 }
 0x272   :  { %6208 = vmatprep.subr.bf16.mxu1 %v7969_v42 }
 0x273   :  { %6254 = vmatpush1.bf16.msra.mxu0 %v7970_v43  ;;  %v8027_v43 = vld [vmem:[%s11221_s3 + $0x580] ss:$28 sps:$4 sm:$0xff]  }
 0x274   :  { %6255 = vmatprep.subr.bf16.mxu0 %v7978_v47 }
 0x275   :  { %6209 = vmatpush1.bf16.msra.mxu1 %v7967_v46 }
 0x276   :  { %6210 = vmatprep.subr.bf16.mxu1 %v7975_v35 }
 0x277   :  { %6256 = vmatpush1.bf16.msra.mxu0 %v7976_v54  ;;  %v8035_v54 = vld [vmem:[%s11221_s3 + $0x54c] ss:$28 sps:$4 sm:$0xff]  }
 0x278   :  { %6257 = vmatprep.subr.bf16.mxu0 %v7984_v45 }
 0x279   :  { %6211 = vmatpush1.bf16.msra.mxu1 %v7973_v2 }
 0x27a   :  { %6212 = vmatprep.subr.bf16.mxu1 %v7981_v8 }
 0x27b   :  { %6258 = vmatpush2.bf16.msra.mxu0 %v7982_v49  ;;  %v8036_v49 = vld [vmem:[%s11221_s3 + $0x160] ss:$28 sps:$4 sm:$0xff]  }
 0x27c   :  { %6259 = vmatprep.subr.bf16.mxu0 %v7990_v52  ;;  %v8033_v52 = vld [vmem:[%s11221_s3 + $0x548] ss:$28 sps:$4 sm:$0xff]  }
 0x27d   :  { %6213 = vmatpush1.bf16.msra.mxu1 %v7979_v50 }
 0x27e   :  { %6214 = vmatprep.subr.bf16.mxu1 %v7987_v56  ;;  %v8044_v56 = vld [vmem:[%s11221_s3 + $0x12c] ss:$28 sps:$4 sm:$0xff]  }
 0x27f   :  { %6260 = vmatpush2.bf16.msra.mxu0 %v7988_v11 }
 0x280   :  { %6261 = vmatprep.subr.bf16.mxu0 %v7996_v29  ;;  %v8042_v29 = vld [vmem:[%s11221_s3 + $0x128] ss:$28 sps:$4 sm:$0xff]  }
 0x281   :  { %6215 = vmatpush1.bf16.msra.mxu1 %v7985_v16  ;;  %v8041_v16 = vld [vmem:[%s11221_s3 + $0xc14] ss:$28 sps:$4 sm:$0xff]  }
 0x282   :  { %6216 = vmatprep.subr.bf16.mxu1 %v7993_v27  ;;  %v8039_v27 = vld [vmem:[%s11221_s3 + $0xc10] ss:$28 sps:$4 sm:$0xff]  }
 0x283   :  { %6262 = vmatpush2.bf16.msra.mxu0 %v7994_v61  ;;  %v8047_v61 = vld [vmem:[%s11221_s3 + $0xbdc] ss:$28 sps:$4 sm:$0xff]  }
 0x284   :  { %6263 = vmatprep.subr.bf16.mxu0 %v8002_v55  ;;  %v8048_v55 = vld [vmem:[%s11221_s3 + $0xf0] ss:$28 sps:$4 sm:$0xff]  }
 0x285   :  { %6217 = vmatpush2.bf16.msra.mxu1 %v7991_v23  ;;  %v8050_v23 = vld [vmem:[%s11221_s3 + $0xf4] ss:$28 sps:$4 sm:$0xff]  }
 0x286   :  { %6218 = vmatprep.subr.bf16.mxu1 %v7999_v62  ;;  %v8045_v62 = vld [vmem:[%s11221_s3 + $0xbd8] ss:$28 sps:$4 sm:$0xff]  }
 0x287   :  { %6264 = vmatpush2.bf16.msra.mxu0 %v8000_v1  ;;  %v8056_v1 = vld [vmem:[%s11221_s3 + $0xbc] ss:$28 sps:$4 sm:$0xff]  }
 0x288   :  { %6265 = vmatprep.subr.bf16.mxu0 %v8008_v60  ;;  %v8054_v60 = vld [vmem:[%s11221_s3 + $0xb8] ss:$28 sps:$4 sm:$0xff]  }
 0x289   :  { %6219 = vmatpush2.bf16.msra.mxu1 %v7997_v3  ;;  %v8053_v3 = vld [vmem:[%s11221_s3 + $0xba4] ss:$28 sps:$4 sm:$0xff]  }
 0x28a   :  { %6220 = vmatprep.subr.bf16.mxu1 %v8005_v6  ;;  %v8051_v6 = vld [vmem:[%s11221_s3 + $0xba0] ss:$28 sps:$4 sm:$0xff]  }
 0x28b   :  { %6266 = vmatpush2.bf16.msra.mxu0 %v8006_v18  ;;  %v8062_v18 = vld [vmem:[%s11221_s3 + $0x84] ss:$28 sps:$4 sm:$0xff]  }
 0x28c   :  { %6267 = vmatprep.subr.bf16.mxu0 %v8014_v59  ;;  %v8060_v59 = vld [vmem:[%s11221_s3 + $0x80] ss:$28 sps:$4 sm:$0xff]  }
 0x28d   :  { %6221 = vmatpush2.bf16.msra.mxu1 %v8003_v9  ;;  %v8059_v9 = vld [vmem:[%s11221_s3 + $0xb6c] ss:$28 sps:$4 sm:$0xff]  }
 0x28e   :  { %6222 = vmatprep.subr.bf16.mxu1 %v8011_v10  ;;  %v8057_v10 = vld [vmem:[%s11221_s3 + $0xb68] ss:$28 sps:$4 sm:$0xff]  }
 0x28f   :  { %6268 = vmatpush2.bf16.msra.mxu0 %v8012_v14  ;;  %v8068_v14 = vld [vmem:[%s11221_s3 + $0x4c] ss:$28 sps:$4 sm:$0xff]  }
 0x290   :  { %6269 = vmatprep.subr.bf16.mxu0 %v8020_v15  ;;  %v8066_v15 = vld [vmem:[%s11221_s3 + $0x48] ss:$28 sps:$4 sm:$0xff]  }
 0x291   :  { %6223 = vmatpush2.bf16.msra.mxu1 %v8009_v48  ;;  %v8065_v48 = vld [vmem:[%s11221_s3 + $0xb34] ss:$28 sps:$4 sm:$0xff]  }
 0x292   :  { %6224 = vmatprep.subr.bf16.mxu1 %v8017_v21  ;;  %v8063_v21 = vld [vmem:[%s11221_s3 + $0xb30] ss:$28 sps:$4 sm:$0xff]  }
 0x293   :  { %6270 = vmatpush2.bf16.msra.mxu0 %v8018_v25  ;;  %v8074_v25 = vld [vmem:[%s11221_s3 + $0x14] ss:$28 sps:$4 sm:$0xff]  }
 0x294   :  { %6271 = vmatprep.subr.bf16.mxu0 %v8026_v33  ;;  %v8072_v33 = vld [vmem:[%s11221_s3 + $0x10] ss:$28 sps:$4 sm:$0xff]  }
 0x295   :  { %6225 = vmatpush2.bf16.msra.mxu1 %v8015_v31  ;;  %v8071_v31 = vld [vmem:[%s11221_s3 + $0xafc] ss:$28 sps:$4 sm:$0xff]  }
 0x296   :  { %6226 = vmatprep.subr.bf16.mxu1 %v8023_v34  ;;  %v6029_v41 = vpop.f32.mrf.mxu0  ;;  %v8069_v34 = vld [vmem:[%s11221_s3 + $0xaf8] ss:$28 sps:$4 sm:$0xff]  }
 0x297   :  { %v6030_v40 = vadd.f32 %v6029_v41, %v3659_v36  ;;  %6272 = vmatpush2.bf16.msra.mxu0 %v8024_v63  ;;  %v8080_v36 = vld [vmem:[%s11221_s3 + $0x35c] ss:$28 sps:$4 sm:$0xff]   ;;  %v8077_v63 = vld [vmem:[%s11221_s3 + $0xac4] ss:$28 sps:$4 sm:$0xff]  }
 0x298   :  { %v6070_v7 = vpop.f32.mrf.mxu1  ;;  %v6031_v42 = vpop.f32.mrf.mxu0  ;;  %6323 = vmatprep.subr.bf16.mxu0 %v8032_v38  ;;  %v8075_v38 = vld [vmem:[%s11221_s3 + $0xac0] ss:$28 sps:$4 sm:$0xff]  }
 0x299   :  { %6227 = vmatpush2.bf16.msra.mxu1 %v8021_v37  ;;  %v10449_v46 = vadd.f32 %v6070_v7, %v6030_v40  ;;  %v6032_v47 = vadd.f32 %v6031_v42, %v3663_v39  ;;  %v8078_v37 = vld [vmem:[%s11221_s3 + $0x358] ss:$28 sps:$4 sm:$0xff]   ;;  %v8086_v39 = vld [vmem:[%s11221_s3 + $0x324] ss:$28 sps:$4 sm:$0xff]   ;;  %v8092_v7 = vld [vmem:[%s11221_s3 + $0x2ec] ss:$28 sps:$4 sm:$0xff]  }
 0x29a   :  { %v6072_v35 = vpop.f32.mrf.mxu1  ;;  %6228 = vmatprep.subr.bf16.mxu1 %v8029_v26  ;;  %v6033_v2 = vpop.f32.mrf.mxu0  ;;  %6274 = vmatmul.mubr.bf16.vlgmr.msra.gmra.mxu0 %v10132_v58  ;;  %v8083_v26 = vld [vmem:[%s11221_s3 + $0xa8c] ss:$28 sps:$4 sm:$0xff]   ;;  %v8084_v41 = vld [vmem:[%s11221_s3 + $0x320] ss:$28 sps:$4 sm:$0xff]  }
 0x29b   :  { %v10455_v45 = vadd.f32 %v6072_v35, %v6032_v47  ;;  %6324 = vmatpush1.bf16.msra.mxu0 %v8030_v5  ;;  %6355 = vmatprep.mubr.bf16.mxu0 %v9708_v20  ;;  %v8081_v40 = vld [vmem:[%s11221_s3 + $0xa88] ss:$28 sps:$4 sm:$0xff]   ;;  %v8089_v5 = vld [vmem:[%s11221_s3 + $0xdd4] ss:$28 sps:$4 sm:$0xff]   ;;  %v8095_v47 = vld [vmem:[%s11221_s3 + $0xd9c] ss:$28 sps:$4 sm:$0xff]  }
 0x29c   :  { %v6074_v8 = vpop.f32.mrf.mxu1  ;;  %v6034_v50 = vpop.f32.mrf.mxu0  ;;  %6325 = vmatprep.subr.bf16.mxu0 %v8038_v32  ;;  %v8090_v42 = vld [vmem:[%s11221_s3 + $0x2e8] ss:$28 sps:$4 sm:$0xff]   ;;  %v8098_v32 = vld [vmem:[%s11221_s3 + $0x2b4] ss:$28 sps:$4 sm:$0xff]   ;;  %v8104_v2 = vld [vmem:[%s11221_s3 + $0x27c] ss:$28 sps:$4 sm:$0xff]  }
 0x29d   :  { %6229 = vmatpush2.bf16.msra.mxu1 %v8027_v43  ;;  %v8087_v43 = vld [vmem:[%s11221_s3 + $0xdd0] ss:$28 sps:$4 sm:$0xff]   ;;  %v8101_v8 = vld [vmem:[%s11221_s3 + $0xd64] ss:$28 sps:$4 sm:$0xff]  }
 0x29e   :  { %v6075_v11 = vpop.f32.mrf.mxu1  ;;  %6230 = vmatprep.subr.bf16.mxu1 %v8035_v54  ;;  %v8096_v35 = vld [vmem:[%s11221_s3 + $0x2b0] ss:$28 sps:$4 sm:$0xff]   ;;  %v8093_v54 = vld [vmem:[%s11221_s3 + $0xd98] ss:$28 sps:$4 sm:$0xff]   ;;  %v8099_v50 = vld [vmem:[%s11221_s3 + $0xd60] ss:$28 sps:$4 sm:$0xff]  }
 0x29f   :  { %6326 = vmatpush1.bf16.msra.mxu0 %v8036_v49  ;;  %v8102_v49 = vld [vmem:[%s11221_s3 + $0x278] ss:$28 sps:$4 sm:$0xff]   ;;  %v8108_v11 = vld [vmem:[%s11221_s3 + $0x240] ss:$28 sps:$4 sm:$0xff]  }
 0x2a0   :  { %6327 = vmatprep.subr.bf16.mxu0 %v8044_v56  ;;  %v8107_v56 = vld [vmem:[%s11221_s3 + $0xd2c] ss:$28 sps:$4 sm:$0xff]  }
 0x2a1   :  { %6231 = vmatpush2.bf16.msra.mxu1 %v8033_v52  ;;  %v8110_v52 = vld [vmem:[%s11221_s3 + $0x244] ss:$28 sps:$4 sm:$0xff]  }
 0x2a2   :  { %6282 = vmatprep.subr.bf16.mxu1 %v8041_v16  ;;  %v8105_v16 = vld [vmem:[%s11221_s3 + $0xd28] ss:$28 sps:$4 sm:$0xff]  }
 0x2a3   :  { %6328 = vmatpush1.bf16.msra.mxu0 %v8042_v29  ;;  %v8116_v29 = vld [vmem:[%s11221_s3 + $0x20c] ss:$28 sps:$4 sm:$0xff]  }
 0x2a4   :  { %6233 = vmatmul.mubr.bf16.vlgmr.msra.gmra.mxu1 %v9915_v19  ;;  %6329 = vmatprep.subr.bf16.mxu0 %v8050_v23  ;;  %v8111_v23 = vld [vmem:[%s11221_s3 + $0xcf0] ss:$28 sps:$4 sm:$0xff]  }
 0x2a5   :  { %6283 = vmatpush1.bf16.msra.mxu1 %v8039_v27  ;;  %6314 = vmatprep.mubr.bf16.mxu1 %v10257_v24  ;;  %v8113_v27 = vld [vmem:[%s11221_s3 + $0xcf4] ss:$28 sps:$4 sm:$0xff]  }
 0x2a6   :  { %6284 = vmatprep.subr.bf16.mxu1 %v8047_v61  ;;  %v8114_v61 = vld [vmem:[%s11221_s3 + $0x208] ss:$28 sps:$4 sm:$0xff]  }
 0x2a7   :  { %6330 = vmatpush1.bf16.msra.mxu0 %v8048_v55  ;;  %v8122_v55 = vld [vmem:[%s11221_s3 + $0x1d4] ss:$28 sps:$4 sm:$0xff]  }
 0x2a8   :  { %6331 = vmatprep.subr.bf16.mxu0 %v8056_v1  ;;  %v8120_v1 = vld [vmem:[%s11221_s3 + $0x1d0] ss:$28 sps:$4 sm:$0xff]  }
 0x2a9   :  { %6285 = vmatpush1.bf16.msra.mxu1 %v8045_v62  ;;  %v8119_v62 = vld [vmem:[%s11221_s3 + $0xcbc] ss:$28 sps:$4 sm:$0xff]  }
 0x2aa   :  { %6286 = vmatprep.subr.bf16.mxu1 %v8053_v3  ;;  %v8117_v3 = vld [vmem:[%s11221_s3 + $0xcb8] ss:$28 sps:$4 sm:$0xff]  }
 0x2ab   :  { %6332 = vmatpush1.bf16.msra.mxu0 %v8054_v60  ;;  %v8128_v60 = vld [vmem:[%s11221_s3 + $0x89c] ss:$28 sps:$4 sm:$0xff]  }
 0x2ac   :  { %6333 = vmatprep.subr.bf16.mxu0 %v8062_v18  ;;  %v8126_v18 = vld [vmem:[%s11221_s3 + $0x898] ss:$28 sps:$4 sm:$0xff]  }
 0x2ad   :  { %6287 = vmatpush1.bf16.msra.mxu1 %v8051_v6  ;;  %v8125_v6 = vld [vmem:[%s11221_s3 + $0xc84] ss:$28 sps:$4 sm:$0xff]  }
 0x2ae   :  { %6288 = vmatprep.subr.bf16.mxu1 %v8059_v9  ;;  %v8123_v9 = vld [vmem:[%s11221_s3 + $0xc80] ss:$28 sps:$4 sm:$0xff]  }
 0x2af   :  { %6334 = vmatpush1.bf16.msra.mxu0 %v8060_v59  ;;  %v8134_v59 = vld [vmem:[%s11221_s3 + $0x864] ss:$28 sps:$4 sm:$0xff]  }
 0x2b0   :  { %6335 = vmatprep.subr.bf16.mxu0 %v8068_v14 }
 0x2b1   :  { %6289 = vmatpush1.bf16.msra.mxu1 %v8057_v10  ;;  %v8131_v10 = vld [vmem:[%s11221_s3 + $0xc4c] ss:$28 sps:$4 sm:$0xff]  }
 0x2b2   :  { %6290 = vmatprep.subr.bf16.mxu1 %v8065_v48 }
 0x2b3   :  { %6336 = vmatpush1.bf16.msra.mxu0 %v8066_v15  ;;  %v8132_v15 = vld [vmem:[%s11221_s3 + $0x860] ss:$28 sps:$4 sm:$0xff]  }
 0x2b4   :  { %6337 = vmatprep.subr.bf16.mxu0 %v8074_v25  ;;  %v8129_v25 = vld [vmem:[%s11221_s3 + $0xc48] ss:$28 sps:$4 sm:$0xff]  }
 0x2b5   :  { %6291 = vmatpush1.bf16.msra.mxu1 %v8063_v21 }
 0x2b6   :  { %6292 = vmatprep.subr.bf16.mxu1 %v8071_v31  ;;  %v8140_v31 = vld [vmem:[%s11221_s3 + $0x82c] ss:$28 sps:$4 sm:$0xff]  }
 0x2b7   :  { %6338 = vmatpush1.bf16.msra.mxu0 %v8072_v33  ;;  %v8137_v33 = vld [vmem:[%s11221_s3 + $0x51c] ss:$28 sps:$4 sm:$0xff]  }
 0x2b8   :  { %6339 = vmatprep.subr.bf16.mxu0 %v8080_v36  ;;  %v8138_v36 = vld [vmem:[%s11221_s3 + $0x828] ss:$28 sps:$4 sm:$0xff]  }
 0x2b9   :  { %6293 = vmatpush1.bf16.msra.mxu1 %v8069_v34 }
 0x2ba   :  { %6294 = vmatprep.subr.bf16.mxu1 %v8077_v63 }
 0x2bb   :  { %6340 = vmatpush2.bf16.msra.mxu0 %v8078_v37  ;;  %v8135_v37 = vld [vmem:[%s11221_s3 + $0x518] ss:$28 sps:$4 sm:$0xff]  }
 0x2bc   :  { %6341 = vmatprep.subr.bf16.mxu0 %v8086_v39  ;;  %v8144_v39 = vld [vmem:[%s11221_s3 + $0x7f0] ss:$28 sps:$4 sm:$0xff]  }
 0x2bd   :  { %6295 = vmatpush1.bf16.msra.mxu1 %v8075_v38  ;;  %v8146_v38 = vld [vmem:[%s11221_s3 + $0x7f4] ss:$28 sps:$4 sm:$0xff]  }
 0x2be   :  { %6296 = vmatprep.subr.bf16.mxu1 %v8083_v26  ;;  %v8141_v26 = vld [vmem:[%s11221_s3 + $0x4e0] ss:$28 sps:$4 sm:$0xff]  }
 0x2bf   :  { %6342 = vmatpush2.bf16.msra.mxu0 %v8084_v41  ;;  %v8152_v41 = vld [vmem:[%s11221_s3 + $0x7bc] ss:$28 sps:$4 sm:$0xff]  }
 0x2c0   :  { %6343 = vmatprep.subr.bf16.mxu0 %v8092_v7  ;;  %v8150_v7 = vld [vmem:[%s11221_s3 + $0x7b8] ss:$28 sps:$4 sm:$0xff]  }
 0x2c1   :  { %6297 = vmatpush1.bf16.msra.mxu1 %v8081_v40  ;;  %v8149_v40 = vld [vmem:[%s11221_s3 + $0x4ac] ss:$28 sps:$4 sm:$0xff]  }
 0x2c2   :  { %6298 = vmatprep.subr.bf16.mxu1 %v8089_v5  ;;  %v8147_v5 = vld [vmem:[%s11221_s3 + $0x4a8] ss:$28 sps:$4 sm:$0xff]  }
 0x2c3   :  { %6344 = vmatpush2.bf16.msra.mxu0 %v8090_v42  ;;  %v8158_v42 = vld [vmem:[%s11221_s3 + $0x784] ss:$28 sps:$4 sm:$0xff]  }
 0x2c4   :  { %6345 = vmatprep.subr.bf16.mxu0 %v8098_v32  ;;  %v8156_v32 = vld [vmem:[%s11221_s3 + $0x780] ss:$28 sps:$4 sm:$0xff]  }
 0x2c5   :  { %6299 = vmatpush2.bf16.msra.mxu1 %v8087_v43  ;;  %v8155_v43 = vld [vmem:[%s11221_s3 + $0x474] ss:$28 sps:$4 sm:$0xff]  }
 0x2c6   :  { %6300 = vmatprep.subr.bf16.mxu1 %v8095_v47  ;;  %v8153_v47 = vld [vmem:[%s11221_s3 + $0x470] ss:$28 sps:$4 sm:$0xff]  }
 0x2c7   :  { %6346 = vmatpush2.bf16.msra.mxu0 %v8096_v35  ;;  %v8164_v35 = vld [vmem:[%s11221_s3 + $0x74c] ss:$28 sps:$4 sm:$0xff]  }
 0x2c8   :  { %6347 = vmatprep.subr.bf16.mxu0 %v8104_v2  ;;  %v8162_v2 = vld [vmem:[%s11221_s3 + $0x748] ss:$28 sps:$4 sm:$0xff]  }
 0x2c9   :  { %6301 = vmatpush2.bf16.msra.mxu1 %v8093_v54  ;;  %v8161_v54 = vld [vmem:[%s11221_s3 + $0x43c] ss:$28 sps:$4 sm:$0xff]  }
 0x2ca   :  { %6302 = vmatprep.subr.bf16.mxu1 %v8101_v8  ;;  %v8159_v8 = vld [vmem:[%s11221_s3 + $0x438] ss:$28 sps:$4 sm:$0xff]  }
 0x2cb   :  { %6348 = vmatpush2.bf16.msra.mxu0 %v8102_v49  ;;  %v8170_v49 = vld [vmem:[%s11221_s3 + $0x714] ss:$28 sps:$4 sm:$0xff]  }
 0x2cc   :  { %6349 = vmatprep.subr.bf16.mxu0 %v8110_v52  ;;  %v8168_v52 = vld [vmem:[%s11221_s3 + $0x710] ss:$28 sps:$4 sm:$0xff]  }
 0x2cd   :  { %6303 = vmatpush2.bf16.msra.mxu1 %v8099_v50  ;;  %v8167_v50 = vld [vmem:[%s11221_s3 + $0x404] ss:$28 sps:$4 sm:$0xff]  }
 0x2ce   :  { %6304 = vmatprep.subr.bf16.mxu1 %v8107_v56  ;;  %v8165_v56 = vld [vmem:[%s11221_s3 + $0x400] ss:$28 sps:$4 sm:$0xff]  }
 0x2cf   :  { %6350 = vmatpush2.bf16.msra.mxu0 %v8108_v11  ;;  %v8176_v11 = vld [vmem:[%s11221_s3 + $0xa5c] ss:$28 sps:$4 sm:$0xff]  }
 0x2d0   :  { %6351 = vmatprep.subr.bf16.mxu0 %v8116_v29  ;;  %v8174_v29 = vld [vmem:[%s11221_s3 + $0xa58] ss:$28 sps:$4 sm:$0xff]  }
 0x2d1   :  { %6305 = vmatpush2.bf16.msra.mxu1 %v8105_v16  ;;  %v8173_v16 = vld [vmem:[%s11221_s3 + $0x3cc] ss:$28 sps:$4 sm:$0xff]  }
 0x2d2   :  { %6306 = vmatprep.subr.bf16.mxu1 %v8113_v27  ;;  %v8171_v27 = vld [vmem:[%s11221_s3 + $0x3c8] ss:$28 sps:$4 sm:$0xff]  }
 0x2d3   :  { %6352 = vmatpush2.bf16.msra.mxu0 %v8114_v61  ;;  %v8182_v61 = vld [vmem:[%s11221_s3 + $0xa24] ss:$28 sps:$4 sm:$0xff]  }
 0x2d4   :  { %6353 = vmatprep.subr.bf16.mxu0 %v8122_v55  ;;  %v8180_v55 = vld [vmem:[%s11221_s3 + $0xa20] ss:$28 sps:$4 sm:$0xff]  }
 0x2d5   :  { %6307 = vmatpush2.bf16.msra.mxu1 %v8111_v23  ;;  %v8179_v23 = vld [vmem:[%s11221_s3 + $0x394] ss:$28 sps:$4 sm:$0xff]  }
 0x2d6   :  { %6308 = vmatprep.subr.bf16.mxu1 %v8119_v62  ;;  %v8177_v62 = vld [vmem:[%s11221_s3 + $0x390] ss:$28 sps:$4 sm:$0xff]  }
 0x2d7   :  { %6354 = vmatpush2.bf16.msra.mxu0 %v8120_v1  ;;  %v8188_v1 = vld [vmem:[%s11221_s3 + $0x9ec] ss:$28 sps:$4 sm:$0xff]  }
 0x2d8   :  { %6405 = vmatprep.subr.bf16.mxu0 %v8128_v60  ;;  %v8186_v60 = vld [vmem:[%s11221_s3 + $0x9e8] ss:$28 sps:$4 sm:$0xff]  }
 0x2d9   :  { %6309 = vmatpush2.bf16.msra.mxu1 %v8117_v3  ;;  %v8185_v3 = vld [vmem:[%s11221_s3 + $0x6dc] ss:$28 sps:$4 sm:$0xff]  }
 0x2da   :  { %6310 = vmatprep.subr.bf16.mxu1 %v8125_v6  ;;  %6356 = vmatmul.mubr.bf16.vlgmr.msra.gmra.mxu0 %v9907_v13  ;;  %v6111_v14 = vpop.f32.mrf.mxu0  ;;  %v8183_v6 = vld [vmem:[%s11221_s3 + $0x6d8] ss:$28 sps:$4 sm:$0xff]  }
 0x2db   :  { %v10654_v48 = vadd.f32 %v6111_v14, %v10449_v46  ;;  %6406 = vmatpush1.bf16.msra.mxu0 %v8126_v18  ;;  %6437 = vmatprep.mubr.bf16.mxu0 %v10125_v4  ;;  %v8194_v18 = vld [vmem:[%s11221_s3 + $0x9b4] ss:$28 sps:$4 sm:$0xff]   ;;  %v8200_v14 = vld [vmem:[%s11221_s3 + $0x97c] ss:$28 sps:$4 sm:$0xff]  }
 0x2dc   :  { %v6113_v21 = vpop.f32.mrf.mxu0  ;;  %6407 = vmatprep.subr.bf16.mxu0 %v8134_v59  ;;  %v8192_v59 = vld [vmem:[%s11221_s3 + $0x9b0] ss:$28 sps:$4 sm:$0xff]  }
 0x2dd   :  { %6311 = vmatpush2.bf16.msra.mxu1 %v8123_v9  ;;  %v10667_v46 = vadd.f32 %v6113_v21, %v10455_v45  ;;  %v8143_v45 = vld [vmem:[%s11221_s3 + $0x4e4] ss:$28 sps:$4 sm:$0xff]   ;;  %v8198_v21 = vld [vmem:[%s11221_s3 + $0x978] ss:$28 sps:$4 sm:$0xff]  }
 0x2de   :  { %6312 = vmatprep.subr.bf16.mxu1 %v8131_v10  ;;  %v6115_v34 = vpop.f32.mrf.mxu0  ;;  %v8191_v9 = vld [vmem:[%s11221_s3 + $0x6a4] ss:$28 sps:$4 sm:$0xff]  }
 0x2df   :  { %6408 = vmatpush1.bf16.msra.mxu0 %v8132_v15  ;;  %v8189_v10 = vld [vmem:[%s11221_s3 + $0x6a0] ss:$28 sps:$4 sm:$0xff]   ;;  %v8197_v15 = vld [vmem:[%s11221_s3 + $0x66c] ss:$28 sps:$4 sm:$0xff]  }
 0x2e0   :  { %v6116_v63 = vpop.f32.mrf.mxu0  ;;  %6409 = vmatprep.subr.bf16.mxu0 %v8140_v31  ;;  %v8206_v31 = vld [vmem:[%s11221_s3 + $0x944] ss:$28 sps:$4 sm:$0xff]  }
 0x2e1   :  { %6313 = vmatpush2.bf16.msra.mxu1 %v8129_v25  ;;  %v8195_v25 = vld [vmem:[%s11221_s3 + $0x668] ss:$28 sps:$4 sm:$0xff]   ;;  %v8204_v34 = vld [vmem:[%s11221_s3 + $0x940] ss:$28 sps:$4 sm:$0xff]  }
 0x2e2   :  { %6364 = vmatprep.subr.bf16.mxu1 %v8137_v33  ;;  %v8203_v33 = vld [vmem:[%s11221_s3 + $0x634] ss:$28 sps:$4 sm:$0xff]   ;;  %v8212_v63 = vld [vmem:[%s11221_s3 + $0x90c] ss:$28 sps:$4 sm:$0xff]  }
 0x2e3   :  { %6410 = vmatpush1.bf16.msra.mxu0 %v8138_v36  ;;  %v8201_v36 = vld [vmem:[%s11221_s3 + $0x630] ss:$28 sps:$4 sm:$0xff]  }
 0x2e4   :  { %6315 = vmatmul.mubr.bf16.vlgmr.msra.gmra.mxu1 %v10262_v28  ;;  %6411 = vmatprep.subr.bf16.mxu0 %v8146_v38  ;;  %v8207_v38 = vld [vmem:[%s11221_s3 + $0x5f8] ss:$28 sps:$4 sm:$0xff]  }
 0x2e5   :  { %6365 = vmatpush1.bf16.msra.mxu1 %v8135_v37  ;;  %6396 = vmatprep.mubr.bf16.mxu1 %v9719_v0  ;;  %v8209_v37 = vld [vmem:[%s11221_s3 + $0x5fc] ss:$28 sps:$4 sm:$0xff]  }
 0x2e6   :  { %6366 = vmatprep.subr.bf16.mxu1 %v8143_v45  ;;  %v8210_v45 = vld [vmem:[%s11221_s3 + $0x908] ss:$28 sps:$4 sm:$0xff]  }
 0x2e7   :  { %6412 = vmatpush1.bf16.msra.mxu0 %v8144_v39  ;;  %v8218_v39 = vld [vmem:[%s11221_s3 + $0x8d4] ss:$28 sps:$4 sm:$0xff]  }
 0x2e8   :  { %6413 = vmatprep.subr.bf16.mxu0 %v8152_v41  ;;  %v8216_v41 = vld [vmem:[%s11221_s3 + $0x8d0] ss:$28 sps:$4 sm:$0xff]  }
 0x2e9   :  { %6367 = vmatpush1.bf16.msra.mxu1 %v8141_v26  ;;  %v8215_v26 = vld [vmem:[%s11221_s3 + $0x5c4] ss:$28 sps:$4 sm:$0xff]  }
 0x2ea   :  { %6368 = vmatprep.subr.bf16.mxu1 %v8149_v40  ;;  %v8213_v40 = vld [vmem:[%s11221_s3 + $0x5c0] ss:$28 sps:$4 sm:$0xff]  }
 0x2eb   :  { %6414 = vmatpush1.bf16.msra.mxu0 %v8150_v7  ;;  %v8222_v7 = vld [vmem:[%s11221_s3 + $0x360] ss:$28 sps:$4 sm:$0xff]  }
 0x2ec   :  { %6415 = vmatprep.subr.bf16.mxu0 %v8158_v42  ;;  %v8223_v42 = vld [vmem:[%s11221_s3 + $0x1a0] ss:$28 sps:$4 sm:$0xff]  }
 0x2ed   :  { %6369 = vmatpush1.bf16.msra.mxu1 %v8147_v5  ;;  %v8221_v5 = vld [vmem:[%s11221_s3 + $0x58c] ss:$28 sps:$4 sm:$0xff]  }
 0x2ee   :  { %6370 = vmatprep.subr.bf16.mxu1 %v8155_v43  ;;  %v8219_v43 = vld [vmem:[%s11221_s3 + $0x588] ss:$28 sps:$4 sm:$0xff]  }
 0x2ef   :  { %6416 = vmatpush1.bf16.msra.mxu0 %v8156_v32  ;;  %v8227_v32 = vld [vmem:[%s11221_s3 + $0x328] ss:$28 sps:$4 sm:$0xff]  }
 0x2f0   :  { %6417 = vmatprep.subr.bf16.mxu0 %v8164_v35 }
 0x2f1   :  { %6371 = vmatpush1.bf16.msra.mxu1 %v8153_v47  ;;  %v8226_v47 = vld [vmem:[%s11221_s3 + $0x554] ss:$28 sps:$4 sm:$0xff]  }
 0x2f2   :  { %6372 = vmatprep.subr.bf16.mxu1 %v8161_v54  ;;  %v8228_v54 = vld [vmem:[%s11221_s3 + $0x168] ss:$28 sps:$4 sm:$0xff]  }
 0x2f3   :  { %6418 = vmatpush1.bf16.msra.mxu0 %v8162_v2 }
 0x2f4   :  { %6419 = vmatprep.subr.bf16.mxu0 %v8170_v49  ;;  %v8232_v49 = vld [vmem:[%s11221_s3 + $0x2f0] ss:$28 sps:$4 sm:$0xff]  }
 0x2f5   :  { %6373 = vmatpush1.bf16.msra.mxu1 %v8159_v8  ;;  %v8224_v8 = vld [vmem:[%s11221_s3 + $0x550] ss:$28 sps:$4 sm:$0xff]  }
 0x2f6   :  { %6374 = vmatprep.subr.bf16.mxu1 %v8167_v50 }
 0x2f7   :  { %6420 = vmatpush1.bf16.msra.mxu0 %v8168_v52  ;;  %v8233_v52 = vld [vmem:[%s11221_s3 + $0x130] ss:$28 sps:$4 sm:$0xff]  }
 0x2f8   :  { %6421 = vmatprep.subr.bf16.mxu0 %v8176_v11  ;;  %v8229_v11 = vld [vmem:[%s11221_s3 + $0xc18] ss:$28 sps:$4 sm:$0xff]  }
 0x2f9   :  { %6375 = vmatpush1.bf16.msra.mxu1 %v8165_v56 }
 0x2fa   :  { %6376 = vmatprep.subr.bf16.mxu1 %v8173_v16  ;;  %v8236_v16 = vld [vmem:[%s11221_s3 + $0xbe4] ss:$28 sps:$4 sm:$0xff]  }
 0x2fb   :  { %6422 = vmatpush2.bf16.msra.mxu0 %v8174_v29  ;;  %v8237_v29 = vld [vmem:[%s11221_s3 + $0x2b8] ss:$28 sps:$4 sm:$0xff]  }
 0x2fc   :  { %6423 = vmatprep.subr.bf16.mxu0 %v8182_v61  ;;  %v8238_v61 = vld [vmem:[%s11221_s3 + $0xf8] ss:$28 sps:$4 sm:$0xff]  }
 0x2fd   :  { %6377 = vmatpush1.bf16.msra.mxu1 %v8171_v27 }
 0x2fe   :  { %6378 = vmatprep.subr.bf16.mxu1 %v8179_v23 }
 0x2ff   :  { %6424 = vmatpush2.bf16.msra.mxu0 %v8180_v55  ;;  %v8234_v55 = vld [vmem:[%s11221_s3 + $0xbe0] ss:$28 sps:$4 sm:$0xff]  }
 0x300   :  { %6425 = vmatprep.subr.bf16.mxu0 %v8188_v1 }
 0x301   :  { %6379 = vmatpush1.bf16.msra.mxu1 %v8177_v62  ;;  %v8242_v62 = vld [vmem:[%s11221_s3 + $0x280] ss:$28 sps:$4 sm:$0xff]  }
 0x302   :  { %6380 = vmatprep.subr.bf16.mxu1 %v8185_v3  ;;  %v8241_v3 = vld [vmem:[%s11221_s3 + $0xbac] ss:$28 sps:$4 sm:$0xff]  }
 0x303   :  { %6426 = vmatpush2.bf16.msra.mxu0 %v8186_v60 }
 0x304   :  { %6427 = vmatprep.subr.bf16.mxu0 %v8194_v18  ;;  %v8239_v18 = vld [vmem:[%s11221_s3 + $0xba8] ss:$28 sps:$4 sm:$0xff]  }
 0x305   :  { %6381 = vmatpush2.bf16.msra.mxu1 %v8183_v6  ;;  %v8243_v6 = vld [vmem:[%s11221_s3 + $0xc0] ss:$28 sps:$4 sm:$0xff]  }
 0x306   :  { %6382 = vmatprep.subr.bf16.mxu1 %v8191_v9  ;;  %v8247_v9 = vld [vmem:[%s11221_s3 + $0x248] ss:$28 sps:$4 sm:$0xff]  }
 0x307   :  { %6428 = vmatpush2.bf16.msra.mxu0 %v8192_v59 }
 0x308   :  { %6429 = vmatprep.subr.bf16.mxu0 %v8200_v14  ;;  %v8244_v14 = vld [vmem:[%s11221_s3 + $0xb70] ss:$28 sps:$4 sm:$0xff]  }
 0x309   :  { %6383 = vmatpush2.bf16.msra.mxu1 %v8189_v10  ;;  %v8248_v10 = vld [vmem:[%s11221_s3 + $0x88] ss:$28 sps:$4 sm:$0xff]  }
 0x30a   :  { %6384 = vmatprep.subr.bf16.mxu1 %v8197_v15  ;;  %v8252_v15 = vld [vmem:[%s11221_s3 + $0x210] ss:$28 sps:$4 sm:$0xff]  }
 0x30b   :  { %6430 = vmatpush2.bf16.msra.mxu0 %v8198_v21  ;;  %v8251_v21 = vld [vmem:[%s11221_s3 + $0xb3c] ss:$28 sps:$4 sm:$0xff]  }
 0x30c   :  { %6431 = vmatprep.subr.bf16.mxu0 %v8206_v31  ;;  %v8249_v31 = vld [vmem:[%s11221_s3 + $0xb38] ss:$28 sps:$4 sm:$0xff]  }
 0x30d   :  { %6385 = vmatpush2.bf16.msra.mxu1 %v8195_v25  ;;  %v8253_v25 = vld [vmem:[%s11221_s3 + $0x50] ss:$28 sps:$4 sm:$0xff]  }
 0x30e   :  { %6386 = vmatprep.subr.bf16.mxu1 %v8203_v33  ;;  %v8257_v33 = vld [vmem:[%s11221_s3 + $0x1d8] ss:$28 sps:$4 sm:$0xff]  }
 0x30f   :  { %6432 = vmatpush2.bf16.msra.mxu0 %v8204_v34  ;;  %v8256_v34 = vld [vmem:[%s11221_s3 + $0xb04] ss:$28 sps:$4 sm:$0xff]  }
 0x310   :  { %6433 = vmatprep.subr.bf16.mxu0 %v8212_v63  ;;  %v8254_v63 = vld [vmem:[%s11221_s3 + $0xb00] ss:$28 sps:$4 sm:$0xff]  }
 0x311   :  { %6387 = vmatpush2.bf16.msra.mxu1 %v8201_v36  ;;  %v8258_v36 = vld [vmem:[%s11221_s3 + $0x18] ss:$28 sps:$4 sm:$0xff]  }
 0x312   :  { %6388 = vmatprep.subr.bf16.mxu1 %v8209_v37  ;;  %v8262_v37 = vld [vmem:[%s11221_s3 + $0xa60] ss:$28 sps:$4 sm:$0xff]  }
 0x313   :  { %6434 = vmatpush2.bf16.msra.mxu0 %v8210_v45  ;;  %v8261_v45 = vld [vmem:[%s11221_s3 + $0xacc] ss:$28 sps:$4 sm:$0xff]  }
 0x314   :  { %6435 = vmatprep.subr.bf16.mxu0 %v8218_v39  ;;  %v8259_v39 = vld [vmem:[%s11221_s3 + $0xac8] ss:$28 sps:$4 sm:$0xff]  }
 0x315   :  { %6389 = vmatpush2.bf16.msra.mxu1 %v8207_v38  ;;  %v8263_v38 = vld [vmem:[%s11221_s3 + $0x8a0] ss:$28 sps:$4 sm:$0xff]  }
 0x316   :  { %6390 = vmatprep.subr.bf16.mxu1 %v8215_v26  ;;  %v8267_v26 = vld [vmem:[%s11221_s3 + $0xa28] ss:$28 sps:$4 sm:$0xff]  }
 0x317   :  { %6436 = vmatpush2.bf16.msra.mxu0 %v8216_v41  ;;  %v8266_v41 = vld [vmem:[%s11221_s3 + $0xa94] ss:$28 sps:$4 sm:$0xff]  }
 0x318   :  { %7605 = vmatprep.subr.bf16.mxu0 %v8222_v7  ;;  %v8264_v7 = vld [vmem:[%s11221_s3 + $0xa90] ss:$28 sps:$4 sm:$0xff]  }
 0x319   :  { %6391 = vmatpush2.bf16.msra.mxu1 %v8213_v40  ;;  %v8268_v40 = vld [vmem:[%s11221_s3 + $0x868] ss:$28 sps:$4 sm:$0xff]  }
 0x31a   :  { %6392 = vmatprep.subr.bf16.mxu1 %v8221_v5  ;;  %v10854_v35 = vpop.f32.mrf.mxu0  ;;  %6438 = vmatmul.mubr.bf16.vlgmr.msra.gmra.mxu0 %v10132_v58  ;;  %v8272_v5 = vld [vmem:[%s11221_s3 + $0x9f0] ss:$28 sps:$4 sm:$0xff]  }
 0x31b   :  { %7606 = vmatpush3.bf16.msra.mxu0 %v8223_v42  ;;  %6519 = vmatprep.mubr.bf16.mxu0 %v9708_v20  ;;  %v8231_v20 = vld [vmem:[%s11221_s3 + $0xc1c] ss:$28 sps:$4 sm:$0xff]  }
 0x31c   :  { %v10861_v2 = vpop.f32.mrf.mxu0  ;;  %7607 = vmatprep.subr.bf16.mxu0 %v8227_v32  ;;  %v8269_v42 = vld [vmem:[%s11221_s3 + $0xdd8] ss:$28 sps:$4 sm:$0xff]   ;;  %v8276_v32 = vld [vmem:[%s11221_s3 + $0xda4] ss:$28 sps:$4 sm:$0xff]  }
 0x31d   :  { %6393 = vmatpush2.bf16.msra.mxu1 %v8219_v43  ;;  %v8277_v43 = vld [vmem:[%s11221_s3 + $0x9b8] ss:$28 sps:$4 sm:$0xff]  }
 0x31e   :  { %6394 = vmatprep.subr.bf16.mxu1 %v8226_v47  ;;  %v6197_v50 = vpop.f32.mrf.mxu0  ;;  %v8278_v47 = vld [vmem:[%s11221_s3 + $0x7f8] ss:$28 sps:$4 sm:$0xff]  }
 0x31f   :  { %7608 = vmatpush3.bf16.msra.mxu0 %v8228_v54  ;;  %v8274_v54 = vld [vmem:[%s11221_s3 + $0xda0] ss:$28 sps:$4 sm:$0xff]   ;;  %v8279_v50 = vld [vmem:[%s11221_s3 + $0xd68] ss:$28 sps:$4 sm:$0xff]  }
 0x320   :  { %v6198_v56 = vpop.f32.mrf.mxu0  ;;  %7609 = vmatprep.subr.bf16.mxu0 %v8232_v49  ;;  %v8281_v49 = vld [vmem:[%s11221_s3 + $0xd6c] ss:$28 sps:$4 sm:$0xff]  }
 0x321   :  { %6395 = vmatpush2.bf16.msra.mxu1 %v8224_v8  ;;  %v8282_v8 = vld [vmem:[%s11221_s3 + $0x980] ss:$28 sps:$4 sm:$0xff]   ;;  %v8286_v56 = vld [vmem:[%s11221_s3 + $0xd34] ss:$28 sps:$4 sm:$0xff]  }
 0x322   :  { %6446 = vmatprep.subr.bf16.mxu1 %v8231_v20  ;;  %v8283_v20 = vld [vmem:[%s11221_s3 + $0x7c0] ss:$28 sps:$4 sm:$0xff]  }
 0x323   :  { %7610 = vmatpush3.bf16.msra.mxu0 %v8233_v52  ;;  %v8287_v52 = vld [vmem:[%s11221_s3 + $0x948] ss:$28 sps:$4 sm:$0xff]  }
 0x324   :  { %6397 = vmatmul.mubr.bf16.vlgmr.msra.gmra.mxu1 %v9915_v19  ;;  %v6152_v27 = vpop.f32.mrf.mxu1  ;;  %7611 = vmatprep.subr.bf16.mxu0 %v8237_v29  ;;  %v8292_v29 = vld [vmem:[%s11221_s3 + $0x910] ss:$28 sps:$4 sm:$0xff]  }
 0x325   :  { %v10889_v23 = vadd.f32 %v6152_v27, %v10654_v48  ;;  %6447 = vmatpush1.bf16.msra.mxu1 %v8229_v11  ;;  %6478 = vmatprep.mubr.bf16.mxu1 %v10257_v24  ;;  %v8288_v11 = vld [vmem:[%s11221_s3 + $0x788] ss:$28 sps:$4 sm:$0xff]   ;;  %v8291_v27 = vld [vmem:[%s11221_s3 + $0xcfc] ss:$28 sps:$4 sm:$0xff]  }
 0x326   :  { %v6154_v1 = vpop.f32.mrf.mxu1  ;;  %6448 = vmatprep.subr.bf16.mxu1 %v8236_v16  ;;  %v8284_v16 = vld [vmem:[%s11221_s3 + $0xd30] ss:$28 sps:$4 sm:$0xff]  }
 0x327   :  { %v10902_v48 = vadd.f32 %v6154_v1, %v10667_v46  ;;  %7612 = vmatpush3.bf16.msra.mxu0 %v8238_v61  ;;  %v8246_v46 = vld [vmem:[%s11221_s3 + $0xb74] ss:$28 sps:$4 sm:$0xff]   ;;  %v8296_v1 = vld [vmem:[%s11221_s3 + $0xcc4] ss:$28 sps:$4 sm:$0xff]  }
 0x328   :  { %v6156_v60 = vpop.f32.mrf.mxu1  ;;  %7613 = vmatprep.subr.bf16.mxu0 %v8242_v62  ;;  %v8293_v61 = vld [vmem:[%s11221_s3 + $0x750] ss:$28 sps:$4 sm:$0xff]   ;;  %v8297_v62 = vld [vmem:[%s11221_s3 + $0x8d8] ss:$28 sps:$4 sm:$0xff]  }
 0x329   :  { %6449 = vmatpush1.bf16.msra.mxu1 %v8234_v55  ;;  %v8289_v55 = vld [vmem:[%s11221_s3 + $0xcf8] ss:$28 sps:$4 sm:$0xff]   ;;  %v8294_v60 = vld [vmem:[%s11221_s3 + $0xcc0] ss:$28 sps:$4 sm:$0xff]   ;;  %v6649_v44 = vsel %vm6647_vm1, %v10902_v48, -inf }
 0x32a   :  { %v6157_v59 = vpop.f32.mrf.mxu1  ;;  %6450 = vmatprep.subr.bf16.mxu1 %v8241_v3  ;;  %v8298_v3 = vld [vmem:[%s11221_s3 + $0x718] ss:$28 sps:$4 sm:$0xff]  }
 0x32b   :  { %7614 = vmatpush3.bf16.msra.mxu0 %v8243_v6  ;;  %v8301_v6 = vld [vmem:[%s11221_s3 + $0xc8c] ss:$28 sps:$4 sm:$0xff]  }
 0x32c   :  { %7615 = vmatprep.subr.bf16.mxu0 %v8247_v9  ;;  %v8304_v9 = vld [vmem:[%s11221_s3 + $0xc54] ss:$28 sps:$4 sm:$0xff]  }
 0x32d   :  { %6451 = vmatpush1.bf16.msra.mxu1 %v8239_v18  ;;  %v8299_v18 = vld [vmem:[%s11221_s3 + $0xc88] ss:$28 sps:$4 sm:$0xff]  }
 0x32e   :  { %6452 = vmatprep.subr.bf16.mxu1 %v8246_v46 }
 0x32f   :  { %7616 = vmatpush3.bf16.msra.mxu0 %v8248_v10  ;;  %v8302_v10 = vld [vmem:[%s11221_s3 + $0xc50] ss:$28 sps:$4 sm:$0xff]  }
 0x330   :  { %7617 = vmatprep.subr.bf16.mxu0 %v8252_v15  ;;  %v3667_v15 = vrot.slane %v10414_v30, %v476_v57 }
 0x331   :  { %6453 = vmatpush1.bf16.msra.mxu1 %v8244_v14  ;;  %v8305_v14 = vld [vmem:[%s11221_s3 + $0x6e0] ss:$28 sps:$4 sm:$0xff]  }
 0x332   :  { %6454 = vmatprep.subr.bf16.mxu1 %v8251_v21 }
 0x333   :  { %7618 = vmatpush3.bf16.msra.mxu0 %v8253_v25 }
 0x334   :  { %7619 = vmatprep.subr.bf16.mxu0 %v8257_v33  ;;  %v8307_v33 = vld [vmem:[%s11221_s3 + $0x6a8] ss:$28 sps:$4 sm:$0xff]  }
 0x335   :  { %6455 = vmatpush1.bf16.msra.mxu1 %v8249_v31  ;;  %v8306_v31 = vld [vmem:[%s11221_s3 + $0x520] ss:$28 sps:$4 sm:$0xff]  }
 0x336   :  { %6456 = vmatprep.subr.bf16.mxu1 %v8256_v34  ;;  %v6194_v34 = vadd.f32 %v10854_v35, %v3667_v15 }
 0x337   :  { %7620 = vmatpush3.bf16.msra.mxu0 %v8258_v36 }
 0x338   :  { %7649 = vmatprep.subr.bf16.mxu0 %v8262_v37  ;;  %v8309_v37 = vld [vmem:[%s11221_s3 + $0x670] ss:$28 sps:$4 sm:$0xff]  }
 0x339   :  { %6457 = vmatpush1.bf16.msra.mxu1 %v8254_v63 }
 0x33a   :  { %6458 = vmatprep.subr.bf16.mxu1 %v8261_v45  ;;  %6520 = vmatmul.mubr.bf16.vlgmr.msra.gmra.mxu0 %v9907_v13  ;;  %v8271_v13 = vld [vmem:[%s11221_s3 + $0xddc] ss:$28 sps:$4 sm:$0xff]  }
 0x33b   :  { %7650 = vmatpush3.bf16.msra.mxu0 %v8263_v38  ;;  %6599 = vmatprep.mubr.bf16.mxu0 %v10125_v4  ;;  %v8273_v4 = vld [vmem:[%s11221_s3 + $0x830] ss:$28 sps:$4 sm:$0xff]  }
 0x33c   :  { %7651 = vmatprep.subr.bf16.mxu0 %v8267_v26  ;;  %v8311_v26 = vld [vmem:[%s11221_s3 + $0x638] ss:$28 sps:$4 sm:$0xff]  }
 0x33d   :  { %6459 = vmatpush1.bf16.msra.mxu1 %v8259_v39 }
 0x33e   :  { %6460 = vmatprep.subr.bf16.mxu1 %v8266_v41  ;;  %v8312_v41 = vld [vmem:[%s11221_s3 + $0x478] ss:$28 sps:$4 sm:$0xff]  }
 0x33f   :  { %7652 = vmatpush3.bf16.msra.mxu0 %v8268_v40  ;;  %v8313_v40 = vld [vmem:[%s11221_s3 + $0x600] ss:$28 sps:$4 sm:$0xff]  }
 0x340   :  { %7653 = vmatprep.subr.bf16.mxu0 %v8272_v5  ;;  %v8315_v5 = vld [vmem:[%s11221_s3 + $0x5c8] ss:$28 sps:$4 sm:$0xff]  }
 0x341   :  { %6461 = vmatpush1.bf16.msra.mxu1 %v8264_v7  ;;  %v8314_v7 = vld [vmem:[%s11221_s3 + $0x440] ss:$28 sps:$4 sm:$0xff]  }
 0x342   :  { %6462 = vmatprep.subr.bf16.mxu1 %v8271_v13  ;;  %v8316_v13 = vld [vmem:[%s11221_s3 + $0x408] ss:$28 sps:$4 sm:$0xff]  }
 0x343   :  { %7654 = vmatpush3.bf16.msra.mxu0 %v8273_v4  ;;  %v8317_v4 = vld [vmem:[%s11221_s3 + $0x590] ss:$28 sps:$4 sm:$0xff]  }
 0x344   :  { %7655 = vmatprep.subr.bf16.mxu0 %v8277_v43  ;;  %v8319_v43 = vld [vmem:[%s11221_s3 + $0x558] ss:$28 sps:$4 sm:$0xff]  }
 0x345   :  { %6463 = vmatpush2.bf16.msra.mxu1 %v8269_v42  ;;  %v8318_v42 = vld [vmem:[%s11221_s3 + $0x3d0] ss:$28 sps:$4 sm:$0xff]  }
 0x346   :  { %6464 = vmatprep.subr.bf16.mxu1 %v8276_v32  ;;  %v8320_v32 = vld [vmem:[%s11221_s3 + $0x398] ss:$28 sps:$4 sm:$0xff]  }
 0x347   :  { %7656 = vmatpush3.bf16.msra.mxu0 %v8278_v47  ;;  %v8321_v47 = vld [vmem:[%s11221_s3 + $0xde0] ss:$28 sps:$4 sm:$0xff]  }
 0x348   :  { %7657 = vmatprep.subr.bf16.mxu0 %v8282_v8  ;;  %v8323_v8 = vld [vmem:[%s11221_s3 + $0xda8] ss:$28 sps:$4 sm:$0xff]  }
 0x349   :  { %6465 = vmatpush2.bf16.msra.mxu1 %v8274_v54  ;;  %v8322_v54 = vld [vmem:[%s11221_s3 + $0xc20] ss:$28 sps:$4 sm:$0xff]  }
 0x34a   :  { %6466 = vmatprep.subr.bf16.mxu1 %v8281_v49  ;;  %v8324_v49 = vld [vmem:[%s11221_s3 + $0xbe8] ss:$28 sps:$4 sm:$0xff]  }
 0x34b   :  { %7658 = vmatpush3.bf16.msra.mxu0 %v8283_v20  ;;  %v8325_v20 = vld [vmem:[%s11221_s3 + $0xd70] ss:$28 sps:$4 sm:$0xff]  }
 0x34c   :  { %7659 = vmatprep.subr.bf16.mxu0 %v8287_v52  ;;  %v8329_v52 = vld [vmem:[%s11221_s3 + $0xd00] ss:$28 sps:$4 sm:$0xff]  }
 0x34d   :  { %6467 = vmatpush2.bf16.msra.mxu1 %v8279_v50  ;;  %v8326_v50 = vld [vmem:[%s11221_s3 + $0xbb0] ss:$28 sps:$4 sm:$0xff]  }
 0x34e   :  { %6468 = vmatprep.subr.bf16.mxu1 %v8286_v56  ;;  %v8330_v56 = vld [vmem:[%s11221_s3 + $0xb40] ss:$28 sps:$4 sm:$0xff]  }
 0x34f   :  { %7660 = vmatpush3.bf16.msra.mxu0 %v8288_v11  ;;  %v8331_v11 = vld [vmem:[%s11221_s3 + $0xcc8] ss:$28 sps:$4 sm:$0xff]  }
 0x350   :  { %7661 = vmatprep.subr.bf16.mxu0 %v8292_v29  ;;  %v8333_v29 = vld [vmem:[%s11221_s3 + $0xc90] ss:$28 sps:$4 sm:$0xff]  }
 0x351   :  { %6469 = vmatpush2.bf16.msra.mxu1 %v8284_v16  ;;  %v8332_v16 = vld [vmem:[%s11221_s3 + $0xb08] ss:$28 sps:$4 sm:$0xff]  }
 0x352   :  { %6470 = vmatprep.subr.bf16.mxu1 %v8291_v27  ;;  %v8334_v27 = vld [vmem:[%s11221_s3 + $0xad0] ss:$28 sps:$4 sm:$0xff]  }
 0x353   :  { %7662 = vmatpush3.bf16.msra.mxu0 %v8293_v61  ;;  %v8335_v61 = vld [vmem:[%s11221_s3 + $0xc58] ss:$28 sps:$4 sm:$0xff]  }
 0x354   :  { %7663 = vmatprep.subr.bf16.mxu0 %v8297_v62 }
 0x355   :  { %6471 = vmatpush2.bf16.msra.mxu1 %v8289_v55 }
 0x356   :  { %6472 = vmatprep.subr.bf16.mxu1 %v8296_v1  ;;  %v8336_v1 = vld [vmem:[%s11221_s3 + $0xa98] ss:$28 sps:$4 sm:$0xff]  }
 0x357   :  { %7664 = vmatpush3.bf16.msra.mxu0 %v8298_v3 }
 0x359   :  { %6473 = vmatpush2.bf16.msra.mxu1 %v8294_v60 }
 0x35a   :  { %6474 = vmatprep.subr.bf16.mxu1 %v8301_v6  ;;  %v6275_v59 = vpop.f32.mrf.mxu0  ;;  %6600 = vmatmul.mubr.bf16.vlgmr.msra.gmra.mxu0 %v10132_v58  ;;  %v3671_v58 = vrot.slane %v10414_v30, %v480_v17  ;;  %v8308_v17 = vld [vmem:[%s11221_s3 + $0x4e8] ss:$28 sps:$4 sm:$0xff]  }
 0x35c   :  { %v6277_v46 = vpop.f32.mrf.mxu0  ;;  %v6196_v57 = vadd.f32 %v10861_v2, %v3671_v58  ;;  %v8310_v2 = vld [vmem:[%s11221_s3 + $0x4b0] ss:$28 sps:$4 sm:$0xff]  }
 0x35d   :  { %6475 = vmatpush2.bf16.msra.mxu1 %v8299_v18 }
 0x35e   :  { %6476 = vmatprep.subr.bf16.mxu1 %v8304_v9  ;;  %v6279_v21 = vpop.f32.mrf.mxu0 }
 0x35f   :  { %v8355_v21 = vld [vmem:[%s11222_s4] sm:$0x7f] }
 0x360   :  { %v6280_v25 = vpop.f32.mrf.mxu0  ;;  %v3675_v58 = vrot.slane %v8355_v21, %v484_v12 }
 0x361   :  { %6477 = vmatpush2.bf16.msra.mxu1 %v8302_v10 }
 0x362   :  { %7627 = vmatprep.subr.bf16.mxu1 %v8305_v14 }
 0x364   :  { %v6234_v36 = vpop.f32.mrf.mxu1  ;;  %6479 = vmatmul.mubr.bf16.vlgmr.msra.gmra.mxu1 %v10262_v28 }
 0x365   :  { %v6235_v63 = vadd.f32 %v6234_v36, %v6194_v34  ;;  %7628 = vmatpush3.bf16.msra.mxu1 %v8306_v31  ;;  %6559 = vmatprep.mubr.bf16.mxu1 %v9719_v0 }
 0x366   :  { %v6236_v30 = vpop.f32.mrf.mxu1  ;;  %7629 = vmatprep.subr.bf16.mxu1 %v8307_v33 }
 0x367   :  { %v6237_v35 = vadd.f32 %v6236_v30, %v6196_v57  ;;  %v11082_v45 = vadd.f32 %v6275_v59, %v6235_v63 }
 0x368   :  { %v6238_v38 = vpop.f32.mrf.mxu1 }
 0x369   :  { %7630 = vmatpush3.bf16.msra.mxu1 %v8308_v17  ;;  %v11087_v0 = vadd.f32 %v6277_v46, %v6237_v35 }
 0x36a   :  { %v6239_v39 = vpop.f32.mrf.mxu1  ;;  %7631 = vmatprep.subr.bf16.mxu1 %v8309_v37 }
 0x36d   :  { %7632 = vmatpush3.bf16.msra.mxu1 %v8310_v2 }
 0x36e   :  { %7633 = vmatprep.subr.bf16.mxu1 %v8311_v26 }
 0x371   :  { %7634 = vmatpush3.bf16.msra.mxu1 %v8312_v41 }
 0x372   :  { %7635 = vmatprep.subr.bf16.mxu1 %v8313_v40 }
 0x375   :  { %7636 = vmatpush3.bf16.msra.mxu1 %v8314_v7 }
 0x376   :  { %7637 = vmatprep.subr.bf16.mxu1 %v8315_v5 }
 0x379   :  { %7638 = vmatpush3.bf16.msra.mxu1 %v8316_v13 }
 0x37a   :  { %7639 = vmatprep.subr.bf16.mxu1 %v8317_v4 }
 0x37d   :  { %7640 = vmatpush3.bf16.msra.mxu1 %v8318_v42 }
 0x37e   :  { %7641 = vmatprep.subr.bf16.mxu1 %v8319_v43 }
 0x381   :  { %7642 = vmatpush3.bf16.msra.mxu1 %v8320_v32 }
 0x382   :  { %7671 = vmatprep.subr.bf16.mxu1 %v8321_v47  ;;  %v3683_v47 = vrot.slane %v8355_v21, %v492_v51 }
 0x384   :  { %6560 = vmatmul.mubr.bf16.vlgmr.msra.gmra.mxu1 %v9915_v19  ;;  %v8327_v19 = vld [vmem:[%s11221_s3 + $0xd38] ss:$28 sps:$4 sm:$0xff]  }
 0x385   :  { %7672 = vmatpush3.bf16.msra.mxu1 %v8322_v54  ;;  %6639 = vmatprep.mubr.bf16.mxu1 %v10257_v24  ;;  %v8328_v24 = vld [vmem:[%s11221_s3 + $0xb78] ss:$28 sps:$4 sm:$0xff]  }
 0x386   :  { %7673 = vmatprep.subr.bf16.mxu1 %v8323_v8 }
 0x389   :  { %7674 = vmatpush3.bf16.msra.mxu1 %v8324_v49 }
 0x38a   :  { %7675 = vmatprep.subr.bf16.mxu1 %v8325_v20 }
 0x38d   :  { %7676 = vmatpush3.bf16.msra.mxu1 %v8326_v50 }
 0x38e   :  { %7677 = vmatprep.subr.bf16.mxu1 %v8327_v19 }
 0x391   :  { %7678 = vmatpush3.bf16.msra.mxu1 %v8328_v24 }
 0x392   :  { %7679 = vmatprep.subr.bf16.mxu1 %v8329_v52 }
 0x395   :  { %7680 = vmatpush3.bf16.msra.mxu1 %v8330_v56 }
 0x396   :  { %7681 = vmatprep.subr.bf16.mxu1 %v8331_v11 }
 0x399   :  { %7682 = vmatpush3.bf16.msra.mxu1 %v8332_v16 }
 0x39a   :  { %7683 = vmatprep.subr.bf16.mxu1 %v8333_v29  ;;  %v6357_v55 = vpop.f32.mrf.mxu0 }
 0x39b   :  { %v6358_v33 = vadd.f32 %v6357_v55, %v3675_v58 }
 0x39c   :  { %v6359_v62 = vpop.f32.mrf.mxu0 }
 0x39d   :  { %7684 = vmatpush3.bf16.msra.mxu1 %v8334_v27 }
 0x39e   :  { %7685 = vmatprep.subr.bf16.mxu1 %v8335_v61  ;;  %v6361_v3 = vpop.f32.mrf.mxu0 }
 0x3a0   :  { %v6362_v60 = vpop.f32.mrf.mxu0 }
 0x3a1   :  { %7686 = vmatpush3.bf16.msra.mxu1 %v8336_v1  ;;  %v6648_v1 = vsel %vm6647_vm1, %v10889_v23, -inf }
 0x3a4   :  { %v6316_v6 = vpop.f32.mrf.mxu1  ;;  %6640 = vmatmul.mubr.bf16.vlgmr.msra.gmra.mxu1 %v10262_v28  ;;  %v3679_v28 = vrot.slane %v8355_v21, %v488_v22 }
 0x3a5   :  { %v11171_v18 = vadd.f32 %v6316_v6, %v11082_v45 }
 0x3a6   :  { %v6318_v9 = vpop.f32.mrf.mxu1  ;;  %v6360_v36 = vadd.f32 %v6359_v62, %v3679_v28 }
 0x3a7   :  { %v11174_v59 = vadd.f32 %v6318_v9, %v11087_v0  ;;  %v6650_v3 = vsel %vm6647_vm1, %v11171_v18, -inf }
 0x3a8   :  { %v6320_v46 = vpop.f32.mrf.mxu1 }
 0x3a9   :  { %v6651_v46 = vsel %vm6647_vm1, %v11174_v59, -inf }
 0x3aa   :  { %v6321_v10 = vpop.f32.mrf.mxu1 }
 0x3da   :  { %v6439_v14 = vpop.f32.mrf.mxu0 }
 0x3dc   :  { %v6441_v15 = vpop.f32.mrf.mxu0 }
 0x3de   :  { %v6443_v25 = vpop.f32.mrf.mxu0 }
 0x3e0   :  { %v6444_v31 = vpop.f32.mrf.mxu0 }
 0x3e4   :  { %v6398_v34 = vpop.f32.mrf.mxu1 }
 0x3e5   :  { %v6399_v57 = vadd.f32 %v6398_v34, %v6358_v33 }
 0x3e6   :  { %v6400_v63 = vpop.f32.mrf.mxu1 }
 0x3e7   :  { %v6401_v17 = vadd.f32 %v6400_v63, %v6360_v36  ;;  %v6440_v30 = vadd.f32 %v6439_v14, %v6399_v57 }
 0x3e8   :  { %v6402_v37 = vpop.f32.mrf.mxu1 }
 0x3e9   :  { %v6442_v35 = vadd.f32 %v6441_v15, %v6401_v17 }
 0x3ea   :  { %v6403_v45 = vpop.f32.mrf.mxu1 }
 0x3fa   :  { %v7621_v38 = vpop.f32.mrf.mxu0 }
 0x3fc   :  { %v7622_v2 = vpop.f32.mrf.mxu0 }
 0x3fd   :  { %v7623_v0 = vadd.f32 %v7622_v2, %v7621_v38 }
 0x3fe   :  { %v7624_v39 = vpop.f32.mrf.mxu0 }
 0x3ff   :  { %v6522_v49 = vadd.f32 %v7623_v0, %v3683_v47 }
 0x400   :  { %v7625_v12 = vpop.f32.mrf.mxu0 }
 0x41a   :  { %v7665_v26 = vpop.f32.mrf.mxu0 }
 0x41c   :  { %v7666_v41 = vpop.f32.mrf.mxu0 }
 0x41d   :  { %v7667_v40 = vadd.f32 %v7666_v41, %v7665_v26 }
 0x41e   :  { %v7668_v22 = vpop.f32.mrf.mxu0 }
 0x420   :  { %v7669_v7 = vpop.f32.mrf.mxu0 }
 0x424   :  { %v6480_v5 = vpop.f32.mrf.mxu1 }
 0x425   :  { %v6481_v13 = vadd.f32 %v6480_v5, %v6440_v30 }
 0x426   :  { %v6482_v4 = vpop.f32.mrf.mxu1 }
 0x427   :  { %v6483_v42 = vadd.f32 %v6482_v4, %v6442_v35  ;;  %v6652_v51 = vsel %vm6647_vm1, %v6481_v13, -inf }
 0x428   :  { %v6484_v43 = vpop.f32.mrf.mxu1  ;;  %v6653_v6 = vmax.f32 %v6648_v1, %v6652_v51 }
 0x429   :  { %v6654_v16 = vsel %vm6647_vm1, %v6483_v42, -inf }
 0x42a   :  { %v6485_v32 = vpop.f32.mrf.mxu1  ;;  %v6655_v55 = vmax.f32 %v6649_v44, %v6654_v16 }
 0x42c   :  { %v6659_v10 = vmax.f32 %v6653_v6, %v6655_v55 }
 0x444   :  { %v7643_v54 = vpop.f32.mrf.mxu1 }
 0x446   :  { %v7644_v8 = vpop.f32.mrf.mxu1 }
 0x447   :  { %v7645_v20 = vadd.f32 %v7644_v8, %v7643_v54 }
 0x448   :  { %v7646_v50 = vpop.f32.mrf.mxu1 }
 0x449   :  { %v6562_v19 = vadd.f32 %v7645_v20, %v6522_v49 }
 0x44a   :  { %v7647_v24 = vpop.f32.mrf.mxu1 }
 0x44b   :  { %v6602_v52 = vadd.f32 %v7667_v40, %v6562_v19 }
 0x464   :  { %v7687_v56 = vpop.f32.mrf.mxu1 }
 0x466   :  { %v7688_v11 = vpop.f32.mrf.mxu1 }
 0x467   :  { %v7689_v29 = vadd.f32 %v7688_v11, %v7687_v56 }
 0x468   :  { %v7690_v27 = vpop.f32.mrf.mxu1 }
 0x469   :  { %v6642_v61 = vadd.f32 %v7689_v29, %v6602_v52 }
 0x46a   :  { %v7691_v62 = vpop.f32.mrf.mxu1 }
 0x46b   :  { %v6657_v60 = vsel %vm6656_vm2, %v6642_v61, -inf }
 0x46c   :  { %v6658_v9 = vmax.f32 %v6650_v3, %v6657_v60 }
 0x46e   :  { %v6660_v14 = vmax.f32 %v6658_v9, %v6651_v46 }
 0x470   :  { %v6661_v15 = vmax.f32 %v6659_v10, %v6660_v14 }
 0x472   :  { %6662 = vmax.xlane.f32.xlu0 %v6661_v15 }
 0x4fb   :  { %v6663_v21 = vpop.xlane.xlu0 %6662 }
 0x4fc   :  { %v6664_v58 = vsub.f32 %v10889_v23, %v6663_v21  ;;  %v6665_v25 = vsub.f32 %v10902_v48, %v6663_v21  ;;  %v6666_v28 = vsub.f32 %v11171_v18, %v6663_v21  ;;  %v6667_v31 = vsub.f32 %v11174_v59, %v6663_v21 }
 0x4fd   :  { %v6668_v33 = vsub.f32 %v6481_v13, %v6663_v21  ;;  %v6669_v63 = vsub.f32 %v6483_v42, %v6663_v21  ;;  %v6670_v30 = vsub.f32 %v6642_v61, %v6663_v21 }
 0x4fe   :  { %v6671_v34 = vmul.f32 1.442695, %v6664_v58  ;;  %v6673_v36 = vmul.f32 1.442695, %v6665_v25  ;;  %v6675_v57 = vmul.f32 1.442695, %v6666_v28 }
 0x4ff   :  { %v6677_v17 = vmul.f32 1.442695, %v6667_v31  ;;  %v6679_v37 = vmul.f32 1.442695, %v6668_v33  ;;  %v6681_v35 = vmul.f32 1.442695, %v6669_v63 }
 0x500   :  { %8337 = vpow2.f32 %v6671_v34  ;;  %v6683_v23 = vmul.f32 1.442695, %v6670_v30 }
 0x501   :  { %8339 = vpow2.f32 %v6673_v36 }
 0x502   :  { %8341 = vpow2.f32 %v6675_v57 }
 0x503   :  { %8343 = vpow2.f32 %v6677_v17 }
 0x504   :  { %8345 = vpow2.f32 %v6679_v37 }
 0x505   :  { %8347 = vpow2.f32 %v6681_v35 }
 0x506   :  { %8349 = vpow2.f32 %v6683_v23 }
 0x50d   :  { %v8338_v48 = vpop.eup %8337 }
 0x50e   :  { %v8340_v18 = vpop.eup %8339  ;;  %v6685_v59 = vsel %vm6647_vm1, %v8338_v48, 0.0 }
 0x50f   :  { %v8342_v45 = vpop.eup %8341  ;;  %v6686_v38 = vsel %vm6647_vm1, %v8340_v18, 0.0 }
 0x510   :  { %v8344_v2 = vpop.eup %8343  ;;  %v6687_v0 = vadd.f32 %v6686_v38, %v6685_v59  ;;  %v6688_v39 = vsel %vm6647_vm1, %v8342_v45, 0.0 }
 0x511   :  { %v8346_v12 = vpop.eup %8345  ;;  %v6690_v41 = vsel %vm6647_vm1, %v8344_v2, 0.0 }
 0x512   :  { %v6689_v26 = vadd.f32 %v6688_v39, %v6687_v0  ;;  %v8348_v40 = vpop.eup %8347  ;;  %v6692_v7 = vsel %vm6647_vm1, %v8346_v12, 0.0 }
 0x513   :  { %v8350_v5 = vpop.eup %8349  ;;  %v6694_v4 = vsel %vm6647_vm1, %v8348_v40, 0.0 }
 0x514   :  { %v6691_v22 = vadd.f32 %v6690_v41, %v6689_v26  ;;  %v6696_v43 = vsel %vm6656_vm2, %v8350_v5, 0.0 }
 0x516   :  { %v6693_v13 = vadd.f32 %v6692_v7, %v6691_v22 }
 0x518   :  { %v6695_v42 = vadd.f32 %v6694_v4, %v6693_v13 }
 0x51a   :  { %v6697_v32 = vadd.f32 %v6696_v43, %v6695_v42 }
 0x51c   :  { %6698 = vadd.xlane.f32.xlu0 %v6697_v32 }
 0x5a5   :  { %v6699_v47 = vpop.xlane.xlu0 %6698 }
 0x5a6   :  { %8351 = vlog2.f32 %v6699_v47 }
 0x5b3   :  { %v8352_v54 = vpop.eup %8351 }
 0x5b4   :  { %v6701_v8 = vmul.f32 0.6931472, %v8352_v54 }
 0x5b6   :  { %v6702_v49 = vsub.f32 %v6664_v58, %v6701_v8  ;;  %v6703_v20 = vsub.f32 %v6665_v25, %v6701_v8  ;;  %v6704_v50 = vsub.f32 %v6666_v28, %v6701_v8  ;;  %v6705_v19 = vsub.f32 %v6667_v31, %v6701_v8 }
 0x5b7   :  { %v6706_v24 = vsub.f32 %v6668_v33, %v6701_v8  ;;  %v6707_v52 = vsub.f32 %v6669_v63, %v6701_v8  ;;  %v6708_v56 = vsub.f32 %v6670_v30, %v6701_v8 }
 0x5b8   :  { %v6716_v11 = vcombine.low %v6702_v49, %v6703_v20  ;;  %v6717_v16 = vcombine.low %v6704_v50, %v6705_v19 }
 0x5b9   :  { %v6733_v29 = vcombine.low %v6706_v24, %v6707_v52  ;;  %v6747_v61 = vrot.slane %v6708_v56, %v8469_v53 }
 0x5ba   :  { %v6724_v27 = vrot.slane %v6716_v11, %v8469_v53  ;;  %v6731_v44 = vrot.slane %v6717_v16, %v8469_v53 }
 0x5bb   :  { %v6740_v51 = vrot.slane %v6733_v29, %v8469_v53 }
 0x5bc   :  { %v6732_v55 = vcombine.low %v6724_v27, %v6731_v44 }
 0x5bd   :  { %v6748_v62 = vcombine.low %v6740_v51, %v6747_v61 }
 0x5be   :  { %6751 = vst [vmem:[%s11223_s5] sm:$0xff] %v6732_v55 }
 0x5bf   :  { %6756 = vst.msk [vmem:[%s11223_s5 + $0x8] sm:$0x3f] %vm6755_vm6, %v6748_v62 }

// kernel: explainer_forward.3
= control target key start
LH: loop header
LB: loop body
LE: loop exit
PB: predicated region body
PF: predicated region fallthrough
CT: control target
= control target key end

     0   :  { %vm106_vm0 = vcmask 1043456   ;;  %vm118_vm1 = vcmask 125952   ;;  %vm805_vm2 = vcmask 128004   ;;  %vm677_vm3 = vcmask 1041409   ;;  %s13366_s0 = inlined_call_operand.vmem [shape: f32[4,4,784], index: 0, kind: input, shape index: {}]   ;;  %s13367_s4 = inlined_call_operand.vmem [shape: bf16[784,1024], index: 4, kind: input, shape index: {}]   ;;  %s13368_s2 = inlined_call_operand.vmem [shape: f32[2,784], index: 2, kind: input, shape index: {}]   ;;  %s13369_s3 = inlined_call_operand.vmem [shape: f32[2,784], index: 3, kind: input, shape index: {}]   ;;  %s13370_s1 = inlined_call_operand.vmem [shape: f32[4,784], index: 1, kind: input, shape index: {}]   ;;  %s13371_s10 = inlined_call_operand.vmem [shape: f32[4,784], index: 10, kind: output, shape index: {0}]   ;;  %s13372_s5 = inlined_call_operand.vmem [shape: f32[1,1024], index: 5, kind: input, shape index: {}]   ;;  %s13373_s6 = inlined_call_operand.vmem [shape: bf16[1024,1024], index: 6, kind: input, shape index: {}]   ;;  %s13374_s7 = inlined_call_operand.vmem [shape: f32[1,1024], index: 7, kind: input, shape index: {}]   ;;  %s13375_s8 = inlined_call_operand.vmem [shape: bf16[1024,128], index: 8, kind: input, shape index: {}]   ;;  %s13376_s9 = inlined_call_operand.vmem [shape: f32[1,128], index: 9, kind: input, shape index: {}]   ;;  %s13377_s11 = inlined_call_operand.vmem [shape: f32[6,128], index: 11, kind: output, shape index: {1}]  }
   0x1   :  { %v46_v0 = vld [vmem:[%s13366_s0 + $0x38] sm:$0xff]  ;;  %v47_v1 = vld [vmem:[%s13366_s0 + $0x40] sm:$0xff]  ;;  %v48_v2 = vld [vmem:[%s13366_s0 + $0x48] sm:$0xff]  ;;  %vm679_vm4 = vcmask 1045509   ;;  %vm682_vm5 = vcmask 1042434   ;;  %vm684_vm6 = vcmask 1046534  }
   0x2   :  { %v49_v3 = vld [vmem:[%s13366_s0 + $0x50] sm:$0xf]  ;;  %v9635_v4 = vmul.f32 2.0, %v46_v0  ;;  %v9637_v5 = vmul.f32 2.0, %v47_v1  ;;  %v9639_v6 = vmul.f32 2.0, %v48_v2  ;;  %v42_v7 = vld [vmem:[%s13366_s0 + $0x1c] sm:$0xff] }
   0x3   :  { %v43_v8 = vld [vmem:[%s13366_s0 + $0x24] sm:$0xff]  ;;  %v44_v9 = vld [vmem:[%s13366_s0 + $0x2c] sm:$0xff]  ;;  %v9650_v10 = vmul.f32 2.0, %v42_v7  ;;  %v9652_v11 = vmul.f32 2.0, %v49_v3  ;;  %v45_v15 = vld [vmem:[%s13366_s0 + $0x34] sm:$0xf] }
   0x4   :  { %v88_v12 = vcombine.high %v9635_v4, %v9635_v4  ;;  %v89_v13 = vcombine.high %v9637_v5, %v9637_v5  ;;  %v138_v14 = vsel %vm106_vm0, %v9635_v4, -inf  ;;  %v9663_v16 = vmul.f32 2.0, %v43_v8  ;;  %v50_v25 = vld [vmem:[%s13366_s0 + $0x54] sm:$0xff]  ;;  %v51_v26 = vld [vmem:[%s13366_s0 + $0x5c] sm:$0xff]  ;;  %v52_v31 = vld [vmem:[%s13366_s0 + $0x64] sm:$0xff] }
   0x5   :  { %v90_v17 = vcombine.high %v9639_v6, %v9639_v6  ;;  %v141_v19 = vsel %vm106_vm0, %v9637_v5, -inf  ;;  %v9670_v20 = vmul.f32 2.0, %v44_v9  ;;  %v145_v22 = vsel %vm106_vm0, %v9639_v6, -inf  ;;  %v38_v32 = vld [vmem:[%s13366_s0] sm:$0xff]  ;;  %v53_v43 = vld [vmem:[%s13366_s0 + $0x6c] sm:$0xf] }
   0x6   :  { %v139_v18 = vsel %vm106_vm0, %v88_v12, -inf  ;;  %v85_v23 = vcombine.high %v9650_v10, %v9650_v10  ;;  %v86_v24 = vcombine.high %v9663_v16, %v9663_v16  ;;  %v143_v27 = vsel %vm106_vm0, %v89_v13, -inf  ;;  %v39_v50 = vld [vmem:[%s13366_s0 + $0x8] sm:$0xff]  ;;  %v40_v55 = vld [vmem:[%s13366_s0 + $0x10] sm:$0xff] }
   0x7   :  { %v140_v21 = vmax.f32 %v138_v14, %v139_v18  ;;  %v149_v28 = vsel %vm118_vm1, %v9652_v11, -inf  ;;  %v9687_v29 = vmul.f32 2.0, %v45_v15  ;;  %v123_v30 = vsel %vm106_vm0, %v9650_v10, -inf }
   0x8   :  { %v87_v34 = vcombine.high %v9670_v20, %v9670_v20  ;;  %v124_v35 = vsel %vm106_vm0, %v85_v23, -inf  ;;  %v126_v36 = vsel %vm106_vm0, %v9663_v16, -inf  ;;  %v147_v37 = vsel %vm106_vm0, %v90_v17, -inf }
   0x9   :  { %v142_v33 = vmax.f32 %v140_v21, %v141_v19  ;;  %v125_v38 = vmax.f32 %v123_v30, %v124_v35  ;;  %v9703_v39 = vmul.f32 2.0, %v50_v25  ;;  %v9705_v40 = vmul.f32 2.0, %v51_v26  ;;  %v41_v19 = vld [vmem:[%s13366_s0 + $0x18] sm:$0xf] }
   0xa   :  { %v128_v42 = vsel %vm106_vm0, %v86_v24, -inf  ;;  %v9711_v44 = vmul.f32 2.0, %v52_v31  ;;  %v9713_v45 = vmul.f32 2.0, %v38_v32  ;;  %v130_v52 = vsel %vm106_vm0, %v9670_v20, -inf }
   0xb   :  { %v144_v41 = vmax.f32 %v142_v33, %v143_v27  ;;  %v127_v46 = vmax.f32 %v125_v38, %v126_v36  ;;  %v91_v47 = vcombine.high %v9703_v39, %v9703_v39  ;;  %v92_v48 = vcombine.high %v9705_v40, %v9705_v40 }
   0xc   :  { %v153_v49 = vsel %vm106_vm0, %v9703_v39, -inf  ;;  %v132_v53 = vsel %vm106_vm0, %v87_v34, -inf  ;;  %v134_v54 = vsel %vm118_vm1, %v9687_v29, -inf  ;;  %v9732_v57 = vmul.f32 2.0, %v53_v43  ;;  %v881_v43 = vld [vmem:[%s13367_s4 + $0x1e0] sm:$0xff] }
   0xd   :  { %v146_v51 = vmax.f32 %v144_v41, %v145_v22  ;;  %v129_v56 = vmax.f32 %v127_v46, %v128_v42  ;;  %v154_v58 = vsel %vm106_vm0, %v91_v47, -inf  ;;  %v156_v59 = vsel %vm106_vm0, %v9705_v40, -inf  ;;  %v877_v42 = vld [vmem:[%s13367_s4 + $0x1c0] sm:$0xff] }
   0xe   :  { %v93_v61 = vcombine.high %v9711_v44, %v9711_v44  ;;  %v155_v62 = vmax.f32 %v153_v49, %v154_v58  ;;  %v9739_v63 = vmul.f32 2.0, %v39_v50  ;;  %v158_v1 = vsel %vm106_vm0, %v92_v48, -inf  ;;  %v1005_v46 = vld [vmem:[%s13367_s4 + $0x5c0] sm:$0xff] }
   0xf   :  { %v148_v60 = vmax.f32 %v146_v51, %v147_v37  ;;  %v131_v0 = vmax.f32 %v129_v56, %v130_v52  ;;  %v9742_v2 = vmul.f32 2.0, %v40_v55  ;;  %v82_v3 = vcombine.high %v9713_v45, %v9713_v45  ;;  %v1009_v49 = vld [vmem:[%s13367_s4 + $0x5e0] sm:$0xff] }
  0x10   :  { %v157_v8 = vmax.f32 %v155_v62, %v156_v59  ;;  %v83_v9 = vcombine.high %v9739_v63, %v9739_v63  ;;  %v107_v12 = vsel %vm106_vm0, %v9713_v45, -inf  ;;  %v160_v14 = vsel %vm106_vm0, %v9711_v44, -inf }
  0x11   :  { %v150_v7 = vmax.f32 %v148_v60, %v149_v28  ;;  %v133_v13 = vmax.f32 %v131_v0, %v132_v53  ;;  %v108_v15 = vsel %vm106_vm0, %v82_v3, -inf  ;;  %v110_v17 = vsel %vm106_vm0, %v9739_v63, -inf }
  0x12   :  { %v159_v18 = vmax.f32 %v157_v8, %v158_v1  ;;  %v109_v21 = vmax.f32 %v107_v12, %v108_v15  ;;  %v162_v23 = vsel %vm106_vm0, %v93_v61, -inf  ;;  %v84_v24 = vcombine.high %v9742_v2, %v9742_v2 }
  0x13   :  { %151 = vmax.xlane.f32.xlu1 %v150_v7  ;;  %v135_v22 = vmax.f32 %v133_v13, %v134_v54  ;;  %v112_v25 = vsel %vm106_vm0, %v83_v9, -inf  ;;  %v164_v28 = vsel %vm118_vm1, %v9732_v57, -inf  ;;  %v9764_v30 = vmul.f32 2.0, %v41_v19 }
  0x14   :  { %v161_v26 = vmax.f32 %v159_v18, %v160_v14  ;;  %v111_v27 = vmax.f32 %v109_v21, %v110_v17  ;;  %v114_v31 = vsel %vm106_vm0, %v9742_v2, -inf  ;;  %v116_v34 = vsel %vm106_vm0, %v84_v24, -inf }
  0x15   :  { %136 = vmax.xlane.f32.xlu0 %v135_v22  ;;  %v119_v37 = vsel %vm118_vm1, %v9764_v30, -inf  ;;  %v8443_v47 = vcombine.high %v877_v42, %v881_v43  ;;  %v8442_v48 = vcombine.low %v877_v42, %v881_v43  ;;  %v8571_v50 = vcombine.high %v1005_v46, %v1009_v49 }
  0x16   :  { %v163_v32 = vmax.f32 %v161_v26, %v162_v23  ;;  %v113_v33 = vmax.f32 %v111_v27, %v112_v25  ;;  %v8570_v51 = vcombine.low %v1005_v46, %v1009_v49  ;;  %v9560_v52 = vmov 839922192  }
  0x17   :  { %3219 = vmatprep.subr.bf16.mxu0 %v8443_v47  ;;  %3260 = vmatprep.subr.bf16.mxu1 %v8571_v50  ;;  %v173_v53 = vunpack.c.l.s4 %v9560_v52  ;;  %v13378_v54 = vlaneseq  ;;  %vm687_vm7 = vcmask 1043459   ;;  %vm689_vm8 = vcmask 1047559  }
  0x18   :  { %v165_v35 = vmax.f32 %v163_v32, %v164_v28  ;;  %v115_v36 = vmax.f32 %v113_v33, %v114_v31  ;;  %3220 = vmatpush1.bf16.msra.mxu0 %v8442_v48  ;;  %3261 = vmatpush1.bf16.msra.mxu1 %v8570_v51  ;;  %vm3215_vm9 = vcmask 130048   ;;  %vm8360_vm11 = vcmask 1045504  }
  0x19   :  { %v174_v55 = vunpack.c.0.s8 %v173_v53  ;;  %v9784_v56 = vshrl.u32 %v13378_v54, 7 }
  0x1a   :  { %166 = vmax.xlane.f32.xlu1 %v165_v35  ;;  %v117_v38 = vmax.f32 %v115_v36, %v116_v34 }
  0x1b   :  { %v9787_v58 = vsub.s32 %v174_v55, %v9784_v56 }
  0x1c   :  { %v120_v41 = vmax.f32 %v117_v38, %v119_v37 }
  0x1e   :  { %121 = vmax.xlane.f32.xlu0 %v120_v41 }
  0x9c   :  { %v152_v59 = vpop.xlane.xlu1 %151 }
  0x9d   :  { %v192_v60 = vrot.slane %v152_v59, %v9787_v58 }
  0x9e   :  { %v137_v0 = vpop.xlane.xlu0 %136 }
  0x9f   :  { %v212_v61 = vsub.f32 %v9635_v4, %v192_v60  ;;  %v213_v62 = vsub.f32 %v9637_v5, %v192_v60  ;;  %v185_v1 = vrot.slane %v137_v0, %v9787_v58  ;;  %v214_v4 = vsub.f32 %v9639_v6, %v192_v60 }
  0xa1   :  { %v236_v3 = vmul.f32 1.442695, %v212_v61  ;;  %v238_v7 = vmul.f32 1.442695, %v213_v62  ;;  %v208_v8 = vsub.f32 %v9650_v10, %v185_v1  ;;  %v209_v9 = vsub.f32 %v9663_v16, %v185_v1 }
  0xa2   :  { %v210_v12 = vsub.f32 %v9670_v20, %v185_v1  ;;  %v211_v18 = vsub.f32 %v9687_v29, %v185_v1  ;;  %v240_v20 = vmul.f32 1.442695, %v214_v4 }
  0xa3   :  { %9514 = vpow2.f32 %v236_v3  ;;  %v228_v13 = vmul.f32 1.442695, %v208_v8  ;;  %v230_v14 = vmul.f32 1.442695, %v209_v9  ;;  %v167_v15 = vpop.xlane.xlu1 %166 }
  0xa4   :  { %9516 = vpow2.f32 %v238_v7  ;;  %v199_v5 = vrot.slane %v167_v15, %v9787_v58  ;;  %v232_v17 = vmul.f32 1.442695, %v210_v12  ;;  %v234_v24 = vmul.f32 1.442695, %v211_v18 }
  0xa5   :  { %9518 = vpow2.f32 %v228_v13 }
  0xa6   :  { %v216_v19 = vsub.f32 %v9703_v39, %v199_v5  ;;  %v217_v10 = vsub.f32 %v9705_v40, %v199_v5  ;;  %9520 = vpow2.f32 %v230_v14  ;;  %v215_v39 = vsub.f32 %v9652_v11, %v192_v60 }
  0xa7   :  { %v122_v16 = vpop.xlane.xlu0 %121  ;;  %9522 = vpow2.f32 %v232_v17  ;;  %v218_v40 = vsub.f32 %v9711_v44, %v199_v5 }
  0xa8   :  { %v244_v21 = vmul.f32 1.442695, %v216_v19  ;;  %v246_v22 = vmul.f32 1.442695, %v217_v10  ;;  %v178_v23 = vrot.slane %v122_v16, %v9787_v58  ;;  %v242_v33 = vmul.f32 1.442695, %v215_v39 }
  0xaa   :  { %9524 = vpow2.f32 %v244_v21  ;;  %v204_v6 = vsub.f32 %v9713_v45, %v178_v23  ;;  %v205_v29 = vsub.f32 %v9739_v63, %v178_v23  ;;  %v206_v25 = vsub.f32 %v9742_v2, %v178_v23 }
  0xab   :  { %9526 = vpow2.f32 %v246_v22  ;;  %v248_v63 = vmul.f32 1.442695, %v218_v40  ;;  %v207_v44 = vsub.f32 %v9764_v30, %v178_v23  ;;  %v219_v30 = vsub.f32 %v9732_v57, %v199_v5 }
  0xac   :  { %9528 = vpow2.f32 %v240_v20  ;;  %v220_v26 = vmul.f32 1.442695, %v204_v6  ;;  %v222_v27 = vmul.f32 1.442695, %v205_v29  ;;  %v224_v31 = vmul.f32 1.442695, %v206_v25 }
  0xad   :  { %9530 = vpow2.f32 %v234_v24  ;;  %v226_v42 = vmul.f32 1.442695, %v207_v44  ;;  %v250_v61 = vmul.f32 1.442695, %v219_v30 }
  0xae   :  { %9532 = vpow2.f32 %v220_v26 }
  0xaf   :  { %9534 = vpow2.f32 %v222_v27 }
  0xb0   :  { %v9807_v28 = vpop.eup %9514  ;;  %9536 = vpow2.f32 %v224_v31 }
  0xb1   :  { %v9809_v32 = vpop.eup %9516  ;;  %v270_v45 = vcombine.high %v9807_v28, %v9807_v28  ;;  %v318_v11 = vsel %vm106_vm0, %v9807_v28, 0.0  ;;  %9538 = vpow2.f32 %v242_v33 }
  0xb2   :  { %v271_v2 = vcombine.high %v9809_v32, %v9809_v32  ;;  %v321_v35 = vsel %vm106_vm0, %v9809_v32, 0.0  ;;  %v9821_v36 = vpop.eup %9518  ;;  %9540 = vpow2.f32 %v248_v63 }
  0xb3   :  { %v319_v34 = vsel %vm106_vm0, %v270_v45, 0.0  ;;  %v9823_v38 = vpop.eup %9520  ;;  %v267_v41 = vcombine.high %v9821_v36, %v9821_v36  ;;  %v303_v48 = vsel %vm106_vm0, %v9821_v36, 0.0  ;;  %9542 = vpow2.f32 %v226_v42 }
  0xb4   :  { %v320_v37 = vadd.f32 %v319_v34, %v318_v11  ;;  %v9828_v46 = vpop.eup %9522  ;;  %v268_v47 = vcombine.high %v9823_v38, %v9823_v38  ;;  %v323_v50 = vsel %vm106_vm0, %v271_v2, 0.0  ;;  %v306_v57 = vsel %vm106_vm0, %v9823_v38, 0.0 }
  0xb5   :  { %v304_v49 = vsel %vm106_vm0, %v267_v41, 0.0  ;;  %v269_v1 = vcombine.high %v9828_v46, %v9828_v46  ;;  %v310_v4 = vsel %vm106_vm0, %v9828_v46, 0.0  ;;  %9544 = vpow2.f32 %v250_v61 }
  0xb6   :  { %v322_v43 = vadd.f32 %v321_v35, %v320_v37  ;;  %v305_v52 = vadd.f32 %v304_v49, %v303_v48  ;;  %v308_v3 = vsel %vm106_vm0, %v268_v47, 0.0 }
  0xb7   :  { %v9836_v51 = vpop.eup %9524  ;;  %v312_v20 = vsel %vm106_vm0, %v269_v1, 0.0 }
  0xb8   :  { %v9838_v53 = vpop.eup %9526  ;;  %v273_v55 = vcombine.high %v9836_v51, %v9836_v51  ;;  %v333_v59 = vsel %vm106_vm0, %v9836_v51, 0.0  ;;  %v307_v62 = vadd.f32 %v306_v57, %v305_v52  ;;  %v324_v0 = vadd.f32 %v323_v50, %v322_v43 }
  0xb9   :  { %v9846_v60 = vpop.eup %9528  ;;  %v274_v7 = vcombine.high %v9838_v53, %v9838_v53  ;;  %v336_v14 = vsel %vm106_vm0, %v9838_v53, 0.0 }
  0xba   :  { %v334_v8 = vsel %vm106_vm0, %v273_v55, 0.0  ;;  %v9854_v9 = vpop.eup %9530  ;;  %v309_v12 = vadd.f32 %v308_v3, %v307_v62  ;;  %v272_v5 = vcombine.high %v9846_v60, %v9846_v60  ;;  %v325_v17 = vsel %vm106_vm0, %v9846_v60, 0.0  ;;  %v869_v3 = vld [vmem:[%s13367_s4 + $0x180] sm:$0xff] }
  0xbb   :  { %v335_v13 = vadd.f32 %v334_v8, %v333_v59  ;;  %v9858_v15 = vpop.eup %9532  ;;  %v326_v10 = vadd.f32 %v325_v17, %v324_v0  ;;  %v338_v22 = vsel %vm106_vm0, %v274_v7, 0.0  ;;  %v314_v39 = vsel %vm118_vm1, %v9854_v9, 0.0  ;;  %v873_v7 = vld [vmem:[%s13367_s4 + $0x1a0] sm:$0xff] }
  0xbc   :  { %v9866_v18 = vpop.eup %9534  ;;  %v311_v19 = vadd.f32 %v310_v4, %v309_v12  ;;  %v264_v16 = vcombine.high %v9858_v15, %v9858_v15  ;;  %v288_v6 = vsel %vm106_vm0, %v9858_v15, 0.0  ;;  %v327_v40 = vsel %vm106_vm0, %v272_v5, 0.0  ;;  %v997_v12 = vld [vmem:[%s13367_s4 + $0x580] sm:$0xff] }
  0xbd   :  { %v337_v21 = vadd.f32 %v336_v14, %v335_v13  ;;  %v265_v24 = vcombine.high %v9866_v18, %v9866_v18  ;;  %v9877_v25 = vpop.eup %9536  ;;  %v328_v33 = vadd.f32 %v327_v40, %v326_v10  ;;  %v291_v45 = vsel %vm106_vm0, %v9866_v18, 0.0  ;;  %v1001_v13 = vld [vmem:[%s13367_s4 + $0x5a0] sm:$0xff] }
  0xbe   :  { %v313_v23 = vadd.f32 %v312_v20, %v311_v19  ;;  %v289_v29 = vsel %vm106_vm0, %v264_v16, 0.0  ;;  %v9882_v27 = vpop.eup %9538  ;;  %v266_v2 = vcombine.high %v9877_v25, %v9877_v25  ;;  %v295_v30 = vsel %vm106_vm0, %v9877_v25, 0.0  ;;  %v861_v17 = vld [vmem:[%s13367_s4 + $0x140] sm:$0xff] }
  0xbf   :  { %v290_v26 = vadd.f32 %v289_v29, %v288_v6  ;;  %v9886_v11 = vpop.eup %9540  ;;  %v339_v44 = vadd.f32 %v338_v22, %v337_v21  ;;  %v293_v34 = vsel %vm106_vm0, %v265_v24, 0.0  ;;  %v329_v35 = vsel %vm118_vm1, %v9882_v27, 0.0  ;;  %v865_v19 = vld [vmem:[%s13367_s4 + $0x160] sm:$0xff] }
  0xc0   :  { %v315_v31 = vadd.f32 %v314_v39, %v313_v23  ;;  %v330_v41 = vadd.f32 %v329_v35, %v328_v33  ;;  %v275_v42 = vcombine.high %v9886_v11, %v9886_v11  ;;  %v340_v43 = vsel %vm106_vm0, %v9886_v11, 0.0  ;;  %v9899_v47 = vpop.eup %9542  ;;  %v989_v16 = vld [vmem:[%s13367_s4 + $0x540] sm:$0xff] }
  0xc1   :  { %v292_v63 = vadd.f32 %v291_v45, %v290_v26  ;;  %v341_v49 = vadd.f32 %v340_v43, %v339_v44  ;;  %v297_v50 = vsel %vm106_vm0, %v266_v2, 0.0  ;;  %v299_v57 = vsel %vm118_vm1, %v9899_v47, 0.0  ;;  %v993_v20 = vld [vmem:[%s13367_s4 + $0x560] sm:$0xff] }
  0xc2   :  { %316 = vadd.xlane.f32.xlu0 %v315_v31  ;;  %v342_v55 = vsel %vm106_vm0, %v275_v42, 0.0  ;;  %v9905_v59 = vpop.eup %9544  ;;  %v8435_v8 = vcombine.high %v869_v3, %v873_v7  ;;  %v8434_v14 = vcombine.low %v869_v3, %v873_v7  ;;  %v8563_v4 = vcombine.high %v997_v12, %v1001_v13  ;;  %v853_v24 = vld [vmem:[%s13367_s4 + $0x100] sm:$0xff] }
  0xc3   :  { %v294_v37 = vadd.f32 %v293_v34, %v292_v63  ;;  %v343_v62 = vadd.f32 %v342_v55, %v341_v49  ;;  %v344_v0 = vsel %vm118_vm1, %v9905_v59, 0.0  ;;  %v8562_v5 = vcombine.low %v997_v12, %v1001_v13  ;;  %v857_v6 = vld [vmem:[%s13367_s4 + $0x120] sm:$0xff] }
  0xc4   :  { %3221 = vmatprep.subr.bf16.mxu0 %v8435_v8  ;;  %3262 = vmatprep.subr.bf16.mxu1 %v8563_v4  ;;  %v8427_v10 = vcombine.high %v861_v17, %v865_v19  ;;  %v8426_v21 = vcombine.low %v861_v17, %v865_v19  ;;  %v8555_v22 = vcombine.high %v989_v16, %v993_v20  ;;  %v981_v39 = vld [vmem:[%s13367_s4 + $0x500] sm:$0xff] }
  0xc5   :  { %v296_v48 = vadd.f32 %v295_v30, %v294_v37  ;;  %v345_v1 = vadd.f32 %v344_v0, %v343_v62  ;;  %3222 = vmatpush1.bf16.msra.mxu0 %v8434_v14  ;;  %3263 = vmatpush1.bf16.msra.mxu1 %v8562_v5  ;;  %v8554_v23 = vcombine.low %v989_v16, %v993_v20  ;;  %v985_v40 = vld [vmem:[%s13367_s4 + $0x520] sm:$0xff] }
  0xc6   :  { %331 = vadd.xlane.f32.xlu0 %v330_v41  ;;  %3223 = vmatprep.subr.bf16.mxu0 %v8427_v10  ;;  %v8419_v29 = vcombine.high %v853_v24, %v857_v6  ;;  %v8418_v26 = vcombine.low %v853_v24, %v857_v6  ;;  %v8547_v31 = vcombine.high %v981_v39, %v985_v40  ;;  %v845_v45 = vld [vmem:[%s13367_s4 + $0xc0] sm:$0xff] }
  0xc7   :  { %v298_v52 = vadd.f32 %v297_v50, %v296_v48  ;;  %3264 = vmatprep.subr.bf16.mxu1 %v8555_v22  ;;  %v8546_v33 = vcombine.low %v981_v39, %v985_v40  ;;  %v849_v63 = vld [vmem:[%s13367_s4 + $0xe0] sm:$0xff] }
  0xc8   :  { %v8411_v44 = vcombine.high %v845_v45, %v849_v63  ;;  %v973_v2 = vld [vmem:[%s13367_s4 + $0x4c0] sm:$0xff]  ;;  %v8410_v35 = vcombine.low %v845_v45, %v849_v63 }
  0xc9   :  { %v300_v61 = vadd.f32 %v299_v57, %v298_v52  ;;  %3224 = vmatpush1.bf16.msra.mxu0 %v8426_v21  ;;  %3265 = vmatpush1.bf16.msra.mxu1 %v8554_v23  ;;  %v977_v34 = vld [vmem:[%s13367_s4 + $0x4e0] sm:$0xff] }
  0xca   :  { %3225 = vmatprep.subr.bf16.mxu0 %v8419_v29  ;;  %3266 = vmatprep.subr.bf16.mxu1 %v8547_v31  ;;  %v8539_v37 = vcombine.high %v973_v2, %v977_v34  ;;  %v8538_v41 = vcombine.low %v973_v2, %v977_v34  ;;  %v837_v30 = vld [vmem:[%s13367_s4 + $0x80] sm:$0xff] }
  0xcb   :  { %301 = vadd.xlane.f32.xlu1 %v300_v61  ;;  %v841_v42 = vld [vmem:[%s13367_s4 + $0xa0] sm:$0xff] }
  0xcc   :  { %v8403_v43 = vcombine.high %v837_v30, %v841_v42  ;;  %v965_v48 = vld [vmem:[%s13367_s4 + $0x480] sm:$0xff]  ;;  %v8402_v50 = vcombine.low %v837_v30, %v841_v42 }
  0xcd   :  { %3226 = vmatpush1.bf16.msra.mxu0 %v8418_v26  ;;  %3267 = vmatpush1.bf16.msra.mxu1 %v8546_v33  ;;  %v969_v49 = vld [vmem:[%s13367_s4 + $0x4a0] sm:$0xff] }
  0xce   :  { %3227 = vmatprep.subr.bf16.mxu0 %v8411_v44  ;;  %3268 = vmatprep.subr.bf16.mxu1 %v8539_v37  ;;  %v8531_v52 = vcombine.high %v965_v48, %v969_v49  ;;  %v8530_v57 = vcombine.low %v965_v48, %v969_v49  ;;  %v829_v55 = vld [vmem:[%s13367_s4 + $0x40] sm:$0xff] }
  0xcf   :  { %346 = vadd.xlane.f32.xlu1 %v345_v1  ;;  %v833_v61 = vld [vmem:[%s13367_s4 + $0x60] sm:$0xff] }
  0xd0   :  { %v8395_v62 = vcombine.high %v829_v55, %v833_v61  ;;  %v957_v0 = vld [vmem:[%s13367_s4 + $0x440] sm:$0xff]  ;;  %v8394_v3 = vcombine.low %v829_v55, %v833_v61 }
  0xd1   :  { %3228 = vmatpush1.bf16.msra.mxu0 %v8410_v35  ;;  %3269 = vmatpush1.bf16.msra.mxu1 %v8538_v41  ;;  %v961_v1 = vld [vmem:[%s13367_s4 + $0x460] sm:$0xff] }
  0xd2   :  { %3229 = vmatprep.subr.bf16.mxu0 %v8403_v43  ;;  %3270 = vmatprep.subr.bf16.mxu1 %v8531_v52  ;;  %v8523_v7 = vcombine.high %v957_v0, %v961_v1  ;;  %v8522_v8 = vcombine.low %v957_v0, %v961_v1  ;;  %v821_v12 = vld [vmem:[%s13367_s4] sm:$0xff] }
  0xd3   :  { %v825_v13 = vld [vmem:[%s13367_s4 + $0x20] sm:$0xff] }
  0xd4   :  { %v8387_v14 = vcombine.high %v821_v12, %v825_v13  ;;  %v949_v4 = vld [vmem:[%s13367_s4 + $0x400] sm:$0xff]  ;;  %v8386_v17 = vcombine.low %v821_v12, %v825_v13 }
  0xd5   :  { %3230 = vmatpush1.bf16.msra.mxu0 %v8402_v50  ;;  %3271 = vmatpush1.bf16.msra.mxu1 %v8530_v57  ;;  %v953_v5 = vld [vmem:[%s13367_s4 + $0x420] sm:$0xff] }
  0xd6   :  { %3231 = vmatprep.subr.bf16.mxu0 %v8395_v62  ;;  %3272 = vmatprep.subr.bf16.mxu1 %v8523_v7  ;;  %v8515_v19 = vcombine.high %v949_v4, %v953_v5  ;;  %v8514_v10 = vcombine.low %v949_v4, %v953_v5  ;;  %v941_v16 = vld [vmem:[%s13367_s4 + $0x3c0] sm:$0xff] }
  0xd7   :  { %v945_v20 = vld [vmem:[%s13367_s4 + $0x3e0] sm:$0xff] }
  0xd8   :  { %v1069_v21 = vld [vmem:[%s13367_s4 + $0x7c0] sm:$0xff]  ;;  %v8507_v22 = vcombine.high %v941_v16, %v945_v20  ;;  %v8506_v23 = vcombine.low %v941_v16, %v945_v20 }
  0xd9   :  { %3232 = vmatpush1.bf16.msra.mxu0 %v8394_v3  ;;  %3273 = vmatpush1.bf16.msra.mxu1 %v8522_v8  ;;  %v1073_v24 = vld [vmem:[%s13367_s4 + $0x7e0] sm:$0xff] }
  0xda   :  { %3233 = vmatprep.subr.bf16.mxu0 %v8387_v14  ;;  %3274 = vmatprep.subr.bf16.mxu1 %v8515_v19  ;;  %v933_v6 = vld [vmem:[%s13367_s4 + $0x380] sm:$0xff]  ;;  %v8635_v39 = vcombine.high %v1069_v21, %v1073_v24  ;;  %v8634_v40 = vcombine.low %v1069_v21, %v1073_v24 }
  0xdb   :  { %v937_v29 = vld [vmem:[%s13367_s4 + $0x3a0] sm:$0xff] }
  0xdc   :  { %v8499_v26 = vcombine.high %v933_v6, %v937_v29  ;;  %v1061_v31 = vld [vmem:[%s13367_s4 + $0x780] sm:$0xff]  ;;  %v8498_v35 = vcombine.low %v933_v6, %v937_v29 }
  0xdd   :  { %3234 = vmatpush1.bf16.msra.mxu0 %v8386_v17  ;;  %3275 = vmatpush1.bf16.msra.mxu1 %v8514_v10  ;;  %v1065_v33 = vld [vmem:[%s13367_s4 + $0x7a0] sm:$0xff] }
  0xde   :  { %3235 = vmatprep.subr.bf16.mxu0 %v8507_v22  ;;  %v8627_v45 = vcombine.high %v1061_v31, %v1065_v33  ;;  %v925_v63 = vld [vmem:[%s13367_s4 + $0x340] sm:$0xff]  ;;  %3276 = vmatprep.subr.bf16.mxu1 %v8635_v39  ;;  %v8626_v37 = vcombine.low %v1061_v31, %v1065_v33 }
  0xdf   :  { %v929_v44 = vld [vmem:[%s13367_s4 + $0x360] sm:$0xff] }
  0xe0   :  { %v1053_v2 = vld [vmem:[%s13367_s4 + $0x740] sm:$0xff]  ;;  %v8491_v41 = vcombine.high %v925_v63, %v929_v44  ;;  %v8490_v50 = vcombine.low %v925_v63, %v929_v44 }
  0xe1   :  { %v1057_v34 = vld [vmem:[%s13367_s4 + $0x760] sm:$0xff]  ;;  %3236 = vmatpush2.bf16.msra.mxu0 %v8506_v23  ;;  %3277 = vmatpush2.bf16.msra.mxu1 %v8634_v40 }
  0xe2   :  { %3237 = vmatprep.subr.bf16.mxu0 %v8499_v26  ;;  %3278 = vmatprep.subr.bf16.mxu1 %v8627_v45  ;;  %v8619_v30 = vcombine.high %v1053_v2, %v1057_v34  ;;  %v917_v42 = vld [vmem:[%s13367_s4 + $0x300] sm:$0xff]  ;;  %v8618_v52 = vcombine.low %v1053_v2, %v1057_v34  ;;  %v9561_v34 = vmov 1983009808  }
  0xe3   :  { %v921_v43 = vld [vmem:[%s13367_s4 + $0x320] sm:$0xff] }
  0xe4   :  { %v1045_v48 = vld [vmem:[%s13367_s4 + $0x700] sm:$0xff]  ;;  %v8483_v57 = vcombine.high %v917_v42, %v921_v43  ;;  %v8482_v3 = vcombine.low %v917_v42, %v921_v43 }
  0xe5   :  { %v1049_v49 = vld [vmem:[%s13367_s4 + $0x720] sm:$0xff]  ;;  %3238 = vmatpush2.bf16.msra.mxu0 %v8498_v35  ;;  %3279 = vmatpush2.bf16.msra.mxu1 %v8626_v37  ;;  %v760_v35 = vunpack.c.l.s4 %v9561_v34 }
  0xe6   :  { %3239 = vmatprep.subr.bf16.mxu0 %v8491_v41  ;;  %3280 = vmatprep.subr.bf16.mxu1 %v8619_v30  ;;  %v8611_v55 = vcombine.high %v1045_v48, %v1049_v49  ;;  %v909_v61 = vld [vmem:[%s13367_s4 + $0x2c0] sm:$0xff]  ;;  %v8610_v7 = vcombine.low %v1045_v48, %v1049_v49 }
  0xe7   :  { %v913_v62 = vld [vmem:[%s13367_s4 + $0x2e0] sm:$0xff]  ;;  %v761_v43 = vunpack.c.0.s8 %v760_v35 }
  0xe8   :  { %v1037_v0 = vld [vmem:[%s13367_s4 + $0x6c0] sm:$0xff]  ;;  %v8475_v8 = vcombine.high %v909_v61, %v913_v62  ;;  %v8474_v17 = vcombine.low %v909_v61, %v913_v62  ;;  %v751_v62 = vld [vmem:[%s13368_s2 + $0x8] sm:$0x3f] }
  0xe9   :  { %v1041_v1 = vld [vmem:[%s13367_s4 + $0x6e0] sm:$0xff]  ;;  %3240 = vmatpush2.bf16.msra.mxu0 %v8490_v50  ;;  %3281 = vmatpush2.bf16.msra.mxu1 %v8618_v52  ;;  %v764_v50 = vsub.s32 %v761_v43, %v9784_v56 }
  0xea   :  { %3241 = vmatprep.subr.bf16.mxu0 %v8483_v57  ;;  %3282 = vmatprep.subr.bf16.mxu1 %v8611_v55  ;;  %v8603_v12 = vcombine.high %v1037_v0, %v1041_v1  ;;  %v901_v13 = vld [vmem:[%s13367_s4 + $0x280] sm:$0xff]  ;;  %v8602_v19 = vcombine.low %v1037_v0, %v1041_v1  ;;  %v753_v0 = vld [vmem:[%s13369_s3 + $0x8] sm:$0x3f] }
  0xeb   :  { %v905_v14 = vld [vmem:[%s13367_s4 + $0x2a0] sm:$0xff]  ;;  %v755_v1 = vmul.f32 %v753_v0, %v751_v62 }
  0xec   :  { %v1029_v4 = vld [vmem:[%s13367_s4 + $0x680] sm:$0xff]  ;;  %v8467_v10 = vcombine.high %v901_v13, %v905_v14  ;;  %v8466_v39 = vcombine.low %v901_v13, %v905_v14 }
  0xed   :  { %v1033_v5 = vld [vmem:[%s13367_s4 + $0x6a0] sm:$0xff]  ;;  %3242 = vmatpush2.bf16.msra.mxu0 %v8482_v3  ;;  %3283 = vmatpush2.bf16.msra.mxu1 %v8610_v7  ;;  %8385 = vst.sshfl [vmem:[#allocation2 + $0x28] sm:$0xc pattern:$0x76325410] %v755_v1 }
  0xee   :  { %3243 = vmatprep.subr.bf16.mxu0 %v8475_v8  ;;  %v750_v16 = vld [vmem:[%s13368_s2] sm:$0xff]  ;;  %3284 = vmatprep.subr.bf16.mxu1 %v8603_v12  ;;  %v8595_v21 = vcombine.high %v1029_v4, %v1033_v5  ;;  %v8594_v40 = vcombine.low %v1029_v4, %v1033_v5 }
  0xef   :  { %v752_v20 = vld [vmem:[%s13369_s3] sm:$0xff] }
  0xf0   :  { %v893_v22 = vld [vmem:[%s13367_s4 + $0x240] sm:$0xff]  ;;  %v754_v24 = vmul.f32 %v752_v20, %v750_v16  ;;  %v782_v16 = vrot.slane %v755_v1, %v764_v50 }
  0xf1   :  { %v897_v23 = vld [vmem:[%s13367_s4 + $0x260] sm:$0xff]  ;;  %3244 = vmatpush2.bf16.msra.mxu0 %v8474_v17  ;;  %3285 = vmatpush2.bf16.msra.mxu1 %v8602_v19  ;;  %v775_v17 = vcombine.high %v755_v1, %v755_v1 }
  0xf2   :  { %v1021_v6 = vld [vmem:[%s13367_s4 + $0x640] sm:$0xff]  ;;  %8383 = vst.sshfl [vmem:[#allocation2 + $0x8] sm:$0xc pattern:$0x76325410] %v754_v24  ;;  %3245 = vmatprep.subr.bf16.mxu0 %v8467_v10  ;;  %v8459_v26 = vcombine.high %v893_v22, %v897_v23  ;;  %3286 = vmatprep.subr.bf16.mxu1 %v8595_v21  ;;  %v8458_v2 = vcombine.low %v893_v22, %v897_v23 }
  0xf3   :  { %v1025_v29 = vld [vmem:[%s13367_s4 + $0x660] sm:$0xff]  ;;  %v758_v49 = vcombine.high %v754_v24, %v754_v24  ;;  %v765_v52 = vrot.slane %v754_v24, %v764_v50  ;;  %v789_v19 = vrot.slane %v775_v17, %v764_v50  ;;  %v790_v20 = vcombine.low %v782_v16, %v782_v16 }
  0xf4   :  { %v8587_v31 = vcombine.high %v1021_v6, %v1025_v29  ;;  %v885_v33 = vld [vmem:[%s13367_s4 + $0x200] sm:$0xff]  ;;  %v8586_v37 = vcombine.low %v1021_v6, %v1025_v29 }
  0xf5   :  { %v889_v45 = vld [vmem:[%s13367_s4 + $0x220] sm:$0xff]  ;;  %3246 = vmatpush2.bf16.msra.mxu0 %v8466_v39  ;;  %3287 = vmatpush2.bf16.msra.mxu1 %v8594_v40  ;;  %8384 = vst.sshfl [vmem:[#allocation2 + $0x18] sm:$0xc pattern:$0x76325410] %v758_v49  ;;  %v772_v57 = vrot.slane %v758_v49, %v764_v50  ;;  %v773_v55 = vcombine.low %v765_v52, %v765_v52 }
  0xf6   :  { %v1013_v63 = vld [vmem:[%s13367_s4 + $0x600] sm:$0xff]  ;;  %3247 = vmatprep.subr.bf16.mxu0 %v8459_v26  ;;  %v8451_v41 = vcombine.high %v885_v33, %v889_v45  ;;  %3288 = vmatprep.subr.bf16.mxu1 %v8587_v31  ;;  %v8450_v42 = vcombine.low %v885_v33, %v889_v45  ;;  %v791_v10 = vcombine.low %v789_v19, %v789_v19 }
  0xf7   :  { %v1017_v44 = vld [vmem:[%s13367_s4 + $0x620] sm:$0xff]  ;;  %v774_v61 = vcombine.low %v772_v57, %v772_v57  ;;  %799 = vst [vmem:[#allocation2] sm:$0x30] %v773_v55  ;;  %803 = vst [vmem:[#allocation2 + $0x20] sm:$0x30] %v790_v20 }
  0xf8   :  { %v8579_v30 = vcombine.high %v1013_v63, %v1017_v44  ;;  %v8578_v48 = vcombine.low %v1013_v63, %v1017_v44  ;;  %v10105_v3 = vld [vmem:[%s13367_s4 + $0x9c0] sm:$0xff]  ;;  %806 = vst.msk [vmem:[#allocation2 + $0x30] sm:$0x30] %vm805_vm2, %v791_v10 }
  0xf9   :  { %3248 = vmatpush2.bf16.msra.mxu0 %v8458_v2  ;;  %3289 = vmatpush2.bf16.msra.mxu1 %v8586_v37  ;;  %801 = vst [vmem:[#allocation2 + $0x10] sm:$0x30] %v774_v61  ;;  %v10110_v7 = vld [vmem:[%s13367_s4 + $0x9e0] sm:$0xff] }
  0xfa   :  { %3249 = vmatprep.subr.bf16.mxu0 %v8451_v41  ;;  %3290 = vmatprep.subr.bf16.mxu1 %v8579_v30  ;;  %v8698_v8 = vcombine.low %v10105_v3, %v10110_v7  ;;  %v8699_v12 = vcombine.high %v10105_v3, %v10110_v7  ;;  %v10119_v13 = vld [vmem:[%s13367_s4 + $0xc00] sm:$0xff] }
  0xfb   :  { %v10124_v14 = vld [vmem:[%s13367_s4 + $0xc20] sm:$0xff] }
  0xfc   :  { %v8771_v5 = vcombine.high %v10119_v13, %v10124_v14  ;;  %v10152_v43 = vld [vmem:[%s13367_s4 + $0x9a0] sm:$0xff] }
  0xfd   :  { %3250 = vmatpush2.bf16.msra.mxu0 %v8450_v42  ;;  %3291 = vmatpush2.bf16.msra.mxu1 %v8578_v48 }
  0xfe   :  { %3301 = vmatprep.subr.bf16.mxu0 %v8699_v12  ;;  %3356 = vmatprep.subr.bf16.mxu1 %v8771_v5 }
 0x14b   :  { %v317_v21 = vpop.xlane.xlu0 %316 }
 0x14c   :  { %v365_v22 = vrot.slane %v317_v21, %v9787_v58 }
 0x14e   :  { %9546 = vrcp.f32 %v365_v22 }
 0x14f   :  { %v332_v23 = vpop.xlane.xlu0 %331 }
 0x150   :  { %v372_v24 = vrot.slane %v332_v23, %v9787_v58 }
 0x152   :  { %9548 = vrcp.f32 %v372_v24 }
 0x154   :  { %v302_v6 = vpop.xlane.xlu1 %301 }
 0x155   :  { %v358_v29 = vrot.slane %v302_v6, %v9787_v58 }
 0x157   :  { %9550 = vrcp.f32 %v358_v29 }
 0x158   :  { %v347_v39 = vpop.xlane.xlu1 %346 }
 0x159   :  { %v379_v40 = vrot.slane %v347_v39, %v9787_v58 }
 0x15b   :  { %v9547_v26 = vpop.eup %9546  ;;  %9552 = vrcp.f32 %v379_v40 }
 0x15c   :  { %v390_v31 = vmul.f32 %v9547_v26, %v9821_v36  ;;  %v391_v33 = vmul.f32 %v9547_v26, %v9823_v38  ;;  %v392_v45 = vmul.f32 %v9547_v26, %v9828_v46  ;;  %v393_v63 = vmul.f32 %v9547_v26, %v9854_v9  ;;  %v10147_v9 = vld [vmem:[%s13367_s4 + $0x980] sm:$0xff] }
 0x15e   :  { %v419_v44 = vcombine.high %v390_v31, %v390_v31  ;;  %v420_v2 = vcombine.high %v391_v33, %v391_v33  ;;  %v421_v34 = vcombine.high %v392_v45, %v392_v45  ;;  %v489_v35 = vsel %vm106_vm0, %v390_v31, -inf }
 0x15f   :  { %v490_v37 = vrot.slane %v489_v35, 4  ;;  %v503_v41 = vsel %vm106_vm0, %v391_v33, -inf  ;;  %v517_v58 = vsel %vm106_vm0, %v392_v45, -inf  ;;  %v531_v30 = vsel %vm118_vm1, %v393_v63, -inf  ;;  %v9549_v48 = vpop.eup %9548 }
 0x160   :  { %v496_v36 = vsel %vm106_vm0, %v419_v44, -inf  ;;  %v504_v38 = vrot.slane %v503_v41, 4  ;;  %v510_v46 = vsel %vm106_vm0, %v420_v2, -inf  ;;  %v518_v42 = vrot.slane %v517_v58, 4 }
 0x161   :  { %v10154_v49 = vmax.f32 %v489_v35, %v490_v37  ;;  %v497_v50 = vrot.slane %v496_v36, 4  ;;  %v511_v52 = vrot.slane %v510_v46, 4  ;;  %v524_v57 = vsel %vm106_vm0, %v421_v34, -inf }
 0x162   :  { %v10157_v55 = vmax.f32 %v503_v41, %v504_v38  ;;  %v10159_v61 = vmax.f32 %v517_v58, %v518_v42  ;;  %v525_v62 = vrot.slane %v524_v57, 4  ;;  %v532_v0 = vrot.slane %v531_v30, 4 }
 0x163   :  { %v492_v1 = vrot.slane %v10154_v49, 2  ;;  %v10162_v12 = vmax.f32 %v496_v36, %v497_v50  ;;  %v10167_v10 = vmax.f32 %v510_v46, %v511_v52  ;;  %v10170_v20 = vmul.f32 %v9549_v48, %v9807_v28 }
 0x164   :  { %v9551_v17 = vpop.eup %9550  ;;  %v506_v19 = vrot.slane %v10157_v55, 2  ;;  %v533_v16 = vmax.f32 %v531_v30, %v532_v0  ;;  %v520_v21 = vrot.slane %v10159_v61, 2  ;;  %v10176_v6 = vmax.f32 %v524_v57, %v525_v62 }
 0x165   :  { %v385_v22 = vmul.f32 %v9551_v17, %v9858_v15  ;;  %v386_v23 = vmul.f32 %v9551_v17, %v9866_v18  ;;  %v387_v24 = vmul.f32 %v9551_v17, %v9877_v25  ;;  %v388_v39 = vmul.f32 %v9551_v17, %v9899_v47 }
 0x166   :  { %v534_v29 = vrot.slane %v533_v16, 2  ;;  %v10180_v40 = vmul.f32 %v9549_v48, %v9809_v32  ;;  %v10186_v25 = vmul.f32 %v9549_v48, %v9846_v60  ;;  %v398_v0 = vmul.f32 %v9549_v48, %v9882_v27 }
 0x167   :  { %v416_v26 = vcombine.high %v385_v22, %v385_v22  ;;  %v417_v31 = vcombine.high %v386_v23, %v386_v23  ;;  %v418_v28 = vcombine.high %v387_v24, %v387_v24  ;;  %v440_v33 = vsel %vm106_vm0, %v385_v22, -inf }
 0x168   :  { %v441_v45 = vrot.slane %v440_v33, 4  ;;  %v454_v15 = vsel %vm106_vm0, %v386_v23, -inf  ;;  %v468_v18 = vsel %vm106_vm0, %v387_v24, -inf  ;;  %v9553_v2 = vpop.eup %9552  ;;  %v482_v38 = vsel %vm118_vm1, %v388_v39, -inf }
 0x169   :  { %v447_v63 = vsel %vm106_vm0, %v416_v26, -inf  ;;  %v455_v44 = vrot.slane %v454_v15, 4  ;;  %v461_v47 = vsel %vm106_vm0, %v417_v31, -inf  ;;  %v469_v32 = vrot.slane %v468_v18, 4 }
 0x16a   :  { %v442_v34 = vmax.f32 %v440_v33, %v441_v45  ;;  %v448_v35 = vrot.slane %v447_v63, 4  ;;  %v462_v37 = vrot.slane %v461_v47, 4  ;;  %v475_v41 = vsel %vm106_vm0, %v418_v28, -inf }
 0x16b   :  { %v456_v58 = vmax.f32 %v454_v15, %v455_v44  ;;  %v470_v30 = vmax.f32 %v468_v18, %v469_v32  ;;  %v476_v36 = vrot.slane %v475_v41, 4  ;;  %v483_v50 = vrot.slane %v482_v38, 4 }
 0x16c   :  { %v443_v46 = vrot.slane %v442_v34, 2  ;;  %v449_v60 = vmax.f32 %v447_v63, %v448_v35  ;;  %v10192_v42 = vmax.f32 %v461_v47, %v462_v37  ;;  %v10197_v17 = vmax.f32 %v533_v16, %v534_v29 }
 0x16d   :  { %v457_v52 = vrot.slane %v456_v58, 2  ;;  %v471_v57 = vrot.slane %v470_v30, 2  ;;  %v10194_v62 = vmax.f32 %v475_v41, %v476_v36  ;;  %v484_v23 = vmax.f32 %v482_v38, %v483_v50 }
 0x16e   :  { %v444_v22 = vmax.f32 %v442_v34, %v443_v46  ;;  %v422_v24 = vcombine.high %v10170_v20, %v10170_v20  ;;  %v450_v26 = vrot.slane %v449_v60, 2  ;;  %v464_v31 = vrot.slane %v10192_v42, 2 }
 0x16f   :  { %v458_v39 = vmax.f32 %v456_v58, %v457_v52  ;;  %v10202_v28 = vmax.f32 %v470_v30, %v471_v57  ;;  %v478_v33 = vrot.slane %v10194_v62, 2  ;;  %v485_v45 = vrot.slane %v484_v23, 2 }
 0x170   :  { %v538_v15 = vsel %vm106_vm0, %v10170_v20, -inf  ;;  %v10209_v27 = vsel %vm106_vm0, %v10180_v40, -inf  ;;  %v423_v48 = vcombine.high %v10180_v40, %v10180_v40  ;;  %v10215_v29 = vsel %vm106_vm0, %v10186_v25, -inf }
 0x171   :  { %v539_v16 = vrot.slane %v538_v15, 4  ;;  %v10218_v18 = vsel %vm118_vm1, %v398_v0, -inf  ;;  %v10220_v63 = vmax.f32 %v484_v23, %v485_v45  ;;  %v424_v20 = vcombine.high %v10186_v25, %v10186_v25 }
 0x172   :  { %v553_v44 = vrot.slane %v10209_v27, 4  ;;  %v400_v47 = vmul.f32 %v9553_v2, %v9836_v51  ;;  %v567_v32 = vrot.slane %v10215_v29, 4  ;;  %v581_v34 = vrot.slane %v10218_v18, 4 }
 0x173   :  { %v10229_v35 = vmul.f32 %v9553_v2, %v9838_v53  ;;  %v445_v37 = vrot.slane %v444_v22, 1  ;;  %v10232_v41 = vmul.f32 %v9553_v2, %v9886_v11  ;;  %v10235_v58 = vmul.f32 %v9553_v2, %v9905_v59 }
 0x174   :  { %v425_v30 = vcombine.high %v400_v47, %v400_v47  ;;  %v451_v36 = vmax.f32 %v449_v60, %v450_v26  ;;  %v493_v51 = vmax.f32 %v10154_v49, %v492_v1  ;;  %v499_v46 = vrot.slane %v10162_v12, 2 }
 0x175   :  { %v446_v38 = vmax.f32 %v444_v22, %v445_v37  ;;  %v540_v50 = vmax.f32 %v538_v15, %v539_v16  ;;  %v545_v53 = vsel %vm106_vm0, %v422_v24, -inf  ;;  %v587_v57 = vsel %vm106_vm0, %v400_v47, -inf }
 0x176   :  { %v452_v52 = vrot.slane %v451_v36, 1  ;;  %v594_v11 = vsel %vm106_vm0, %v425_v30, -inf  ;;  %v494_v0 = vrot.slane %v493_v51, 1  ;;  %v500_v59 = vmax.f32 %v10162_v12, %v499_v46 }
 0x177   :  { %v541_v2 = vrot.slane %v540_v50, 2  ;;  %v546_v60 = vrot.slane %v545_v53, 4  ;;  %v588_v23 = vrot.slane %v587_v57, 4  ;;  %v595_v26 = vrot.slane %v594_v11, 4 }
 0x178   :  { %v453_v22 = vmax.f32 %v451_v36, %v452_v52  ;;  %v426_v49 = vcombine.high %v10229_v35, %v10229_v35  ;;  %v495_v1 = vmax.f32 %v493_v51, %v494_v0  ;;  %v501_v45 = vrot.slane %v500_v59, 1 }
 0x179   :  { %v542_v15 = vmax.f32 %v540_v50, %v541_v2  ;;  %v547_v24 = vmax.f32 %v545_v53, %v546_v60  ;;  %v589_v16 = vmax.f32 %v587_v57, %v588_v23  ;;  %v596_v47 = vmax.f32 %v594_v11, %v595_v26 }
 0x17a   :  { %v664_v37 = vcombine.low %v446_v38, %v453_v22  ;;  %v459_v30 = vrot.slane %v458_v39, 1  ;;  %v502_v54 = vmax.f32 %v500_v59, %v501_v45  ;;  %v465_v36 = vmax.f32 %v10192_v42, %v464_v31 }
 0x17b   :  { %v543_v12 = vrot.slane %v542_v15, 1  ;;  %v548_v46 = vrot.slane %v547_v24, 2  ;;  %v590_v52 = vrot.slane %v589_v16, 2  ;;  %v597_v4 = vrot.slane %v596_v47, 2 }
 0x17c   :  { %v10248_v5 = vmax.f32 %v458_v39, %v459_v30  ;;  %v507_v51 = vmax.f32 %v10157_v55, %v506_v19  ;;  %v667_v0 = vcombine.low %v495_v1, %v502_v54  ;;  %v466_v57 = vrot.slane %v465_v36, 1 }
 0x17d   :  { %v544_v50 = vmax.f32 %v542_v15, %v543_v12  ;;  %v549_v53 = vmax.f32 %v547_v24, %v548_v46  ;;  %v591_v11 = vmax.f32 %v589_v16, %v590_v52  ;;  %v598_v38 = vmax.f32 %v596_v47, %v597_v4 }
 0x17e   :  { %v508_v59 = vrot.slane %v507_v51, 1  ;;  %v513_v2 = vrot.slane %v10167_v10, 2  ;;  %v676_v42 = vrot.slane %v667_v0, 7  ;;  %v467_v31 = vmax.f32 %v465_v36, %v466_v57 }
 0x17f   :  { %v550_v60 = vrot.slane %v549_v53, 1  ;;  %v554_v39 = vmax.f32 %v10209_v27, %v553_v44  ;;  %v592_v22 = vrot.slane %v591_v11, 1  ;;  %v599_v23 = vrot.slane %v598_v38, 1 }
 0x180   :  { %v509_v55 = vmax.f32 %v507_v51, %v508_v59  ;;  %v514_v19 = vmax.f32 %v10167_v10, %v513_v2  ;;  %v678_v26 = vsel %vm677_vm3, %v676_v42, %v664_v37  ;;  %v559_v1 = vsel %vm106_vm0, %v423_v48, -inf  ;;  %v726_v2 = vld [vmem:[%s13370_s1] sm:$0xff] }
 0x181   :  { %v551_v54 = vmax.f32 %v549_v53, %v550_v60  ;;  %v555_v4 = vrot.slane %v554_v39, 2  ;;  %v593_v45 = vmax.f32 %v591_v11, %v592_v22  ;;  %v600_v15 = vmax.f32 %v598_v38, %v599_v23 }
 0x182   :  { %v680_v27 = vsel %vm679_vm4, %v676_v42, %v678_v26  ;;  %v515_v44 = vrot.slane %v514_v19, 1  ;;  %v560_v47 = vrot.slane %v559_v1, 4  ;;  %v601_v10 = vsel %vm106_vm0, %v10229_v35, -inf }
 0x183   :  { %v670_v24 = vcombine.low %v544_v50, %v551_v54  ;;  %v556_v16 = vmax.f32 %v554_v39, %v555_v4  ;;  %v673_v30 = vcombine.low %v593_v45, %v600_v15  ;;  %v602_v12 = vrot.slane %v601_v10, 4 }
 0x184   :  { %v516_v37 = vmax.f32 %v514_v19, %v515_v44  ;;  %v608_v46 = vsel %vm106_vm0, %v426_v49, -inf  ;;  %v561_v52 = vmax.f32 %v559_v1, %v560_v47  ;;  %v487_v51 = vrot.slane %v10220_v63, 1 }
 0x185   :  { %v681_v36 = vrot.slane %v670_v24, 6  ;;  %v557_v40 = vrot.slane %v556_v16, 1  ;;  %v609_v48 = vrot.slane %v608_v46, 4  ;;  %v686_v53 = vrot.slane %v673_v30, 5 }
 0x186   :  { %v603_v0 = vmax.f32 %v601_v10, %v602_v12  ;;  %v668_v57 = vcombine.low %v509_v55, %v516_v37  ;;  %v562_v11 = vrot.slane %v561_v52, 2  ;;  %v665_v35 = vcombine.low %v10248_v5, %v467_v31 }
 0x187   :  { %v683_v50 = vsel %vm682_vm5, %v681_v36, %v680_v27  ;;  %v610_v38 = vmax.f32 %v608_v46, %v609_v48  ;;  %v10271_v59 = vmax.f32 %v10218_v18, %v581_v34  ;;  %v558_v60 = vmax.f32 %v556_v16, %v557_v40 }
 0x188   :  { %v685_v49 = vsel %vm684_vm6, %v681_v36, %v683_v50  ;;  %v604_v42 = vrot.slane %v603_v0, 2  ;;  %v563_v22 = vmax.f32 %v561_v52, %v562_v11  ;;  %v691_v55 = vrot.slane %v668_v57, 7 }
 0x189   :  { %v688_v39 = vsel %vm687_vm7, %v686_v53, %v685_v49  ;;  %v611_v23 = vrot.slane %v610_v38, 2  ;;  %v427_v18 = vcombine.high %v10232_v41, %v10232_v41  ;;  %v479_v34 = vmax.f32 %v10194_v62, %v478_v33 }
 0x18a   :  { %v690_v5 = vsel %vm689_vm8, %v686_v53, %v688_v39  ;;  %v605_v31 = vmax.f32 %v603_v0, %v604_v42  ;;  %v564_v54 = vrot.slane %v563_v22, 1  ;;  %v692_v4 = vsel %vm677_vm3, %v691_v55, %v665_v35 }
 0x18b   :  { %722 = vst [vmem:[%s13371_s10] sm:$0xff] %v690_v5  ;;  %v730_v19 = vmul.f32 %v726_v2, %v690_v5  ;;  %v612_v26 = vmax.f32 %v610_v38, %v611_v23  ;;  %v473_v45 = vrot.slane %v10202_v28, 1  ;;  %v480_v15 = vrot.slane %v479_v34, 1 }
 0x18c   :  { %v606_v1 = vrot.slane %v605_v31, 1  ;;  %v521_v27 = vmax.f32 %v10159_v61, %v520_v21  ;;  %v565_v62 = vmax.f32 %v563_v22, %v564_v54  ;;  %v527_v24 = vrot.slane %v10176_v6, 2 }
 0x18d   :  { %v737_v44 = vcombine.high %v730_v19, %v730_v19  ;;  %743 = vst [vmem:[#allocation2] sm:$0xf] %v730_v19  ;;  %v613_v33 = vrot.slane %v612_v26, 1  ;;  %v693_v47 = vsel %vm679_vm4, %v691_v55, %v692_v4  ;;  %v568_v30 = vmax.f32 %v10215_v29, %v567_v32 }
 0x18e   :  { %v607_v16 = vmax.f32 %v605_v31, %v606_v1  ;;  %v522_v10 = vrot.slane %v521_v27, 1  ;;  %v671_v12 = vcombine.low %v558_v60, %v565_v62  ;;  %v528_v46 = vmax.f32 %v10176_v6, %v527_v24 }
 0x18f   :  { %744 = vst [vmem:[#allocation2 + $0x8] sm:$0xf] %v737_v44  ;;  %v614_v37 = vmax.f32 %v612_v26, %v613_v33  ;;  %v573_v61 = vsel %vm106_vm0, %v424_v20, -inf  ;;  %v481_v21 = vmax.f32 %v479_v34, %v480_v15  ;;  %v569_v36 = vrot.slane %v568_v30, 2  ;;  %v1121_v44 = vld [vmem:[%s13367_s4 + $0x960] sm:$0xff] }
 0x190   :  { %v574_v40 = vrot.slane %v573_v61, 4  ;;  %v615_v52 = vsel %vm106_vm0, %v10232_v41, -inf  ;;  %v694_v53 = vrot.slane %v671_v12, 6  ;;  %v529_v0 = vrot.slane %v528_v46, 1  ;;  %v727_v41 = vld [vmem:[%s13370_s1 + $0x8] sm:$0xff] }
 0x191   :  { %v674_v48 = vcombine.low %v607_v16, %v614_v37  ;;  %v616_v29 = vrot.slane %v615_v52, 4  ;;  %v523_v32 = vmax.f32 %v521_v27, %v522_v10  ;;  %v570_v57 = vmax.f32 %v568_v30, %v569_v36  ;;  %v1117_v27 = vld [vmem:[%s13367_s4 + $0x940] sm:$0xff] }
 0x192   :  { %v575_v50 = vmax.f32 %v573_v61, %v574_v40  ;;  %v622_v6 = vsel %vm106_vm0, %v427_v18, -inf  ;;  %v695_v11 = vsel %vm682_vm5, %v694_v53, %v693_v47  ;;  %v530_v38 = vmax.f32 %v528_v46, %v529_v0 }
 0x193   :  { %v697_v25 = vrot.slane %v674_v48, 5  ;;  %v617_v20 = vmax.f32 %v615_v52, %v616_v29  ;;  %v696_v35 = vsel %vm684_vm6, %v694_v53, %v695_v11  ;;  %v474_v2 = vmax.f32 %v10202_v28, %v473_v45  ;;  %v10362_v11 = vld [vmem:[%s13367_s4 + $0x1e8] sm:$0xff] }
 0x194   :  { %v807_v49 = vld [vmem:[#allocation2] sm:$0x3f]  ;;  %v576_v60 = vrot.slane %v575_v50, 2  ;;  %v623_v42 = vrot.slane %v622_v6, 4  ;;  %v571_v22 = vrot.slane %v570_v57, 1  ;;  %v669_v55 = vcombine.low %v523_v32, %v530_v38 }
 0x195   :  { %v698_v39 = vsel %vm687_vm7, %v697_v25, %v696_v35  ;;  %v618_v23 = vrot.slane %v617_v20, 2  ;;  %v666_v19 = vcombine.low %v474_v2, %v481_v21  ;;  %v10318_v26 = vpack.c.bf16 %v807_v49, %v807_v49 }
 0x196   :  { %v808_v5 = vld [vmem:[#allocation2 + $0x8] sm:$0x3f]  ;;  %v699_v31 = vsel %vm689_vm8, %v697_v25, %v698_v39  ;;  %v577_v18 = vmax.f32 %v575_v50, %v576_v60  ;;  %v624_v34 = vmax.f32 %v622_v6, %v623_v42  ;;  %v700_v15 = vrot.slane %v669_v55, 7  ;;  %v1101_v60 = vld [vmem:[%s13367_s4 + $0x8c0] sm:$0xff] }
 0x197   :  { %v10313_v54 = vpack.c.bf16 %v808_v5, %v808_v5  ;;  %723 = vst [vmem:[%s13371_s10 + $0x8] sm:$0xff] %v699_v31  ;;  %v731_v28 = vmul.f32 %v727_v41, %v699_v31  ;;  %v619_v4 = vmax.f32 %v617_v20, %v618_v23  ;;  %v536_v62 = vrot.slane %v10197_v17, 1  ;;  %v10357_v6 = vld [vmem:[%s13367_s4 + $0x1c8] sm:$0xff]  ;;  %v1105_v42 = vld [vmem:[%s13367_s4 + $0x8e0] sm:$0xff]  ;;  %v728_v23 = vld [vmem:[%s13370_s1 + $0x10] sm:$0xff] }
 0x198   :  { %v578_v1 = vrot.slane %v577_v18, 1  ;;  %v625_v45 = vrot.slane %v624_v34, 2  ;;  %v572_v24 = vmax.f32 %v570_v57, %v571_v22  ;;  %v583_v47 = vrot.slane %v10271_v59, 2 }
 0x199   :  { %3251 = vmatprep.mubr.bf16.mxu0 %v10313_v54  ;;  %v738_v33 = vcombine.high %v731_v28, %v731_v28  ;;  %745 = vst [vmem:[#allocation2 + $0x10] sm:$0xf] %v731_v28  ;;  %v620_v16 = vrot.slane %v619_v4, 1  ;;  %v701_v37 = vsel %vm677_vm3, %v700_v15, %v666_v19  ;;  %v537_v12 = vmax.f32 %v10197_v17, %v536_v62  ;;  %v1113_v17 = vld [vmem:[%s13367_s4 + $0x920] sm:$0xff] }
 0x19a   :  { %3252 = vmatmul.mubr.bf16.vlgmr.msra.gmra.mxu0 %v10318_v26  ;;  %v579_v10 = vmax.f32 %v577_v18, %v578_v1  ;;  %v626_v30 = vmax.f32 %v624_v34, %v625_v45  ;;  %v8690_v46 = vcombine.low %v10147_v9, %v10152_v43  ;;  %v8683_v61 = vcombine.high %v1117_v27, %v1121_v44 }
 0x19b   :  { %746 = vst [vmem:[#allocation2 + $0x18] sm:$0xf] %v738_v33  ;;  %3302 = vmatpush1.bf16.msra.mxu0 %v8698_v8  ;;  %v584_v21 = vmax.f32 %v10271_v59, %v583_v47  ;;  %v629_v36 = vsel %vm118_vm1, %v10235_v58, -inf  ;;  %v13379_v48 = vcombine.high %v10147_v9, %v10152_v43  ;;  %v488_v3 = vmax.f32 %v10220_v63, %v487_v51  ;;  %v1109_v8 = vld [vmem:[%s13367_s4 + $0x900] sm:$0xff] }
 0x19c   :  { %v627_v40 = vrot.slane %v626_v30, 1  ;;  %v672_v52 = vcombine.low %v572_v24, %v579_v10  ;;  %v630_v7 = vrot.slane %v629_v36, 4  ;;  %v621_v58 = vmax.f32 %v619_v4, %v620_v16 }
 0x19d   :  { %3303 = vmatprep.subr.bf16.mxu0 %v13379_v48  ;;  %v702_v59 = vsel %vm679_vm4, %v700_v15, %v701_v37  ;;  %v585_v53 = vrot.slane %v584_v21, 1  ;;  %v709_v29 = vrot.slane %v537_v12, 7  ;;  %v8682_v32 = vcombine.low %v1117_v27, %v1121_v44  ;;  %v1093_v27 = vld [vmem:[%s13367_s4 + $0x880] sm:$0xff] }
 0x19e   :  { %v628_v0 = vmax.f32 %v626_v30, %v627_v40  ;;  %v703_v9 = vrot.slane %v672_v52, 6  ;;  %v631_v43 = vmax.f32 %v629_v36, %v630_v7  ;;  %v8675_v51 = vcombine.high %v1109_v8, %v1113_v17  ;;  %v1097_v44 = vld [vmem:[%s13367_s4 + $0x8a0] sm:$0xff]  ;;  %v729_v30 = vld [vmem:[%s13370_s1 + $0x18] sm:$0xf] }
 0x19f   :  { %3304 = vmatpush1.bf16.msra.mxu0 %v8690_v46  ;;  %v586_v63 = vmax.f32 %v584_v21, %v585_v53  ;;  %v710_v38 = vsel %vm677_vm3, %v709_v29, %v488_v3  ;;  %v8445_v55 = vcombine.high %v10357_v6, %v10362_v11  ;;  %v8674_v19 = vcombine.low %v1109_v8, %v1113_v17  ;;  %v1089_v12 = vld [vmem:[%s13367_s4 + $0x860] sm:$0xff]  ;;  %v870_v17 = vld [vmem:[%s13367_s4 + $0x188] sm:$0xff] }
 0x1a0   :  { %v675_v57 = vcombine.low %v621_v58, %v628_v0  ;;  %v704_v50 = vsel %vm682_vm5, %v703_v9, %v702_v59  ;;  %3305 = vmatprep.subr.bf16.mxu0 %v8683_v61  ;;  %v632_v25 = vrot.slane %v631_v43, 2  ;;  %v809_v20 = vld [vmem:[#allocation2 + $0x10] sm:$0x3f]  ;;  %v711_v5 = vsel %vm679_vm4, %v709_v29, %v710_v38  ;;  %v1077_v40 = vld [vmem:[%s13367_s4 + $0x800] sm:$0xff]  ;;  %v874_v58 = vld [vmem:[%s13367_s4 + $0x1a8] sm:$0xff] }
 0x1a1   :  { %v712_v2 = vrot.slane %v586_v63, 6  ;;  %v705_v22 = vsel %vm684_vm6, %v703_v9, %v704_v50  ;;  %v10380_v31 = vpack.c.bf16 %v809_v20, %v809_v20  ;;  %v8667_v4 = vcombine.high %v1101_v60, %v1105_v42  ;;  %v1081_v52 = vld [vmem:[%s13367_s4 + $0x820] sm:$0xff]  ;;  %v862_v50 = vld [vmem:[%s13367_s4 + $0x148] sm:$0xff] }
 0x1a2   :  { %v810_v35 = vld [vmem:[#allocation2 + $0x18] sm:$0x3f]  ;;  %v706_v41 = vrot.slane %v675_v57, 5  ;;  %v633_v49 = vmax.f32 %v631_v43, %v632_v25  ;;  %v13380_v62 = vcombine.low %v10119_v13, %v10124_v14  ;;  %v9562_v33 = vmov 0   ;;  %v1085_v14 = vld [vmem:[%s13367_s4 + $0x840] sm:$0xff] }
 0x1a3   :  { %v10371_v39 = vpack.c.bf16 %v810_v35, %v810_v35  ;;  %3306 = vmatpush1.bf16.msra.mxu0 %v8682_v32  ;;  %v713_v15 = vsel %vm682_vm5, %v712_v2, %v711_v5  ;;  %v8666_v47 = vcombine.low %v1101_v60, %v1105_v42  ;;  %v8659_v37 = vcombine.high %v1093_v27, %v1097_v44  ;;  %v1197_v59 = vld [vmem:[%s13367_s4 + $0xbc0] sm:$0xff] }
 0x1a4   :  { %v707_v18 = vsel %vm687_vm7, %v706_v41, %v705_v22  ;;  %v634_v34 = vrot.slane %v633_v49, 1  ;;  %3307 = vmatprep.subr.bf16.mxu0 %v8675_v51  ;;  %v714_v10 = vsel %vm684_vm6, %v712_v2, %v713_v15  ;;  %v8658_v21 = vcombine.low %v1093_v27, %v1097_v44  ;;  %v1201_v53 = vld [vmem:[%s13367_s4 + $0xbe0] sm:$0xff]  ;;  %v858_v2 = vld [vmem:[%s13367_s4 + $0x128] sm:$0xff] }
 0x1a5   :  { %3292 = vmatprep.mubr.bf16.mxu1 %v10371_v39  ;;  %v708_v28 = vsel %vm689_vm8, %v706_v41, %v707_v18  ;;  %v8651_v36 = vcombine.high %v1085_v14, %v1089_v12  ;;  %v8650_v48 = vcombine.low %v1085_v14, %v1089_v12  ;;  %v8643_v7 = vcombine.high %v1077_v40, %v1081_v52  ;;  %v1189_v51 = vld [vmem:[%s13367_s4 + $0xb80] sm:$0xff]  ;;  %v846_v18 = vld [vmem:[%s13367_s4 + $0xc8] sm:$0xff] }
 0x1a6   :  { %3293 = vmatmul.mubr.bf16.vlgmr.msra.gmra.mxu1 %v10380_v31  ;;  %724 = vst [vmem:[%s13371_s10 + $0x10] sm:$0xff] %v708_v28  ;;  %v732_v1 = vmul.f32 %v728_v23, %v708_v28  ;;  %v635_v45 = vmax.f32 %v633_v49, %v634_v34  ;;  %v8642_v0 = vcombine.low %v1077_v40, %v1081_v52  ;;  %v1193_v57 = vld [vmem:[%s13367_s4 + $0xba0] sm:$0xff]  ;;  %v854_v49 = vld [vmem:[%s13367_s4 + $0x108] sm:$0xff] }
 0x1a7   :  { %3357 = vmatpush1.bf16.msra.mxu1 %v13380_v62  ;;  %3374 = vmatprep.mubr.bf16.mxu1 %v9562_v33  ;;  %v8444_v9 = vcombine.low %v10357_v6, %v10362_v11  ;;  %v8437_v32 = vcombine.high %v870_v17, %v874_v58  ;;  %v8763_v63 = vcombine.high %v1197_v59, %v1201_v53  ;;  %v866_v6 = vld [vmem:[%s13367_s4 + $0x168] sm:$0xff]  ;;  %v1181_v35 = vld [vmem:[%s13367_s4 + $0xb40] sm:$0xff] }
 0x1a8   :  { %v739_v24 = vcombine.high %v732_v1, %v732_v1  ;;  %747 = vst [vmem:[#allocation2 + $0x20] sm:$0xf] %v732_v1  ;;  %3383 = vmatprep.subr.bf16.mxu1 %v8445_v55  ;;  %v715_v16 = vrot.slane %v635_v45, 5  ;;  %3308 = vmatpush1.bf16.msra.mxu0 %v8674_v19  ;;  %v8762_v11 = vcombine.low %v1197_v59, %v1201_v53  ;;  %v1185_v41 = vld [vmem:[%s13367_s4 + $0xb60] sm:$0xff]  ;;  %v850_v34 = vld [vmem:[%s13367_s4 + $0xe8] sm:$0xff] }
 0x1a9   :  { %3309 = vmatprep.subr.bf16.mxu0 %v8667_v4  ;;  %v8436_v25 = vcombine.low %v870_v17, %v874_v58  ;;  %v8755_v38 = vcombine.high %v1189_v51, %v1193_v57  ;;  %v8429_v20 = vcombine.high %v862_v50, %v866_v6  ;;  %v8754_v60 = vcombine.low %v1189_v51, %v1193_v57  ;;  %v1173_v55 = vld [vmem:[%s13367_s4 + $0xb00] sm:$0xff]  ;;  %v838_v27 = vld [vmem:[%s13367_s4 + $0x88] sm:$0xff] }
 0x1aa   :  { %748 = vst [vmem:[#allocation2 + $0x28] sm:$0xf] %v739_v24  ;;  %v716_v13 = vsel %vm687_vm7, %v715_v16, %v714_v10  ;;  %v8428_v42 = vcombine.low %v862_v50, %v866_v6  ;;  %v8747_v22 = vcombine.high %v1181_v35, %v1185_v41  ;;  %v8421_v23 = vcombine.high %v854_v49, %v858_v2  ;;  %v1177_v5 = vld [vmem:[%s13367_s4 + $0xb20] sm:$0xff]  ;;  %v842_v44 = vld [vmem:[%s13367_s4 + $0xa8] sm:$0xff] }
 0x1ab   :  { %v717_v46 = vsel %vm689_vm8, %v715_v16, %v716_v13  ;;  %v8746_v19 = vcombine.low %v1181_v35, %v1185_v41  ;;  %v8420_v28 = vcombine.low %v854_v49, %v858_v2  ;;  %v8739_v4 = vcombine.high %v1173_v55, %v1177_v5  ;;  %v1165_v45 = vld [vmem:[%s13367_s4 + $0xac0] sm:$0xff]  ;;  %v834_v13 = vld [vmem:[%s13367_s4 + $0x68] sm:$0xff] }
 0x1ac   :  { %725 = vst.msk [vmem:[%s13371_s10 + $0x18] sm:$0xf] %vm118_vm1, %v717_v46  ;;  %v733_v61 = vmul.f32 %v729_v30, %v717_v46  ;;  %3310 = vmatpush1.bf16.msra.mxu0 %v8666_v47  ;;  %v8413_v1 = vcombine.high %v846_v18, %v850_v34  ;;  %v1169_v15 = vld [vmem:[%s13367_s4 + $0xae0] sm:$0xff]  ;;  %v8738_v62 = vcombine.low %v1173_v55, %v1177_v5  ;;  %v822_v40 = vld [vmem:[%s13367_s4 + $0x8] sm:$0xff] }
 0x1ad   :  { %3311 = vmatprep.subr.bf16.mxu0 %v8659_v37  ;;  %v8412_v24 = vcombine.low %v846_v18, %v850_v34  ;;  %v8731_v16 = vcombine.high %v1165_v45, %v1169_v15  ;;  %v8405_v47 = vcombine.high %v838_v27, %v842_v44  ;;  %v1157_v10 = vld [vmem:[%s13367_s4 + $0xa80] sm:$0xff]  ;;  %v830_v37 = vld [vmem:[%s13367_s4 + $0x48] sm:$0xff]  ;;  %v8730_v14 = vcombine.low %v1165_v45, %v1169_v15 }
 0x1ae   :  { %749 = vst.msk [vmem:[#allocation2 + $0x30] sm:$0xf] %vm118_vm1, %v733_v61  ;;  %v1161_v30 = vld [vmem:[%s13367_s4 + $0xaa0] sm:$0xff]  ;;  %v8404_v12 = vcombine.low %v838_v27, %v842_v44  ;;  %v8397_v61 = vcombine.high %v830_v37, %v834_v13  ;;  %v826_v52 = vld [vmem:[%s13367_s4 + $0x28] sm:$0xff] }
 0x1af   :  { %v8723_v46 = vcombine.high %v1157_v10, %v1161_v30  ;;  %v8389_v17 = vcombine.high %v822_v40, %v826_v52  ;;  %v1141_v58 = vld [vmem:[%s13367_s4 + $0xa00] sm:$0xff]  ;;  %v942_v53 = vld [vmem:[%s13367_s4 + $0x3c8] sm:$0xff] }
 0x1b0   :  { %3312 = vmatpush1.bf16.msra.mxu0 %v8658_v21  ;;  %v1149_v21 = vld [vmem:[%s13367_s4 + $0xa40] sm:$0xff]  ;;  %v1006_v51 = vld [vmem:[%s13367_s4 + $0x5c8] sm:$0xff] }
 0x1b1   :  { %v812_v3 = vld [vmem:[#allocation2 + $0x28] sm:$0x3f]  ;;  %3313 = vmatprep.subr.bf16.mxu0 %v8651_v36  ;;  %v1153_v36 = vld [vmem:[%s13367_s4 + $0xa60] sm:$0xff] }
 0x1b2   :  { %v10423_v8 = vpack.c.bf16 %v812_v3, %v812_v3  ;;  %v8396_v3 = vcombine.low %v830_v37, %v834_v13  ;;  %v1145_v59 = vld [vmem:[%s13367_s4 + $0xa20] sm:$0xff]  ;;  %v1010_v57 = vld [vmem:[%s13367_s4 + $0x5e8] sm:$0xff] }
 0x1b3   :  { %v934_v50 = vld [vmem:[%s13367_s4 + $0x388] sm:$0xff]  ;;  %v811_v35 = vld [vmem:[#allocation2 + $0x20] sm:$0x3f] }
 0x1b4   :  { %3333 = vmatprep.mubr.bf16.mxu0 %v10423_v8  ;;  %3314 = vmatpush1.bf16.msra.mxu0 %v8650_v48  ;;  %v8722_v48 = vcombine.low %v1157_v10, %v1161_v30  ;;  %v938_v6 = vld [vmem:[%s13367_s4 + $0x3a8] sm:$0xff] }
 0x1b5   :  { %v813_v43 = vld [vmem:[#allocation2 + $0x30] sm:$0x3f]  ;;  %3315 = vmatprep.subr.bf16.mxu0 %v8643_v7  ;;  %v8715_v7 = vcombine.high %v1149_v21, %v1153_v36  ;;  %v998_v41 = vld [vmem:[%s13367_s4 + $0x588] sm:$0xff] }
 0x1b6   :  { %v10440_v29 = vpack.c.bf16 %v813_v43, %v813_v43  ;;  %v8388_v43 = vcombine.low %v822_v40, %v826_v52  ;;  %v1002_v49 = vld [vmem:[%s13367_s4 + $0x5a8] sm:$0xff] }
 0x1b7   :  { %v926_v2 = vld [vmem:[%s13367_s4 + $0x348] sm:$0xff]  ;;  %v8565_v55 = vcombine.high %v998_v41, %v1002_v49 }
 0x1b8   :  { %8778 = vmatmul.mubr.msk.bf16.vlgmr.msra.gmra.mxu1 %vm3215_vm9, %v10440_v29  ;;  %3316 = vmatpush1.bf16.msra.mxu0 %v8642_v0  ;;  %v946_v0 = vld [vmem:[%s13367_s4 + $0x3e8] sm:$0xff] }
 0x1b9   :  { %3384 = vmatpush1.bf16.msra.mxu1 %v8444_v9  ;;  %3415 = vmatprep.mubr.bf16.mxu1 %v10313_v54  ;;  %v8714_v9 = vcombine.low %v1149_v21, %v1153_v36  ;;  %v990_v18 = vld [vmem:[%s13367_s4 + $0x548] sm:$0xff] }
 0x1ba   :  { %3385 = vmatprep.subr.bf16.mxu1 %v8437_v32  ;;  %3317 = vmatprep.subr.bf16.mxu0 %v8763_v63  ;;  %v8707_v32 = vcombine.high %v1141_v58, %v1145_v59  ;;  %v8509_v63 = vcombine.high %v942_v53, %v946_v0  ;;  %v994_v34 = vld [vmem:[%s13367_s4 + $0x568] sm:$0xff] }
 0x1bb   :  { %v8557_v45 = vcombine.high %v990_v18, %v994_v34  ;;  %v982_v27 = vld [vmem:[%s13367_s4 + $0x508] sm:$0xff] }
 0x1bc   :  { %3318 = vmatpush2.bf16.msra.mxu0 %v8762_v11  ;;  %v8706_v11 = vcombine.low %v1141_v58, %v1145_v59  ;;  %v986_v44 = vld [vmem:[%s13367_s4 + $0x528] sm:$0xff] }
 0x1bd   :  { %3386 = vmatpush1.bf16.msra.mxu1 %v8436_v25  ;;  %3319 = vmatprep.subr.bf16.mxu0 %v8755_v38  ;;  %v8508_v25 = vcombine.low %v942_v53, %v946_v0  ;;  %v8573_v38 = vcombine.high %v1006_v51, %v1010_v57  ;;  %v8549_v10 = vcombine.high %v982_v27, %v986_v44  ;;  %v974_v37 = vld [vmem:[%s13367_s4 + $0x4c8] sm:$0xff] }
 0x1be   :  { %3387 = vmatprep.subr.bf16.mxu1 %v8429_v20  ;;  %v8501_v20 = vcombine.high %v934_v50, %v938_v6  ;;  %v978_v13 = vld [vmem:[%s13367_s4 + $0x4e8] sm:$0xff] }
 0x1bf   :  { %v8541_v21 = vcombine.high %v974_v37, %v978_v13  ;;  %v966_v40 = vld [vmem:[%s13367_s4 + $0x488] sm:$0xff] }
 0x1c0   :  { %3320 = vmatpush2.bf16.msra.mxu0 %v8754_v60  ;;  %v930_v60 = vld [vmem:[%s13367_s4 + $0x368] sm:$0xff] }
 0x1c1   :  { %3388 = vmatpush1.bf16.msra.mxu1 %v8428_v42  ;;  %3321 = vmatprep.subr.bf16.mxu0 %v8747_v22  ;;  %v8572_v42 = vcombine.low %v1006_v51, %v1010_v57  ;;  %v8500_v22 = vcombine.low %v934_v50, %v938_v6  ;;  %v8493_v5 = vcombine.high %v926_v2, %v930_v60  ;;  %v970_v52 = vld [vmem:[%s13367_s4 + $0x4a8] sm:$0xff] }
 0x1c2   :  { %3389 = vmatprep.subr.bf16.mxu1 %v8421_v23  ;;  %v10553_v23 = vpack.c.bf16 %v811_v35, %v811_v35  ;;  %v8533_v58 = vcombine.high %v966_v40, %v970_v52  ;;  %v958_v53 = vld [vmem:[%s13367_s4 + $0x448] sm:$0xff] }
 0x1c3   :  { %v962_v0 = vld [vmem:[%s13367_s4 + $0x468] sm:$0xff] }
 0x1c4   :  { %3322 = vmatpush2.bf16.msra.mxu0 %v8746_v19  ;;  %v918_v19 = vld [vmem:[%s13367_s4 + $0x308] sm:$0xff]  ;;  %v8525_v51 = vcombine.high %v958_v53, %v962_v0 }
 0x1c5   :  { %3390 = vmatpush1.bf16.msra.mxu1 %v8420_v28  ;;  %3323 = vmatprep.subr.bf16.mxu0 %v8739_v4  ;;  %v922_v28 = vld [vmem:[%s13367_s4 + $0x328] sm:$0xff]  ;;  %v8564_v4 = vcombine.low %v998_v41, %v1002_v49 }
 0x1c6   :  { %3391 = vmatprep.subr.bf16.mxu1 %v8413_v1  ;;  %v8492_v1 = vcombine.low %v926_v2, %v930_v60  ;;  %v8485_v15 = vcombine.high %v918_v19, %v922_v28  ;;  %v950_v50 = vld [vmem:[%s13367_s4 + $0x408] sm:$0xff] }
 0x1c7   :  { %v954_v6 = vld [vmem:[%s13367_s4 + $0x428] sm:$0xff] }
 0x1c8   :  { %3324 = vmatpush2.bf16.msra.mxu0 %v8738_v62  ;;  %v910_v62 = vld [vmem:[%s13367_s4 + $0x2c8] sm:$0xff]  ;;  %v8517_v35 = vcombine.high %v950_v50, %v954_v6 }
 0x1c9   :  { %3392 = vmatpush1.bf16.msra.mxu1 %v8412_v24  ;;  %3325 = vmatprep.subr.bf16.mxu0 %v8731_v16  ;;  %v914_v24 = vld [vmem:[%s13367_s4 + $0x2e8] sm:$0xff]  ;;  %v8556_v16 = vcombine.low %v990_v18, %v994_v34 }
 0x1ca   :  { %3393 = vmatprep.subr.bf16.mxu1 %v8405_v47  ;;  %v8484_v47 = vcombine.low %v918_v19, %v922_v28  ;;  %v8477_v30 = vcombine.high %v910_v62, %v914_v24  ;;  %v1126_v49 = vld [vmem:[%s13367_s4 + $0x988] sm:$0xff] }
 0x1cb   :  { %v1130_v2 = vld [vmem:[%s13367_s4 + $0x9a8] sm:$0xff] }
 0x1cc   :  { %3326 = vmatpush2.bf16.msra.mxu0 %v8730_v14  ;;  %v902_v14 = vld [vmem:[%s13367_s4 + $0x288] sm:$0xff] }
 0x1cd   :  { %3394 = vmatpush1.bf16.msra.mxu1 %v8404_v12  ;;  %3327 = vmatprep.subr.bf16.mxu0 %v8723_v46  ;;  %v906_v12 = vld [vmem:[%s13367_s4 + $0x2a8] sm:$0xff]  ;;  %v8548_v46 = vcombine.low %v982_v27, %v986_v44 }
 0x1ce   :  { %3395 = vmatprep.subr.bf16.mxu1 %v8397_v61  ;;  %v8476_v61 = vcombine.low %v910_v62, %v914_v24  ;;  %v8469_v36 = vcombine.high %v902_v14, %v906_v12  ;;  %v1070_v60 = vld [vmem:[%s13367_s4 + $0x7c8] sm:$0xff] }
 0x1cf   :  { %v1062_v34 = vld [vmem:[%s13367_s4 + $0x788] sm:$0xff] }
 0x1d0   :  { %3328 = vmatpush2.bf16.msra.mxu0 %v8722_v48  ;;  %v894_v48 = vld [vmem:[%s13367_s4 + $0x248] sm:$0xff] }
 0x1d1   :  { %3396 = vmatpush1.bf16.msra.mxu1 %v8396_v3  ;;  %3329 = vmatprep.subr.bf16.mxu0 %v8715_v7  ;;  %v898_v3 = vld [vmem:[%s13367_s4 + $0x268] sm:$0xff]  ;;  %v8540_v7 = vcombine.low %v974_v37, %v978_v13 }
 0x1d2   :  { %3397 = vmatprep.subr.bf16.mxu1 %v8389_v17  ;;  %v8468_v17 = vcombine.low %v902_v14, %v906_v12  ;;  %v8461_v59 = vcombine.high %v894_v48, %v898_v3  ;;  %v1066_v19 = vld [vmem:[%s13367_s4 + $0x7a8] sm:$0xff] }
 0x1d3   :  { %v1118_v28 = vld [vmem:[%s13367_s4 + $0x948] sm:$0xff] }
 0x1d4   :  { %3330 = vmatpush2.bf16.msra.mxu0 %v8714_v9  ;;  %v886_v9 = vld [vmem:[%s13367_s4 + $0x208] sm:$0xff] }
 0x1d5   :  { %3398 = vmatpush1.bf16.msra.mxu1 %v8388_v43  ;;  %3331 = vmatprep.subr.bf16.mxu0 %v8707_v32  ;;  %v890_v43 = vld [vmem:[%s13367_s4 + $0x228] sm:$0xff]  ;;  %v8532_v32 = vcombine.low %v966_v40, %v970_v52 }
 0x1d6   :  { %3399 = vmatprep.subr.bf16.mxu1 %v8509_v63  ;;  %v8460_v63 = vcombine.low %v894_v48, %v898_v3  ;;  %v8453_v57 = vcombine.high %v886_v9, %v890_v43  ;;  %v1054_v44 = vld [vmem:[%s13367_s4 + $0x748] sm:$0xff] }
 0x1d7   :  { %v1058_v62 = vld [vmem:[%s13367_s4 + $0x768] sm:$0xff] }
 0x1d8   :  { %3332 = vmatpush2.bf16.msra.mxu0 %v8706_v11  ;;  %v1134_v11 = vld [vmem:[%s13367_s4 + $0x9c8] sm:$0xff] }
 0x1d9   :  { %3400 = vmatpush2.bf16.msra.mxu1 %v8508_v25  ;;  %3424 = vmatprep.subr.bf16.mxu0 %v8573_v38  ;;  %v1138_v25 = vld [vmem:[%s13367_s4 + $0x9e8] sm:$0xff]  ;;  %v8524_v38 = vcombine.low %v958_v53, %v962_v0 }
 0x1da   :  { %3401 = vmatprep.subr.bf16.mxu1 %v8501_v20  ;;  %v8452_v20 = vcombine.low %v886_v9, %v890_v43  ;;  %v8701_v41 = vcombine.high %v1134_v11, %v1138_v25  ;;  %v1110_v24 = vld [vmem:[%s13367_s4 + $0x908] sm:$0xff] }
 0x1db   :  { %3334 = vmatmul.mubr.bf16.vlgmr.msra.gmra.mxu0 %v10553_v23  ;;  %v1046_v13 = vld [vmem:[%s13367_s4 + $0x708] sm:$0xff] }
 0x1dc   :  { %3425 = vmatpush1.bf16.msra.mxu0 %v8572_v42  ;;  %3456 = vmatprep.mubr.bf16.mxu0 %v10371_v39  ;;  %v1074_v42 = vld [vmem:[%s13367_s4 + $0x7e8] sm:$0xff] }
 0x1dd   :  { %3402 = vmatpush2.bf16.msra.mxu1 %v8500_v22  ;;  %3426 = vmatprep.subr.bf16.mxu0 %v8565_v55  ;;  %v8516_v22 = vcombine.low %v950_v50, %v954_v6  ;;  %v8700_v55 = vcombine.low %v1134_v11, %v1138_v25  ;;  %v8637_v18 = vcombine.high %v1070_v60, %v1074_v42  ;;  %v1050_v14 = vld [vmem:[%s13367_s4 + $0x728] sm:$0xff] }
 0x1de   :  { %3403 = vmatprep.subr.bf16.mxu1 %v8493_v5  ;;  %v8693_v5 = vcombine.high %v1126_v49, %v1130_v2  ;;  %v1102_v12 = vld [vmem:[%s13367_s4 + $0x8c8] sm:$0xff] }
 0x1df   :  { %v1038_v52 = vld [vmem:[%s13367_s4 + $0x6c8] sm:$0xff] }
 0x1e0   :  { %3427 = vmatpush1.bf16.msra.mxu0 %v8564_v4  ;;  %v1122_v4 = vld [vmem:[%s13367_s4 + $0x968] sm:$0xff] }
 0x1e1   :  { %3404 = vmatpush2.bf16.msra.mxu1 %v8492_v1  ;;  %3428 = vmatprep.subr.bf16.mxu0 %v8557_v45  ;;  %v8636_v1 = vcombine.low %v1070_v60, %v1074_v42  ;;  %v8692_v45 = vcombine.low %v1126_v49, %v1130_v2  ;;  %v8685_v27 = vcombine.high %v1118_v28, %v1122_v4  ;;  %v1042_v48 = vld [vmem:[%s13367_s4 + $0x6e8] sm:$0xff] }
 0x1e2   :  { %3405 = vmatprep.subr.bf16.mxu1 %v8485_v15  ;;  %v8629_v15 = vcombine.high %v1062_v34, %v1066_v19  ;;  %v1094_v3 = vld [vmem:[%s13367_s4 + $0x888] sm:$0xff] }
 0x1e3   :  { %v1030_v0 = vld [vmem:[%s13367_s4 + $0x688] sm:$0xff] }
 0x1e4   :  { %3429 = vmatpush1.bf16.msra.mxu0 %v8556_v16  ;;  %v1114_v16 = vld [vmem:[%s13367_s4 + $0x928] sm:$0xff] }
 0x1e5   :  { %3406 = vmatpush2.bf16.msra.mxu1 %v8484_v47  ;;  %3430 = vmatprep.subr.bf16.mxu0 %v8549_v10  ;;  %v8628_v47 = vcombine.low %v1062_v34, %v1066_v19  ;;  %v8684_v10 = vcombine.low %v1118_v28, %v1122_v4  ;;  %v8677_v37 = vcombine.high %v1110_v24, %v1114_v16  ;;  %v1034_v9 = vld [vmem:[%s13367_s4 + $0x6a8] sm:$0xff] }
 0x1e6   :  { %3407 = vmatprep.subr.bf16.mxu1 %v8477_v30  ;;  %v8621_v30 = vcombine.high %v1054_v44, %v1058_v62  ;;  %v1086_v43 = vld [vmem:[%s13367_s4 + $0x848] sm:$0xff] }
 0x1e7   :  { %v1022_v6 = vld [vmem:[%s13367_s4 + $0x648] sm:$0xff] }
 0x1e8   :  { %3431 = vmatpush1.bf16.msra.mxu0 %v8548_v46  ;;  %v1106_v46 = vld [vmem:[%s13367_s4 + $0x8e8] sm:$0xff] }
 0x1e9   :  { %3408 = vmatpush2.bf16.msra.mxu1 %v8476_v61  ;;  %3432 = vmatprep.subr.bf16.mxu0 %v8541_v21  ;;  %v8620_v61 = vcombine.low %v1054_v44, %v1058_v62  ;;  %v8676_v21 = vcombine.low %v1110_v24, %v1114_v16  ;;  %v8669_v40 = vcombine.high %v1102_v12, %v1106_v46  ;;  %v1026_v11 = vld [vmem:[%s13367_s4 + $0x668] sm:$0xff]  ;;  %v879_v62 = vld [vmem:[%s13367_s4 + $0x1d0] sm:$0xff] }
 0x1ea   :  { %3409 = vmatprep.subr.bf16.mxu1 %v8469_v36  ;;  %v8613_v36 = vcombine.high %v1046_v13, %v1050_v14  ;;  %v1078_v25 = vld [vmem:[%s13367_s4 + $0x808] sm:$0xff]  ;;  %v883_v24 = vld [vmem:[%s13367_s4 + $0x1f0] sm:$0xff] }
 0x1eb   :  { %v1014_v2 = vld [vmem:[%s13367_s4 + $0x608] sm:$0xff] }
 0x1ec   :  { %3433 = vmatpush1.bf16.msra.mxu0 %v8540_v7  ;;  %v1098_v7 = vld [vmem:[%s13367_s4 + $0x8a8] sm:$0xff] }
 0x1ed   :  { %3410 = vmatpush2.bf16.msra.mxu1 %v8468_v17  ;;  %3434 = vmatprep.subr.bf16.mxu0 %v8533_v58  ;;  %v8612_v17 = vcombine.low %v1046_v13, %v1050_v14  ;;  %v8668_v58 = vcombine.low %v1102_v12, %v1106_v46  ;;  %v8661_v53 = vcombine.high %v1094_v3, %v1098_v7  ;;  %v1018_v60 = vld [vmem:[%s13367_s4 + $0x628] sm:$0xff] }
 0x1ee   :  { %3411 = vmatprep.subr.bf16.mxu1 %v8461_v59  ;;  %v8605_v59 = vcombine.high %v1038_v52, %v1042_v48  ;;  %v1198_v42 = vld [vmem:[%s13367_s4 + $0xbc8] sm:$0xff] }
 0x1ef   :  { %v1206_v19 = vld [vmem:[%s13367_s4 + $0xc08] sm:$0xff] }
 0x1f0   :  { %3435 = vmatpush1.bf16.msra.mxu0 %v8532_v32  ;;  %v1090_v32 = vld [vmem:[%s13367_s4 + $0x868] sm:$0xff] }
 0x1f1   :  { %3412 = vmatpush2.bf16.msra.mxu1 %v8460_v63  ;;  %3436 = vmatprep.subr.bf16.mxu0 %v8525_v51  ;;  %v8604_v63 = vcombine.low %v1038_v52, %v1042_v48  ;;  %v8660_v51 = vcombine.low %v1094_v3, %v1098_v7  ;;  %v8653_v50 = vcombine.high %v1086_v43, %v1090_v32  ;;  %v1210_v28 = vld [vmem:[%s13367_s4 + $0xc28] sm:$0xff] }
 0x1f2   :  { %3413 = vmatprep.subr.bf16.mxu1 %v8453_v57  ;;  %v8597_v57 = vcombine.high %v1030_v0, %v1034_v9  ;;  %v1190_v4 = vld [vmem:[%s13367_s4 + $0xb88] sm:$0xff]  ;;  %v8446_v48 = vcombine.low %v879_v62, %v883_v24 }
 0x1f3   :  { %v1182_v16 = vld [vmem:[%s13367_s4 + $0xb48] sm:$0xff] }
 0x1f4   :  { %3437 = vmatpush1.bf16.msra.mxu0 %v8524_v38  ;;  %v1082_v38 = vld [vmem:[%s13367_s4 + $0x828] sm:$0xff] }
 0x1f5   :  { %3414 = vmatpush2.bf16.msra.mxu1 %v8452_v20  ;;  %3438 = vmatprep.subr.bf16.mxu0 %v8517_v35  ;;  %v8596_v20 = vcombine.low %v1030_v0, %v1034_v9  ;;  %v8652_v35 = vcombine.low %v1086_v43, %v1090_v32  ;;  %v8645_v49 = vcombine.high %v1078_v25, %v1082_v38  ;;  %v1174_v14 = vld [vmem:[%s13367_s4 + $0xb08] sm:$0xff] }
 0x1f6   :  { %3465 = vmatprep.subr.bf16.mxu1 %v8701_v41  ;;  %v8589_v41 = vcombine.high %v1022_v6, %v1026_v11  ;;  %v1178_v12 = vld [vmem:[%s13367_s4 + $0xb28] sm:$0xff] }
 0x1f7   :  { %v1170_v52 = vld [vmem:[%s13367_s4 + $0xae8] sm:$0xff]  ;;  %v8740_v3 = vcombine.low %v1174_v14, %v1178_v12 }
 0x1f8   :  { %3416 = vmatmul.mubr.bf16.vlgmr.msra.gmra.mxu1 %v10318_v26  ;;  %3439 = vmatpush1.bf16.msra.mxu0 %v8516_v22  ;;  %v1202_v22 = vld [vmem:[%s13367_s4 + $0xbe8] sm:$0xff] }
 0x1f9   :  { %3466 = vmatpush1.bf16.msra.mxu1 %v8700_v55  ;;  %3497 = vmatprep.mubr.bf16.mxu1 %v10423_v8  ;;  %v8588_v55 = vcombine.low %v1022_v6, %v1026_v11  ;;  %v8765_v34 = vcombine.high %v1198_v42, %v1202_v22  ;;  %v1162_v0 = vld [vmem:[%s13367_s4 + $0xaa8] sm:$0xff] }
 0x1fa   :  { %3467 = vmatprep.subr.bf16.mxu1 %v8693_v5  ;;  %3440 = vmatprep.subr.bf16.mxu0 %v8637_v18  ;;  %v8644_v5 = vcombine.low %v1078_v25, %v1082_v38  ;;  %v8581_v18 = vcombine.high %v1014_v2, %v1018_v60  ;;  %v1154_v6 = vld [vmem:[%s13367_s4 + $0xa68] sm:$0xff] }
 0x1fc   :  { %3441 = vmatpush2.bf16.msra.mxu0 %v8636_v1  ;;  %v1194_v1 = vld [vmem:[%s13367_s4 + $0xba8] sm:$0xff] }
 0x1fd   :  { %3468 = vmatpush1.bf16.msra.mxu1 %v8692_v45  ;;  %3442 = vmatprep.subr.bf16.mxu0 %v8629_v15  ;;  %v8580_v45 = vcombine.low %v1014_v2, %v1018_v60  ;;  %v8764_v15 = vcombine.low %v1198_v42, %v1202_v22  ;;  %v8757_v44 = vcombine.high %v1190_v4, %v1194_v1  ;;  %v1146_v2 = vld [vmem:[%s13367_s4 + $0xa28] sm:$0xff] }
 0x1fe   :  { %3469 = vmatprep.subr.bf16.mxu1 %v8685_v27  ;;  %v8773_v27 = vcombine.high %v1206_v19, %v1210_v28 }
 0x200   :  { %3443 = vmatpush2.bf16.msra.mxu0 %v8628_v47  ;;  %v1186_v47 = vld [vmem:[%s13367_s4 + $0xb68] sm:$0xff] }
 0x201   :  { %3470 = vmatpush1.bf16.msra.mxu1 %v8684_v10  ;;  %3444 = vmatprep.subr.bf16.mxu0 %v8621_v30  ;;  %v8772_v10 = vcombine.low %v1206_v19, %v1210_v28  ;;  %v8756_v30 = vcombine.low %v1190_v4, %v1194_v1  ;;  %v8749_v13 = vcombine.high %v1182_v16, %v1186_v47  ;;  %v1011_v19 = vld [vmem:[%s13367_s4 + $0x5f0] sm:$0xff] }
 0x202   :  { %3471 = vmatprep.subr.bf16.mxu1 %v8677_v37  ;;  %v8447_v37 = vcombine.high %v879_v62, %v883_v24  ;;  %v8748_v46 = vcombine.low %v1182_v16, %v1186_v47  ;;  %v835_v62 = vld [vmem:[%s13367_s4 + $0x70] sm:$0xff] }
 0x204   :  { %3445 = vmatpush2.bf16.msra.mxu0 %v8620_v61  ;;  %v8741_v61 = vcombine.high %v1174_v14, %v1178_v12  ;;  %v995_v14 = vld [vmem:[%s13367_s4 + $0x570] sm:$0xff] }
 0x205   :  { %3472 = vmatpush1.bf16.msra.mxu1 %v8676_v21  ;;  %3446 = vmatprep.subr.bf16.mxu0 %v8613_v36  ;;  %v871_v21 = vld [vmem:[%s13367_s4 + $0x190] sm:$0xff] }
 0x206   :  { %3473 = vmatprep.subr.bf16.mxu1 %v8669_v40  ;;  %v875_v36 = vld [vmem:[%s13367_s4 + $0x1b0] sm:$0xff]  ;;  %v1166_v40 = vld [vmem:[%s13367_s4 + $0xac8] sm:$0xff] }
 0x207   :  { %v8439_v7 = vcombine.high %v871_v21, %v875_v36  ;;  %v8438_v9 = vcombine.low %v871_v21, %v875_v36  ;;  %v8732_v43 = vcombine.low %v1166_v40, %v1170_v52  ;;  %v943_v36 = vld [vmem:[%s13367_s4 + $0x3d0] sm:$0xff] }
 0x208   :  { %3447 = vmatpush2.bf16.msra.mxu0 %v8612_v17  ;;  %v8733_v17 = vcombine.high %v1166_v40, %v1170_v52  ;;  %v947_v40 = vld [vmem:[%s13367_s4 + $0x3f0] sm:$0xff] }
 0x209   :  { %3474 = vmatpush1.bf16.msra.mxu1 %v8668_v58  ;;  %3448 = vmatprep.subr.bf16.mxu0 %v8605_v59  ;;  %v863_v58 = vld [vmem:[%s13367_s4 + $0x150] sm:$0xff] }
 0x20a   :  { %3475 = vmatprep.subr.bf16.mxu1 %v8661_v53  ;;  %v867_v59 = vld [vmem:[%s13367_s4 + $0x170] sm:$0xff]  ;;  %v1158_v53 = vld [vmem:[%s13367_s4 + $0xa88] sm:$0xff] }
 0x20b   :  { %v8431_v32 = vcombine.high %v863_v58, %v867_v59  ;;  %v8430_v11 = vcombine.low %v863_v58, %v867_v59  ;;  %v8724_v25 = vcombine.low %v1158_v53, %v1162_v0  ;;  %v983_v52 = vld [vmem:[%s13367_s4 + $0x510] sm:$0xff] }
 0x20c   :  { %3449 = vmatpush2.bf16.msra.mxu0 %v8604_v63  ;;  %v8725_v63 = vcombine.high %v1158_v53, %v1162_v0  ;;  %v935_v59 = vld [vmem:[%s13367_s4 + $0x390] sm:$0xff] }
 0x20d   :  { %3476 = vmatpush1.bf16.msra.mxu1 %v8660_v51  ;;  %3450 = vmatprep.subr.bf16.mxu0 %v8597_v57  ;;  %v855_v51 = vld [vmem:[%s13367_s4 + $0x110] sm:$0xff] }
 0x20e   :  { %3477 = vmatprep.subr.bf16.mxu1 %v8653_v50  ;;  %v859_v57 = vld [vmem:[%s13367_s4 + $0x130] sm:$0xff]  ;;  %v1150_v50 = vld [vmem:[%s13367_s4 + $0xa48] sm:$0xff] }
 0x20f   :  { %v8423_v38 = vcombine.high %v855_v51, %v859_v57  ;;  %v8422_v60 = vcombine.low %v855_v51, %v859_v57  ;;  %v8716_v42 = vcombine.low %v1150_v50, %v1154_v6  ;;  %v939_v53 = vld [vmem:[%s13367_s4 + $0x3b0] sm:$0xff] }
 0x210   :  { %3451 = vmatpush2.bf16.msra.mxu0 %v8596_v20  ;;  %v8717_v20 = vcombine.high %v1150_v50, %v1154_v6  ;;  %v975_v0 = vld [vmem:[%s13367_s4 + $0x4d0] sm:$0xff] }
 0x211   :  { %3478 = vmatpush1.bf16.msra.mxu1 %v8652_v35  ;;  %3452 = vmatprep.subr.bf16.mxu0 %v8589_v41  ;;  %v847_v35 = vld [vmem:[%s13367_s4 + $0xd0] sm:$0xff] }
 0x212   :  { %3479 = vmatprep.subr.bf16.mxu1 %v8645_v49  ;;  %v851_v41 = vld [vmem:[%s13367_s4 + $0xf0] sm:$0xff]  ;;  %v1142_v49 = vld [vmem:[%s13367_s4 + $0xa08] sm:$0xff] }
 0x213   :  { %v8415_v22 = vcombine.high %v847_v35, %v851_v41  ;;  %v8414_v28 = vcombine.low %v847_v35, %v851_v41  ;;  %v8708_v4 = vcombine.low %v1142_v49, %v1146_v2  ;;  %v927_v57 = vld [vmem:[%s13367_s4 + $0x350] sm:$0xff] }
 0x214   :  { %3453 = vmatpush2.bf16.msra.mxu0 %v8588_v55  ;;  %v8709_v55 = vcombine.high %v1142_v49, %v1146_v2  ;;  %v931_v50 = vld [vmem:[%s13367_s4 + $0x370] sm:$0xff] }
 0x215   :  { %3480 = vmatpush1.bf16.msra.mxu1 %v8644_v5  ;;  %3454 = vmatprep.subr.bf16.mxu0 %v8581_v18  ;;  %v839_v5 = vld [vmem:[%s13367_s4 + $0x90] sm:$0xff] }
 0x216   :  { %3481 = vmatprep.subr.bf16.mxu1 %v8765_v34  ;;  %v843_v18 = vld [vmem:[%s13367_s4 + $0xb0] sm:$0xff] }
 0x217   :  { %v1007_v34 = vld [vmem:[%s13367_s4 + $0x5d0] sm:$0xff]  ;;  %v8407_v1 = vcombine.high %v839_v5, %v843_v18  ;;  %v8406_v24 = vcombine.low %v839_v5, %v843_v18 }
 0x218   :  { %3455 = vmatpush2.bf16.msra.mxu0 %v8580_v45  ;;  %v8575_v45 = vcombine.high %v1007_v34, %v1011_v19  ;;  %v8574_v16 = vcombine.low %v1007_v34, %v1011_v19  ;;  %v967_v6 = vld [vmem:[%s13367_s4 + $0x490] sm:$0xff] }
 0x219   :  { %3482 = vmatpush2.bf16.msra.mxu1 %v8764_v15  ;;  %3520 = vmatprep.subr.bf16.mxu0 %v8773_v27  ;;  %v999_v15 = vld [vmem:[%s13367_s4 + $0x590] sm:$0xff] }
 0x21a   :  { %3483 = vmatprep.subr.bf16.mxu1 %v8757_v44  ;;  %v1003_v27 = vld [vmem:[%s13367_s4 + $0x5b0] sm:$0xff] }
 0x21b   :  { %3457 = vmatmul.mubr.bf16.vlgmr.msra.gmra.mxu0 %v10380_v31  ;;  %v831_v44 = vld [vmem:[%s13367_s4 + $0x50] sm:$0xff]  ;;  %v8567_v47 = vcombine.high %v999_v15, %v1003_v27 }
 0x21c   :  { %3521 = vmatpush1.bf16.msra.mxu0 %v8772_v10  ;;  %3538 = vmatprep.mubr.bf16.mxu0 %v9562_v33  ;;  %v8399_v10 = vcombine.high %v831_v44, %v835_v62  ;;  %v8398_v12 = vcombine.low %v831_v44, %v835_v62  ;;  %v919_v41 = vld [vmem:[%s13367_s4 + $0x310] sm:$0xff] }
 0x21d   :  { %3484 = vmatpush2.bf16.msra.mxu1 %v8756_v30  ;;  %3547 = vmatprep.subr.bf16.mxu0 %v8447_v37  ;;  %v823_v30 = vld [vmem:[%s13367_s4 + $0x10] sm:$0xff] }
 0x21e   :  { %3485 = vmatprep.subr.bf16.mxu1 %v8749_v13  ;;  %v827_v37 = vld [vmem:[%s13367_s4 + $0x30] sm:$0xff] }
 0x21f   :  { %v991_v13 = vld [vmem:[%s13367_s4 + $0x550] sm:$0xff] }
 0x220   :  { %v8559_v21 = vcombine.high %v991_v13, %v995_v14  ;;  %v923_v49 = vld [vmem:[%s13367_s4 + $0x330] sm:$0xff] }
 0x221   :  { %3486 = vmatpush2.bf16.msra.mxu1 %v8748_v46  ;;  %v8566_v46 = vcombine.low %v999_v15, %v1003_v27  ;;  %v959_v2 = vld [vmem:[%s13367_s4 + $0x450] sm:$0xff] }
 0x222   :  { %3487 = vmatprep.subr.bf16.mxu1 %v8741_v61  ;;  %v8391_v61 = vcombine.high %v823_v30, %v827_v37  ;;  %v911_v18 = vld [vmem:[%s13367_s4 + $0x2d0] sm:$0xff] }
 0x223   :  { %8779 = vmatmul.mubr.msk.bf16.vlgmr.msra.gmra.mxu0 %vm3215_vm9, %v10440_v29  ;;  %v915_v34 = vld [vmem:[%s13367_s4 + $0x2f0] sm:$0xff] }
 0x224   :  { %3548 = vmatpush1.bf16.msra.mxu0 %v8446_v48  ;;  %3579 = vmatprep.mubr.bf16.mxu0 %v10313_v54  ;;  %v987_v48 = vld [vmem:[%s13367_s4 + $0x530] sm:$0xff] }
 0x225   :  { %3488 = vmatpush2.bf16.msra.mxu1 %v8740_v3  ;;  %3549 = vmatprep.subr.bf16.mxu0 %v8439_v7  ;;  %v8390_v3 = vcombine.low %v823_v30, %v827_v37  ;;  %v8558_v7 = vcombine.low %v991_v13, %v995_v14  ;;  %v8551_v58 = vcombine.high %v983_v52, %v987_v48  ;;  %v951_v19 = vld [vmem:[%s13367_s4 + $0x410] sm:$0xff] }
 0x226   :  { %3489 = vmatprep.subr.bf16.mxu1 %v8733_v17  ;;  %v8511_v17 = vcombine.high %v943_v36, %v947_v40  ;;  %v903_v27 = vld [vmem:[%s13367_s4 + $0x290] sm:$0xff] }
 0x227   :  { %v907_v44 = vld [vmem:[%s13367_s4 + $0x2b0] sm:$0xff] }
 0x228   :  { %3550 = vmatpush1.bf16.msra.mxu0 %v8438_v9  ;;  %v979_v9 = vld [vmem:[%s13367_s4 + $0x4f0] sm:$0xff] }
 0x229   :  { %3490 = vmatpush2.bf16.msra.mxu1 %v8732_v43  ;;  %3551 = vmatprep.subr.bf16.mxu0 %v8431_v32  ;;  %v8510_v43 = vcombine.low %v943_v36, %v947_v40  ;;  %v8550_v32 = vcombine.low %v983_v52, %v987_v48  ;;  %v8543_v51 = vcombine.high %v975_v0, %v979_v9  ;;  %v1071_v62 = vld [vmem:[%s13367_s4 + $0x7d0] sm:$0xff] }
 0x22a   :  { %3491 = vmatprep.subr.bf16.mxu1 %v8725_v63  ;;  %v8503_v63 = vcombine.high %v935_v59, %v939_v53  ;;  %v895_v37 = vld [vmem:[%s13367_s4 + $0x250] sm:$0xff] }
 0x22b   :  { %v899_v13 = vld [vmem:[%s13367_s4 + $0x270] sm:$0xff] }
 0x22c   :  { %3552 = vmatpush1.bf16.msra.mxu0 %v8430_v11  ;;  %v971_v11 = vld [vmem:[%s13367_s4 + $0x4b0] sm:$0xff] }
 0x22d   :  { %3492 = vmatpush2.bf16.msra.mxu1 %v8724_v25  ;;  %3553 = vmatprep.subr.bf16.mxu0 %v8423_v38  ;;  %v8502_v25 = vcombine.low %v935_v59, %v939_v53  ;;  %v8542_v38 = vcombine.low %v975_v0, %v979_v9  ;;  %v8535_v35 = vcombine.high %v967_v6, %v971_v11  ;;  %v1063_v14 = vld [vmem:[%s13367_s4 + $0x790] sm:$0xff] }
 0x22e   :  { %3493 = vmatprep.subr.bf16.mxu1 %v8717_v20  ;;  %v8495_v20 = vcombine.high %v927_v57, %v931_v50  ;;  %v887_v40 = vld [vmem:[%s13367_s4 + $0x210] sm:$0xff] }
 0x22f   :  { %v891_v52 = vld [vmem:[%s13367_s4 + $0x230] sm:$0xff] }
 0x230   :  { %3554 = vmatpush1.bf16.msra.mxu0 %v8422_v60  ;;  %v963_v60 = vld [vmem:[%s13367_s4 + $0x470] sm:$0xff] }
 0x231   :  { %3494 = vmatpush2.bf16.msra.mxu1 %v8716_v42  ;;  %3555 = vmatprep.subr.bf16.mxu0 %v8415_v22  ;;  %v8494_v42 = vcombine.low %v927_v57, %v931_v50  ;;  %v8534_v22 = vcombine.low %v967_v6, %v971_v11  ;;  %v8527_v5 = vcombine.high %v959_v2, %v963_v60  ;;  %v1055_v48 = vld [vmem:[%s13367_s4 + $0x750] sm:$0xff]  ;;  %v1221_v11 = vsub.s32 1, %v9784_v56 }
 0x232   :  { %3495 = vmatprep.subr.bf16.mxu1 %v8709_v55  ;;  %v8487_v55 = vcombine.high %v919_v41, %v923_v49  ;;  %v1135_v0 = vld [vmem:[%s13367_s4 + $0x9d0] sm:$0xff]  ;;  %v8454_v50 = vcombine.low %v887_v40, %v891_v52 }
 0x233   :  { %v1139_v9 = vld [vmem:[%s13367_s4 + $0x9f0] sm:$0xff] }
 0x234   :  { %3556 = vmatpush1.bf16.msra.mxu0 %v8414_v28  ;;  %v955_v28 = vld [vmem:[%s13367_s4 + $0x430] sm:$0xff] }
 0x235   :  { %3496 = vmatpush2.bf16.msra.mxu1 %v8708_v4  ;;  %3557 = vmatprep.subr.bf16.mxu0 %v8407_v1  ;;  %v8486_v4 = vcombine.low %v919_v41, %v923_v49  ;;  %v8526_v1 = vcombine.low %v959_v2, %v963_v60  ;;  %v8519_v15 = vcombine.high %v951_v19, %v955_v28  ;;  %v1131_v41 = vld [vmem:[%s13367_s4 + $0x9b0] sm:$0xff] }
 0x236   :  { %3588 = vmatprep.subr.bf16.mxu1 %v8575_v45  ;;  %v8479_v45 = vcombine.high %v911_v18, %v915_v34  ;;  %v1039_v49 = vld [vmem:[%s13367_s4 + $0x6d0] sm:$0xff] }
 0x237   :  { %v1043_v2 = vld [vmem:[%s13367_s4 + $0x6f0] sm:$0xff] }
 0x238   :  { %3498 = vmatmul.mubr.bf16.vlgmr.msra.gmra.mxu1 %v10553_v23  ;;  %3558 = vmatpush1.bf16.msra.mxu0 %v8406_v24  ;;  %v1075_v24 = vld [vmem:[%s13367_s4 + $0x7f0] sm:$0xff] }
 0x239   :  { %3589 = vmatpush1.bf16.msra.mxu1 %v8574_v16  ;;  %3620 = vmatprep.mubr.bf16.mxu1 %v10371_v39  ;;  %v8478_v16 = vcombine.low %v911_v18, %v915_v34  ;;  %v8639_v30 = vcombine.high %v1071_v62, %v1075_v24  ;;  %v8607_v34 = vcombine.high %v1039_v49, %v1043_v2 }
 0x23a   :  { %3590 = vmatprep.subr.bf16.mxu1 %v8567_v47  ;;  %3559 = vmatprep.subr.bf16.mxu0 %v8399_v10  ;;  %v8518_v47 = vcombine.low %v951_v19, %v955_v28  ;;  %v8471_v10 = vcombine.high %v903_v27, %v907_v44  ;;  %v1119_v19 = vld [vmem:[%s13367_s4 + $0x950] sm:$0xff] }
 0x23b   :  { %v1123_v28 = vld [vmem:[%s13367_s4 + $0x970] sm:$0xff] }
 0x23c   :  { %3560 = vmatpush1.bf16.msra.mxu0 %v8398_v12  ;;  %v1067_v12 = vld [vmem:[%s13367_s4 + $0x7b0] sm:$0xff] }
 0x23d   :  { %3591 = vmatpush1.bf16.msra.mxu1 %v8566_v46  ;;  %3561 = vmatprep.subr.bf16.mxu0 %v8391_v61  ;;  %v8470_v46 = vcombine.low %v903_v27, %v907_v44  ;;  %v8638_v61 = vcombine.low %v1071_v62, %v1075_v24  ;;  %v8631_v36 = vcombine.high %v1063_v14, %v1067_v12 }
 0x23e   :  { %3592 = vmatprep.subr.bf16.mxu1 %v8559_v21  ;;  %v8463_v21 = vcombine.high %v895_v37, %v899_v13  ;;  %v8606_v27 = vcombine.low %v1039_v49, %v1043_v2  ;;  %v8687_v62 = vcombine.high %v1119_v19, %v1123_v28  ;;  %v1091_v49 = vld [vmem:[%s13367_s4 + $0x870] sm:$0xff] }
 0x240   :  { %3562 = vmatpush1.bf16.msra.mxu0 %v8390_v3  ;;  %v1059_v3 = vld [vmem:[%s13367_s4 + $0x770] sm:$0xff] }
 0x241   :  { %3593 = vmatpush1.bf16.msra.mxu1 %v8558_v7  ;;  %3563 = vmatprep.subr.bf16.mxu0 %v8511_v17  ;;  %v8462_v7 = vcombine.low %v895_v37, %v899_v13  ;;  %v8630_v17 = vcombine.low %v1063_v14, %v1067_v12  ;;  %v8623_v59 = vcombine.high %v1055_v48, %v1059_v3  ;;  %v1027_v37 = vld [vmem:[%s13367_s4 + $0x670] sm:$0xff] }
 0x242   :  { %3594 = vmatprep.subr.bf16.mxu1 %v8551_v58  ;;  %v8455_v58 = vcombine.high %v887_v40, %v891_v52  ;;  %v8622_v6 = vcombine.low %v1055_v48, %v1059_v3  ;;  %v8686_v12 = vcombine.low %v1119_v19, %v1123_v28  ;;  %v1103_v52 = vld [vmem:[%s13367_s4 + $0x8d0] sm:$0xff] }
 0x243   :  { %v1107_v48 = vld [vmem:[%s13367_s4 + $0x8f0] sm:$0xff] }
 0x244   :  { %3564 = vmatpush2.bf16.msra.mxu0 %v8510_v43  ;;  %v1047_v43 = vld [vmem:[%s13367_s4 + $0x710] sm:$0xff] }
 0x245   :  { %3595 = vmatpush1.bf16.msra.mxu1 %v8550_v32  ;;  %3565 = vmatprep.subr.bf16.mxu0 %v8503_v63  ;;  %v1051_v32 = vld [vmem:[%s13367_s4 + $0x730] sm:$0xff]  ;;  %v1217_v63 = vsub.s32 0, %v9784_v56 }
 0x246   :  { %3596 = vmatprep.subr.bf16.mxu1 %v8543_v51  ;;  %v10960_v51 = vld [vmem:[%s13372_s5] sm:$0xff]  ;;  %v1015_v3 = vld [vmem:[%s13367_s4 + $0x610] sm:$0xff] }
 0x247   :  { %v1218_v60 = vrot.slane %v10960_v51, %v1217_v63 }
 0x248   :  { %3566 = vmatpush2.bf16.msra.mxu0 %v8502_v25  ;;  %v8703_v25 = vcombine.high %v1135_v0, %v1139_v9 }
 0x249   :  { %3597 = vmatpush1.bf16.msra.mxu1 %v8542_v38  ;;  %3567 = vmatprep.subr.bf16.mxu0 %v8495_v20  ;;  %v8615_v38 = vcombine.high %v1047_v43, %v1051_v32 }
 0x24a   :  { %3598 = vmatprep.subr.bf16.mxu1 %v8535_v35  ;;  %v1127_v35 = vld [vmem:[%s13367_s4 + $0x990] sm:$0xff] }
 0x24b   :  { %v8695_v18 = vcombine.high %v1127_v35, %v1131_v41 }
 0x24c   :  { %3568 = vmatpush2.bf16.msra.mxu0 %v8494_v42 }
 0x24d   :  { %3599 = vmatpush1.bf16.msra.mxu1 %v8534_v22  ;;  %3569 = vmatprep.subr.bf16.mxu0 %v8487_v55  ;;  %v8702_v22 = vcombine.low %v1135_v0, %v1139_v9  ;;  %v8614_v55 = vcombine.low %v1047_v43, %v1051_v32  ;;  %v1095_v9 = vld [vmem:[%s13367_s4 + $0x890] sm:$0xff] }
 0x24e   :  { %3600 = vmatprep.subr.bf16.mxu1 %v8527_v5  ;;  %v1222_v5 = vrot.slane %v10960_v51, %v1221_v11  ;;  %v1099_v43 = vld [vmem:[%s13367_s4 + $0x8b0] sm:$0xff] }
 0x24f   :  { %v1207_v32 = vld [vmem:[%s13367_s4 + $0xc10] sm:$0xff]  ;;  %v8662_v2 = vcombine.low %v1095_v9, %v1099_v43 }
 0x250   :  { %3570 = vmatpush2.bf16.msra.mxu0 %v8486_v4  ;;  %v1031_v4 = vld [vmem:[%s13367_s4 + $0x690] sm:$0xff] }
 0x251   :  { %3601 = vmatpush1.bf16.msra.mxu1 %v8526_v1  ;;  %3571 = vmatprep.subr.bf16.mxu0 %v8479_v45  ;;  %v1035_v1 = vld [vmem:[%s13367_s4 + $0x6b0] sm:$0xff] }
 0x252   :  { %3602 = vmatprep.subr.bf16.mxu1 %v8519_v15  ;;  %v8694_v15 = vcombine.low %v1127_v35, %v1131_v41  ;;  %v8599_v24 = vcombine.high %v1031_v4, %v1035_v1  ;;  %v884_v35 = vld [vmem:[%s13367_s4 + $0x1f8] sm:$0xff]  ;;  %v1087_v41 = vld [vmem:[%s13367_s4 + $0x850] sm:$0xff] }
 0x254   :  { %3572 = vmatpush2.bf16.msra.mxu0 %v8478_v16 }
 0x255   :  { %3603 = vmatpush1.bf16.msra.mxu1 %v8518_v47  ;;  %3573 = vmatprep.subr.bf16.mxu0 %v8471_v10  ;;  %v1111_v47 = vld [vmem:[%s13367_s4 + $0x910] sm:$0xff] }
 0x256   :  { %3604 = vmatprep.subr.bf16.mxu1 %v8639_v30  ;;  %v1115_v10 = vld [vmem:[%s13367_s4 + $0x930] sm:$0xff] }
 0x257   :  { %v1023_v30 = vld [vmem:[%s13367_s4 + $0x650] sm:$0xff] }
 0x258   :  { %3574 = vmatpush2.bf16.msra.mxu0 %v8470_v46  ;;  %v8598_v46 = vcombine.low %v1031_v4, %v1035_v1  ;;  %v872_v4 = vld [vmem:[%s13367_s4 + $0x198] sm:$0xff] }
 0x259   :  { %3605 = vmatpush2.bf16.msra.mxu1 %v8638_v61  ;;  %3575 = vmatprep.subr.bf16.mxu0 %v8463_v21  ;;  %v8679_v21 = vcombine.high %v1111_v47, %v1115_v10  ;;  %v876_v1 = vld [vmem:[%s13367_s4 + $0x1b8] sm:$0xff] }
 0x25a   :  { %3606 = vmatprep.subr.bf16.mxu1 %v8631_v36  ;;  %v3253_v53 = vpop.f32.mrf.mxu0  ;;  %v8591_v36 = vcombine.high %v1023_v30, %v1027_v37 }
 0x25b   :  { %v3254_v45 = vadd.f32 %v3253_v53, %v1218_v60  ;;  %v8671_v53 = vcombine.high %v1103_v52, %v1107_v48 }
 0x25c   :  { %3576 = vmatpush2.bf16.msra.mxu0 %v8462_v7  ;;  %v3255_v57 = vpop.f32.mrf.mxu0  ;;  %v1019_v7 = vld [vmem:[%s13367_s4 + $0x630] sm:$0xff] }
 0x25d   :  { %3607 = vmatpush2.bf16.msra.mxu1 %v8630_v17  ;;  %3577 = vmatprep.subr.bf16.mxu0 %v8455_v58  ;;  %v3256_v44 = vadd.f32 %v3255_v57, %v1222_v5  ;;  %v8678_v58 = vcombine.low %v1111_v47, %v1115_v10  ;;  %v8583_v0 = vcombine.high %v1015_v3, %v1019_v7  ;;  %v1211_v57 = vld [vmem:[%s13367_s4 + $0xc30] sm:$0xff] }
 0x25e   :  { %3608 = vmatprep.subr.bf16.mxu1 %v8623_v59  ;;  %v3257_v20 = vpop.f32.mrf.mxu0  ;;  %v8590_v59 = vcombine.low %v1023_v30, %v1027_v37  ;;  %v8774_v60 = vcombine.low %v1207_v32, %v1211_v57  ;;  %v1083_v5 = vld [vmem:[%s13367_s4 + $0x830] sm:$0xff]  ;;  %v864_v37 = vld [vmem:[%s13367_s4 + $0x158] sm:$0xff] }
 0x25f   :  { %v880_v20 = vld [vmem:[%s13367_s4 + $0x1d8] sm:$0xff]  ;;  %v1191_v10 = vld [vmem:[%s13367_s4 + $0xb90] sm:$0xff] }
 0x260   :  { %3578 = vmatpush2.bf16.msra.mxu0 %v8454_v50  ;;  %v3258_v42 = vpop.f32.mrf.mxu0  ;;  %v8670_v50 = vcombine.low %v1103_v52, %v1107_v48  ;;  %v1195_v30 = vld [vmem:[%s13367_s4 + $0xbb0] sm:$0xff]  ;;  %v856_v48 = vld [vmem:[%s13367_s4 + $0x118] sm:$0xff] }
 0x261   :  { %3609 = vmatpush2.bf16.msra.mxu1 %v8622_v6  ;;  %3629 = vmatprep.subr.bf16.mxu0 %v8703_v25  ;;  %v8582_v6 = vcombine.low %v1015_v3, %v1019_v7  ;;  %v8663_v25 = vcombine.high %v1095_v9, %v1099_v43  ;;  %v8449_v42 = vcombine.high %v880_v20, %v884_v35  ;;  %v1187_v52 = vld [vmem:[%s13367_s4 + $0xb70] sm:$0xff]  ;;  %v852_v9 = vld [vmem:[%s13367_s4 + $0xf8] sm:$0xff] }
 0x262   :  { %3610 = vmatprep.subr.bf16.mxu1 %v8615_v38  ;;  %v8775_v38 = vcombine.high %v1207_v32, %v1211_v57  ;;  %v8758_v3 = vcombine.low %v1191_v10, %v1195_v30 }
 0x263   :  { %3580 = vmatmul.mubr.bf16.vlgmr.msra.gmra.mxu0 %v10318_v26 }
 0x264   :  { %3630 = vmatpush1.bf16.msra.mxu0 %v8702_v22  ;;  %3661 = vmatprep.mubr.bf16.mxu0 %v10423_v8  ;;  %v8655_v22 = vcombine.high %v1087_v41, %v1091_v49 }
 0x265   :  { %3611 = vmatpush2.bf16.msra.mxu1 %v8614_v55  ;;  %3631 = vmatprep.subr.bf16.mxu0 %v8695_v18  ;;  %v1079_v55 = vld [vmem:[%s13367_s4 + $0x810] sm:$0xff] }
 0x266   :  { %3612 = vmatprep.subr.bf16.mxu1 %v8607_v34  ;;  %v3294_v16 = vpop.f32.mrf.mxu1  ;;  %v8654_v34 = vcombine.low %v1087_v41, %v1091_v49  ;;  %v8647_v19 = vcombine.high %v1079_v55, %v1083_v5 }
 0x267   :  { %v11007_v13 = vadd.f32 %v3294_v16, %v3254_v45  ;;  %v1199_v45 = vld [vmem:[%s13367_s4 + $0xbd0] sm:$0xff]  ;;  %v8441_v16 = vcombine.high %v872_v4, %v876_v1 }
 0x268   :  { %v3296_v14 = vpop.f32.mrf.mxu1  ;;  %3632 = vmatpush1.bf16.msra.mxu0 %v8694_v15  ;;  %v1203_v15 = vld [vmem:[%s13367_s4 + $0xbf0] sm:$0xff] }
 0x269   :  { %3613 = vmatpush2.bf16.msra.mxu1 %v8606_v27  ;;  %v11009_v61 = vadd.f32 %v3296_v14, %v3256_v44  ;;  %3633 = vmatprep.subr.bf16.mxu0 %v8687_v62  ;;  %v8646_v44 = vcombine.low %v1079_v55, %v1083_v5  ;;  %v8448_v62 = vcombine.low %v880_v20, %v884_v35  ;;  %v868_v14 = vld [vmem:[%s13367_s4 + $0x178] sm:$0xff] }
 0x26a   :  { %3614 = vmatprep.subr.bf16.mxu1 %v8599_v24  ;;  %v3298_v40 = vpop.f32.mrf.mxu1  ;;  %v8767_v47 = vcombine.high %v1199_v45, %v1203_v15  ;;  %v8432_v7 = vcombine.low %v864_v37, %v868_v14  ;;  %v844_v20 = vld [vmem:[%s13367_s4 + $0xb8] sm:$0xff] }
 0x26b   :  { %v1183_v40 = vld [vmem:[%s13367_s4 + $0xb50] sm:$0xff]  ;;  %v836_v55 = vld [vmem:[%s13367_s4 + $0x78] sm:$0xff] }
 0x26c   :  { %v3299_v17 = vpop.f32.mrf.mxu1  ;;  %3634 = vmatpush1.bf16.msra.mxu0 %v8686_v12  ;;  %v8766_v12 = vcombine.low %v1199_v45, %v1203_v15  ;;  %v8750_v43 = vcombine.low %v1183_v40, %v1187_v52  ;;  %v1155_v45 = vld [vmem:[%s13367_s4 + $0xa70] sm:$0xff]  ;;  %v824_v15 = vld [vmem:[%s13367_s4 + $0x18] sm:$0xff] }
 0x26d   :  { %3615 = vmatpush2.bf16.msra.mxu1 %v8598_v46  ;;  %3635 = vmatprep.subr.bf16.mxu0 %v8679_v21  ;;  %v8440_v46 = vcombine.low %v872_v4, %v876_v1  ;;  %v8759_v21 = vcombine.high %v1191_v10, %v1195_v30  ;;  %v8751_v17 = vcombine.high %v1183_v40, %v1187_v52  ;;  %v1151_v1 = vld [vmem:[%s13367_s4 + $0xa50] sm:$0xff]  ;;  %v944_v30 = vld [vmem:[%s13367_s4 + $0x3d8] sm:$0xff] }
 0x26e   :  { %3616 = vmatprep.subr.bf16.mxu1 %v8591_v36  ;;  %v8433_v36 = vcombine.high %v864_v37, %v868_v14  ;;  %v1147_v10 = vld [vmem:[%s13367_s4 + $0xa30] sm:$0xff]  ;;  %v948_v37 = vld [vmem:[%s13367_s4 + $0x3f8] sm:$0xff]  ;;  %v8718_v14 = vcombine.low %v1151_v1, %v1155_v45 }
 0x26f   :  { %v1012_v40 = vld [vmem:[%s13367_s4 + $0x5f8] sm:$0xff] }
 0x270   :  { %3636 = vmatpush1.bf16.msra.mxu0 %v8678_v58  ;;  %v936_v52 = vld [vmem:[%s13367_s4 + $0x398] sm:$0xff] }
 0x271   :  { %3617 = vmatpush2.bf16.msra.mxu1 %v8590_v59  ;;  %3637 = vmatprep.subr.bf16.mxu0 %v8671_v53  ;;  %v1175_v59 = vld [vmem:[%s13367_s4 + $0xb10] sm:$0xff] }
 0x272   :  { %3618 = vmatprep.subr.bf16.mxu1 %v8583_v0  ;;  %v1179_v53 = vld [vmem:[%s13367_s4 + $0xb30] sm:$0xff]  ;;  %v848_v0 = vld [vmem:[%s13367_s4 + $0xd8] sm:$0xff] }
 0x273   :  { %v8743_v57 = vcombine.high %v1175_v59, %v1179_v53  ;;  %v8742_v35 = vcombine.low %v1175_v59, %v1179_v53  ;;  %v8416_v41 = vcombine.low %v848_v0, %v852_v9 }
 0x274   :  { %3638 = vmatpush1.bf16.msra.mxu0 %v8670_v50  ;;  %v8417_v50 = vcombine.high %v848_v0, %v852_v9 }
 0x275   :  { %3619 = vmatpush2.bf16.msra.mxu1 %v8582_v6  ;;  %3639 = vmatprep.subr.bf16.mxu0 %v8663_v25  ;;  %v1167_v6 = vld [vmem:[%s13367_s4 + $0xad0] sm:$0xff] }
 0x276   :  { %3684 = vmatprep.subr.bf16.mxu1 %v8775_v38  ;;  %v1171_v25 = vld [vmem:[%s13367_s4 + $0xaf0] sm:$0xff]  ;;  %v840_v38 = vld [vmem:[%s13367_s4 + $0x98] sm:$0xff] }
 0x277   :  { %v8735_v49 = vcombine.high %v1167_v6, %v1171_v25  ;;  %v8734_v5 = vcombine.low %v1167_v6, %v1171_v25 }
 0x278   :  { %3621 = vmatmul.mubr.bf16.vlgmr.msra.gmra.mxu1 %v10380_v31  ;;  %v11054_v18 = vpop.f32.mrf.mxu1  ;;  %3640 = vmatpush1.bf16.msra.mxu0 %v8662_v2  ;;  %v8409_v2 = vcombine.high %v840_v38, %v844_v20 }
 0x279   :  { %3685 = vmatpush1.bf16.msra.mxu1 %v8774_v60  ;;  %3702 = vmatprep.mubr.bf16.mxu1 %v9562_v33  ;;  %v1159_v60 = vld [vmem:[%s13367_s4 + $0xa90] sm:$0xff] }
 0x27a   :  { %v11057_v28 = vpop.f32.mrf.mxu1  ;;  %3711 = vmatprep.subr.bf16.mxu1 %v8449_v42  ;;  %3641 = vmatprep.subr.bf16.mxu0 %v8655_v22  ;;  %v1163_v42 = vld [vmem:[%s13367_s4 + $0xab0] sm:$0xff]  ;;  %v832_v22 = vld [vmem:[%s13367_s4 + $0x58] sm:$0xff] }
 0x27b   :  { %v8401_v4 = vcombine.high %v832_v22, %v836_v55 }
 0x27c   :  { %v3380_v27 = vpop.f32.mrf.mxu1  ;;  %3642 = vmatpush1.bf16.msra.mxu0 %v8654_v34  ;;  %v8408_v34 = vcombine.low %v840_v38, %v844_v20 }
 0x27d   :  { %3643 = vmatprep.subr.bf16.mxu0 %v8647_v19  ;;  %v8727_v19 = vcombine.high %v1159_v60, %v1163_v42  ;;  %v828_v27 = vld [vmem:[%s13367_s4 + $0x38] sm:$0xff] }
 0x27e   :  { %v3381_v24 = vpop.f32.mrf.mxu1 }
 0x27f   :  { %v8719_v24 = vcombine.high %v1151_v1, %v1155_v45 }
 0x280   :  { %8780 = vmatmul.mubr.msk.bf16.vlgmr.msra.gmra.mxu1 %vm3215_vm9, %v10440_v29  ;;  %3644 = vmatpush1.bf16.msra.mxu0 %v8646_v44  ;;  %v8726_v44 = vcombine.low %v1159_v60, %v1163_v42 }
 0x281   :  { %3712 = vmatpush1.bf16.msra.mxu1 %v8448_v62  ;;  %3743 = vmatprep.mubr.bf16.mxu1 %v10313_v54  ;;  %v860_v54 = vld [vmem:[%s13367_s4 + $0x138] sm:$0xff]  ;;  %v8400_v62 = vcombine.low %v832_v22, %v836_v55 }
 0x282   :  { %3713 = vmatprep.subr.bf16.mxu1 %v8441_v16  ;;  %3645 = vmatprep.subr.bf16.mxu0 %v8767_v47  ;;  %v8425_v58 = vcombine.high %v856_v48, %v860_v54  ;;  %v8424_v32 = vcombine.low %v856_v48, %v860_v54  ;;  %v8393_v16 = vcombine.high %v824_v15, %v828_v27  ;;  %v1143_v47 = vld [vmem:[%s13367_s4 + $0xa10] sm:$0xff]  ;;  %v940_v48 = vld [vmem:[%s13367_s4 + $0x3b8] sm:$0xff] }
 0x283   :  { %v8505_v53 = vcombine.high %v936_v52, %v940_v48  ;;  %v8504_v6 = vcombine.low %v936_v52, %v940_v48  ;;  %v984_v55 = vld [vmem:[%s13367_s4 + $0x518] sm:$0xff] }
 0x284   :  { %3646 = vmatpush2.bf16.msra.mxu0 %v8766_v12  ;;  %v8392_v12 = vcombine.low %v824_v15, %v828_v27  ;;  %v976_v15 = vld [vmem:[%s13367_s4 + $0x4d8] sm:$0xff] }
 0x285   :  { %3714 = vmatpush1.bf16.msra.mxu1 %v8440_v46  ;;  %3647 = vmatprep.subr.bf16.mxu0 %v8759_v21  ;;  %v8711_v46 = vcombine.high %v1143_v47, %v1147_v10  ;;  %v8513_v21 = vcombine.high %v944_v30, %v948_v37  ;;  %v980_v27 = vld [vmem:[%s13367_s4 + $0x4f8] sm:$0xff] }
 0x286   :  { %3715 = vmatprep.subr.bf16.mxu1 %v8433_v36  ;;  %v1008_v36 = vld [vmem:[%s13367_s4 + $0x5d8] sm:$0xff] }
 0x287   :  { %v8577_v59 = vcombine.high %v1008_v36, %v1012_v40  ;;  %v960_v52 = vld [vmem:[%s13367_s4 + $0x458] sm:$0xff] }
 0x288   :  { %3648 = vmatpush2.bf16.msra.mxu0 %v8758_v3  ;;  %v964_v48 = vld [vmem:[%s13367_s4 + $0x478] sm:$0xff] }
 0x289   :  { %3716 = vmatpush1.bf16.msra.mxu1 %v8432_v7  ;;  %3649 = vmatprep.subr.bf16.mxu0 %v8751_v17  ;;  %v8710_v7 = vcombine.low %v1143_v47, %v1147_v10  ;;  %v8512_v17 = vcombine.low %v944_v30, %v948_v37  ;;  %v8545_v47 = vcombine.high %v976_v15, %v980_v27  ;;  %v968_v30 = vld [vmem:[%s13367_s4 + $0x498] sm:$0xff] }
 0x28a   :  { %3717 = vmatprep.subr.bf16.mxu1 %v8425_v58  ;;  %v972_v37 = vld [vmem:[%s13367_s4 + $0x4b8] sm:$0xff] }
 0x28c   :  { %3650 = vmatpush2.bf16.msra.mxu0 %v8750_v43  ;;  %v1000_v43 = vld [vmem:[%s13367_s4 + $0x598] sm:$0xff] }
 0x28d   :  { %3718 = vmatpush1.bf16.msra.mxu1 %v8424_v32  ;;  %3651 = vmatprep.subr.bf16.mxu0 %v8743_v57  ;;  %v928_v32 = vld [vmem:[%s13367_s4 + $0x358] sm:$0xff] }
 0x28e   :  { %3719 = vmatprep.subr.bf16.mxu1 %v8417_v50  ;;  %v932_v57 = vld [vmem:[%s13367_s4 + $0x378] sm:$0xff] }
 0x28f   :  { %v8497_v20 = vcombine.high %v928_v32, %v932_v57  ;;  %v8496_v60 = vcombine.low %v928_v32, %v932_v57  ;;  %v8528_v57 = vcombine.low %v960_v52, %v964_v48 }
 0x290   :  { %3652 = vmatpush2.bf16.msra.mxu0 %v8742_v35  ;;  %v992_v35 = vld [vmem:[%s13367_s4 + $0x558] sm:$0xff] }
 0x291   :  { %3720 = vmatpush1.bf16.msra.mxu1 %v8416_v41  ;;  %3653 = vmatprep.subr.bf16.mxu0 %v8735_v49  ;;  %v996_v41 = vld [vmem:[%s13367_s4 + $0x578] sm:$0xff] }
 0x292   :  { %3721 = vmatprep.subr.bf16.mxu1 %v8409_v2  ;;  %v924_v49 = vld [vmem:[%s13367_s4 + $0x338] sm:$0xff]  ;;  %v8561_v42 = vcombine.high %v992_v35, %v996_v41 }
 0x294   :  { %3654 = vmatpush2.bf16.msra.mxu0 %v8734_v5  ;;  %v988_v5 = vld [vmem:[%s13367_s4 + $0x538] sm:$0xff] }
 0x295   :  { %3722 = vmatpush1.bf16.msra.mxu1 %v8408_v34  ;;  %3655 = vmatprep.subr.bf16.mxu0 %v8727_v19  ;;  %v912_v34 = vld [vmem:[%s13367_s4 + $0x2d8] sm:$0xff]  ;;  %v8560_v19 = vcombine.low %v992_v35, %v996_v41  ;;  %v8553_v1 = vcombine.high %v984_v55, %v988_v5 }
 0x296   :  { %3723 = vmatprep.subr.bf16.mxu1 %v8401_v4  ;;  %v1072_v35 = vld [vmem:[%s13367_s4 + $0x7d8] sm:$0xff] }
 0x297   :  { %v1076_v41 = vld [vmem:[%s13367_s4 + $0x7f8] sm:$0xff] }
 0x298   :  { %3656 = vmatpush2.bf16.msra.mxu0 %v8726_v44  ;;  %v904_v44 = vld [vmem:[%s13367_s4 + $0x298] sm:$0xff] }
 0x299   :  { %3724 = vmatpush1.bf16.msra.mxu1 %v8400_v62  ;;  %3657 = vmatprep.subr.bf16.mxu0 %v8719_v24  ;;  %v908_v62 = vld [vmem:[%s13367_s4 + $0x2b8] sm:$0xff]  ;;  %v8552_v24 = vcombine.low %v984_v55, %v988_v5 }
 0x29a   :  { %3725 = vmatprep.subr.bf16.mxu1 %v8393_v16  ;;  %v8473_v10 = vcombine.high %v904_v44, %v908_v62  ;;  %v1064_v55 = vld [vmem:[%s13367_s4 + $0x798] sm:$0xff] }
 0x29b   :  { %v3335_v54 = vpop.f32.mrf.mxu0  ;;  %v1068_v5 = vld [vmem:[%s13367_s4 + $0x7b8] sm:$0xff] }
 0x29c   :  { %v3336_v3 = vadd.f32 %v3335_v54, %v11007_v13  ;;  %3658 = vmatpush2.bf16.msra.mxu0 %v8718_v14  ;;  %v1004_v13 = vld [vmem:[%s13367_s4 + $0x5b8] sm:$0xff] }
 0x29d   :  { %3726 = vmatpush1.bf16.msra.mxu1 %v8392_v12  ;;  %v3337_v58 = vpop.f32.mrf.mxu0  ;;  %3659 = vmatprep.subr.bf16.mxu0 %v8711_v46  ;;  %v8569_v38 = vcombine.high %v1000_v43, %v1004_v13  ;;  %v8568_v2 = vcombine.low %v1000_v43, %v1004_v13  ;;  %v896_v14 = vld [vmem:[%s13367_s4 + $0x258] sm:$0xff]  ;;  %v8544_v46 = vcombine.low %v976_v15, %v980_v27 }
 0x29e   :  { %3727 = vmatprep.subr.bf16.mxu1 %v8513_v21  ;;  %v11172_v0 = vadd.f32 %v11054_v18, %v3336_v3  ;;  %v3338_v9 = vadd.f32 %v3337_v58, %v11009_v61  ;;  %v8576_v61 = vcombine.low %v1008_v36, %v1012_v40  ;;  %v900_v12 = vld [vmem:[%s13367_s4 + $0x278] sm:$0xff]  ;;  %v8472_v21 = vcombine.low %v904_v44, %v908_v62 }
 0x29f   :  { %v3339_v18 = vpop.f32.mrf.mxu0  ;;  %v8537_v36 = vcombine.high %v968_v30, %v972_v37  ;;  %v8465_v40 = vcombine.high %v896_v14, %v900_v12  ;;  %v888_v54 = vld [vmem:[%s13367_s4 + $0x218] sm:$0xff]  ;;  %v8529_v58 = vcombine.high %v960_v52, %v964_v48  ;;  %v8632_v44 = vcombine.low %v1064_v55, %v1068_v5 }
 0x2a0   :  { %v11188_v50 = vadd.f32 %v11057_v28, %v3338_v9  ;;  %3660 = vmatpush2.bf16.msra.mxu0 %v8710_v7  ;;  %v920_v28 = vld [vmem:[%s13367_s4 + $0x318] sm:$0xff]  ;;  %v8536_v7 = vcombine.low %v968_v30, %v972_v37 }
 0x2a1   :  { %3728 = vmatpush2.bf16.msra.mxu1 %v8512_v17  ;;  %v3340_v25 = vpop.f32.mrf.mxu0  ;;  %3752 = vmatprep.subr.bf16.mxu0 %v8577_v59  ;;  %v8489_v22 = vcombine.high %v920_v28, %v924_v49  ;;  %v8488_v4 = vcombine.low %v920_v28, %v924_v49  ;;  %v892_v3 = vld [vmem:[%s13367_s4 + $0x238] sm:$0xff]  ;;  %v8464_v17 = vcombine.low %v896_v14, %v900_v12 }
 0x2a2   :  { %3729 = vmatprep.subr.bf16.mxu1 %v8505_v53  ;;  %v8457_v59 = vcombine.high %v888_v54, %v892_v3  ;;  %v952_v53 = vld [vmem:[%s13367_s4 + $0x418] sm:$0xff]  ;;  %v8456_v18 = vcombine.low %v888_v54, %v892_v3 }
 0x2a3   :  { %3662 = vmatmul.mubr.bf16.vlgmr.msra.gmra.mxu0 %v10553_v23  ;;  %v956_v9 = vld [vmem:[%s13367_s4 + $0x438] sm:$0xff] }
 0x2a4   :  { %3753 = vmatpush1.bf16.msra.mxu0 %v8576_v61  ;;  %3784 = vmatprep.mubr.bf16.mxu0 %v10371_v39  ;;  %v916_v39 = vld [vmem:[%s13367_s4 + $0x2f8] sm:$0xff]  ;;  %v8521_v61 = vcombine.high %v952_v53, %v956_v9  ;;  %v8520_v49 = vcombine.low %v952_v53, %v956_v9 }
 0x2a5   :  { %3730 = vmatpush2.bf16.msra.mxu1 %v8504_v6  ;;  %3754 = vmatprep.subr.bf16.mxu0 %v8569_v38  ;;  %v8481_v45 = vcombine.high %v912_v34, %v916_v39  ;;  %v8480_v16 = vcombine.low %v912_v34, %v916_v39  ;;  %v1136_v43 = vld [vmem:[%s13367_s4 + $0x9d8] sm:$0xff] }
 0x2a6   :  { %3731 = vmatprep.subr.bf16.mxu1 %v8497_v20  ;;  %v1140_v13 = vld [vmem:[%s13367_s4 + $0x9f8] sm:$0xff] }
 0x2a7   :  { %v8705_v25 = vcombine.high %v1136_v43, %v1140_v13  ;;  %v1128_v38 = vld [vmem:[%s13367_s4 + $0x998] sm:$0xff] }
 0x2a8   :  { %3755 = vmatpush1.bf16.msra.mxu0 %v8568_v2  ;;  %v1132_v20 = vld [vmem:[%s13367_s4 + $0x9b8] sm:$0xff]  ;;  %v8704_v2 = vcombine.low %v1136_v43, %v1140_v13 }
 0x2a9   :  { %3732 = vmatpush2.bf16.msra.mxu1 %v8496_v60  ;;  %3756 = vmatprep.subr.bf16.mxu0 %v8561_v42  ;;  %v8697_v42 = vcombine.high %v1128_v38, %v1132_v20  ;;  %v1120_v34 = vld [vmem:[%s13367_s4 + $0x958] sm:$0xff] }
 0x2aa   :  { %3733 = vmatprep.subr.bf16.mxu1 %v8489_v22  ;;  %v8641_v22 = vcombine.high %v1072_v35, %v1076_v41  ;;  %v1124_v39 = vld [vmem:[%s13367_s4 + $0x978] sm:$0xff] }
 0x2ab   :  { %v1056_v15 = vld [vmem:[%s13367_s4 + $0x758] sm:$0xff]  ;;  %v8688_v62 = vcombine.low %v1120_v34, %v1124_v39 }
 0x2ac   :  { %3757 = vmatpush1.bf16.msra.mxu0 %v8560_v19  ;;  %v8640_v19 = vcombine.low %v1072_v35, %v1076_v41  ;;  %v1060_v27 = vld [vmem:[%s13367_s4 + $0x778] sm:$0xff] }
 0x2ad   :  { %3734 = vmatpush2.bf16.msra.mxu1 %v8488_v4  ;;  %3758 = vmatprep.subr.bf16.mxu0 %v8553_v1  ;;  %v8696_v4 = vcombine.low %v1128_v38, %v1132_v20  ;;  %v8633_v1 = vcombine.high %v1064_v55, %v1068_v5  ;;  %v1104_v30 = vld [vmem:[%s13367_s4 + $0x8d8] sm:$0xff]  ;;  %v8624_v14 = vcombine.low %v1056_v15, %v1060_v27 }
 0x2ae   :  { %3735 = vmatprep.subr.bf16.mxu1 %v8481_v45  ;;  %v8689_v45 = vcombine.high %v1120_v34, %v1124_v39  ;;  %v1108_v37 = vld [vmem:[%s13367_s4 + $0x8f8] sm:$0xff] }
 0x2af   :  { %v1096_v52 = vld [vmem:[%s13367_s4 + $0x898] sm:$0xff]  ;;  %v8672_v3 = vcombine.low %v1104_v30, %v1108_v37 }
 0x2b0   :  { %3759 = vmatpush1.bf16.msra.mxu0 %v8552_v24  ;;  %v8625_v24 = vcombine.high %v1056_v15, %v1060_v27  ;;  %v1100_v48 = vld [vmem:[%s13367_s4 + $0x8b8] sm:$0xff] }
 0x2b1   :  { %3736 = vmatpush2.bf16.msra.mxu1 %v8480_v16  ;;  %3760 = vmatprep.subr.bf16.mxu0 %v8545_v47  ;;  %v1048_v47 = vld [vmem:[%s13367_s4 + $0x718] sm:$0xff]  ;;  %v8664_v13 = vcombine.low %v1096_v52, %v1100_v48 }
 0x2b2   :  { %3737 = vmatprep.subr.bf16.mxu1 %v8473_v10  ;;  %v1052_v10 = vld [vmem:[%s13367_s4 + $0x738] sm:$0xff] }
 0x2b3   :  { %v8616_v54 = vcombine.low %v1048_v47, %v1052_v10  ;;  %v1088_v53 = vld [vmem:[%s13367_s4 + $0x858] sm:$0xff] }
 0x2b4   :  { %3761 = vmatpush1.bf16.msra.mxu0 %v8544_v46  ;;  %v8617_v46 = vcombine.high %v1048_v47, %v1052_v10  ;;  %v1092_v9 = vld [vmem:[%s13367_s4 + $0x878] sm:$0xff]  ;;  %v3947_v10 = vld [vmem:[%s13373_s6 + $0x1c0] sm:$0xff] }
 0x2b5   :  { %3738 = vmatpush2.bf16.msra.mxu1 %v8472_v21  ;;  %3762 = vmatprep.subr.bf16.mxu0 %v8537_v36  ;;  %v8673_v21 = vcombine.high %v1104_v30, %v1108_v37  ;;  %v1040_v36 = vld [vmem:[%s13367_s4 + $0x6d8] sm:$0xff]  ;;  %v3951_v30 = vld [vmem:[%s13373_s6 + $0x1e0] sm:$0xff] }
 0x2b6   :  { %3739 = vmatprep.subr.bf16.mxu1 %v8465_v40  ;;  %v1044_v40 = vld [vmem:[%s13367_s4 + $0x6f8] sm:$0xff] }
 0x2b7   :  { %v8608_v43 = vcombine.low %v1040_v36, %v1044_v40  ;;  %v1028_v38 = vld [vmem:[%s13367_s4 + $0x678] sm:$0xff] }
 0x2b8   :  { %v11264_v32 = vpop.f32.mrf.mxu1  ;;  %3763 = vmatpush1.bf16.msra.mxu0 %v8536_v7  ;;  %v8609_v7 = vcombine.high %v1040_v36, %v1044_v40  ;;  %v1080_v20 = vld [vmem:[%s13367_s4 + $0x818] sm:$0xff]  ;;  %v8839_v40 = vcombine.high %v3947_v10, %v3951_v30 }
 0x2b9   :  { %3740 = vmatpush2.bf16.msra.mxu1 %v8464_v17  ;;  %3764 = vmatprep.subr.bf16.mxu0 %v8529_v58  ;;  %v8665_v17 = vcombine.high %v1096_v52, %v1100_v48  ;;  %v1032_v58 = vld [vmem:[%s13367_s4 + $0x698] sm:$0xff] }
 0x2ba   :  { %v11266_v6 = vpop.f32.mrf.mxu1  ;;  %3741 = vmatprep.subr.bf16.mxu1 %v8457_v59  ;;  %v1036_v59 = vld [vmem:[%s13367_s4 + $0x6b8] sm:$0xff] }
 0x2bb   :  { %v1084_v35 = vld [vmem:[%s13367_s4 + $0x838] sm:$0xff]  ;;  %v8600_v41 = vcombine.low %v1032_v58, %v1036_v59 }
 0x2bc   :  { %v3421_v28 = vpop.f32.mrf.mxu1  ;;  %3765 = vmatpush1.bf16.msra.mxu0 %v8528_v57  ;;  %v8601_v57 = vcombine.high %v1032_v58, %v1036_v59  ;;  %v1200_v55 = vld [vmem:[%s13367_s4 + $0xbd8] sm:$0xff]  ;;  %v8648_v39 = vcombine.low %v1080_v20, %v1084_v35  ;;  %v3876_v58 = vmax.f32 %v11188_v50, 0.0  ;;  %v8838_v50 = vcombine.low %v3947_v10, %v3951_v30  ;;  %v3911_v10 = vld [vmem:[%s13373_s6 + $0xa0] sm:$0xff] }
 0x2bd   :  { %3742 = vmatpush2.bf16.msra.mxu1 %v8456_v18  ;;  %3766 = vmatprep.subr.bf16.mxu0 %v8521_v61  ;;  %v1225_v18 = vsub.s32 2, %v9784_v56  ;;  %v8657_v61 = vcombine.high %v1088_v53, %v1092_v9  ;;  %v8656_v28 = vcombine.low %v1088_v53, %v1092_v9  ;;  %v1204_v5 = vld [vmem:[%s13367_s4 + $0xbf8] sm:$0xff]  ;;  %v3939_v53 = vld [vmem:[%s13373_s6 + $0x180] sm:$0xff] }
 0x2be   :  { %v3422_v60 = vpop.f32.mrf.mxu1  ;;  %3793 = vmatprep.subr.bf16.mxu1 %v8705_v25  ;;  %v1024_v25 = vld [vmem:[%s13367_s4 + $0x658] sm:$0xff] }
 0x2bf   :  { %v8649_v60 = vcombine.high %v1080_v20, %v1084_v35  ;;  %v8592_v34 = vcombine.low %v1024_v25, %v1028_v38  ;;  %v1212_v15 = vld [vmem:[%s13367_s4 + $0xc38] sm:$0xff]  ;;  %v3931_v20 = vld [vmem:[%s13373_s6 + $0x140] sm:$0xff] }
 0x2c0   :  { %3744 = vmatmul.mubr.bf16.vlgmr.msra.gmra.mxu1 %v10318_v26  ;;  %3767 = vmatpush1.bf16.msra.mxu0 %v8520_v49  ;;  %v1112_v26 = vld [vmem:[%s13367_s4 + $0x918] sm:$0xff]  ;;  %v8593_v49 = vcombine.high %v1024_v25, %v1028_v38  ;;  %v11424_v25 = vpack.c.bf16 %v3876_v58, %v3876_v58  ;;  %v3935_v35 = vld [vmem:[%s13373_s6 + $0x160] sm:$0xff] }
 0x2c1   :  { %3794 = vmatpush1.bf16.msra.mxu1 %v8704_v2  ;;  %3825 = vmatprep.mubr.bf16.mxu1 %v10423_v8  ;;  %v1116_v8 = vld [vmem:[%s13367_s4 + $0x938] sm:$0xff]  ;;  %v1226_v2 = vrot.slane %v10960_v51, %v1225_v18 }
 0x2c2   :  { %3795 = vmatprep.subr.bf16.mxu1 %v8697_v42  ;;  %3768 = vmatprep.subr.bf16.mxu0 %v8641_v22  ;;  %v8681_v16 = vcombine.high %v1112_v26, %v1116_v8  ;;  %v8680_v12 = vcombine.low %v1112_v26, %v1116_v8  ;;  %v1016_v42 = vld [vmem:[%s13367_s4 + $0x618] sm:$0xff] }
 0x2c3   :  { %v1020_v22 = vld [vmem:[%s13367_s4 + $0x638] sm:$0xff] }
 0x2c4   :  { %3769 = vmatpush2.bf16.msra.mxu0 %v8640_v19  ;;  %v8585_v19 = vcombine.high %v1016_v42, %v1020_v22  ;;  %v1192_v27 = vld [vmem:[%s13367_s4 + $0xb98] sm:$0xff] }
 0x2c5   :  { %3796 = vmatpush1.bf16.msra.mxu1 %v8696_v4  ;;  %3770 = vmatprep.subr.bf16.mxu0 %v8633_v1  ;;  %v3418_v4 = vadd.f32 %v11264_v32, %v1226_v2  ;;  %v8769_v1 = vcombine.high %v1200_v55, %v1204_v5  ;;  %v1196_v26 = vld [vmem:[%s13367_s4 + $0xbb8] sm:$0xff] }
 0x2c6   :  { %3797 = vmatprep.subr.bf16.mxu1 %v8689_v45  ;;  %v1208_v45 = vld [vmem:[%s13367_s4 + $0xc18] sm:$0xff]  ;;  %v8761_v47 = vcombine.high %v1192_v27, %v1196_v26 }
 0x2c7   :  { %v1184_v37 = vld [vmem:[%s13367_s4 + $0xb58] sm:$0xff] }
 0x2c8   :  { %3771 = vmatpush2.bf16.msra.mxu0 %v8632_v44  ;;  %v8584_v44 = vcombine.low %v1016_v42, %v1020_v22  ;;  %v1176_v48 = vld [vmem:[%s13367_s4 + $0xb18] sm:$0xff]  ;;  %v3923_v22 = vld [vmem:[%s13373_s6 + $0x100] sm:$0xff] }
 0x2c9   :  { %3798 = vmatpush1.bf16.msra.mxu1 %v8688_v62  ;;  %3772 = vmatprep.subr.bf16.mxu0 %v8625_v24  ;;  %v8768_v62 = vcombine.low %v1200_v55, %v1204_v5  ;;  %v1172_v9 = vld [vmem:[%s13367_s4 + $0xaf8] sm:$0xff]  ;;  %v3927_v55 = vld [vmem:[%s13373_s6 + $0x120] sm:$0xff] }
 0x2ca   :  { %3799 = vmatprep.subr.bf16.mxu1 %v8681_v16  ;;  %v8777_v16 = vcombine.high %v1208_v45, %v1212_v15  ;;  %v1152_v5 = vld [vmem:[%s13367_s4 + $0xa58] sm:$0xff] }
 0x2cc   :  { %3773 = vmatpush2.bf16.msra.mxu0 %v8624_v14  ;;  %v1188_v14 = vld [vmem:[%s13367_s4 + $0xb78] sm:$0xff] }
 0x2cd   :  { %3800 = vmatpush1.bf16.msra.mxu1 %v8680_v12  ;;  %3774 = vmatprep.subr.bf16.mxu0 %v8617_v46  ;;  %v8776_v46 = vcombine.low %v1208_v45, %v1212_v15  ;;  %v8753_v52 = vcombine.high %v1184_v37, %v1188_v14  ;;  %v3915_v45 = vld [vmem:[%s13373_s6 + $0xc0] sm:$0xff] }
 0x2ce   :  { %3801 = vmatprep.subr.bf16.mxu1 %v8673_v21  ;;  %v8760_v21 = vcombine.low %v1192_v27, %v1196_v26  ;;  %v3919_v15 = vld [vmem:[%s13373_s6 + $0xe0] sm:$0xff]  ;;  %v1144_v26 = vld [vmem:[%s13367_s4 + $0xa18] sm:$0xff] }
 0x2d0   :  { %3775 = vmatpush2.bf16.msra.mxu0 %v8616_v54  ;;  %v1180_v54 = vld [vmem:[%s13367_s4 + $0xb38] sm:$0xff] }
 0x2d1   :  { %3802 = vmatpush1.bf16.msra.mxu1 %v8672_v3  ;;  %3776 = vmatprep.subr.bf16.mxu0 %v8609_v7  ;;  %v8752_v7 = vcombine.low %v1184_v37, %v1188_v14  ;;  %v8745_v59 = vcombine.high %v1176_v48, %v1180_v54  ;;  %v4075_v37 = vld [vmem:[%s13373_s6 + $0x5c0] sm:$0xff] }
 0x2d2   :  { %3803 = vmatprep.subr.bf16.mxu1 %v8665_v17  ;;  %v4079_v14 = vld [vmem:[%s13373_s6 + $0x5e0] sm:$0xff] }
 0x2d4   :  { %3777 = vmatpush2.bf16.msra.mxu0 %v8608_v43 }
 0x2d5   :  { %3804 = vmatpush1.bf16.msra.mxu1 %v8664_v13  ;;  %3778 = vmatprep.subr.bf16.mxu0 %v8601_v57  ;;  %v8744_v13 = vcombine.low %v1176_v48, %v1180_v54  ;;  %v8967_v48 = vcombine.high %v4075_v37, %v4079_v14  ;;  %v3899_v54 = vld [vmem:[%s13373_s6 + $0x40] sm:$0xff] }
 0x2d6   :  { %3805 = vmatprep.subr.bf16.mxu1 %v8657_v61 }
 0x2d8   :  { %3779 = vmatpush2.bf16.msra.mxu0 %v8600_v41  ;;  %v1160_v41 = vld [vmem:[%s13367_s4 + $0xa98] sm:$0xff] }
 0x2d9   :  { %3806 = vmatpush1.bf16.msra.mxu1 %v8656_v28  ;;  %3780 = vmatprep.subr.bf16.mxu0 %v8593_v49  ;;  %v1164_v28 = vld [vmem:[%s13367_s4 + $0xab8] sm:$0xff] }
 0x2da   :  { %3807 = vmatprep.subr.bf16.mxu1 %v8649_v60  ;;  %v8823_v60 = vcombine.high %v3931_v20, %v3935_v35  ;;  %v8729_v42 = vcombine.high %v1160_v41, %v1164_v28 }
 0x2db   :  { %v3458_v8 = vpop.f32.mrf.mxu0 }
 0x2dc   :  { %v11383_v32 = vadd.f32 %v3458_v8, %v3418_v4  ;;  %3781 = vmatpush2.bf16.msra.mxu0 %v8592_v34  ;;  %v1156_v34 = vld [vmem:[%s13367_s4 + $0xa78] sm:$0xff]  ;;  %v8815_v4 = vcombine.high %v3923_v22, %v3927_v55 }
 0x2dd   :  { %3808 = vmatpush1.bf16.msra.mxu1 %v8648_v39  ;;  %v11385_v24 = vpop.f32.mrf.mxu0  ;;  %3782 = vmatprep.subr.bf16.mxu0 %v8585_v19  ;;  %v8822_v39 = vcombine.low %v3931_v20, %v3935_v35  ;;  %v8728_v19 = vcombine.low %v1160_v41, %v1164_v28  ;;  %v1148_v8 = vld [vmem:[%s13367_s4 + $0xa38] sm:$0xff] }
 0x2de   :  { %3809 = vmatprep.subr.bf16.mxu1 %v8769_v1  ;;  %v8721_v1 = vcombine.high %v1152_v5, %v1156_v34 }
 0x2df   :  { %v3462_v12 = vpop.f32.mrf.mxu0 }
 0x2e0   :  { %3783 = vmatpush2.bf16.msra.mxu0 %v8584_v44  ;;  %v8814_v44 = vcombine.low %v3923_v22, %v3927_v55 }
 0x2e1   :  { %3810 = vmatpush2.bf16.msra.mxu1 %v8768_v62  ;;  %v3463_v36 = vpop.f32.mrf.mxu0  ;;  %3848 = vmatprep.subr.bf16.mxu0 %v8777_v16  ;;  %v8720_v62 = vcombine.low %v1152_v5, %v1156_v34  ;;  %v8807_v16 = vcombine.high %v3915_v45, %v3919_v15 }
 0x2e2   :  { %3811 = vmatprep.subr.bf16.mxu1 %v8761_v47  ;;  %v8713_v47 = vcombine.high %v1144_v26, %v1148_v8 }
 0x2e3   :  { %3785 = vmatmul.mubr.bf16.vlgmr.msra.gmra.mxu0 %v10380_v31  ;;  %v11406_v3 = vpop.f32.mrf.mxu0  ;;  %v3943_v31 = vld [vmem:[%s13373_s6 + $0x1a0] sm:$0xff] }
 0x2e4   :  { %3849 = vmatpush1.bf16.msra.mxu0 %v8776_v46  ;;  %3866 = vmatprep.mubr.bf16.mxu0 %v9562_v33  ;;  %v1168_v33 = vld [vmem:[%s13367_s4 + $0xad8] sm:$0xff]  ;;  %v8831_v61 = vcombine.high %v3939_v53, %v3943_v31  ;;  %v8830_v49 = vcombine.low %v3939_v53, %v3943_v31  ;;  %v8712_v46 = vcombine.low %v1144_v26, %v1148_v8  ;;  %v3995_v8 = vld [vmem:[%s13373_s6 + $0x340] sm:$0xff] }
 0x2e5   :  { %3812 = vmatpush2.bf16.msra.mxu1 %v8760_v21  ;;  %v11409_v17 = vpop.f32.mrf.mxu0  ;;  %7005 = vmatprep.subr.bf16.mxu0 %v8839_v40  ;;  %v8737_v38 = vcombine.high %v1168_v33, %v1172_v9  ;;  %v8736_v2 = vcombine.low %v1168_v33, %v1172_v9  ;;  %v8806_v21 = vcombine.low %v3915_v45, %v3919_v15 }
 0x2e6   :  { %3813 = vmatprep.subr.bf16.mxu1 %v8753_v52  ;;  %v8966_v9 = vcombine.low %v4075_v37, %v4079_v14  ;;  %v3987_v37 = vld [vmem:[%s13373_s6 + $0x300] sm:$0xff] }
 0x2e7   :  { %v3544_v43 = vpop.f32.mrf.mxu0  ;;  %v3991_v14 = vld [vmem:[%s13373_s6 + $0x320] sm:$0xff] }
 0x2e9   :  { %3814 = vmatpush2.bf16.msra.mxu1 %v8752_v7  ;;  %v3545_v57 = vpop.f32.mrf.mxu0  ;;  %v3903_v7 = vld [vmem:[%s13373_s6 + $0x60] sm:$0xff] }
 0x2ea   :  { %3815 = vmatprep.subr.bf16.mxu1 %v8745_v59  ;;  %v4071_v59 = vld [vmem:[%s13373_s6 + $0x5a0] sm:$0xff]  ;;  %v8791_v43 = vcombine.high %v3899_v54, %v3903_v7  ;;  %v8790_v20 = vcombine.low %v3899_v54, %v3903_v7 }
 0x2eb   :  { %8781 = vmatmul.mubr.msk.bf16.vlgmr.msra.gmra.mxu0 %vm3215_vm9, %v10440_v29  ;;  %v1229_v29 = vsub.s32 3, %v9784_v56  ;;  %v3895_v57 = vld [vmem:[%s13373_s6 + $0x20] sm:$0xff] }
 0x2ec   :  { %7006 = vmatpush1.bf16.msra.mxu0 %v8838_v50  ;;  %7037 = vmatprep.mubr.bf16.mxu0 %v11424_v25  ;;  %v4019_v54 = vld [vmem:[%s13373_s6 + $0x400] sm:$0xff] }
 0x2ed   :  { %3816 = vmatpush2.bf16.msra.mxu1 %v8744_v13  ;;  %7007 = vmatprep.subr.bf16.mxu0 %v8831_v61  ;;  %v1230_v27 = vrot.slane %v10960_v51, %v1229_v29  ;;  %v3907_v51 = vld [vmem:[%s13373_s6 + $0x80] sm:$0xff] }
 0x2ee   :  { %3817 = vmatprep.subr.bf16.mxu1 %v8737_v38  ;;  %v8799_v52 = vcombine.high %v3907_v51, %v3911_v10  ;;  %v8798_v31 = vcombine.low %v3907_v51, %v3911_v10  ;;  %v3891_v13 = vld [vmem:[%s13373_s6] sm:$0xff] }
 0x2ef   :  { %v3420_v30 = vadd.f32 %v11266_v6, %v1230_v27  ;;  %v4063_v38 = vld [vmem:[%s13373_s6 + $0x560] sm:$0xff]  ;;  %v8783_v28 = vcombine.high %v3891_v13, %v3895_v57  ;;  %v8782_v22 = vcombine.low %v3891_v13, %v3895_v57 }
 0x2f0   :  { %7008 = vmatpush1.bf16.msra.mxu0 %v8830_v49  ;;  %v4023_v7 = vld [vmem:[%s13373_s6 + $0x420] sm:$0xff] }
 0x2f1   :  { %3818 = vmatpush2.bf16.msra.mxu1 %v8736_v2  ;;  %7009 = vmatprep.subr.bf16.mxu0 %v8823_v60  ;;  %v3461_v36 = vadd.f32 %v11385_v24, %v3420_v30  ;;  %v4011_v2 = vld [vmem:[%s13373_s6 + $0x3c0] sm:$0xff] }
 0x2f2   :  { %3819 = vmatprep.subr.bf16.mxu1 %v8729_v42  ;;  %v4015_v60 = vld [vmem:[%s13373_s6 + $0x3e0] sm:$0xff] }
 0x2f3   :  { %v4055_v42 = vld [vmem:[%s13373_s6 + $0x520] sm:$0xff]  ;;  %v8903_v5 = vcombine.high %v4011_v2, %v4015_v60  ;;  %v8902_v45 = vcombine.low %v4011_v2, %v4015_v60 }
 0x2f4   :  { %7010 = vmatpush1.bf16.msra.mxu0 %v8822_v39  ;;  %v4003_v39 = vld [vmem:[%s13373_s6 + $0x380] sm:$0xff] }
 0x2f5   :  { %3820 = vmatpush2.bf16.msra.mxu1 %v8728_v19  ;;  %7011 = vmatprep.subr.bf16.mxu0 %v8815_v4  ;;  %v4007_v19 = vld [vmem:[%s13373_s6 + $0x3a0] sm:$0xff] }
 0x2f6   :  { %3821 = vmatprep.subr.bf16.mxu1 %v8721_v1  ;;  %v4043_v4 = vld [vmem:[%s13373_s6 + $0x4c0] sm:$0xff]  ;;  %v8895_v27 = vcombine.high %v4003_v39, %v4007_v19 }
 0x2f7   :  { %v4047_v1 = vld [vmem:[%s13373_s6 + $0x4e0] sm:$0xff] }
 0x2f8   :  { %v3499_v12 = vpop.f32.mrf.mxu1  ;;  %7012 = vmatpush1.bf16.msra.mxu0 %v8814_v44  ;;  %v8935_v26 = vcombine.high %v4043_v4, %v4047_v1  ;;  %v3999_v44 = vld [vmem:[%s13373_s6 + $0x360] sm:$0xff]  ;;  %v8934_v51 = vcombine.low %v4043_v4, %v4047_v1 }
 0x2f9   :  { %v3500_v40 = vadd.f32 %v3499_v12, %v11383_v32  ;;  %3822 = vmatpush2.bf16.msra.mxu1 %v8720_v62  ;;  %7013 = vmatprep.subr.bf16.mxu0 %v8807_v16  ;;  %v4067_v32 = vld [vmem:[%s13373_s6 + $0x580] sm:$0xff]  ;;  %v8887_v10 = vcombine.high %v3995_v8, %v3999_v44 }
 0x2fa   :  { %v3501_v6 = vpop.f32.mrf.mxu1  ;;  %3823 = vmatprep.subr.bf16.mxu1 %v8713_v47  ;;  %v8959_v50 = vcombine.high %v4067_v32, %v4071_v59  ;;  %v8958_v41 = vcombine.low %v4067_v32, %v4071_v59  ;;  %v4035_v62 = vld [vmem:[%s13373_s6 + $0x480] sm:$0xff]  ;;  %v8894_v47 = vcombine.low %v4003_v39, %v4007_v19 }
 0x2fb   :  { %v11491_v58 = vadd.f32 %v11406_v3, %v3500_v40  ;;  %v3502_v24 = vadd.f32 %v3501_v6, %v3461_v36  ;;  %v4039_v16 = vld [vmem:[%s13373_s6 + $0x4a0] sm:$0xff]  ;;  %v8879_v40 = vcombine.high %v3987_v37, %v3991_v14 }
 0x2fc   :  { %v3503_v53 = vpop.f32.mrf.mxu1  ;;  %7014 = vmatpush1.bf16.msra.mxu0 %v8806_v21  ;;  %v8927_v30 = vcombine.high %v4035_v62, %v4039_v16  ;;  %v4027_v12 = vld [vmem:[%s13373_s6 + $0x440] sm:$0xff]  ;;  %v8886_v21 = vcombine.low %v3995_v8, %v3999_v44  ;;  %v8926_v36 = vcombine.low %v4035_v62, %v4039_v16 }
 0x2fd   :  { %v3543_v33 = vadd.f32 %v11409_v17, %v3502_v24  ;;  %3824 = vmatpush2.bf16.msra.mxu1 %v8712_v46  ;;  %7015 = vmatprep.subr.bf16.mxu0 %v8799_v52  ;;  %v4059_v17 = vld [vmem:[%s13373_s6 + $0x540] sm:$0xff]  ;;  %v8878_v24 = vcombine.low %v3987_v37, %v3991_v14  ;;  %v8911_v53 = vcombine.high %v4019_v54, %v4023_v7 }
 0x2fe   :  { %v3504_v3 = vpop.f32.mrf.mxu1  ;;  %7046 = vmatprep.subr.bf16.mxu1 %v8967_v48  ;;  %v8951_v49 = vcombine.high %v4059_v17, %v4063_v38  ;;  %v8950_v55 = vcombine.low %v4059_v17, %v4063_v38  ;;  %v4031_v46 = vld [vmem:[%s13373_s6 + $0x460] sm:$0xff] }
 0x2ff   :  { %v3878_v61 = vmax.f32 %v3543_v33, 0.0  ;;  %v8919_v52 = vcombine.high %v4027_v12, %v4031_v46  ;;  %v3979_v6 = vld [vmem:[%s13373_s6 + $0x2c0] sm:$0xff]  ;;  %v8918_v32 = vcombine.low %v4027_v12, %v4031_v46 }
 0x300   :  { %3826 = vmatmul.mubr.bf16.vlgmr.msra.gmra.mxu1 %v10553_v23  ;;  %7016 = vmatpush1.bf16.msra.mxu0 %v8798_v31  ;;  %v4051_v23 = vld [vmem:[%s13373_s6 + $0x500] sm:$0xff] }
 0x301   :  { %v11513_v35 = vpack.c.bf16 %v3878_v61, %v3878_v61  ;;  %7047 = vmatpush1.bf16.msra.mxu1 %v8966_v9  ;;  %7017 = vmatprep.subr.bf16.mxu0 %v8791_v43  ;;  %v8943_v34 = vcombine.high %v4051_v23, %v4055_v42  ;;  %v8942_v15 = vcombine.low %v4051_v23, %v4055_v42  ;;  %v3983_v48 = vld [vmem:[%s13373_s6 + $0x2e0] sm:$0xff] }
 0x302   :  { %7048 = vmatprep.subr.bf16.mxu1 %v8959_v50  ;;  %v8871_v59 = vcombine.high %v3979_v6, %v3983_v48  ;;  %v3971_v31 = vld [vmem:[%s13373_s6 + $0x280] sm:$0xff]  ;;  %v8870_v3 = vcombine.low %v3979_v6, %v3983_v48  ;;  %v8910_v50 = vcombine.low %v4019_v54, %v4023_v7 }
 0x303   :  { %7078 = vmatprep.mubr.bf16.mxu1 %v11513_v35  ;;  %v3975_v33 = vld [vmem:[%s13373_s6 + $0x2a0] sm:$0xff] }
 0x304   :  { %7018 = vmatpush1.bf16.msra.mxu0 %v8790_v20  ;;  %v4139_v9 = vld [vmem:[%s13373_s6 + $0x7c0] sm:$0xff]  ;;  %v8863_v13 = vcombine.high %v3971_v31, %v3975_v33 }
 0x305   :  { %7049 = vmatpush1.bf16.msra.mxu1 %v8958_v41  ;;  %7019 = vmatprep.subr.bf16.mxu0 %v8783_v28  ;;  %v4143_v43 = vld [vmem:[%s13373_s6 + $0x7e0] sm:$0xff]  ;;  %v8862_v41 = vcombine.low %v3971_v31, %v3975_v33 }
 0x306   :  { %7050 = vmatprep.subr.bf16.mxu1 %v8951_v49  ;;  %v9031_v57 = vcombine.high %v4139_v9, %v4143_v43  ;;  %v3963_v61 = vld [vmem:[%s13373_s6 + $0x240] sm:$0xff]  ;;  %v9030_v28 = vcombine.low %v4139_v9, %v4143_v43 }
 0x307   :  { %v3967_v17 = vld [vmem:[%s13373_s6 + $0x260] sm:$0xff] }
 0x308   :  { %7020 = vmatpush1.bf16.msra.mxu0 %v8782_v22  ;;  %v4131_v38 = vld [vmem:[%s13373_s6 + $0x780] sm:$0xff]  ;;  %v8855_v49 = vcombine.high %v3963_v61, %v3967_v17 }
 0x309   :  { %7051 = vmatpush1.bf16.msra.mxu1 %v8950_v55  ;;  %7021 = vmatprep.subr.bf16.mxu0 %v8903_v5  ;;  %v4135_v20 = vld [vmem:[%s13373_s6 + $0x7a0] sm:$0xff]  ;;  %v8854_v55 = vcombine.low %v3963_v61, %v3967_v17 }
 0x30a   :  { %7052 = vmatprep.subr.bf16.mxu1 %v8943_v34  ;;  %v9023_v2 = vcombine.high %v4131_v38, %v4135_v20  ;;  %v3955_v60 = vld [vmem:[%s13373_s6 + $0x200] sm:$0xff]  ;;  %v9022_v5 = vcombine.low %v4131_v38, %v4135_v20 }
 0x30b   :  { %v3959_v23 = vld [vmem:[%s13373_s6 + $0x220] sm:$0xff] }
 0x30c   :  { %7022 = vmatpush2.bf16.msra.mxu0 %v8902_v45  ;;  %v4123_v42 = vld [vmem:[%s13373_s6 + $0x740] sm:$0xff]  ;;  %v8847_v34 = vcombine.high %v3955_v60, %v3959_v23 }
 0x30d   :  { %7053 = vmatpush1.bf16.msra.mxu1 %v8942_v15  ;;  %7023 = vmatprep.subr.bf16.mxu0 %v8895_v27  ;;  %v4127_v22 = vld [vmem:[%s13373_s6 + $0x760] sm:$0xff]  ;;  %v8846_v27 = vcombine.low %v3955_v60, %v3959_v23 }
 0x30e   :  { %7054 = vmatprep.subr.bf16.mxu1 %v8935_v26  ;;  %v9015_v39 = vcombine.high %v4123_v42, %v4127_v22  ;;  %v4203_v19 = vld [vmem:[%s13373_s6 + $0x9c0] sm:$0xff]  ;;  %v3875_v26 = vmax.f32 %v11172_v0, 0.0  ;;  %v9014_v8 = vcombine.low %v4123_v42, %v4127_v22 }
 0x30f   :  { %v4207_v4 = vld [vmem:[%s13373_s6 + $0x9e0] sm:$0xff] }
 0x310   :  { %7024 = vmatpush2.bf16.msra.mxu0 %v8894_v47  ;;  %v4115_v1 = vld [vmem:[%s13373_s6 + $0x700] sm:$0xff]  ;;  %v9095_v62 = vcombine.high %v4203_v19, %v4207_v4  ;;  %v9094_v37 = vcombine.low %v4203_v19, %v4207_v4  ;;  %v11641_v14 = vpack.c.bf16 %v3875_v26, %v3875_v26 }
 0x311   :  { %7055 = vmatpush1.bf16.msra.mxu1 %v8934_v51  ;;  %7025 = vmatprep.subr.bf16.mxu0 %v8887_v10  ;;  %v4119_v45 = vld [vmem:[%s13373_s6 + $0x720] sm:$0xff] }
 0x312   :  { %7056 = vmatprep.subr.bf16.mxu1 %v8927_v30  ;;  %v9007_v16 = vcombine.high %v4115_v1, %v4119_v45  ;;  %v4195_v47 = vld [vmem:[%s13373_s6 + $0x980] sm:$0xff]  ;;  %v9006_v12 = vcombine.low %v4115_v1, %v4119_v45 }
 0x313   :  { %v4199_v51 = vld [vmem:[%s13373_s6 + $0x9a0] sm:$0xff] }
 0x314   :  { %7026 = vmatpush2.bf16.msra.mxu0 %v8886_v21  ;;  %v4107_v0 = vld [vmem:[%s13373_s6 + $0x6c0] sm:$0xff]  ;;  %v9087_v21 = vcombine.high %v4195_v47, %v4199_v51  ;;  %v9086_v54 = vcombine.low %v4195_v47, %v4199_v51 }
 0x315   :  { %7057 = vmatpush1.bf16.msra.mxu1 %v8926_v36  ;;  %7027 = vmatprep.subr.bf16.mxu0 %v8879_v40  ;;  %v4111_v10 = vld [vmem:[%s13373_s6 + $0x6e0] sm:$0xff] }
 0x316   :  { %7058 = vmatprep.subr.bf16.mxu1 %v8919_v52  ;;  %v8999_v36 = vcombine.high %v4107_v0, %v4111_v10  ;;  %v4187_v40 = vld [vmem:[%s13373_s6 + $0x940] sm:$0xff]  ;;  %v8998_v7 = vcombine.low %v4107_v0, %v4111_v10 }
 0x317   :  { %v4191_v52 = vld [vmem:[%s13373_s6 + $0x960] sm:$0xff] }
 0x318   :  { %7028 = vmatpush2.bf16.msra.mxu0 %v8878_v24  ;;  %v4099_v6 = vld [vmem:[%s13373_s6 + $0x680] sm:$0xff]  ;;  %v9079_v24 = vcombine.high %v4187_v40, %v4191_v52  ;;  %v9078_v9 = vcombine.low %v4187_v40, %v4191_v52 }
 0x319   :  { %7059 = vmatpush1.bf16.msra.mxu1 %v8918_v32  ;;  %7029 = vmatprep.subr.bf16.mxu0 %v8871_v59  ;;  %v4103_v48 = vld [vmem:[%s13373_s6 + $0x6a0] sm:$0xff] }
 0x31a   :  { %7060 = vmatprep.subr.bf16.mxu1 %v8911_v53  ;;  %v8991_v32 = vcombine.high %v4099_v6, %v4103_v48  ;;  %v4179_v59 = vld [vmem:[%s13373_s6 + $0x900] sm:$0xff]  ;;  %v8990_v43 = vcombine.low %v4099_v6, %v4103_v48 }
 0x31b   :  { %v4183_v53 = vld [vmem:[%s13373_s6 + $0x920] sm:$0xff] }
 0x31c   :  { %7030 = vmatpush2.bf16.msra.mxu0 %v8870_v3  ;;  %v4091_v31 = vld [vmem:[%s13373_s6 + $0x640] sm:$0xff]  ;;  %v9071_v3 = vcombine.high %v4179_v59, %v4183_v53  ;;  %v9070_v38 = vcombine.low %v4179_v59, %v4183_v53 }
 0x31d   :  { %7061 = vmatpush1.bf16.msra.mxu1 %v8910_v50  ;;  %7031 = vmatprep.subr.bf16.mxu0 %v8863_v13  ;;  %v4095_v33 = vld [vmem:[%s13373_s6 + $0x660] sm:$0xff] }
 0x31e   :  { %7062 = vmatprep.subr.bf16.mxu1 %v9031_v57  ;;  %v8983_v50 = vcombine.high %v4091_v31, %v4095_v33  ;;  %v4171_v13 = vld [vmem:[%s13373_s6 + $0x8c0] sm:$0xff]  ;;  %v8982_v20 = vcombine.low %v4091_v31, %v4095_v33 }
 0x31f   :  { %v4175_v57 = vld [vmem:[%s13373_s6 + $0x8e0] sm:$0xff] }
 0x320   :  { %7032 = vmatpush2.bf16.msra.mxu0 %v8862_v41  ;;  %v4083_v61 = vld [vmem:[%s13373_s6 + $0x600] sm:$0xff]  ;;  %v9063_v41 = vcombine.high %v4171_v13, %v4175_v57  ;;  %v9062_v22 = vcombine.low %v4171_v13, %v4175_v57 }
 0x321   :  { %7063 = vmatpush2.bf16.msra.mxu1 %v9030_v28  ;;  %7033 = vmatprep.subr.bf16.mxu0 %v8855_v49  ;;  %v4087_v17 = vld [vmem:[%s13373_s6 + $0x620] sm:$0xff] }
 0x322   :  { %7064 = vmatprep.subr.bf16.mxu1 %v9023_v2  ;;  %v8975_v28 = vcombine.high %v4083_v61, %v4087_v17  ;;  %v4163_v49 = vld [vmem:[%s13373_s6 + $0x880] sm:$0xff] }
 0x323   :  { %v11624_v15 = vpop.f32.mrf.mxu0  ;;  %v4167_v2 = vld [vmem:[%s13373_s6 + $0x8a0] sm:$0xff] }
 0x324   :  { %7034 = vmatpush2.bf16.msra.mxu0 %v8854_v55  ;;  %v4331_v60 = vld [vmem:[%s13373_s6 + $0xdc0] sm:$0xff]  ;;  %v8974_v55 = vcombine.low %v4083_v61, %v4087_v17  ;;  %v9054_v26 = vcombine.low %v4163_v49, %v4167_v2 }
 0x325   :  { %7065 = vmatpush2.bf16.msra.mxu1 %v9022_v5  ;;  %v11627_v44 = vpop.f32.mrf.mxu0  ;;  %7035 = vmatprep.subr.bf16.mxu0 %v8847_v34  ;;  %v4335_v23 = vld [vmem:[%s13373_s6 + $0xde0] sm:$0xff]  ;;  %v9055_v5 = vcombine.high %v4163_v49, %v4167_v2  ;;  %v3877_v34 = vmax.f32 %v11491_v58, 0.0  ;;  %v11767_v49 = vld [vmem:[%s13373_s6 + $0x5c8] sm:$0xff] }
 0x326   :  { %7066 = vmatprep.subr.bf16.mxu1 %v9015_v39  ;;  %v4155_v19 = vld [vmem:[%s13373_s6 + $0x840] sm:$0xff]  ;;  %v9223_v1 = vcombine.high %v4331_v60, %v4335_v23 }
 0x327   :  { %v3585_v30 = vpop.f32.mrf.mxu0  ;;  %v4159_v4 = vld [vmem:[%s13373_s6 + $0x860] sm:$0xff] }
 0x328   :  { %7036 = vmatpush2.bf16.msra.mxu0 %v8846_v27  ;;  %v4323_v45 = vld [vmem:[%s13373_s6 + $0xd80] sm:$0xff] }
 0x329   :  { %7067 = vmatpush2.bf16.msra.mxu1 %v9014_v8  ;;  %v3586_v46 = vpop.f32.mrf.mxu0  ;;  %7087 = vmatprep.subr.bf16.mxu0 %v9095_v62  ;;  %v4327_v58 = vld [vmem:[%s13373_s6 + $0xda0] sm:$0xff]  ;;  %v9047_v8 = vcombine.high %v4155_v19, %v4159_v4  ;;  %v9222_v62 = vcombine.low %v4331_v60, %v4335_v23  ;;  %v11772_v60 = vld [vmem:[%s13373_s6 + $0x5e8] sm:$0xff] }
 0x32a   :  { %7068 = vmatprep.subr.bf16.mxu1 %v9007_v16  ;;  %v11709_v16 = vpack.c.bf16 %v3877_v34, %v3877_v34  ;;  %v4147_v51 = vld [vmem:[%s13373_s6 + $0x800] sm:$0xff]  ;;  %v9215_v10 = vcombine.high %v4323_v45, %v4327_v58  ;;  %v9046_v46 = vcombine.low %v4155_v19, %v4159_v4 }
 0x32b   :  { %7038 = vmatmul.mubr.bf16.vlgmr.msra.gmra.mxu0 %v11641_v14  ;;  %v4151_v0 = vld [vmem:[%s13373_s6 + $0x820] sm:$0xff] }
 0x32c   :  { %7088 = vmatpush1.bf16.msra.mxu0 %v9094_v37  ;;  %v4315_v30 = vld [vmem:[%s13373_s6 + $0xd40] sm:$0xff] }
 0x32d   :  { %7069 = vmatpush2.bf16.msra.mxu1 %v9006_v12  ;;  %7089 = vmatprep.subr.bf16.mxu0 %v9087_v21  ;;  %v4319_v37 = vld [vmem:[%s13373_s6 + $0xd60] sm:$0xff]  ;;  %v9039_v21 = vcombine.high %v4147_v51, %v4151_v0 }
 0x32e   :  { %7070 = vmatprep.subr.bf16.mxu1 %v8999_v36  ;;  %v9214_v36 = vcombine.low %v4323_v45, %v4327_v58  ;;  %v4267_v52 = vld [vmem:[%s13373_s6 + $0xbc0] sm:$0xff]  ;;  %v9207_v48 = vcombine.high %v4315_v30, %v4319_v37  ;;  %v9206_v53 = vcombine.low %v4315_v30, %v4319_v37  ;;  %v1233_v37 = vsub.s32 4, %v9784_v56 }
 0x32f   :  { %v4271_v6 = vld [vmem:[%s13373_s6 + $0xbe0] sm:$0xff] }
 0x330   :  { %7090 = vmatpush1.bf16.msra.mxu0 %v9086_v54  ;;  %v4307_v54 = vld [vmem:[%s13373_s6 + $0xd00] sm:$0xff]  ;;  %v9159_v59 = vcombine.high %v4267_v52, %v4271_v6  ;;  %v9158_v13 = vcombine.low %v4267_v52, %v4271_v6 }
 0x331   :  { %7071 = vmatpush2.bf16.msra.mxu1 %v8998_v7  ;;  %7091 = vmatprep.subr.bf16.mxu0 %v9079_v24  ;;  %v4311_v7 = vld [vmem:[%s13373_s6 + $0xd20] sm:$0xff] }
 0x332   :  { %7072 = vmatprep.subr.bf16.mxu1 %v8991_v32  ;;  %v9038_v32 = vcombine.low %v4147_v51, %v4151_v0  ;;  %v4259_v33 = vld [vmem:[%s13373_s6 + $0xb80] sm:$0xff]  ;;  %v9198_v61 = vcombine.low %v4307_v54, %v4311_v7 }
 0x333   :  { %v4251_v17 = vld [vmem:[%s13373_s6 + $0xb40] sm:$0xff] }
 0x334   :  { %7092 = vmatpush1.bf16.msra.mxu0 %v9078_v9  ;;  %v4263_v9 = vld [vmem:[%s13373_s6 + $0xba0] sm:$0xff] }
 0x335   :  { %7073 = vmatpush2.bf16.msra.mxu1 %v8990_v43  ;;  %7093 = vmatprep.subr.bf16.mxu0 %v9071_v3  ;;  %v9199_v43 = vcombine.high %v4307_v54, %v4311_v7  ;;  %v4299_v3 = vld [vmem:[%s13373_s6 + $0xcc0] sm:$0xff]  ;;  %v9151_v57 = vcombine.high %v4259_v33, %v4263_v9  ;;  %v9150_v2 = vcombine.low %v4259_v33, %v4263_v9 }
 0x336   :  { %7074 = vmatprep.subr.bf16.mxu1 %v8983_v50  ;;  %v4303_v50 = vld [vmem:[%s13373_s6 + $0xce0] sm:$0xff] }
 0x337   :  { %v4247_v34 = vld [vmem:[%s13373_s6 + $0xb20] sm:$0xff] }
 0x338   :  { %v11692_v42 = vpop.f32.mrf.mxu1  ;;  %7094 = vmatpush1.bf16.msra.mxu0 %v9070_v38  ;;  %v4255_v38 = vld [vmem:[%s13373_s6 + $0xb60] sm:$0xff] }
 0x339   :  { %7075 = vmatpush2.bf16.msra.mxu1 %v8982_v20  ;;  %7095 = vmatprep.subr.bf16.mxu0 %v9063_v41  ;;  %v9191_v20 = vcombine.high %v4299_v3, %v4303_v50  ;;  %v4291_v41 = vld [vmem:[%s13373_s6 + $0xc80] sm:$0xff]  ;;  %v9143_v23 = vcombine.high %v4251_v17, %v4255_v38  ;;  %v9142_v45 = vcombine.low %v4251_v17, %v4255_v38 }
 0x33a   :  { %v11695_v39 = vpop.f32.mrf.mxu1  ;;  %7076 = vmatprep.subr.bf16.mxu1 %v8975_v28  ;;  %v4295_v28 = vld [vmem:[%s13373_s6 + $0xca0] sm:$0xff] }
 0x33b   :  { %v9183_v19 = vcombine.high %v4291_v41, %v4295_v28  ;;  %v4283_v4 = vld [vmem:[%s13373_s6 + $0xc40] sm:$0xff] }
 0x33c   :  { %v3626_v27 = vpop.f32.mrf.mxu1  ;;  %7096 = vmatpush1.bf16.msra.mxu0 %v9062_v22  ;;  %v9190_v22 = vcombine.low %v4299_v3, %v4303_v50  ;;  %v4279_v51 = vld [vmem:[%s13373_s6 + $0xc20] sm:$0xff] }
 0x33d   :  { %7077 = vmatpush2.bf16.msra.mxu1 %v8974_v55  ;;  %7097 = vmatprep.subr.bf16.mxu0 %v9055_v5  ;;  %v8968_v55 = vcombine.low %v11767_v49, %v11772_v60  ;;  %v4243_v5 = vld [vmem:[%s13373_s6 + $0xb00] sm:$0xff]  ;;  %v9182_v27 = vcombine.low %v4291_v41, %v4295_v28 }
 0x33e   :  { %v3627_v47 = vpop.f32.mrf.mxu1  ;;  %7128 = vmatprep.subr.bf16.mxu1 %v9223_v1  ;;  %v4287_v1 = vld [vmem:[%s13373_s6 + $0xc60] sm:$0xff]  ;;  %v9135_v58 = vcombine.high %v4243_v5, %v4247_v34  ;;  %v9134_v0 = vcombine.low %v4243_v5, %v4247_v34  ;;  %v3948_v34 = vld [vmem:[%s13373_s6 + $0x1c8] sm:$0xff] }
 0x33f   :  { %v4275_v47 = vld [vmem:[%s13373_s6 + $0xc00] sm:$0xff]  ;;  %v9174_v30 = vcombine.low %v4283_v4, %v4287_v1 }
 0x340   :  { %7079 = vmatmul.mubr.bf16.vlgmr.msra.gmra.mxu1 %v11709_v16  ;;  %v11724_v12 = vpop.f32.mrf.mxu1  ;;  %7098 = vmatpush1.bf16.msra.mxu0 %v9054_v26  ;;  %v4235_v26 = vld [vmem:[%s13373_s6 + $0xac0] sm:$0xff] }
 0x341   :  { %7099 = vmatprep.subr.bf16.mxu0 %v9047_v8  ;;  %7129 = vmatpush1.bf16.msra.mxu1 %v9222_v62  ;;  %v4239_v8 = vld [vmem:[%s13373_s6 + $0xae0] sm:$0xff]  ;;  %v9175_v62 = vcombine.high %v4283_v4, %v4287_v1 }
 0x342   :  { %v11726_v40 = vpop.f32.mrf.mxu1  ;;  %7130 = vmatprep.subr.bf16.mxu1 %v9215_v10  ;;  %v9127_v10 = vcombine.high %v4235_v26, %v4239_v8  ;;  %v4395_v52 = vld [vmem:[%s13373_s6 + $0xfc0] sm:$0xff]  ;;  %v9126_v54 = vcombine.low %v4235_v26, %v4239_v8 }
 0x343   :  { %v4399_v6 = vld [vmem:[%s13373_s6 + $0xfe0] sm:$0xff] }
 0x344   :  { %v3708_v24 = vpop.f32.mrf.mxu1  ;;  %7100 = vmatpush1.bf16.msra.mxu0 %v9046_v46  ;;  %v4227_v46 = vld [vmem:[%s13373_s6 + $0xa80] sm:$0xff]  ;;  %v9287_v33 = vcombine.high %v4395_v52, %v4399_v6 }
 0x345   :  { %7101 = vmatprep.subr.bf16.mxu0 %v9039_v21  ;;  %7131 = vmatpush1.bf16.msra.mxu1 %v9214_v36  ;;  %v4231_v21 = vld [vmem:[%s13373_s6 + $0xaa0] sm:$0xff]  ;;  %v9167_v36 = vcombine.high %v4275_v47, %v4279_v51  ;;  %v9166_v24 = vcombine.low %v4275_v47, %v4279_v51 }
 0x346   :  { %v3709_v31 = vpop.f32.mrf.mxu1  ;;  %7132 = vmatprep.subr.bf16.mxu1 %v9207_v48  ;;  %v1237_v48 = vsub.s32 5, %v9784_v56  ;;  %v9119_v7 = vcombine.high %v4227_v46, %v4231_v21  ;;  %v4387_v9 = vld [vmem:[%s13373_s6 + $0xf80] sm:$0xff]  ;;  %v9118_v50 = vcombine.low %v4227_v46, %v4231_v21 }
 0x347   :  { %v4223_v31 = vld [vmem:[%s13373_s6 + $0xa60] sm:$0xff] }
 0x348   :  { %7102 = vmatpush1.bf16.msra.mxu0 %v9038_v32  ;;  %v11817_v32 = vld [vmem:[%s13372_s5] sm:$0xff] }
 0x349   :  { %7103 = vmatprep.subr.bf16.mxu0 %v9159_v59  ;;  %7133 = vmatpush1.bf16.msra.mxu1 %v9206_v53  ;;  %v1234_v59 = vrot.slane %v11817_v32, %v1233_v37  ;;  %v4219_v53 = vld [vmem:[%s13373_s6 + $0xa40] sm:$0xff]  ;;  %v1238_v3 = vrot.slane %v11817_v32, %v1237_v48 }
 0x34a   :  { %7134 = vmatprep.subr.bf16.mxu1 %v9199_v43  ;;  %v4391_v43 = vld [vmem:[%s13373_s6 + $0xfa0] sm:$0xff] }
 0x34b   :  { %v4211_v17 = vld [vmem:[%s13373_s6 + $0xa00] sm:$0xff] }
 0x34c   :  { %7104 = vmatpush2.bf16.msra.mxu0 %v9158_v13  ;;  %v9111_v13 = vcombine.high %v4219_v53, %v4223_v31  ;;  %v4215_v38 = vld [vmem:[%s13373_s6 + $0xa20] sm:$0xff] }
 0x34d   :  { %7105 = vmatprep.subr.bf16.mxu0 %v9151_v57  ;;  %7135 = vmatpush1.bf16.msra.mxu1 %v9198_v61  ;;  %v9286_v57 = vcombine.low %v4395_v52, %v4399_v6  ;;  %v3582_v61 = vadd.f32 %v11624_v15, %v1234_v59  ;;  %v4379_v41 = vld [vmem:[%s13373_s6 + $0xf40] sm:$0xff]  ;;  %v3584_v15 = vadd.f32 %v11627_v44, %v1238_v3  ;;  %v3940_v6 = vld [vmem:[%s13373_s6 + $0x188] sm:$0xff] }
 0x34e   :  { %7136 = vmatprep.subr.bf16.mxu1 %v9191_v20  ;;  %v9279_v20 = vcombine.high %v4387_v9, %v4391_v43  ;;  %v4383_v28 = vld [vmem:[%s13373_s6 + $0xf60] sm:$0xff]  ;;  %v3936_v3 = vld [vmem:[%s13373_s6 + $0x168] sm:$0xff] }
 0x34f   :  { %v3623_v5 = vadd.f32 %v11692_v42, %v3582_v61  ;;  %v9271_v4 = vcombine.high %v4379_v41, %v4383_v28  ;;  %v4371_v44 = vld [vmem:[%s13373_s6 + $0xf00] sm:$0xff]  ;;  %v3625_v42 = vadd.f32 %v11695_v39, %v3584_v15 }
 0x350   :  { %7106 = vmatpush2.bf16.msra.mxu0 %v9150_v2  ;;  %v9110_v2 = vcombine.low %v4219_v53, %v4223_v31  ;;  %v4367_v39 = vld [vmem:[%s13373_s6 + $0xee0] sm:$0xff] }
 0x351   :  { %7107 = vmatprep.subr.bf16.mxu0 %v9143_v23  ;;  %7137 = vmatpush1.bf16.msra.mxu1 %v9190_v22  ;;  %v9103_v23 = vcombine.high %v4211_v17, %v4215_v38  ;;  %v9278_v22 = vcombine.low %v4387_v9, %v4391_v43  ;;  %v3932_v43 = vld [vmem:[%s13373_s6 + $0x148] sm:$0xff]  ;;  %v4339_v15 = vld [vmem:[%s13373_s6 + $0xe00] sm:$0xff] }
 0x352   :  { %7138 = vmatprep.subr.bf16.mxu1 %v9183_v19  ;;  %v3952_v19 = vld [vmem:[%s13373_s6 + $0x1e8] sm:$0xff] }
 0x353   :  { %v8841_v8 = vcombine.high %v3948_v34, %v3952_v19  ;;  %v8840_v53 = vcombine.low %v3948_v34, %v3952_v19  ;;  %v3916_v34 = vld [vmem:[%s13373_s6 + $0xc8] sm:$0xff] }
 0x354   :  { %7108 = vmatpush2.bf16.msra.mxu0 %v9142_v45  ;;  %v4375_v45 = vld [vmem:[%s13373_s6 + $0xf20] sm:$0xff]  ;;  %v3920_v19 = vld [vmem:[%s13373_s6 + $0xe8] sm:$0xff] }
 0x355   :  { %7109 = vmatprep.subr.bf16.mxu0 %v9135_v58  ;;  %7139 = vmatpush1.bf16.msra.mxu1 %v9182_v27  ;;  %v9102_v27 = vcombine.low %v4211_v17, %v4215_v38  ;;  %v8825_v17 = vcombine.high %v3932_v43, %v3936_v3 }
 0x356   :  { %7140 = vmatprep.subr.bf16.mxu1 %v9175_v62  ;;  %v9270_v62 = vcombine.low %v4379_v41, %v4383_v28  ;;  %v3928_v41 = vld [vmem:[%s13373_s6 + $0x128] sm:$0xff] }
 0x358   :  { %7110 = vmatpush2.bf16.msra.mxu0 %v9134_v0  ;;  %v9263_v0 = vcombine.high %v4371_v44, %v4375_v45 }
 0x359   :  { %7111 = vmatprep.subr.bf16.mxu0 %v9127_v10  ;;  %7141 = vmatpush1.bf16.msra.mxu1 %v9174_v30  ;;  %v4363_v30 = vld [vmem:[%s13373_s6 + $0xec0] sm:$0xff] }
 0x35a   :  { %7142 = vmatprep.subr.bf16.mxu1 %v9167_v36  ;;  %v9254_v9 = vcombine.low %v4363_v30, %v4367_v39 }
 0x35c   :  { %7112 = vmatpush2.bf16.msra.mxu0 %v9126_v54  ;;  %v3944_v54 = vld [vmem:[%s13373_s6 + $0x1a8] sm:$0xff] }
 0x35d   :  { %7113 = vmatprep.subr.bf16.mxu0 %v9119_v7  ;;  %7143 = vmatpush1.bf16.msra.mxu1 %v9166_v24  ;;  %v9255_v7 = vcombine.high %v4363_v30, %v4367_v39  ;;  %v4359_v24 = vld [vmem:[%s13373_s6 + $0xea0] sm:$0xff]  ;;  %v8832_v61 = vcombine.low %v3940_v6, %v3944_v54  ;;  %v3892_v39 = vld [vmem:[%s13373_s6 + $0x8] sm:$0xff] }
 0x35e   :  { %7144 = vmatprep.subr.bf16.mxu1 %v9287_v33  ;;  %v8833_v33 = vcombine.high %v3940_v6, %v3944_v54  ;;  %v4012_v6 = vld [vmem:[%s13373_s6 + $0x3c8] sm:$0xff] }
 0x35f   :  { %v4016_v54 = vld [vmem:[%s13373_s6 + $0x3e8] sm:$0xff] }
 0x360   :  { %7114 = vmatpush2.bf16.msra.mxu0 %v9118_v50 }
 0x361   :  { %7115 = vmatprep.subr.bf16.mxu0 %v9111_v13  ;;  %7145 = vmatpush2.bf16.msra.mxu1 %v9286_v57  ;;  %v4347_v13 = vld [vmem:[%s13373_s6 + $0xe40] sm:$0xff] }
 0x362   :  { %7146 = vmatprep.subr.bf16.mxu1 %v9279_v20  ;;  %v4351_v57 = vld [vmem:[%s13373_s6 + $0xe60] sm:$0xff]  ;;  %v3924_v20 = vld [vmem:[%s13373_s6 + $0x108] sm:$0xff] }
 0x363   :  { %v3663_v1 = vpop.f32.mrf.mxu0  ;;  %v9239_v28 = vcombine.high %v4347_v13, %v4351_v57 }
 0x364   :  { %v3664_v58 = vadd.f32 %v3663_v1, %v3623_v5  ;;  %7116 = vmatpush2.bf16.msra.mxu0 %v9110_v2  ;;  %v4343_v2 = vld [vmem:[%s13373_s6 + $0xe20] sm:$0xff]  ;;  %v9238_v5 = vcombine.low %v4347_v13, %v4351_v57  ;;  %v8816_v1 = vcombine.low %v3924_v20, %v3928_v41  ;;  %v3988_v57 = vld [vmem:[%s13373_s6 + $0x308] sm:$0xff] }
 0x365   :  { %v3665_v26 = vpop.f32.mrf.mxu0  ;;  %7117 = vmatprep.subr.bf16.mxu0 %v9103_v23  ;;  %7147 = vmatpush2.bf16.msra.mxu1 %v9278_v22  ;;  %v8824_v23 = vcombine.low %v3932_v43, %v3936_v3  ;;  %v8817_v22 = vcombine.high %v3924_v20, %v3928_v41  ;;  %v3996_v43 = vld [vmem:[%s13373_s6 + $0x348] sm:$0xff] }
 0x366   :  { %v3705_v47 = vadd.f32 %v11724_v12, %v3664_v58  ;;  %v3666_v51 = vadd.f32 %v3665_v26, %v3625_v42  ;;  %7148 = vmatprep.subr.bf16.mxu1 %v9271_v4  ;;  %v9262_v12 = vcombine.low %v4371_v44, %v4375_v45  ;;  %v9231_v4 = vcombine.high %v4339_v15, %v4343_v2  ;;  %v3908_v42 = vld [vmem:[%s13373_s6 + $0x88] sm:$0xff] }
 0x367   :  { %v3667_v10 = vpop.f32.mrf.mxu0  ;;  %v8809_v44 = vcombine.high %v3916_v34, %v3920_v19  ;;  %v9230_v45 = vcombine.low %v4339_v15, %v4343_v2  ;;  %v3912_v58 = vld [vmem:[%s13373_s6 + $0xa8] sm:$0xff]  ;;  %v8808_v26 = vcombine.low %v3916_v34, %v3920_v19 }
 0x368   :  { %v3707_v46 = vadd.f32 %v11726_v40, %v3666_v51  ;;  %7118 = vmatpush2.bf16.msra.mxu0 %v9102_v27  ;;  %v3879_v21 = vmax.f32 %v3705_v47, 0.0  ;;  %v4355_v40 = vld [vmem:[%s13373_s6 + $0xe80] sm:$0xff]  ;;  %v8969_v27 = vcombine.high %v11767_v49, %v11772_v60  ;;  %v3904_v47 = vld [vmem:[%s13373_s6 + $0x68] sm:$0xff] }
 0x369   :  { %v3668_v36 = vpop.f32.mrf.mxu0  ;;  %7169 = vmatprep.subr.bf16.mxu0 %v8841_v8  ;;  %7149 = vmatpush2.bf16.msra.mxu1 %v9270_v62  ;;  %v9247_v50 = vcombine.high %v4355_v40, %v4359_v24  ;;  %v9246_v38 = vcombine.low %v4355_v40, %v4359_v24  ;;  %v8801_v8 = vcombine.high %v3908_v42, %v3912_v58  ;;  %v3900_v62 = vld [vmem:[%s13373_s6 + $0x48] sm:$0xff] }
 0x36a   :  { %v3880_v52 = vmax.f32 %v3707_v46, 0.0  ;;  %7150 = vmatprep.subr.bf16.mxu1 %v9263_v0  ;;  %v11887_v31 = vpack.c.bf16 %v3879_v21, %v3879_v21  ;;  %v8800_v0 = vcombine.low %v3908_v42, %v3912_v58  ;;  %v8793_v10 = vcombine.high %v3900_v62, %v3904_v47  ;;  %v3896_v46 = vld [vmem:[%s13373_s6 + $0x28] sm:$0xff] }
 0x36b   :  { %v8792_v36 = vcombine.low %v3900_v62, %v3904_v47  ;;  %v8905_v40 = vcombine.high %v4012_v6, %v4016_v54  ;;  %v4004_v24 = vld [vmem:[%s13373_s6 + $0x388] sm:$0xff] }
 0x36c   :  { %v11885_v59 = vpack.c.bf16 %v3880_v52, %v3880_v52  ;;  %v4000_v3 = vld [vmem:[%s13373_s6 + $0x368] sm:$0xff] }
 0x36d   :  { %7151 = vmatpush2.bf16.msra.mxu1 %v9262_v12  ;;  %v8785_v12 = vcombine.high %v3892_v39, %v3896_v46  ;;  %v8889_v13 = vcombine.high %v3996_v43, %v4000_v3  ;;  %v3980_v20 = vld [vmem:[%s13373_s6 + $0x2c8] sm:$0xff] }
 0x36e   :  { %7119 = vmatprep.mubr.bf16.mxu0 %v11885_v59  ;;  %7152 = vmatprep.subr.bf16.mxu1 %v9255_v7  ;;  %v8784_v7 = vcombine.low %v3892_v39, %v3896_v46  ;;  %v3984_v41 = vld [vmem:[%s13373_s6 + $0x2e8] sm:$0xff] }
 0x36f   :  { %7120 = vmatmul.mubr.bf16.vlgmr.msra.gmra.mxu0 %v11887_v31  ;;  %v8873_v15 = vcombine.high %v3980_v20, %v3984_v41  ;;  %v3972_v2 = vld [vmem:[%s13373_s6 + $0x288] sm:$0xff] }
 0x370   :  { %7170 = vmatpush1.bf16.msra.mxu0 %v8840_v53  ;;  %7201 = vmatprep.mubr.bf16.mxu0 %v11424_v25  ;;  %v4008_v53 = vld [vmem:[%s13373_s6 + $0x3a8] sm:$0xff] }
 0x371   :  { %7171 = vmatprep.subr.bf16.mxu0 %v8833_v33  ;;  %7153 = vmatpush2.bf16.msra.mxu1 %v9254_v9  ;;  %v8904_v33 = vcombine.low %v4012_v6, %v4016_v54  ;;  %v8897_v9 = vcombine.high %v4004_v24, %v4008_v53  ;;  %v3964_v34 = vld [vmem:[%s13373_s6 + $0x248] sm:$0xff] }
 0x372   :  { %7154 = vmatprep.subr.bf16.mxu1 %v9247_v50  ;;  %v8896_v50 = vcombine.low %v4004_v24, %v4008_v53  ;;  %v3968_v19 = vld [vmem:[%s13373_s6 + $0x268] sm:$0xff] }
 0x373   :  { %v8856_v58 = vcombine.low %v3964_v34, %v3968_v19  ;;  %v4208_v62 = vld [vmem:[%s13373_s6 + $0x9e8] sm:$0xff] }
 0x374   :  { %7172 = vmatpush1.bf16.msra.mxu0 %v8832_v61  ;;  %v3992_v61 = vld [vmem:[%s13373_s6 + $0x328] sm:$0xff] }
 0x375   :  { %7173 = vmatprep.subr.bf16.mxu0 %v8825_v17  ;;  %7155 = vmatpush2.bf16.msra.mxu1 %v9246_v38  ;;  %v8888_v17 = vcombine.low %v3996_v43, %v4000_v3  ;;  %v8881_v38 = vcombine.high %v3988_v57, %v3992_v61  ;;  %v4196_v46 = vld [vmem:[%s13373_s6 + $0x988] sm:$0xff] }
 0x376   :  { %7156 = vmatprep.subr.bf16.mxu1 %v9239_v28  ;;  %v8880_v28 = vcombine.low %v3988_v57, %v3992_v61  ;;  %v4188_v54 = vld [vmem:[%s13373_s6 + $0x948] sm:$0xff] }
 0x377   :  { %v4184_v43 = vld [vmem:[%s13373_s6 + $0x928] sm:$0xff] }
 0x378   :  { %7174 = vmatpush1.bf16.msra.mxu0 %v8824_v23  ;;  %v3976_v23 = vld [vmem:[%s13373_s6 + $0x2a8] sm:$0xff] }
 0x379   :  { %7175 = vmatprep.subr.bf16.mxu0 %v8817_v22  ;;  %7157 = vmatpush2.bf16.msra.mxu1 %v9238_v5  ;;  %v8872_v22 = vcombine.low %v3980_v20, %v3984_v41  ;;  %v8865_v5 = vcombine.high %v3972_v2, %v3976_v23  ;;  %v4172_v57 = vld [vmem:[%s13373_s6 + $0x8c8] sm:$0xff] }
 0x37a   :  { %7158 = vmatprep.subr.bf16.mxu1 %v9231_v4  ;;  %v8864_v4 = vcombine.low %v3972_v2, %v3976_v23  ;;  %v4176_v61 = vld [vmem:[%s13373_s6 + $0x8e8] sm:$0xff] }
 0x37b   :  { %v9065_v41 = vcombine.high %v4172_v57, %v4176_v61  ;;  %v9064_v23 = vcombine.low %v4172_v57, %v4176_v61  ;;  %v4052_v49 = vld [vmem:[%s13373_s6 + $0x508] sm:$0xff] }
 0x37c   :  { %7176 = vmatpush1.bf16.msra.mxu0 %v8816_v1  ;;  %v8857_v1 = vcombine.high %v3964_v34, %v3968_v19  ;;  %v4156_v34 = vld [vmem:[%s13373_s6 + $0x848] sm:$0xff] }
 0x37d   :  { %7177 = vmatprep.subr.bf16.mxu0 %v8809_v44  ;;  %7159 = vmatpush2.bf16.msra.mxu1 %v9230_v45  ;;  %v3956_v44 = vld [vmem:[%s13373_s6 + $0x208] sm:$0xff] }
 0x37e   :  { %7210 = vmatprep.subr.bf16.mxu1 %v8969_v27  ;;  %v3960_v45 = vld [vmem:[%s13373_s6 + $0x228] sm:$0xff] }
 0x37f   :  { %v4160_v19 = vld [vmem:[%s13373_s6 + $0x868] sm:$0xff] }
 0x380   :  { %v11936_v51 = vpop.f32.mrf.mxu1  ;;  %7178 = vmatpush1.bf16.msra.mxu0 %v8808_v26  ;;  %v8849_v26 = vcombine.high %v3956_v44, %v3960_v45  ;;  %v4056_v60 = vld [vmem:[%s13373_s6 + $0x528] sm:$0xff] }
 0x381   :  { %7179 = vmatprep.subr.bf16.mxu0 %v8801_v8  ;;  %v4204_v8 = vld [vmem:[%s13373_s6 + $0x9c8] sm:$0xff] }
 0x382   :  { %v11938_v30 = vpop.f32.mrf.mxu1  ;;  %v9097_v39 = vcombine.high %v4204_v8, %v4208_v62 }
 0x384   :  { %v3749_v21 = vpop.f32.mrf.mxu1  ;;  %7180 = vmatpush1.bf16.msra.mxu0 %v8800_v0  ;;  %v8848_v0 = vcombine.low %v3956_v44, %v3960_v45 }
 0x385   :  { %7181 = vmatprep.subr.bf16.mxu0 %v8793_v10  ;;  %v4200_v21 = vld [vmem:[%s13373_s6 + $0x9a8] sm:$0xff] }
 0x386   :  { %v3750_v52 = vpop.f32.mrf.mxu1  ;;  %v9089_v6 = vcombine.high %v4196_v46, %v4200_v21  ;;  %v9088_v24 = vcombine.low %v4196_v46, %v4200_v21  ;;  %v4068_v21 = vld [vmem:[%s13373_s6 + $0x588] sm:$0xff] }
 0x388   :  { %7182 = vmatpush1.bf16.msra.mxu0 %v8792_v36 }
 0x389   :  { %7183 = vmatprep.subr.bf16.mxu0 %v8785_v12  ;;  %v9096_v12 = vcombine.low %v4204_v8, %v4208_v62  ;;  %v4148_v8 = vld [vmem:[%s13373_s6 + $0x808] sm:$0xff] }
 0x38a   :  { %v4152_v62 = vld [vmem:[%s13373_s6 + $0x828] sm:$0xff] }
 0x38c   :  { %7184 = vmatpush1.bf16.msra.mxu0 %v8784_v7  ;;  %v4192_v7 = vld [vmem:[%s13373_s6 + $0x968] sm:$0xff] }
 0x38d   :  { %7185 = vmatprep.subr.bf16.mxu0 %v8905_v40  ;;  %v9080_v3 = vcombine.low %v4188_v54, %v4192_v7 }
 0x390   :  { %7186 = vmatpush2.bf16.msra.mxu0 %v8904_v33  ;;  %v9081_v33 = vcombine.high %v4188_v54, %v4192_v7  ;;  %v9040_v54 = vcombine.low %v4148_v8, %v4152_v62 }
 0x391   :  { %7187 = vmatprep.subr.bf16.mxu0 %v8897_v9  ;;  %v4180_v9 = vld [vmem:[%s13373_s6 + $0x908] sm:$0xff] }
 0x394   :  { %7188 = vmatpush2.bf16.msra.mxu0 %v8896_v50  ;;  %v1241_v50 = vsub.s32 6, %v9784_v56 }
 0x395   :  { %7189 = vmatprep.subr.bf16.mxu0 %v8889_v13  ;;  %v9073_v13 = vcombine.high %v4180_v9, %v4184_v43 }
 0x396   :  { %v1242_v20 = vrot.slane %v11817_v32, %v1241_v50 }
 0x398   :  { %7190 = vmatpush2.bf16.msra.mxu0 %v8888_v17  ;;  %v1245_v17 = vsub.s32 7, %v9784_v56 }
 0x399   :  { %7191 = vmatprep.subr.bf16.mxu0 %v8881_v38  ;;  %v9072_v38 = vcombine.low %v4180_v9, %v4184_v43  ;;  %v4264_v9 = vld [vmem:[%s13373_s6 + $0xba8] sm:$0xff] }
 0x39a   :  { %v1246_v2 = vrot.slane %v11817_v32, %v1245_v17  ;;  %v4060_v43 = vld [vmem:[%s13373_s6 + $0x548] sm:$0xff] }
 0x39c   :  { %7192 = vmatpush2.bf16.msra.mxu0 %v8880_v28  ;;  %v4164_v28 = vld [vmem:[%s13373_s6 + $0x888] sm:$0xff] }
 0x39d   :  { %7193 = vmatprep.subr.bf16.mxu0 %v8873_v15  ;;  %v4168_v15 = vld [vmem:[%s13373_s6 + $0x8a8] sm:$0xff] }
 0x39e   :  { %v9056_v32 = vcombine.low %v4164_v28, %v4168_v15 }
 0x3a0   :  { %7194 = vmatpush2.bf16.msra.mxu0 %v8872_v22  ;;  %v3746_v22 = vadd.f32 %v11936_v51, %v1242_v20  ;;  %v9049_v51 = vcombine.high %v4156_v34, %v4160_v19  ;;  %v4252_v20 = vld [vmem:[%s13373_s6 + $0xb48] sm:$0xff] }
 0x3a1   :  { %7195 = vmatprep.subr.bf16.mxu0 %v8865_v5  ;;  %v9057_v5 = vcombine.high %v4164_v28, %v4168_v15 }
 0x3a3   :  { %v3786_v42 = vpop.f32.mrf.mxu0 }
 0x3a4   :  { %7196 = vmatpush2.bf16.msra.mxu0 %v8864_v4  ;;  %v3748_v4 = vadd.f32 %v11938_v30, %v1246_v2  ;;  %v8945_v2 = vcombine.high %v4052_v49, %v4056_v60 }
 0x3a5   :  { %v3788_v27 = vpop.f32.mrf.mxu0  ;;  %7197 = vmatprep.subr.bf16.mxu0 %v8857_v1  ;;  %v3787_v1 = vadd.f32 %v3786_v42, %v3746_v22  ;;  %v9048_v42 = vcombine.low %v4156_v34, %v4160_v19  ;;  %v4248_v22 = vld [vmem:[%s13373_s6 + $0xb28] sm:$0xff] }
 0x3a6   :  { %v3789_v45 = vadd.f32 %v3788_v27, %v3748_v4  ;;  %v9041_v27 = vcombine.high %v4148_v8, %v4152_v62  ;;  %v4048_v34 = vld [vmem:[%s13373_s6 + $0x4e8] sm:$0xff]  ;;  %v8944_v4 = vcombine.low %v4052_v49, %v4056_v60  ;;  %v3953_v49 = vld [vmem:[%s13373_s6 + $0x1f0] sm:$0xff] }
 0x3a7   :  { %v3790_v47 = vpop.f32.mrf.mxu0  ;;  %v4132_v60 = vld [vmem:[%s13373_s6 + $0x788] sm:$0xff] }
 0x3a8   :  { %7198 = vmatpush2.bf16.msra.mxu0 %v8856_v58 }
 0x3a9   :  { %v3791_v10 = vpop.f32.mrf.mxu0  ;;  %7199 = vmatprep.subr.bf16.mxu0 %v8849_v26 }
 0x3ab   :  { %v3868_v36 = vpop.f32.mrf.mxu0 }
 0x3ac   :  { %7200 = vmatpush2.bf16.msra.mxu0 %v8848_v0 }
 0x3ad   :  { %v3870_v52 = vpop.f32.mrf.mxu0  ;;  %7251 = vmatprep.subr.bf16.mxu0 %v9097_v39 }
 0x3af   :  { %7202 = vmatmul.mubr.bf16.vlgmr.msra.gmra.mxu0 %v11641_v14  ;;  %v3872_v40 = vpop.f32.mrf.mxu0 }
 0x3b0   :  { %7252 = vmatpush1.bf16.msra.mxu0 %v9096_v12  ;;  %7283 = vmatprep.mubr.bf16.mxu0 %v11885_v59 }
 0x3b1   :  { %v3873_v53 = vpop.f32.mrf.mxu0  ;;  %7253 = vmatprep.subr.bf16.mxu0 %v9089_v6  ;;  %v4072_v6 = vld [vmem:[%s13373_s6 + $0x5a8] sm:$0xff] }
 0x3b2   :  { %v8960_v57 = vcombine.low %v4068_v21, %v4072_v6 }
 0x3b4   :  { %7254 = vmatpush1.bf16.msra.mxu0 %v9088_v24  ;;  %v8961_v24 = vcombine.high %v4068_v21, %v4072_v6  ;;  %v4224_v6 = vld [vmem:[%s13373_s6 + $0xa68] sm:$0xff] }
 0x3b5   :  { %7255 = vmatprep.subr.bf16.mxu0 %v9081_v33  ;;  %v4260_v33 = vld [vmem:[%s13373_s6 + $0xb88] sm:$0xff] }
 0x3b6   :  { %v9153_v61 = vcombine.high %v4260_v33, %v4264_v9 }
 0x3b8   :  { %7256 = vmatpush1.bf16.msra.mxu0 %v9080_v3  ;;  %v4064_v3 = vld [vmem:[%s13373_s6 + $0x568] sm:$0xff] }
 0x3b9   :  { %7257 = vmatprep.subr.bf16.mxu0 %v9073_v13  ;;  %v8952_v28 = vcombine.low %v4060_v43, %v4064_v3 }
 0x3bc   :  { %7258 = vmatpush1.bf16.msra.mxu0 %v9072_v38  ;;  %v8953_v38 = vcombine.high %v4060_v43, %v4064_v3  ;;  %v4216_v43 = vld [vmem:[%s13373_s6 + $0xa28] sm:$0xff] }
 0x3bd   :  { %7259 = vmatprep.subr.bf16.mxu0 %v9065_v41  ;;  %v4256_v41 = vld [vmem:[%s13373_s6 + $0xb68] sm:$0xff] }
 0x3be   :  { %v9145_v15 = vcombine.high %v4252_v20, %v4256_v41  ;;  %v9144_v19 = vcombine.low %v4252_v20, %v4256_v41  ;;  %v4140_v3 = vld [vmem:[%s13373_s6 + $0x7c8] sm:$0xff]  ;;  %v3949_v41 = vld [vmem:[%s13373_s6 + $0x1d0] sm:$0xff] }
 0x3c0   :  { %v3827_v44 = vpop.f32.mrf.mxu1  ;;  %7260 = vmatpush1.bf16.msra.mxu0 %v9064_v23  ;;  %v4244_v23 = vld [vmem:[%s13373_s6 + $0xb08] sm:$0xff] }
 0x3c1   :  { %v3828_v58 = vadd.f32 %v3827_v44, %v3787_v1  ;;  %7261 = vmatprep.subr.bf16.mxu0 %v9057_v5  ;;  %v4044_v5 = vld [vmem:[%s13373_s6 + $0x4c8] sm:$0xff]  ;;  %v9137_v1 = vcombine.high %v4244_v23, %v4248_v22 }
 0x3c2   :  { %v3829_v26 = vpop.f32.mrf.mxu1  ;;  %v8937_v44 = vcombine.high %v4044_v5, %v4048_v34  ;;  %v8936_v8 = vcombine.low %v4044_v5, %v4048_v34  ;;  %v3945_v5 = vld [vmem:[%s13373_s6 + $0x1b0] sm:$0xff]  ;;  %v4124_v34 = vld [vmem:[%s13373_s6 + $0x748] sm:$0xff] }
 0x3c3   :  { %v3869_v47 = vadd.f32 %v3868_v36, %v3828_v58  ;;  %v3830_v0 = vadd.f32 %v3829_v26, %v3789_v45  ;;  %v4268_v36 = vld [vmem:[%s13373_s6 + $0xbc8] sm:$0xff]  ;;  %v9136_v26 = vcombine.low %v4244_v23, %v4248_v22  ;;  %v3941_v22 = vld [vmem:[%s13373_s6 + $0x190] sm:$0xff] }
 0x3c4   :  { %v3831_v30 = vpop.f32.mrf.mxu1  ;;  %7262 = vmatpush1.bf16.msra.mxu0 %v9056_v32  ;;  %v4236_v32 = vld [vmem:[%s13373_s6 + $0xac8] sm:$0xff] }
 0x3c5   :  { %v3871_v10 = vadd.f32 %v3870_v52, %v3830_v0  ;;  %7263 = vmatprep.subr.bf16.mxu0 %v9049_v51  ;;  %v3881_v39 = vmax.f32 %v3869_v47, 0.0  ;;  %v4272_v52 = vld [vmem:[%s13373_s6 + $0xbe8] sm:$0xff] }
 0x3c6   :  { %v3832_v46 = vpop.f32.mrf.mxu1  ;;  %v9161_v53 = vcombine.high %v4268_v36, %v4272_v52  ;;  %v9160_v13 = vcombine.low %v4268_v36, %v4272_v52  ;;  %v4240_v45 = vld [vmem:[%s13373_s6 + $0xae8] sm:$0xff] }
 0x3c7   :  { %v3882_v12 = vmax.f32 %v3871_v10, 0.0  ;;  %v12068_v40 = vpack.c.bf16 %v3881_v39, %v3881_v39  ;;  %v4036_v58 = vld [vmem:[%s13373_s6 + $0x488] sm:$0xff]  ;;  %v9129_v62 = vcombine.high %v4236_v32, %v4240_v45 }
 0x3c8   :  { %7264 = vmatpush1.bf16.msra.mxu0 %v9048_v42  ;;  %v4040_v51 = vld [vmem:[%s13373_s6 + $0x4a8] sm:$0xff] }
 0x3c9   :  { %v12066_v7 = vpack.c.bf16 %v3882_v12, %v3882_v12  ;;  %7265 = vmatprep.subr.bf16.mxu0 %v9041_v27  ;;  %v8929_v47 = vcombine.high %v4036_v58, %v4040_v51  ;;  %v4228_v0 = vld [vmem:[%s13373_s6 + $0xa88] sm:$0xff]  ;;  %v9128_v27 = vcombine.low %v4236_v32, %v4240_v45  ;;  %v8928_v39 = vcombine.low %v4036_v58, %v4040_v51  ;;  %v3933_v51 = vld [vmem:[%s13373_s6 + $0x150] sm:$0xff] }
 0x3ca   :  { %v4232_v30 = vld [vmem:[%s13373_s6 + $0xaa8] sm:$0xff]  ;;  %v8835_v45 = vcombine.high %v3941_v22, %v3945_v5 }
 0x3cb   :  { %7160 = vmatprep.mubr.bf16.mxu1 %v12066_v7  ;;  %v4028_v42 = vld [vmem:[%s13373_s6 + $0x448] sm:$0xff]  ;;  %v9121_v46 = vcombine.high %v4228_v0, %v4232_v30 }
 0x3cc   :  { %7161 = vmatmul.mubr.bf16.vlgmr.msra.gmra.mxu1 %v12068_v40  ;;  %7266 = vmatpush1.bf16.msra.mxu0 %v9040_v54  ;;  %v4032_v10 = vld [vmem:[%s13373_s6 + $0x468] sm:$0xff]  ;;  %v9120_v54 = vcombine.low %v4228_v0, %v4232_v30  ;;  %v8834_v0 = vcombine.low %v3941_v22, %v3945_v5  ;;  %v3905_v22 = vld [vmem:[%s13373_s6 + $0x70] sm:$0xff] }
 0x3cd   :  { %7211 = vmatpush1.bf16.msra.mxu1 %v8968_v55  ;;  %7242 = vmatprep.mubr.bf16.mxu1 %v11513_v35  ;;  %v9152_v55 = vcombine.low %v4260_v33, %v4264_v9  ;;  %v8921_v21 = vcombine.high %v4028_v42, %v4032_v10  ;;  %v4220_v12 = vld [vmem:[%s13373_s6 + $0xa48] sm:$0xff] }
 0x3ce   :  { %7212 = vmatprep.subr.bf16.mxu1 %v8961_v24  ;;  %7267 = vmatprep.subr.bf16.mxu0 %v9161_v53  ;;  %v4020_v36 = vld [vmem:[%s13373_s6 + $0x408] sm:$0xff]  ;;  %v8920_v24 = vcombine.low %v4028_v42, %v4032_v10  ;;  %v9113_v53 = vcombine.high %v4220_v12, %v4224_v6 }
 0x3cf   :  { %v4024_v52 = vld [vmem:[%s13373_s6 + $0x428] sm:$0xff] }
 0x3d0   :  { %7268 = vmatpush2.bf16.msra.mxu0 %v9160_v13  ;;  %v8913_v33 = vcombine.high %v4020_v36, %v4024_v52  ;;  %v4212_v9 = vld [vmem:[%s13373_s6 + $0xa08] sm:$0xff] }
 0x3d1   :  { %7213 = vmatpush1.bf16.msra.mxu1 %v8960_v57  ;;  %7269 = vmatprep.subr.bf16.mxu0 %v9153_v61  ;;  %v4144_v13 = vld [vmem:[%s13373_s6 + $0x7e8] sm:$0xff]  ;;  %v9112_v57 = vcombine.low %v4220_v12, %v4224_v6  ;;  %v8912_v61 = vcombine.low %v4020_v36, %v4024_v52 }
 0x3d2   :  { %7214 = vmatprep.subr.bf16.mxu1 %v8953_v38  ;;  %v9105_v38 = vcombine.high %v4212_v9, %v4216_v43  ;;  %v9033_v20 = vcombine.high %v4140_v3, %v4144_v13  ;;  %v4112_v12 = vld [vmem:[%s13373_s6 + $0x6e8] sm:$0xff] }
 0x3d4   :  { %7270 = vmatpush2.bf16.msra.mxu0 %v9152_v55  ;;  %v4136_v55 = vld [vmem:[%s13373_s6 + $0x7a8] sm:$0xff] }
 0x3d5   :  { %7215 = vmatpush1.bf16.msra.mxu1 %v8952_v28  ;;  %7271 = vmatprep.subr.bf16.mxu0 %v9145_v15  ;;  %v9104_v28 = vcombine.low %v4212_v9, %v4216_v43  ;;  %v9032_v15 = vcombine.low %v4140_v3, %v4144_v13  ;;  %v9025_v23 = vcombine.high %v4132_v60, %v4136_v55  ;;  %v4100_v9 = vld [vmem:[%s13373_s6 + $0x688] sm:$0xff] }
 0x3d6   :  { %7216 = vmatprep.subr.bf16.mxu1 %v8945_v2  ;;  %v8843_v2 = vcombine.high %v3949_v41, %v3953_v49  ;;  %v4104_v43 = vld [vmem:[%s13373_s6 + $0x6a8] sm:$0xff] }
 0x3d8   :  { %7272 = vmatpush2.bf16.msra.mxu0 %v9144_v19  ;;  %v4128_v19 = vld [vmem:[%s13373_s6 + $0x768] sm:$0xff] }
 0x3d9   :  { %7217 = vmatpush1.bf16.msra.mxu1 %v8944_v4  ;;  %7273 = vmatprep.subr.bf16.mxu0 %v9137_v1  ;;  %v8842_v1 = vcombine.low %v3949_v41, %v3953_v49  ;;  %v9017_v58 = vcombine.high %v4124_v34, %v4128_v19  ;;  %v9016_v30 = vcombine.low %v4124_v34, %v4128_v19  ;;  %v3913_v41 = vld [vmem:[%s13373_s6 + $0xb0] sm:$0xff]  ;;  %v4084_v34 = vld [vmem:[%s13373_s6 + $0x608] sm:$0xff] }
 0x3da   :  { %7218 = vmatprep.subr.bf16.mxu1 %v8937_v44  ;;  %v9024_v44 = vcombine.low %v4132_v60, %v4136_v55  ;;  %v4092_v60 = vld [vmem:[%s13373_s6 + $0x648] sm:$0xff] }
 0x3db   :  { %v4088_v19 = vld [vmem:[%s13373_s6 + $0x628] sm:$0xff] }
 0x3dc   :  { %7274 = vmatpush2.bf16.msra.mxu0 %v9136_v26  ;;  %v3937_v26 = vld [vmem:[%s13373_s6 + $0x170] sm:$0xff] }
 0x3dd   :  { %7219 = vmatpush1.bf16.msra.mxu1 %v8936_v8  ;;  %7275 = vmatprep.subr.bf16.mxu0 %v9129_v62  ;;  %v4116_v8 = vld [vmem:[%s13373_s6 + $0x708] sm:$0xff]  ;;  %v8827_v10 = vcombine.high %v3933_v51, %v3937_v26  ;;  %v8826_v6 = vcombine.low %v3933_v51, %v3937_v26  ;;  %v3893_v26 = vld [vmem:[%s13373_s6 + $0x10] sm:$0xff] }
 0x3de   :  { %7220 = vmatprep.subr.bf16.mxu1 %v8929_v47  ;;  %v4120_v62 = vld [vmem:[%s13373_s6 + $0x728] sm:$0xff] }
 0x3df   :  { %v9008_v36 = vcombine.low %v4116_v8, %v4120_v62 }
 0x3e0   :  { %7276 = vmatpush2.bf16.msra.mxu0 %v9128_v27  ;;  %v9009_v27 = vcombine.high %v4116_v8, %v4120_v62  ;;  %v3897_v8 = vld [vmem:[%s13373_s6 + $0x30] sm:$0xff] }
 0x3e1   :  { %7221 = vmatpush1.bf16.msra.mxu1 %v8928_v39  ;;  %7277 = vmatprep.subr.bf16.mxu0 %v9121_v46  ;;  %v3925_v39 = vld [vmem:[%s13373_s6 + $0x110] sm:$0xff] }
 0x3e2   :  { %7222 = vmatprep.subr.bf16.mxu1 %v8921_v21  ;;  %v3929_v46 = vld [vmem:[%s13373_s6 + $0x130] sm:$0xff]  ;;  %v4108_v21 = vld [vmem:[%s13373_s6 + $0x6c8] sm:$0xff] }
 0x3e3   :  { %v8819_v52 = vcombine.high %v3925_v39, %v3929_v46  ;;  %v8818_v3 = vcombine.low %v3925_v39, %v3929_v46  ;;  %v9000_v13 = vcombine.low %v4108_v21, %v4112_v12 }
 0x3e4   :  { %7278 = vmatpush2.bf16.msra.mxu0 %v9120_v54  ;;  %v9001_v54 = vcombine.high %v4108_v21, %v4112_v12  ;;  %v4324_v21 = vld [vmem:[%s13373_s6 + $0xd88] sm:$0xff] }
 0x3e5   :  { %7223 = vmatpush1.bf16.msra.mxu1 %v8920_v24  ;;  %7279 = vmatprep.subr.bf16.mxu0 %v9113_v53  ;;  %v4403_v24 = vld [vmem:[%s13374_s7] sm:$0xff]  ;;  %v3917_v53 = vld [vmem:[%s13373_s6 + $0xd0] sm:$0xff]  ;;  %v4328_v12 = vld [vmem:[%s13373_s6 + $0xda8] sm:$0xff] }
 0x3e6   :  { %7224 = vmatprep.subr.bf16.mxu1 %v8913_v33  ;;  %v3921_v33 = vld [vmem:[%s13373_s6 + $0xf0] sm:$0xff]  ;;  %v4412_v49 = vrot.slane %v4403_v24, %v1221_v11 }
 0x3e7   :  { %v8810_v55 = vcombine.low %v3917_v53, %v3921_v33  ;;  %v3901_v11 = vld [vmem:[%s13373_s6 + $0x50] sm:$0xff] }
 0x3e8   :  { %7280 = vmatpush2.bf16.msra.mxu0 %v9112_v57  ;;  %v4408_v57 = vrot.slane %v4403_v24, %v1217_v63  ;;  %v4096_v63 = vld [vmem:[%s13373_s6 + $0x668] sm:$0xff]  ;;  %v9217_v24 = vcombine.high %v4324_v21, %v4328_v12 }
 0x3e9   :  { %7225 = vmatpush1.bf16.msra.mxu1 %v8912_v61  ;;  %7281 = vmatprep.subr.bf16.mxu0 %v9105_v38  ;;  %v8811_v61 = vcombine.high %v3917_v53, %v3921_v33  ;;  %v8993_v38 = vcombine.high %v4100_v9, %v4104_v43  ;;  %v4005_v33 = vld [vmem:[%s13373_s6 + $0x390] sm:$0xff] }
 0x3ea   :  { %7226 = vmatprep.subr.bf16.mxu1 %v9033_v20  ;;  %v3909_v20 = vld [vmem:[%s13373_s6 + $0x90] sm:$0xff] }
 0x3eb   :  { %v7039_v4 = vpop.f32.mrf.mxu0 }
 0x3ec   :  { %7282 = vmatpush2.bf16.msra.mxu0 %v9104_v28  ;;  %v7040_v28 = vadd.f32 %v7039_v4, %v4408_v57  ;;  %v9216_v57 = vcombine.low %v4324_v21, %v4328_v12  ;;  %v3965_v12 = vld [vmem:[%s13373_s6 + $0x250] sm:$0xff] }
 0x3ed   :  { %7227 = vmatpush2.bf16.msra.mxu1 %v9032_v15  ;;  %v12184_v32 = vpop.f32.mrf.mxu0  ;;  %7333 = vmatprep.subr.bf16.mxu0 %v8843_v2  ;;  %v8992_v15 = vcombine.low %v4100_v9, %v4104_v43  ;;  %v8803_v2 = vcombine.high %v3909_v20, %v3913_v41  ;;  %v4009_v9 = vld [vmem:[%s13373_s6 + $0x3b0] sm:$0xff]  ;;  %v4316_v43 = vld [vmem:[%s13373_s6 + $0xd48] sm:$0xff] }
 0x3ee   :  { %7228 = vmatprep.subr.bf16.mxu1 %v9025_v23  ;;  %v8985_v23 = vcombine.high %v4092_v60, %v4096_v63  ;;  %v7042_v5 = vadd.f32 %v12184_v32, %v4412_v49  ;;  %v8977_v32 = vcombine.high %v4084_v34, %v4088_v19  ;;  %v4308_v49 = vld [vmem:[%s13373_s6 + $0xd08] sm:$0xff] }
 0x3ef   :  { %v7043_v47 = vpop.f32.mrf.mxu0  ;;  %7284 = vmatmul.mubr.bf16.vlgmr.msra.gmra.mxu0 %v11887_v31 }
 0x3f0   :  { %7334 = vmatpush1.bf16.msra.mxu0 %v8842_v1  ;;  %7365 = vmatprep.mubr.bf16.mxu0 %v11424_v25  ;;  %v8802_v1 = vcombine.low %v3909_v20, %v3913_v41  ;;  %v4332_v47 = vld [vmem:[%s13373_s6 + $0xdc8] sm:$0xff]  ;;  %v3997_v20 = vld [vmem:[%s13373_s6 + $0x350] sm:$0xff] }
 0x3f1   :  { %7229 = vmatpush2.bf16.msra.mxu1 %v9024_v44  ;;  %v7044_v42 = vpop.f32.mrf.mxu0  ;;  %7335 = vmatprep.subr.bf16.mxu0 %v8835_v45  ;;  %v8984_v45 = vcombine.low %v4092_v60, %v4096_v63  ;;  %v4001_v41 = vld [vmem:[%s13373_s6 + $0x370] sm:$0xff]  ;;  %v4312_v60 = vld [vmem:[%s13373_s6 + $0xd28] sm:$0xff]  ;;  %v8898_v63 = vcombine.low %v4005_v33, %v4009_v9 }
 0x3f2   :  { %7230 = vmatprep.subr.bf16.mxu1 %v9017_v58  ;;  %v8795_v58 = vcombine.high %v3901_v11, %v3905_v22  ;;  %v8794_v42 = vcombine.low %v3901_v11, %v3905_v22  ;;  %v4300_v11 = vld [vmem:[%s13373_s6 + $0xcc8] sm:$0xff] }
 0x3f3   :  { %v4304_v22 = vld [vmem:[%s13373_s6 + $0xce8] sm:$0xff] }
 0x3f4   :  { %7336 = vmatpush1.bf16.msra.mxu0 %v8834_v0  ;;  %v4336_v0 = vld [vmem:[%s13373_s6 + $0xde8] sm:$0xff] }
 0x3f5   :  { %7231 = vmatpush2.bf16.msra.mxu1 %v9016_v30  ;;  %7337 = vmatprep.subr.bf16.mxu0 %v8827_v10  ;;  %v8976_v10 = vcombine.low %v4084_v34, %v4088_v19  ;;  %v9225_v46 = vcombine.high %v4332_v47, %v4336_v0  ;;  %v9200_v34 = vcombine.low %v4308_v49, %v4312_v60 }
 0x3f6   :  { %7232 = vmatprep.subr.bf16.mxu1 %v9009_v27  ;;  %v8787_v27 = vcombine.high %v3893_v26, %v3897_v8 }
 0x3f8   :  { %7338 = vmatpush1.bf16.msra.mxu0 %v8826_v6  ;;  %v4013_v6 = vld [vmem:[%s13373_s6 + $0x3d0] sm:$0xff] }
 0x3f9   :  { %7233 = vmatpush2.bf16.msra.mxu1 %v9008_v36  ;;  %7339 = vmatprep.subr.bf16.mxu0 %v8819_v52  ;;  %v4017_v36 = vld [vmem:[%s13373_s6 + $0x3f0] sm:$0xff]  ;;  %v8786_v52 = vcombine.low %v3893_v26, %v3897_v8  ;;  %v9192_v26 = vcombine.low %v4300_v11, %v4304_v22 }
 0x3fa   :  { %7234 = vmatprep.subr.bf16.mxu1 %v9001_v54  ;;  %v9224_v54 = vcombine.low %v4332_v47, %v4336_v0  ;;  %v8907_v53 = vcombine.high %v4013_v6, %v4017_v36  ;;  %v3973_v0 = vld [vmem:[%s13373_s6 + $0x290] sm:$0xff] }
 0x3fc   :  { %7340 = vmatpush1.bf16.msra.mxu0 %v8818_v3  ;;  %v4320_v3 = vld [vmem:[%s13373_s6 + $0xd68] sm:$0xff] }
 0x3fd   :  { %7235 = vmatpush2.bf16.msra.mxu1 %v9000_v13  ;;  %7341 = vmatprep.subr.bf16.mxu0 %v8811_v61  ;;  %v8906_v13 = vcombine.low %v4013_v6, %v4017_v36  ;;  %v8899_v61 = vcombine.high %v4005_v33, %v4009_v9  ;;  %v3969_v6 = vld [vmem:[%s13373_s6 + $0x270] sm:$0xff]  ;;  %v4276_v36 = vld [vmem:[%s13373_s6 + $0xc08] sm:$0xff] }
 0x3fe   :  { %7236 = vmatprep.subr.bf16.mxu1 %v8993_v38  ;;  %v9209_v38 = vcombine.high %v4316_v43, %v4320_v3  ;;  %v3957_v9 = vld [vmem:[%s13373_s6 + $0x210] sm:$0xff] }
 0x400   :  { %v7080_v4 = vpop.f32.mrf.mxu1  ;;  %7342 = vmatpush1.bf16.msra.mxu0 %v8810_v55  ;;  %v9208_v55 = vcombine.low %v4316_v43, %v4320_v3  ;;  %v3961_v43 = vld [vmem:[%s13373_s6 + $0x230] sm:$0xff]  ;;  %v4396_v3 = vld [vmem:[%s13373_s6 + $0xfc8] sm:$0xff] }
 0x401   :  { %v12256_v44 = vadd.f32 %v7080_v4, %v7040_v28  ;;  %7237 = vmatpush2.bf16.msra.mxu1 %v8992_v15  ;;  %7343 = vmatprep.subr.bf16.mxu0 %v8803_v2  ;;  %v8891_v28 = vcombine.high %v3997_v20, %v4001_v41  ;;  %v9201_v15 = vcombine.high %v4308_v49, %v4312_v60  ;;  %v3989_v2 = vld [vmem:[%s13373_s6 + $0x310] sm:$0xff]  ;;  %v4388_v60 = vld [vmem:[%s13373_s6 + $0xf88] sm:$0xff] }
 0x402   :  { %v7082_v51 = vpop.f32.mrf.mxu1  ;;  %7238 = vmatprep.subr.bf16.mxu1 %v8985_v23  ;;  %v3993_v23 = vld [vmem:[%s13373_s6 + $0x330] sm:$0xff]  ;;  %v9193_v4 = vcombine.high %v4300_v11, %v4304_v22  ;;  %v4380_v22 = vld [vmem:[%s13373_s6 + $0xf48] sm:$0xff] }
 0x403   :  { %v12264_v62 = vadd.f32 %v7082_v51, %v7042_v5  ;;  %v8890_v5 = vcombine.low %v3997_v20, %v4001_v41  ;;  %v8883_v19 = vcombine.high %v3989_v2, %v3993_v23  ;;  %v4296_v51 = vld [vmem:[%s13373_s6 + $0xca8] sm:$0xff]  ;;  %v4205_v41 = vld [vmem:[%s13373_s6 + $0x9d0] sm:$0xff] }
 0x404   :  { %v7084_v30 = vpop.f32.mrf.mxu1  ;;  %7344 = vmatpush1.bf16.msra.mxu0 %v8802_v1  ;;  %v3981_v1 = vld [vmem:[%s13373_s6 + $0x2d0] sm:$0xff] }
 0x405   :  { %7239 = vmatpush2.bf16.msra.mxu1 %v8984_v45  ;;  %7345 = vmatprep.subr.bf16.mxu0 %v8795_v58  ;;  %v3985_v45 = vld [vmem:[%s13373_s6 + $0x2f0] sm:$0xff]  ;;  %v4292_v58 = vld [vmem:[%s13373_s6 + $0xc88] sm:$0xff] }
 0x406   :  { %v7085_v39 = vpop.f32.mrf.mxu1  ;;  %7240 = vmatprep.subr.bf16.mxu1 %v8977_v32  ;;  %v8882_v32 = vcombine.low %v3989_v2, %v3993_v23  ;;  %v8875_v8 = vcombine.high %v3981_v1, %v3985_v45  ;;  %v9185_v47 = vcombine.high %v4292_v58, %v4296_v51  ;;  %v3977_v30 = vld [vmem:[%s13373_s6 + $0x2b0] sm:$0xff] }
 0x407   :  { %v9184_v39 = vcombine.low %v4292_v58, %v4296_v51  ;;  %v4209_v49 = vld [vmem:[%s13373_s6 + $0x9f0] sm:$0xff]  ;;  %v4372_v51 = vld [vmem:[%s13373_s6 + $0xf08] sm:$0xff] }
 0x408   :  { %7346 = vmatpush1.bf16.msra.mxu0 %v8794_v42  ;;  %v4284_v42 = vld [vmem:[%s13373_s6 + $0xc48] sm:$0xff]  ;;  %v4197_v23 = vld [vmem:[%s13373_s6 + $0x990] sm:$0xff] }
 0x409   :  { %7241 = vmatpush2.bf16.msra.mxu1 %v8976_v10  ;;  %7347 = vmatprep.subr.bf16.mxu0 %v8787_v27  ;;  %v4288_v10 = vld [vmem:[%s13373_s6 + $0xc68] sm:$0xff]  ;;  %v8874_v27 = vcombine.low %v3981_v1, %v3985_v45  ;;  %v4201_v11 = vld [vmem:[%s13373_s6 + $0x9b0] sm:$0xff] }
 0x40a   :  { %7292 = vmatprep.subr.bf16.mxu1 %v9225_v46  ;;  %v8867_v46 = vcombine.high %v3973_v0, %v3977_v30  ;;  %v9177_v21 = vcombine.high %v4284_v42, %v4288_v10  ;;  %v4189_v45 = vld [vmem:[%s13373_s6 + $0x950] sm:$0xff] }
 0x40b   :  { %v4193_v58 = vld [vmem:[%s13373_s6 + $0x970] sm:$0xff] }
 0x40c   :  { %7243 = vmatmul.mubr.bf16.vlgmr.msra.gmra.mxu1 %v11709_v16  ;;  %7348 = vmatpush1.bf16.msra.mxu0 %v8786_v52  ;;  %v4280_v52 = vld [vmem:[%s13373_s6 + $0xc28] sm:$0xff] }
 0x40d   :  { %7293 = vmatpush1.bf16.msra.mxu1 %v9224_v54  ;;  %7324 = vmatprep.mubr.bf16.mxu1 %v12066_v7  ;;  %v8866_v54 = vcombine.low %v3973_v0, %v3977_v30  ;;  %v9169_v33 = vcombine.high %v4276_v36, %v4280_v52 }
 0x40e   :  { %7294 = vmatprep.subr.bf16.mxu1 %v9217_v24  ;;  %7349 = vmatprep.subr.bf16.mxu0 %v8907_v53  ;;  %v9176_v24 = vcombine.low %v4284_v42, %v4288_v10  ;;  %v8859_v53 = vcombine.high %v3965_v12, %v3969_v6  ;;  %v9083_v42 = vcombine.high %v4189_v45, %v4193_v58 }
 0x410   :  { %7350 = vmatpush2.bf16.msra.mxu0 %v8906_v13  ;;  %v4400_v13 = vld [vmem:[%s13373_s6 + $0xfe8] sm:$0xff] }
 0x411   :  { %7295 = vmatpush1.bf16.msra.mxu1 %v9216_v57  ;;  %7351 = vmatprep.subr.bf16.mxu0 %v8899_v61  ;;  %v8858_v57 = vcombine.low %v3965_v12, %v3969_v6  ;;  %v9168_v61 = vcombine.low %v4276_v36, %v4280_v52  ;;  %v9289_v20 = vcombine.high %v4396_v3, %v4400_v13 }
 0x412   :  { %7296 = vmatprep.subr.bf16.mxu1 %v9209_v38  ;;  %v8851_v38 = vcombine.high %v3957_v9, %v3961_v43 }
 0x414   :  { %7352 = vmatpush2.bf16.msra.mxu0 %v8898_v63  ;;  %v4392_v63 = vld [vmem:[%s13373_s6 + $0xfa8] sm:$0xff] }
 0x415   :  { %7297 = vmatpush1.bf16.msra.mxu1 %v9208_v55  ;;  %7353 = vmatprep.subr.bf16.mxu0 %v8891_v28  ;;  %v8850_v55 = vcombine.low %v3957_v9, %v3961_v43  ;;  %v9288_v28 = vcombine.low %v4396_v3, %v4400_v13  ;;  %v9281_v2 = vcombine.high %v4388_v60, %v4392_v63  ;;  %v4360_v9 = vld [vmem:[%s13373_s6 + $0xea8] sm:$0xff] }
 0x416   :  { %7298 = vmatprep.subr.bf16.mxu1 %v9201_v15  ;;  %v9099_v15 = vcombine.high %v4205_v41, %v4209_v49 }
 0x418   :  { %7354 = vmatpush2.bf16.msra.mxu0 %v8890_v5  ;;  %v4384_v5 = vld [vmem:[%s13373_s6 + $0xf68] sm:$0xff] }
 0x419   :  { %7299 = vmatpush1.bf16.msra.mxu1 %v9200_v34  ;;  %7355 = vmatprep.subr.bf16.mxu0 %v8883_v19  ;;  %v9098_v34 = vcombine.low %v4205_v41, %v4209_v49  ;;  %v9280_v19 = vcombine.low %v4388_v60, %v4392_v63  ;;  %v9273_v1 = vcombine.high %v4380_v22, %v4384_v5  ;;  %v4352_v41 = vld [vmem:[%s13373_s6 + $0xe68] sm:$0xff] }
 0x41a   :  { %7300 = vmatprep.subr.bf16.mxu1 %v9193_v4  ;;  %v9091_v4 = vcombine.high %v4197_v23, %v4201_v11  ;;  %v9272_v0 = vcombine.low %v4380_v22, %v4384_v5 }
 0x41c   :  { %7356 = vmatpush2.bf16.msra.mxu0 %v8882_v32  ;;  %v4376_v32 = vld [vmem:[%s13373_s6 + $0xf28] sm:$0xff] }
 0x41d   :  { %7301 = vmatpush1.bf16.msra.mxu1 %v9192_v26  ;;  %7357 = vmatprep.subr.bf16.mxu0 %v8875_v8  ;;  %v9265_v10 = vcombine.high %v4372_v51, %v4376_v32  ;;  %v9264_v6 = vcombine.low %v4372_v51, %v4376_v32 }
 0x41e   :  { %7302 = vmatprep.subr.bf16.mxu1 %v9185_v47  ;;  %v9090_v47 = vcombine.low %v4197_v23, %v4201_v11  ;;  %v4344_v23 = vld [vmem:[%s13373_s6 + $0xe28] sm:$0xff] }
 0x420   :  { %7358 = vmatpush2.bf16.msra.mxu0 %v8874_v27 }
 0x421   :  { %7303 = vmatpush1.bf16.msra.mxu1 %v9184_v39  ;;  %7359 = vmatprep.subr.bf16.mxu0 %v8867_v46  ;;  %v4181_v39 = vld [vmem:[%s13373_s6 + $0x910] sm:$0xff]  ;;  %v4364_v46 = vld [vmem:[%s13373_s6 + $0xec8] sm:$0xff] }
 0x422   :  { %7304 = vmatprep.subr.bf16.mxu1 %v9177_v21  ;;  %v4368_v21 = vld [vmem:[%s13373_s6 + $0xee8] sm:$0xff] }
 0x423   :  { %v9256_v3 = vcombine.low %v4364_v46, %v4368_v21 }
 0x424   :  { %7360 = vmatpush2.bf16.msra.mxu0 %v8866_v54  ;;  %v9257_v54 = vcombine.high %v4364_v46, %v4368_v21  ;;  %v4261_v21 = vld [vmem:[%s13373_s6 + $0xb90] sm:$0xff] }
 0x425   :  { %7305 = vmatpush1.bf16.msra.mxu1 %v9176_v24  ;;  %7361 = vmatprep.subr.bf16.mxu0 %v8859_v53  ;;  %v4173_v24 = vld [vmem:[%s13373_s6 + $0x8d0] sm:$0xff] }
 0x426   :  { %7306 = vmatprep.subr.bf16.mxu1 %v9169_v33  ;;  %v4177_v53 = vld [vmem:[%s13373_s6 + $0x8f0] sm:$0xff]  ;;  %v4356_v33 = vld [vmem:[%s13373_s6 + $0xe88] sm:$0xff] }
 0x427   :  { %v9067_v13 = vcombine.high %v4173_v24, %v4177_v53  ;;  %v9066_v49 = vcombine.low %v4173_v24, %v4177_v53  ;;  %v9248_v60 = vcombine.low %v4356_v33, %v4360_v9  ;;  %v4253_v53 = vld [vmem:[%s13373_s6 + $0xb50] sm:$0xff] }
 0x428   :  { %7362 = vmatpush2.bf16.msra.mxu0 %v8858_v57  ;;  %v9249_v57 = vcombine.high %v4356_v33, %v4360_v9  ;;  %v4257_v33 = vld [vmem:[%s13373_s6 + $0xb70] sm:$0xff] }
 0x429   :  { %7307 = vmatpush1.bf16.msra.mxu1 %v9168_v61  ;;  %7363 = vmatprep.subr.bf16.mxu0 %v8851_v38  ;;  %v4165_v61 = vld [vmem:[%s13373_s6 + $0x890] sm:$0xff] }
 0x42a   :  { %7308 = vmatprep.subr.bf16.mxu1 %v9289_v20  ;;  %v4169_v38 = vld [vmem:[%s13373_s6 + $0x8b0] sm:$0xff]  ;;  %v4348_v20 = vld [vmem:[%s13373_s6 + $0xe48] sm:$0xff] }
 0x42b   :  { %v9059_v63 = vcombine.high %v4165_v61, %v4169_v38  ;;  %v9058_v11 = vcombine.low %v4165_v61, %v4169_v38  ;;  %v9240_v22 = vcombine.low %v4348_v20, %v4352_v41  ;;  %v4053_v9 = vld [vmem:[%s13373_s6 + $0x510] sm:$0xff] }
 0x42c   :  { %7364 = vmatpush2.bf16.msra.mxu0 %v8850_v55  ;;  %v9241_v55 = vcombine.high %v4348_v20, %v4352_v41  ;;  %v4245_v38 = vld [vmem:[%s13373_s6 + $0xb10] sm:$0xff] }
 0x42d   :  { %7309 = vmatpush2.bf16.msra.mxu1 %v9288_v28  ;;  %7415 = vmatprep.subr.bf16.mxu0 %v9099_v15  ;;  %v4157_v28 = vld [vmem:[%s13373_s6 + $0x850] sm:$0xff] }
 0x42e   :  { %7310 = vmatprep.subr.bf16.mxu1 %v9281_v2  ;;  %v4161_v15 = vld [vmem:[%s13373_s6 + $0x870] sm:$0xff]  ;;  %v4340_v2 = vld [vmem:[%s13373_s6 + $0xe08] sm:$0xff] }
 0x42f   :  { %7366 = vmatmul.mubr.bf16.vlgmr.msra.gmra.mxu0 %v11641_v14  ;;  %v7121_v26 = vpop.f32.mrf.mxu0  ;;  %v9051_v5 = vcombine.high %v4157_v28, %v4161_v15  ;;  %v9232_v51 = vcombine.low %v4340_v2, %v4344_v23  ;;  %v4249_v20 = vld [vmem:[%s13373_s6 + $0xb30] sm:$0xff] }
 0x430   :  { %v12408_v8 = vadd.f32 %v7121_v26, %v12256_v44  ;;  %7416 = vmatpush1.bf16.msra.mxu0 %v9098_v34  ;;  %7447 = vmatprep.mubr.bf16.mxu0 %v11885_v59  ;;  %v4185_v44 = vld [vmem:[%s13373_s6 + $0x930] sm:$0xff]  ;;  %v9233_v34 = vcombine.high %v4340_v2, %v4344_v23 }
 0x431   :  { %7311 = vmatpush2.bf16.msra.mxu1 %v9280_v19  ;;  %v7123_v30 = vpop.f32.mrf.mxu0  ;;  %7417 = vmatprep.subr.bf16.mxu0 %v9091_v4  ;;  %v9075_v52 = vcombine.high %v4181_v39, %v4185_v44  ;;  %v9074_v43 = vcombine.low %v4181_v39, %v4185_v44  ;;  %v4149_v19 = vld [vmem:[%s13373_s6 + $0x810] sm:$0xff] }
 0x432   :  { %7312 = vmatprep.subr.bf16.mxu1 %v9273_v1  ;;  %v12412_v27 = vadd.f32 %v7123_v30, %v12264_v62  ;;  %v9082_v62 = vcombine.low %v4189_v45, %v4193_v58  ;;  %v4153_v4 = vld [vmem:[%s13373_s6 + $0x830] sm:$0xff]  ;;  %v9050_v58 = vcombine.low %v4157_v28, %v4161_v15 }
 0x433   :  { %v7125_v12 = vpop.f32.mrf.mxu0  ;;  %v4077_v1 = vld [vmem:[%s13373_s6 + $0x5d0] sm:$0xff]  ;;  %v9043_v32 = vcombine.high %v4149_v19, %v4153_v4 }
 0x434   :  { %7418 = vmatpush1.bf16.msra.mxu0 %v9090_v47  ;;  %v4081_v45 = vld [vmem:[%s13373_s6 + $0x5f0] sm:$0xff] }
 0x435   :  { %7313 = vmatpush2.bf16.msra.mxu1 %v9272_v0  ;;  %v7126_v36 = vpop.f32.mrf.mxu0  ;;  %7419 = vmatprep.subr.bf16.mxu0 %v9083_v42  ;;  %v8971_v26 = vcombine.high %v4077_v1, %v4081_v45  ;;  %v4069_v47 = vld [vmem:[%s13373_s6 + $0x590] sm:$0xff]  ;;  %v8970_v39 = vcombine.low %v4077_v1, %v4081_v45 }
 0x436   :  { %7314 = vmatprep.subr.bf16.mxu1 %v9265_v10  ;;  %v4073_v0 = vld [vmem:[%s13373_s6 + $0x5b0] sm:$0xff]  ;;  %v9042_v10 = vcombine.low %v4149_v19, %v4153_v4 }
 0x437   :  { %v4269_v30 = vld [vmem:[%s13373_s6 + $0xbd0] sm:$0xff]  ;;  %v8963_v44 = vcombine.high %v4069_v47, %v4073_v0 }
 0x438   :  { %7420 = vmatpush1.bf16.msra.mxu0 %v9082_v62  ;;  %v4273_v42 = vld [vmem:[%s13373_s6 + $0xbf0] sm:$0xff] }
 0x439   :  { %7315 = vmatpush2.bf16.msra.mxu1 %v9264_v6  ;;  %7421 = vmatprep.subr.bf16.mxu0 %v9075_v52  ;;  %v9163_v46 = vcombine.high %v4269_v30, %v4273_v42  ;;  %v4265_v12 = vld [vmem:[%s13373_s6 + $0xbb0] sm:$0xff]  ;;  %v9162_v36 = vcombine.low %v4269_v30, %v4273_v42  ;;  %v8962_v52 = vcombine.low %v4069_v47, %v4073_v0 }
 0x43a   :  { %7316 = vmatprep.subr.bf16.mxu1 %v9257_v54  ;;  %v4061_v62 = vld [vmem:[%s13373_s6 + $0x550] sm:$0xff]  ;;  %v9155_v54 = vcombine.high %v4261_v21, %v4265_v12 }
 0x43b   :  { %v4065_v6 = vld [vmem:[%s13373_s6 + $0x570] sm:$0xff] }
 0x43c   :  { %7422 = vmatpush1.bf16.msra.mxu0 %v9074_v43  ;;  %v8955_v24 = vcombine.high %v4061_v62, %v4065_v6  ;;  %v4057_v43 = vld [vmem:[%s13373_s6 + $0x530] sm:$0xff] }
 0x43d   :  { %7317 = vmatpush2.bf16.msra.mxu1 %v9256_v3  ;;  %7423 = vmatprep.subr.bf16.mxu0 %v9067_v13  ;;  %v9154_v3 = vcombine.low %v4261_v21, %v4265_v12  ;;  %v8954_v13 = vcombine.low %v4061_v62, %v4065_v6  ;;  %v8947_v61 = vcombine.high %v4053_v9, %v4057_v43  ;;  %v4045_v41 = vld [vmem:[%s13373_s6 + $0x4d0] sm:$0xff] }
 0x43e   :  { %7318 = vmatprep.subr.bf16.mxu1 %v9249_v57  ;;  %v9147_v57 = vcombine.high %v4253_v53, %v4257_v33  ;;  %v4237_v15 = vld [vmem:[%s13373_s6 + $0xad0] sm:$0xff] }
 0x43f   :  { %v4241_v2 = vld [vmem:[%s13373_s6 + $0xaf0] sm:$0xff] }
 0x440   :  { %7424 = vmatpush1.bf16.msra.mxu0 %v9066_v49  ;;  %v4049_v49 = vld [vmem:[%s13373_s6 + $0x4f0] sm:$0xff] }
 0x441   :  { %7319 = vmatpush2.bf16.msra.mxu1 %v9248_v60  ;;  %7425 = vmatprep.subr.bf16.mxu0 %v9059_v63  ;;  %v9146_v60 = vcombine.low %v4253_v53, %v4257_v33  ;;  %v8946_v63 = vcombine.low %v4053_v9, %v4057_v43  ;;  %v8939_v28 = vcombine.high %v4045_v41, %v4049_v49  ;;  %v4037_v23 = vld [vmem:[%s13373_s6 + $0x490] sm:$0xff]  ;;  %v3950_v33 = vld [vmem:[%s13373_s6 + $0x1d8] sm:$0xff] }
 0x442   :  { %7320 = vmatprep.subr.bf16.mxu1 %v9241_v55  ;;  %v9139_v55 = vcombine.high %v4245_v38, %v4249_v20  ;;  %v4229_v4 = vld [vmem:[%s13373_s6 + $0xa90] sm:$0xff]  ;;  %v3954_v9 = vld [vmem:[%s13373_s6 + $0x1f8] sm:$0xff] }
 0x443   :  { %v4233_v1 = vld [vmem:[%s13373_s6 + $0xab0] sm:$0xff] }
 0x444   :  { %7426 = vmatpush1.bf16.msra.mxu0 %v9058_v11  ;;  %v4041_v11 = vld [vmem:[%s13373_s6 + $0x4b0] sm:$0xff] }
 0x445   :  { %7321 = vmatpush2.bf16.msra.mxu1 %v9240_v22  ;;  %7427 = vmatprep.subr.bf16.mxu0 %v9051_v5  ;;  %v9138_v22 = vcombine.low %v4245_v38, %v4249_v20  ;;  %v8938_v5 = vcombine.low %v4045_v41, %v4049_v49  ;;  %v8931_v19 = vcombine.high %v4037_v23, %v4041_v11  ;;  %v4029_v45 = vld [vmem:[%s13373_s6 + $0x450] sm:$0xff]  ;;  %v3942_v20 = vld [vmem:[%s13373_s6 + $0x198] sm:$0xff] }
 0x446   :  { %7322 = vmatprep.subr.bf16.mxu1 %v9233_v34  ;;  %v9131_v34 = vcombine.high %v4237_v15, %v4241_v2  ;;  %v4221_v0 = vld [vmem:[%s13373_s6 + $0xa50] sm:$0xff]  ;;  %v3946_v41 = vld [vmem:[%s13373_s6 + $0x1b8] sm:$0xff] }
 0x447   :  { %v4225_v30 = vld [vmem:[%s13373_s6 + $0xa70] sm:$0xff] }
 0x448   :  { %7428 = vmatpush1.bf16.msra.mxu0 %v9050_v58  ;;  %v4033_v58 = vld [vmem:[%s13373_s6 + $0x470] sm:$0xff] }
 0x449   :  { %7323 = vmatpush2.bf16.msra.mxu1 %v9232_v51  ;;  %7429 = vmatprep.subr.bf16.mxu0 %v9043_v32  ;;  %v9130_v51 = vcombine.low %v4237_v15, %v4241_v2  ;;  %v8930_v32 = vcombine.low %v4037_v23, %v4041_v11  ;;  %v8923_v47 = vcombine.high %v4029_v45, %v4033_v58  ;;  %v4021_v42 = vld [vmem:[%s13373_s6 + $0x410] sm:$0xff]  ;;  %v3934_v2 = vld [vmem:[%s13373_s6 + $0x158] sm:$0xff] }
 0x44a   :  { %7374 = vmatprep.subr.bf16.mxu1 %v8971_v26  ;;  %v9123_v26 = vcombine.high %v4229_v4, %v4233_v1  ;;  %v4213_v12 = vld [vmem:[%s13373_s6 + $0xa10] sm:$0xff]  ;;  %v3938_v23 = vld [vmem:[%s13373_s6 + $0x178] sm:$0xff] }
 0x44b   :  { %v4217_v62 = vld [vmem:[%s13373_s6 + $0xa30] sm:$0xff] }
 0x44c   :  { %7325 = vmatmul.mubr.bf16.vlgmr.msra.gmra.mxu1 %v12068_v40  ;;  %7430 = vmatpush1.bf16.msra.mxu0 %v9042_v10  ;;  %v4025_v10 = vld [vmem:[%s13373_s6 + $0x430] sm:$0xff] }
 0x44d   :  { %7375 = vmatpush1.bf16.msra.mxu1 %v8970_v39  ;;  %7406 = vmatprep.mubr.bf16.mxu1 %v11513_v35  ;;  %v9122_v39 = vcombine.low %v4229_v4, %v4233_v1  ;;  %v8915_v21 = vcombine.high %v4021_v42, %v4025_v10  ;;  %v4141_v6 = vld [vmem:[%s13373_s6 + $0x7d0] sm:$0xff]  ;;  %v8829_v1 = vcombine.high %v3934_v2, %v3938_v23 }
 0x44e   :  { %7376 = vmatprep.subr.bf16.mxu1 %v8963_v44  ;;  %7431 = vmatprep.subr.bf16.mxu0 %v9163_v46  ;;  %v8922_v44 = vcombine.low %v4029_v45, %v4033_v58  ;;  %v9115_v46 = vcombine.high %v4221_v0, %v4225_v30  ;;  %v4133_v43 = vld [vmem:[%s13373_s6 + $0x790] sm:$0xff]  ;;  %v3926_v58 = vld [vmem:[%s13373_s6 + $0x118] sm:$0xff] }
 0x44f   :  { %v4125_v49 = vld [vmem:[%s13373_s6 + $0x750] sm:$0xff] }
 0x450   :  { %7432 = vmatpush2.bf16.msra.mxu0 %v9162_v36  ;;  %v4145_v36 = vld [vmem:[%s13373_s6 + $0x7f0] sm:$0xff] }
 0x451   :  { %7377 = vmatpush1.bf16.msra.mxu1 %v8962_v52  ;;  %7433 = vmatprep.subr.bf16.mxu0 %v9155_v54  ;;  %v9114_v52 = vcombine.low %v4221_v0, %v4225_v30  ;;  %v8914_v54 = vcombine.low %v4021_v42, %v4025_v10  ;;  %v9035_v53 = vcombine.high %v4141_v6, %v4145_v36  ;;  %v4117_v11 = vld [vmem:[%s13373_s6 + $0x710] sm:$0xff] }
 0x452   :  { %7378 = vmatprep.subr.bf16.mxu1 %v8955_v24  ;;  %v9107_v24 = vcombine.high %v4213_v12, %v4217_v62 }
 0x454   :  { %7434 = vmatpush2.bf16.msra.mxu0 %v9154_v3  ;;  %v4137_v3 = vld [vmem:[%s13373_s6 + $0x7b0] sm:$0xff] }
 0x455   :  { %7379 = vmatpush1.bf16.msra.mxu1 %v8954_v13  ;;  %7435 = vmatprep.subr.bf16.mxu0 %v9147_v57  ;;  %v9106_v13 = vcombine.low %v4213_v12, %v4217_v62  ;;  %v9034_v57 = vcombine.low %v4141_v6, %v4145_v36  ;;  %v9027_v38 = vcombine.high %v4133_v43, %v4137_v3 }
 0x456   :  { %7380 = vmatprep.subr.bf16.mxu1 %v8947_v61  ;;  %v8845_v61 = vcombine.high %v3950_v33, %v3954_v9 }
 0x458   :  { %7436 = vmatpush2.bf16.msra.mxu0 %v9146_v60  ;;  %v4129_v60 = vld [vmem:[%s13373_s6 + $0x770] sm:$0xff] }
 0x459   :  { %7381 = vmatpush1.bf16.msra.mxu1 %v8946_v63  ;;  %7437 = vmatprep.subr.bf16.mxu0 %v9139_v55  ;;  %v8844_v63 = vcombine.low %v3950_v33, %v3954_v9  ;;  %v9026_v55 = vcombine.low %v4133_v43, %v4137_v3  ;;  %v9019_v15 = vcombine.high %v4125_v49, %v4129_v60 }
 0x45a   :  { %7382 = vmatprep.subr.bf16.mxu1 %v8939_v28  ;;  %v8837_v28 = vcombine.high %v3942_v20, %v3946_v41 }
 0x45c   :  { %7438 = vmatpush2.bf16.msra.mxu0 %v9138_v22  ;;  %v4121_v22 = vld [vmem:[%s13373_s6 + $0x730] sm:$0xff] }
 0x45d   :  { %7383 = vmatpush1.bf16.msra.mxu1 %v8938_v5  ;;  %7439 = vmatprep.subr.bf16.mxu0 %v9131_v34  ;;  %v8836_v34 = vcombine.low %v3942_v20, %v3946_v41  ;;  %v9011_v45 = vcombine.high %v4117_v11, %v4121_v22  ;;  %v9010_v0 = vcombine.low %v4117_v11, %v4121_v22  ;;  %v4325_v11 = vld [vmem:[%s13373_s6 + $0xd90] sm:$0xff] }
 0x45e   :  { %7384 = vmatprep.subr.bf16.mxu1 %v8931_v19  ;;  %v9018_v19 = vcombine.low %v4125_v49, %v4129_v60  ;;  %v4329_v22 = vld [vmem:[%s13373_s6 + $0xdb0] sm:$0xff] }
 0x460   :  { %7440 = vmatpush2.bf16.msra.mxu0 %v9130_v51  ;;  %v3930_v51 = vld [vmem:[%s13373_s6 + $0x138] sm:$0xff] }
 0x461   :  { %7385 = vmatpush1.bf16.msra.mxu1 %v8930_v32  ;;  %7441 = vmatprep.subr.bf16.mxu0 %v9123_v26  ;;  %v4113_v32 = vld [vmem:[%s13373_s6 + $0x6f0] sm:$0xff]  ;;  %v8821_v42 = vcombine.high %v3926_v58, %v3930_v51  ;;  %v8820_v12 = vcombine.low %v3926_v58, %v3930_v51  ;;  %v4006_v51 = vld [vmem:[%s13373_s6 + $0x398] sm:$0xff] }
 0x462   :  { %7386 = vmatprep.subr.bf16.mxu1 %v8923_v47  ;;  %v8828_v47 = vcombine.low %v3934_v2, %v3938_v23 }
 0x464   :  { %7442 = vmatpush2.bf16.msra.mxu0 %v9122_v39  ;;  %v3918_v39 = vld [vmem:[%s13373_s6 + $0xd8] sm:$0xff] }
 0x465   :  { %7387 = vmatpush1.bf16.msra.mxu1 %v8922_v44  ;;  %7443 = vmatprep.subr.bf16.mxu0 %v9115_v46  ;;  %v3922_v44 = vld [vmem:[%s13373_s6 + $0xf8] sm:$0xff]  ;;  %v4101_v46 = vld [vmem:[%s13373_s6 + $0x690] sm:$0xff] }
 0x466   :  { %7388 = vmatprep.subr.bf16.mxu1 %v8915_v21  ;;  %v4105_v21 = vld [vmem:[%s13373_s6 + $0x6b0] sm:$0xff]  ;;  %v8813_v6 = vcombine.high %v3918_v39, %v3922_v44  ;;  %v8812_v33 = vcombine.low %v3918_v39, %v3922_v44  ;;  %v3998_v39 = vld [vmem:[%s13373_s6 + $0x358] sm:$0xff] }
 0x467   :  { %v8995_v36 = vcombine.high %v4101_v46, %v4105_v21  ;;  %v8994_v9 = vcombine.low %v4101_v46, %v4105_v21  ;;  %v4002_v44 = vld [vmem:[%s13373_s6 + $0x378] sm:$0xff]  ;;  %v9218_v21 = vcombine.low %v4325_v11, %v4329_v22 }
 0x468   :  { %7444 = vmatpush2.bf16.msra.mxu0 %v9114_v52  ;;  %v3910_v52 = vld [vmem:[%s13373_s6 + $0x98] sm:$0xff] }
 0x469   :  { %7389 = vmatpush1.bf16.msra.mxu1 %v8914_v54  ;;  %7445 = vmatprep.subr.bf16.mxu0 %v9107_v24  ;;  %v3914_v54 = vld [vmem:[%s13373_s6 + $0xb8] sm:$0xff]  ;;  %v4093_v24 = vld [vmem:[%s13373_s6 + $0x650] sm:$0xff] }
 0x46a   :  { %7390 = vmatprep.subr.bf16.mxu1 %v9035_v53  ;;  %v4097_v53 = vld [vmem:[%s13373_s6 + $0x670] sm:$0xff]  ;;  %v8805_v43 = vcombine.high %v3910_v52, %v3914_v54  ;;  %v8804_v20 = vcombine.low %v3910_v52, %v3914_v54 }
 0x46b   :  { %v8987_v3 = vcombine.high %v4093_v24, %v4097_v53  ;;  %v8986_v41 = vcombine.low %v4093_v24, %v4097_v53 }
 0x46c   :  { %7446 = vmatpush2.bf16.msra.mxu0 %v9106_v13  ;;  %v3902_v13 = vld [vmem:[%s13373_s6 + $0x58] sm:$0xff] }
 0x46d   :  { %7391 = vmatpush2.bf16.msra.mxu1 %v9034_v57  ;;  %7497 = vmatprep.subr.bf16.mxu0 %v8845_v61  ;;  %v3906_v57 = vld [vmem:[%s13373_s6 + $0x78] sm:$0xff]  ;;  %v4085_v61 = vld [vmem:[%s13373_s6 + $0x610] sm:$0xff] }
 0x46e   :  { %7392 = vmatprep.subr.bf16.mxu1 %v9027_v38  ;;  %v4089_v38 = vld [vmem:[%s13373_s6 + $0x630] sm:$0xff]  ;;  %v8797_v49 = vcombine.high %v3902_v13, %v3906_v57  ;;  %v8796_v2 = vcombine.low %v3902_v13, %v3906_v57 }
 0x46f   :  { %v12608_v5 = vpop.f32.mrf.mxu0  ;;  %7448 = vmatmul.mubr.bf16.vlgmr.msra.gmra.mxu0 %v11887_v31  ;;  %v8979_v60 = vcombine.high %v4085_v61, %v4089_v38  ;;  %v8978_v23 = vcombine.low %v4085_v61, %v4089_v38  ;;  %v4301_v13 = vld [vmem:[%s13373_s6 + $0xcd0] sm:$0xff]  ;;  %v8892_v61 = vcombine.low %v3998_v39, %v4002_v44 }
 0x470   :  { %7498 = vmatpush1.bf16.msra.mxu0 %v8844_v63  ;;  %7529 = vmatprep.mubr.bf16.mxu0 %v11424_v25  ;;  %v4109_v25 = vld [vmem:[%s13373_s6 + $0x6d0] sm:$0xff] }
 0x471   :  { %7393 = vmatpush2.bf16.msra.mxu1 %v9026_v55  ;;  %v12612_v4 = vpop.f32.mrf.mxu0  ;;  %7499 = vmatprep.subr.bf16.mxu0 %v8837_v28  ;;  %v9003_v10 = vcombine.high %v4109_v25, %v4113_v32  ;;  %v9002_v62 = vcombine.low %v4109_v25, %v4113_v32  ;;  %v4333_v63 = vld [vmem:[%s13373_s6 + $0xdd0] sm:$0xff]  ;;  %v3894_v55 = vld [vmem:[%s13373_s6 + $0x18] sm:$0xff] }
 0x472   :  { %7394 = vmatprep.subr.bf16.mxu1 %v9019_v15  ;;  %v3898_v28 = vld [vmem:[%s13373_s6 + $0x38] sm:$0xff]  ;;  %v4337_v15 = vld [vmem:[%s13373_s6 + $0xdf0] sm:$0xff] }
 0x473   :  { %v7207_v26 = vpop.f32.mrf.mxu0  ;;  %v8788_v58 = vcombine.low %v3894_v55, %v3898_v28  ;;  %v9226_v25 = vcombine.low %v4333_v63, %v4337_v15  ;;  %v4317_v32 = vld [vmem:[%s13373_s6 + $0xd50] sm:$0xff] }
 0x474   :  { %7500 = vmatpush1.bf16.msra.mxu0 %v8836_v34  ;;  %v8789_v34 = vcombine.high %v3894_v55, %v3898_v28  ;;  %v4321_v26 = vld [vmem:[%s13373_s6 + $0xd70] sm:$0xff]  ;;  %v3986_v55 = vld [vmem:[%s13373_s6 + $0x2f8] sm:$0xff] }
 0x475   :  { %7395 = vmatpush2.bf16.msra.mxu1 %v9018_v19  ;;  %v7208_v30 = vpop.f32.mrf.mxu0  ;;  %7501 = vmatprep.subr.bf16.mxu0 %v8829_v1  ;;  %v4014_v19 = vld [vmem:[%s13373_s6 + $0x3d8] sm:$0xff]  ;;  %v9227_v1 = vcombine.high %v4333_v63, %v4337_v15  ;;  %v9210_v53 = vcombine.low %v4317_v32, %v4321_v26  ;;  %v4305_v57 = vld [vmem:[%s13373_s6 + $0xcf0] sm:$0xff] }
 0x476   :  { %7396 = vmatprep.subr.bf16.mxu1 %v9011_v45  ;;  %v4018_v45 = vld [vmem:[%s13373_s6 + $0x3f8] sm:$0xff]  ;;  %v9194_v15 = vcombine.low %v4301_v13, %v4305_v57 }
 0x477   :  { %v8909_v30 = vcombine.high %v4014_v19, %v4018_v45  ;;  %v3982_v63 = vld [vmem:[%s13373_s6 + $0x2d8] sm:$0xff] }
 0x478   :  { %7502 = vmatpush1.bf16.msra.mxu0 %v8828_v47  ;;  %v4010_v47 = vld [vmem:[%s13373_s6 + $0x3b8] sm:$0xff] }
 0x479   :  { %7397 = vmatpush2.bf16.msra.mxu1 %v9010_v0  ;;  %7503 = vmatprep.subr.bf16.mxu0 %v8821_v42  ;;  %v9219_v0 = vcombine.high %v4325_v11, %v4329_v22  ;;  %v8900_v24 = vcombine.low %v4006_v51, %v4010_v47  ;;  %v8877_v11 = vcombine.high %v3982_v63, %v3986_v55  ;;  %v3974_v22 = vld [vmem:[%s13373_s6 + $0x298] sm:$0xff] }
 0x47a   :  { %7398 = vmatprep.subr.bf16.mxu1 %v9003_v10  ;;  %v8908_v10 = vcombine.low %v4014_v19, %v4018_v45  ;;  %v3978_v19 = vld [vmem:[%s13373_s6 + $0x2b8] sm:$0xff] }
 0x47c   :  { %7504 = vmatpush1.bf16.msra.mxu0 %v8820_v12  ;;  %v4309_v12 = vld [vmem:[%s13373_s6 + $0xd10] sm:$0xff] }
 0x47d   :  { %7399 = vmatpush2.bf16.msra.mxu1 %v9002_v62  ;;  %7505 = vmatprep.subr.bf16.mxu0 %v8813_v6  ;;  %v8901_v62 = vcombine.high %v4006_v51, %v4010_v47  ;;  %v4281_v51 = vld [vmem:[%s13373_s6 + $0xc30] sm:$0xff]  ;;  %v3970_v47 = vld [vmem:[%s13373_s6 + $0x278] sm:$0xff] }
 0x47e   :  { %7400 = vmatprep.subr.bf16.mxu1 %v8995_v36  ;;  %v9211_v36 = vcombine.high %v4317_v32, %v4321_v26  ;;  %v3966_v32 = vld [vmem:[%s13373_s6 + $0x258] sm:$0xff] }
 0x480   :  { %7506 = vmatpush1.bf16.msra.mxu0 %v8812_v33  ;;  %v8893_v33 = vcombine.high %v3998_v39, %v4002_v44  ;;  %v8861_v39 = vcombine.high %v3966_v32, %v3970_v47  ;;  %v3958_v44 = vld [vmem:[%s13373_s6 + $0x218] sm:$0xff] }
 0x481   :  { %7401 = vmatpush2.bf16.msra.mxu1 %v8994_v9  ;;  %7507 = vmatprep.subr.bf16.mxu0 %v8805_v43  ;;  %v3990_v9 = vld [vmem:[%s13373_s6 + $0x318] sm:$0xff] }
 0x482   :  { %7402 = vmatprep.subr.bf16.mxu1 %v8987_v3 }
 0x484   :  { %7508 = vmatpush1.bf16.msra.mxu0 %v8804_v20  ;;  %v4293_v20 = vld [vmem:[%s13373_s6 + $0xc90] sm:$0xff] }
 0x485   :  { %7403 = vmatpush2.bf16.msra.mxu1 %v8986_v41  ;;  %7509 = vmatprep.subr.bf16.mxu0 %v8797_v49  ;;  %v4297_v41 = vld [vmem:[%s13373_s6 + $0xcb0] sm:$0xff] }
 0x486   :  { %7404 = vmatprep.subr.bf16.mxu1 %v8979_v60  ;;  %v9195_v60 = vcombine.high %v4301_v13, %v4305_v57  ;;  %v9186_v45 = vcombine.low %v4293_v20, %v4297_v41  ;;  %v4198_v57 = vld [vmem:[%s13373_s6 + $0x998] sm:$0xff] }
 0x488   :  { %7510 = vmatpush1.bf16.msra.mxu0 %v8796_v2  ;;  %v4285_v2 = vld [vmem:[%s13373_s6 + $0xc50] sm:$0xff] }
 0x489   :  { %7405 = vmatpush2.bf16.msra.mxu1 %v8978_v23  ;;  %7511 = vmatprep.subr.bf16.mxu0 %v8789_v34  ;;  %v4289_v23 = vld [vmem:[%s13373_s6 + $0xc70] sm:$0xff]  ;;  %v9187_v34 = vcombine.high %v4293_v20, %v4297_v41 }
 0x48a   :  { %7456 = vmatprep.subr.bf16.mxu1 %v9227_v1  ;;  %v8876_v1 = vcombine.low %v3982_v63, %v3986_v55  ;;  %v9179_v26 = vcombine.high %v4285_v2, %v4289_v23  ;;  %v4190_v55 = vld [vmem:[%s13373_s6 + $0x958] sm:$0xff] }
 0x48c   :  { %7407 = vmatmul.mubr.bf16.vlgmr.msra.gmra.mxu1 %v11709_v16  ;;  %v7162_v42 = vpop.f32.mrf.mxu1  ;;  %7512 = vmatpush1.bf16.msra.mxu0 %v8788_v58  ;;  %v4277_v58 = vld [vmem:[%s13373_s6 + $0xc10] sm:$0xff] }
 0x48d   :  { %v12706_v46 = vadd.f32 %v7162_v42, %v12408_v8  ;;  %7457 = vmatpush1.bf16.msra.mxu1 %v9226_v25  ;;  %7488 = vmatprep.mubr.bf16.mxu1 %v12066_v7  ;;  %v4313_v8 = vld [vmem:[%s13373_s6 + $0xd30] sm:$0xff]  ;;  %v8869_v25 = vcombine.high %v3974_v22, %v3978_v19 }
 0x48e   :  { %v7164_v6 = vpop.f32.mrf.mxu1  ;;  %7458 = vmatprep.subr.bf16.mxu1 %v9219_v0  ;;  %7513 = vmatprep.subr.bf16.mxu0 %v8909_v30  ;;  %v9203_v3 = vcombine.high %v4309_v12, %v4313_v8  ;;  %v9202_v38 = vcombine.low %v4309_v12, %v4313_v8  ;;  %v8868_v0 = vcombine.low %v3974_v22, %v3978_v19  ;;  %v4397_v42 = vld [vmem:[%s13373_s6 + $0xfd0] sm:$0xff] }
 0x48f   :  { %v12713_v52 = vadd.f32 %v7164_v6, %v12412_v27  ;;  %v3994_v27 = vld [vmem:[%s13373_s6 + $0x338] sm:$0xff]  ;;  %v9178_v30 = vcombine.low %v4285_v2, %v4289_v23  ;;  %v9171_v12 = vcombine.high %v4277_v58, %v4281_v51  ;;  %v9170_v6 = vcombine.low %v4277_v58, %v4281_v51  ;;  %v4393_v8 = vld [vmem:[%s13373_s6 + $0xfb0] sm:$0xff] }
 0x490   :  { %v7166_v54 = vpop.f32.mrf.mxu1  ;;  %7514 = vmatpush2.bf16.msra.mxu0 %v8908_v10  ;;  %v8885_v49 = vcombine.high %v3990_v9, %v3994_v27  ;;  %v8884_v28 = vcombine.low %v3990_v9, %v3994_v27  ;;  %v4401_v10 = vld [vmem:[%s13373_s6 + $0xff0] sm:$0xff] }
 0x491   :  { %7459 = vmatpush1.bf16.msra.mxu1 %v9218_v21  ;;  %7515 = vmatprep.subr.bf16.mxu0 %v8901_v62  ;;  %v3962_v21 = vld [vmem:[%s13373_s6 + $0x238] sm:$0xff]  ;;  %v8860_v62 = vcombine.low %v3966_v32, %v3970_v47  ;;  %v4385_v27 = vld [vmem:[%s13373_s6 + $0xf70] sm:$0xff] }
 0x492   :  { %v7167_v43 = vpop.f32.mrf.mxu1  ;;  %7460 = vmatprep.subr.bf16.mxu1 %v9211_v36  ;;  %v4389_v36 = vld [vmem:[%s13373_s6 + $0xf90] sm:$0xff]  ;;  %v8853_v54 = vcombine.high %v3958_v44, %v3962_v21  ;;  %v8852_v9 = vcombine.low %v3958_v44, %v3962_v21 }
 0x493   :  { %v9290_v43 = vcombine.low %v4397_v42, %v4401_v10  ;;  %v9282_v41 = vcombine.low %v4389_v36, %v4393_v8  ;;  %v4365_v22 = vld [vmem:[%s13373_s6 + $0xed0] sm:$0xff] }
 0x494   :  { %7516 = vmatpush2.bf16.msra.mxu0 %v8900_v24  ;;  %v4206_v24 = vld [vmem:[%s13373_s6 + $0x9d8] sm:$0xff]  ;;  %v4357_v32 = vld [vmem:[%s13373_s6 + $0xe90] sm:$0xff] }
 0x495   :  { %7461 = vmatpush1.bf16.msra.mxu1 %v9210_v53  ;;  %7517 = vmatprep.subr.bf16.mxu0 %v8893_v33  ;;  %v4210_v53 = vld [vmem:[%s13373_s6 + $0x9f8] sm:$0xff]  ;;  %v9291_v33 = vcombine.high %v4397_v42, %v4401_v10  ;;  %v4349_v21 = vld [vmem:[%s13373_s6 + $0xe50] sm:$0xff] }
 0x496   :  { %7462 = vmatprep.subr.bf16.mxu1 %v9203_v3  ;;  %v4381_v3 = vld [vmem:[%s13373_s6 + $0xf50] sm:$0xff]  ;;  %v9101_v13 = vcombine.high %v4206_v24, %v4210_v53  ;;  %v9100_v20 = vcombine.low %v4206_v24, %v4210_v53  ;;  %v4178_v42 = vld [vmem:[%s13373_s6 + $0x8f8] sm:$0xff] }
 0x498   :  { %7518 = vmatpush2.bf16.msra.mxu0 %v8892_v61  ;;  %v4202_v61 = vld [vmem:[%s13373_s6 + $0x9b8] sm:$0xff] }
 0x499   :  { %7463 = vmatpush1.bf16.msra.mxu1 %v9202_v38  ;;  %7519 = vmatprep.subr.bf16.mxu0 %v8885_v49  ;;  %v9283_v38 = vcombine.high %v4389_v36, %v4393_v8  ;;  %v4373_v49 = vld [vmem:[%s13373_s6 + $0xf10] sm:$0xff]  ;;  %v9093_v63 = vcombine.high %v4198_v57, %v4202_v61  ;;  %v9092_v23 = vcombine.low %v4198_v57, %v4202_v61  ;;  %v4170_v36 = vld [vmem:[%s13373_s6 + $0x8b8] sm:$0xff] }
 0x49a   :  { %7464 = vmatprep.subr.bf16.mxu1 %v9195_v60  ;;  %v4377_v60 = vld [vmem:[%s13373_s6 + $0xf30] sm:$0xff] }
 0x49c   :  { %7520 = vmatpush2.bf16.msra.mxu0 %v8884_v28  ;;  %v4194_v28 = vld [vmem:[%s13373_s6 + $0x978] sm:$0xff] }
 0x49d   :  { %7465 = vmatpush1.bf16.msra.mxu1 %v9194_v15  ;;  %7521 = vmatprep.subr.bf16.mxu0 %v8877_v11  ;;  %v9275_v15 = vcombine.high %v4381_v3, %v4385_v27  ;;  %v9274_v11 = vcombine.low %v4381_v3, %v4385_v27  ;;  %v9084_v51 = vcombine.low %v4190_v55, %v4194_v28  ;;  %v4341_v3 = vld [vmem:[%s13373_s6 + $0xe10] sm:$0xff] }
 0x49e   :  { %7466 = vmatprep.subr.bf16.mxu1 %v9187_v34  ;;  %v4369_v34 = vld [vmem:[%s13373_s6 + $0xef0] sm:$0xff] }
 0x49f   :  { %v9259_v10 = vcombine.high %v4365_v22, %v4369_v34  ;;  %v9258_v44 = vcombine.low %v4365_v22, %v4369_v34  ;;  %v4345_v27 = vld [vmem:[%s13373_s6 + $0xe30] sm:$0xff]  ;;  %v4074_v34 = vld [vmem:[%s13373_s6 + $0x5b8] sm:$0xff] }
 0x4a0   :  { %7522 = vmatpush2.bf16.msra.mxu0 %v8876_v1  ;;  %v9085_v1 = vcombine.high %v4190_v55, %v4194_v28  ;;  %v9234_v55 = vcombine.low %v4341_v3, %v4345_v27 }
 0x4a1   :  { %7467 = vmatpush1.bf16.msra.mxu1 %v9186_v45  ;;  %7523 = vmatprep.subr.bf16.mxu0 %v8869_v25  ;;  %v9267_v45 = vcombine.high %v4373_v49, %v4377_v60  ;;  %v9266_v25 = vcombine.low %v4373_v49, %v4377_v60  ;;  %v4078_v49 = vld [vmem:[%s13373_s6 + $0x5d8] sm:$0xff] }
 0x4a2   :  { %7468 = vmatprep.subr.bf16.mxu1 %v9179_v26  ;;  %v4361_v26 = vld [vmem:[%s13373_s6 + $0xeb0] sm:$0xff]  ;;  %v4082_v60 = vld [vmem:[%s13373_s6 + $0x5f8] sm:$0xff] }
 0x4a3   :  { %v9251_v8 = vcombine.high %v4357_v32, %v4361_v26  ;;  %v9250_v24 = vcombine.low %v4357_v32, %v4361_v26  ;;  %v4266_v32 = vld [vmem:[%s13373_s6 + $0xbb8] sm:$0xff] }
 0x4a4   :  { %7524 = vmatpush2.bf16.msra.mxu0 %v8868_v0 }
 0x4a5   :  { %7469 = vmatpush1.bf16.msra.mxu1 %v9178_v30  ;;  %7525 = vmatprep.subr.bf16.mxu0 %v8861_v39  ;;  %v4174_v30 = vld [vmem:[%s13373_s6 + $0x8d8] sm:$0xff] }
 0x4a6   :  { %7470 = vmatprep.subr.bf16.mxu1 %v9171_v12  ;;  %v4353_v12 = vld [vmem:[%s13373_s6 + $0xe70] sm:$0xff] }
 0x4a7   :  { %v9242_v57 = vcombine.low %v4349_v21, %v4353_v12 }
 0x4a8   :  { %7526 = vmatpush2.bf16.msra.mxu0 %v8860_v62  ;;  %v9069_v62 = vcombine.high %v4174_v30, %v4178_v42 }
 0x4a9   :  { %7471 = vmatpush1.bf16.msra.mxu1 %v9170_v6  ;;  %7527 = vmatprep.subr.bf16.mxu0 %v8853_v54  ;;  %v4166_v6 = vld [vmem:[%s13373_s6 + $0x898] sm:$0xff]  ;;  %v9068_v54 = vcombine.low %v4174_v30, %v4178_v42 }
 0x4aa   :  { %7472 = vmatprep.subr.bf16.mxu1 %v9291_v33  ;;  %v9061_v53 = vcombine.high %v4166_v6, %v4170_v36  ;;  %v9243_v33 = vcombine.high %v4349_v21, %v4353_v12  ;;  %v4254_v12 = vld [vmem:[%s13373_s6 + $0xb58] sm:$0xff] }
 0x4ac   :  { %7528 = vmatpush2.bf16.msra.mxu0 %v8852_v9  ;;  %v4158_v9 = vld [vmem:[%s13373_s6 + $0x858] sm:$0xff] }
 0x4ad   :  { %7473 = vmatpush2.bf16.msra.mxu1 %v9290_v43  ;;  %7579 = vmatprep.subr.bf16.mxu0 %v9101_v13  ;;  %v4162_v43 = vld [vmem:[%s13373_s6 + $0x878] sm:$0xff]  ;;  %v9060_v13 = vcombine.low %v4166_v6, %v4170_v36 }
 0x4ae   :  { %7474 = vmatprep.subr.bf16.mxu1 %v9283_v38  ;;  %v9053_v61 = vcombine.high %v4158_v9, %v4162_v43  ;;  %v9235_v38 = vcombine.high %v4341_v3, %v4345_v27  ;;  %v4246_v3 = vld [vmem:[%s13373_s6 + $0xb18] sm:$0xff] }
 0x4af   :  { %v12814_v2 = vpop.f32.mrf.mxu0  ;;  %7530 = vmatmul.mubr.bf16.vlgmr.msra.gmra.mxu0 %v11641_v14  ;;  %v4182_v14 = vld [vmem:[%s13373_s6 + $0x918] sm:$0xff] }
 0x4b0   :  { %7580 = vmatpush1.bf16.msra.mxu0 %v9100_v20  ;;  %7611 = vmatprep.mubr.bf16.mxu0 %v11885_v59  ;;  %v4186_v59 = vld [vmem:[%s13373_s6 + $0x938] sm:$0xff] }
 0x4b1   :  { %7475 = vmatpush2.bf16.msra.mxu1 %v9282_v41  ;;  %v12824_v19 = vpop.f32.mrf.mxu0  ;;  %7581 = vmatprep.subr.bf16.mxu0 %v9093_v63  ;;  %v9077_v0 = vcombine.high %v4182_v14, %v4186_v59  ;;  %v9076_v39 = vcombine.low %v4182_v14, %v4186_v59  ;;  %v4150_v20 = vld [vmem:[%s13373_s6 + $0x818] sm:$0xff]  ;;  %v9052_v63 = vcombine.low %v4158_v9, %v4162_v43 }
 0x4b2   :  { %7476 = vmatprep.subr.bf16.mxu1 %v9275_v15  ;;  %v4154_v41 = vld [vmem:[%s13373_s6 + $0x838] sm:$0xff]  ;;  %v8973_v15 = vcombine.high %v4078_v49, %v4082_v60 }
 0x4b3   :  { %v7289_v58 = vpop.f32.mrf.mxu0  ;;  %v9045_v28 = vcombine.high %v4150_v20, %v4154_v41  ;;  %v4274_v14 = vld [vmem:[%s13373_s6 + $0xbf8] sm:$0xff]  ;;  %v9044_v59 = vcombine.low %v4150_v20, %v4154_v41 }
 0x4b4   :  { %7582 = vmatpush1.bf16.msra.mxu0 %v9092_v23  ;;  %v4070_v23 = vld [vmem:[%s13373_s6 + $0x598] sm:$0xff] }
 0x4b5   :  { %7477 = vmatpush2.bf16.msra.mxu1 %v9274_v11  ;;  %v7290_v47 = vpop.f32.mrf.mxu0  ;;  %7583 = vmatprep.subr.bf16.mxu0 %v9085_v1  ;;  %v12886_v11 = vld [vmem:[%s13374_s7] sm:$0xff]  ;;  %v4270_v1 = vld [vmem:[%s13373_s6 + $0xbd8] sm:$0xff]  ;;  %v8965_v58 = vcombine.high %v4070_v23, %v4074_v34  ;;  %v8964_v30 = vcombine.low %v4070_v23, %v4074_v34 }
 0x4b6   :  { %7478 = vmatprep.subr.bf16.mxu1 %v9267_v45  ;;  %v4416_v22 = vrot.slane %v12886_v11, %v1225_v18  ;;  %v4420_v45 = vrot.slane %v12886_v11, %v1229_v29  ;;  %v8972_v18 = vcombine.low %v4078_v49, %v4082_v60  ;;  %v4062_v29 = vld [vmem:[%s13373_s6 + $0x558] sm:$0xff]  ;;  %v9164_v42 = vcombine.low %v4270_v1, %v4274_v14 }
 0x4b7   :  { %v4066_v47 = vld [vmem:[%s13373_s6 + $0x578] sm:$0xff] }
 0x4b8   :  { %7584 = vmatpush1.bf16.msra.mxu0 %v9084_v51  ;;  %v9165_v51 = vcombine.high %v4270_v1, %v4274_v14  ;;  %v7204_v26 = vadd.f32 %v12608_v5, %v4416_v22  ;;  %v8957_v21 = vcombine.high %v4062_v29, %v4066_v47  ;;  %v4046_v27 = vld [vmem:[%s13373_s6 + $0x4d8] sm:$0xff] }
 0x4b9   :  { %7479 = vmatpush2.bf16.msra.mxu1 %v9266_v25  ;;  %7585 = vmatprep.subr.bf16.mxu0 %v9077_v0  ;;  %v4262_v25 = vld [vmem:[%s13373_s6 + $0xb98] sm:$0xff] }
 0x4ba   :  { %7480 = vmatprep.subr.bf16.mxu1 %v9259_v10  ;;  %v7206_v10 = vadd.f32 %v12612_v4, %v4420_v45  ;;  %v9157_v5 = vcombine.high %v4262_v25, %v4266_v32  ;;  %v4054_v4 = vld [vmem:[%s13373_s6 + $0x518] sm:$0xff] }
 0x4bb   :  { %v4238_v20 = vld [vmem:[%s13373_s6 + $0xad8] sm:$0xff] }
 0x4bc   :  { %7586 = vmatpush1.bf16.msra.mxu0 %v9076_v39  ;;  %v4242_v41 = vld [vmem:[%s13373_s6 + $0xaf8] sm:$0xff] }
 0x4bd   :  { %7481 = vmatpush2.bf16.msra.mxu1 %v9258_v44  ;;  %7587 = vmatprep.subr.bf16.mxu0 %v9069_v62  ;;  %v4258_v62 = vld [vmem:[%s13373_s6 + $0xb78] sm:$0xff]  ;;  %v9132_v14 = vcombine.low %v4238_v20, %v4242_v41 }
 0x4be   :  { %7482 = vmatprep.subr.bf16.mxu1 %v9251_v8  ;;  %v4038_v49 = vld [vmem:[%s13373_s6 + $0x498] sm:$0xff] }
 0x4bf   :  { %v4042_v60 = vld [vmem:[%s13373_s6 + $0x4b8] sm:$0xff] }
 0x4c0   :  { %7588 = vmatpush1.bf16.msra.mxu0 %v9068_v54  ;;  %v9156_v54 = vcombine.low %v4262_v25, %v4266_v32  ;;  %v4230_v23 = vld [vmem:[%s13373_s6 + $0xa98] sm:$0xff] }
 0x4c1   :  { %7483 = vmatpush2.bf16.msra.mxu1 %v9250_v24  ;;  %7589 = vmatprep.subr.bf16.mxu0 %v9061_v53  ;;  %v8956_v24 = vcombine.low %v4062_v29, %v4066_v47  ;;  %v9149_v53 = vcombine.high %v4254_v12, %v4258_v62  ;;  %v4234_v22 = vld [vmem:[%s13373_s6 + $0xab8] sm:$0xff] }
 0x4c2   :  { %7484 = vmatprep.subr.bf16.mxu1 %v9243_v33  ;;  %v4030_v34 = vld [vmem:[%s13373_s6 + $0x458] sm:$0xff]  ;;  %v9125_v45 = vcombine.high %v4230_v23, %v4234_v22 }
 0x4c3   :  { %v4034_v1 = vld [vmem:[%s13373_s6 + $0x478] sm:$0xff] }
 0x4c4   :  { %7590 = vmatpush1.bf16.msra.mxu0 %v9060_v13  ;;  %v9148_v13 = vcombine.low %v4254_v12, %v4258_v62  ;;  %v4022_v25 = vld [vmem:[%s13373_s6 + $0x418] sm:$0xff]  ;;  %v8924_v29 = vcombine.low %v4030_v34, %v4034_v1 }
 0x4c5   :  { %7485 = vmatpush2.bf16.msra.mxu1 %v9242_v57  ;;  %7591 = vmatprep.subr.bf16.mxu0 %v9053_v61  ;;  %v4026_v32 = vld [vmem:[%s13373_s6 + $0x438] sm:$0xff] }
 0x4c6   :  { %7486 = vmatprep.subr.bf16.mxu1 %v9235_v38  ;;  %v4134_v62 = vld [vmem:[%s13373_s6 + $0x798] sm:$0xff] }
 0x4c8   :  { %7592 = vmatpush1.bf16.msra.mxu0 %v9052_v63 }
 0x4c9   :  { %7487 = vmatpush2.bf16.msra.mxu1 %v9234_v55  ;;  %7593 = vmatprep.subr.bf16.mxu0 %v9045_v28  ;;  %v9133_v28 = vcombine.high %v4238_v20, %v4242_v41  ;;  %v9454_v41 = vld [vmem:[%s13375_s8 + $0x68] sm:$0xff]  }
 0x4ca   :  { %7538 = vmatprep.subr.bf16.mxu1 %v8973_v15  ;;  %v8933_v15 = vcombine.high %v4038_v49, %v4042_v60 }
 0x4cc   :  { %v7244_v0 = vpop.f32.mrf.mxu1  ;;  %7489 = vmatmul.mubr.bf16.vlgmr.msra.gmra.mxu1 %v12068_v40  ;;  %7594 = vmatpush1.bf16.msra.mxu0 %v9044_v59  ;;  %v8932_v59 = vcombine.low %v4038_v49, %v4042_v60  ;;  %v4114_v60 = vld [vmem:[%s13373_s6 + $0x6f8] sm:$0xff] }
 0x4cd   :  { %v7245_v39 = vadd.f32 %v7244_v0, %v7204_v26  ;;  %7539 = vmatpush1.bf16.msra.mxu1 %v8972_v18  ;;  %7570 = vmatprep.mubr.bf16.mxu1 %v11513_v35  ;;  %v4058_v35 = vld [vmem:[%s13373_s6 + $0x538] sm:$0xff]  ;;  %v8925_v18 = vcombine.high %v4030_v34, %v4034_v1  ;;  %v9124_v26 = vcombine.low %v4230_v23, %v4234_v22  ;;  %v9456_v23 = vld [vmem:[%s13375_s8 + $0x60] sm:$0xff]  }
 0x4ce   :  { %v7246_v44 = vpop.f32.mrf.mxu1  ;;  %7540 = vmatprep.subr.bf16.mxu1 %v8965_v58  ;;  %7595 = vmatprep.subr.bf16.mxu0 %v9165_v51  ;;  %v8949_v43 = vcombine.high %v4054_v4, %v4058_v35  ;;  %v8948_v57 = vcombine.low %v4054_v4, %v4058_v35  ;;  %v4222_v58 = vld [vmem:[%s13373_s6 + $0xa58] sm:$0xff]  ;;  %v8917_v0 = vcombine.high %v4022_v25, %v4026_v32 }
 0x4cf   :  { %v7247_v6 = vadd.f32 %v7246_v44, %v7206_v10  ;;  %v12932_v36 = vadd.f32 %v12814_v2, %v7245_v39  ;;  %v4250_v2 = vld [vmem:[%s13373_s6 + $0xb38] sm:$0xff]  ;;  %v8916_v44 = vcombine.low %v4022_v25, %v4026_v32 }
 0x4d0   :  { %v7248_v8 = vpop.f32.mrf.mxu1  ;;  %7596 = vmatpush2.bf16.msra.mxu0 %v9164_v42  ;;  %v9141_v61 = vcombine.high %v4246_v3, %v4250_v2  ;;  %v9140_v63 = vcombine.low %v4246_v3, %v4250_v2  ;;  %v4226_v51 = vld [vmem:[%s13373_s6 + $0xa78] sm:$0xff] }
 0x4d1   :  { %7541 = vmatpush1.bf16.msra.mxu1 %v8964_v30  ;;  %7597 = vmatprep.subr.bf16.mxu0 %v9157_v5  ;;  %v12935_v33 = vadd.f32 %v12824_v19, %v7247_v6  ;;  %v4050_v19 = vld [vmem:[%s13373_s6 + $0x4f8] sm:$0xff]  ;;  %v9117_v47 = vcombine.high %v4222_v58, %v4226_v51  ;;  %v9116_v5 = vcombine.low %v4222_v58, %v4226_v51 }
 0x4d2   :  { %v7249_v9 = vpop.f32.mrf.mxu1  ;;  %7542 = vmatprep.subr.bf16.mxu1 %v8957_v21  ;;  %v8941_v38 = vcombine.high %v4046_v27, %v4050_v19  ;;  %v8940_v55 = vcombine.low %v4046_v27, %v4050_v19  ;;  %v4214_v30 = vld [vmem:[%s13373_s6 + $0xa18] sm:$0xff] }
 0x4d3   :  { %v4218_v42 = vld [vmem:[%s13373_s6 + $0xa38] sm:$0xff] }
 0x4d4   :  { %7598 = vmatpush2.bf16.msra.mxu0 %v9156_v54  ;;  %v4142_v10 = vld [vmem:[%s13373_s6 + $0x7d8] sm:$0xff]  ;;  %v9109_v21 = vcombine.high %v4214_v30, %v4218_v42  ;;  %v9108_v4 = vcombine.low %v4214_v30, %v4218_v42  ;;  %v7662_v54 = vmax.f32 %v12713_v52, 0.0  ;;  %v9452_v52 = vld [vmem:[%s13375_s8 + $0x70] sm:$0xff]  }
 0x4d5   :  { %7543 = vmatpush1.bf16.msra.mxu1 %v8956_v24  ;;  %7599 = vmatprep.subr.bf16.mxu0 %v9149_v53  ;;  %v4146_v39 = vld [vmem:[%s13373_s6 + $0x7f8] sm:$0xff]  ;;  %v9461_v30 = vld [vmem:[%s13375_s8 + $0x10] sm:$0xff]  }
 0x4d6   :  { %7544 = vmatprep.subr.bf16.mxu1 %v8949_v43  ;;  %v9037_v12 = vcombine.high %v4142_v10, %v4146_v39  ;;  %v4138_v6 = vld [vmem:[%s13373_s6 + $0x7b8] sm:$0xff]  ;;  %v9036_v35 = vcombine.low %v4142_v10, %v4146_v39  ;;  %v7670_v2 = vpack.c.bf16 %v7662_v54, %v7662_v54  ;;  %v9462_v10 = vld [vmem:[%s13375_s8 + $0x48] sm:$0xff]   ;;  %v7661_v54 = vmax.f32 %v12706_v46, 0.0 }
 0x4d7   :  { %v9450_v8 = vld [vmem:[%s13375_s8 + $0x78] sm:$0xff]   ;;  %v9029_v24 = vcombine.high %v4134_v62, %v4138_v6  ;;  %v9028_v3 = vcombine.low %v4134_v62, %v4138_v6  ;;  %v9464_v62 = vld [vmem:[%s13375_s8 + $0x40] sm:$0xff]  }
 0x4d8   :  { %7600 = vmatpush2.bf16.msra.mxu0 %v9148_v13  ;;  %v4126_v53 = vld [vmem:[%s13373_s6 + $0x758] sm:$0xff] }
 0x4d9   :  { %7545 = vmatpush1.bf16.msra.mxu1 %v8948_v57  ;;  %7601 = vmatprep.subr.bf16.mxu0 %v9141_v61  ;;  %v4130_v9 = vld [vmem:[%s13373_s6 + $0x778] sm:$0xff]  ;;  %v9453_v61 = vld [vmem:[%s13375_s8 + $0x30] sm:$0xff]  }
 0x4da   :  { %7546 = vmatprep.subr.bf16.mxu1 %v8941_v38  ;;  %v9451_v43 = vld [vmem:[%s13375_s8 + $0x38] sm:$0xff]   ;;  %v9021_v27 = vcombine.high %v4126_v53, %v4130_v9  ;;  %v9020_v38 = vcombine.low %v4126_v53, %v4130_v9 }
 0x4db   :  { %v4118_v19 = vld [vmem:[%s13373_s6 + $0x718] sm:$0xff] }
 0x4dc   :  { %7602 = vmatpush2.bf16.msra.mxu0 %v9140_v63  ;;  %v4122_v13 = vld [vmem:[%s13373_s6 + $0x738] sm:$0xff] }
 0x4dd   :  { %7547 = vmatpush1.bf16.msra.mxu1 %v8940_v55  ;;  %7603 = vmatprep.subr.bf16.mxu0 %v9133_v28  ;;  %v9013_v49 = vcombine.high %v4118_v19, %v4122_v13  ;;  %v9455_v55 = vld [vmem:[%s13375_s8 + $0x28] sm:$0xff]   ;;  %v9012_v28 = vcombine.low %v4118_v19, %v4122_v13  ;;  %v4102_v34 = vld [vmem:[%s13373_s6 + $0x698] sm:$0xff]  ;;  %v9484_v13 = vld [vmem:[%s13375_s8 + $0x170] sm:$0xff]  }
 0x4de   :  { %7548 = vmatprep.subr.bf16.mxu1 %v8933_v15  ;;  %v4106_v1 = vld [vmem:[%s13373_s6 + $0x6b8] sm:$0xff] }
 0x4df   :  { %v4094_v58 = vld [vmem:[%s13373_s6 + $0x658] sm:$0xff]  ;;  %v8996_v32 = vcombine.low %v4102_v34, %v4106_v1 }
 0x4e0   :  { %7604 = vmatpush2.bf16.msra.mxu0 %v9132_v14  ;;  %v9457_v14 = vld [vmem:[%s13375_s8 + $0x20] sm:$0xff]   ;;  %v4098_v51 = vld [vmem:[%s13373_s6 + $0x678] sm:$0xff] }
 0x4e1   :  { %7549 = vmatpush1.bf16.msra.mxu1 %v8932_v59  ;;  %7605 = vmatprep.subr.bf16.mxu0 %v9125_v45  ;;  %v9458_v45 = vld [vmem:[%s13375_s8 + $0x58] sm:$0xff]   ;;  %v8988_v42 = vcombine.low %v4094_v58, %v4098_v51 }
 0x4e2   :  { %7550 = vmatprep.subr.bf16.mxu1 %v8925_v18  ;;  %v8997_v18 = vcombine.high %v4102_v34, %v4106_v1  ;;  %v9459_v25 = vld [vmem:[%s13375_s8 + $0x18] sm:$0xff]  }
 0x4e3   :  { %v9482_v9 = vld [vmem:[%s13375_s8 + $0x178] sm:$0xff]  }
 0x4e4   :  { %7606 = vmatpush2.bf16.msra.mxu0 %v9124_v26  ;;  %v9460_v26 = vld [vmem:[%s13375_s8 + $0x50] sm:$0xff]   ;;  %v9483_v46 = vld [vmem:[%s13375_s8 + $0x138] sm:$0xff]  }
 0x4e5   :  { %7551 = vmatpush1.bf16.msra.mxu1 %v8924_v29  ;;  %7607 = vmatprep.subr.bf16.mxu0 %v9117_v47  ;;  %v8989_v29 = vcombine.high %v4094_v58, %v4098_v51  ;;  %v4086_v47 = vld [vmem:[%s13373_s6 + $0x618] sm:$0xff] }
 0x4e6   :  { %7552 = vmatprep.subr.bf16.mxu1 %v8917_v0  ;;  %v4090_v0 = vld [vmem:[%s13373_s6 + $0x638] sm:$0xff] }
 0x4e7   :  { %v8981_v39 = vcombine.high %v4086_v47, %v4090_v0  ;;  %v4294_v1 = vld [vmem:[%s13373_s6 + $0xc98] sm:$0xff] }
 0x4e8   :  { %7608 = vmatpush2.bf16.msra.mxu0 %v9116_v5  ;;  %v4334_v5 = vld [vmem:[%s13373_s6 + $0xdd8] sm:$0xff] }
 0x4e9   :  { %7553 = vmatpush1.bf16.msra.mxu1 %v8916_v44  ;;  %7609 = vmatprep.subr.bf16.mxu0 %v9109_v21  ;;  %v4338_v44 = vld [vmem:[%s13373_s6 + $0xdf8] sm:$0xff]  ;;  %v9463_v21 = vld [vmem:[%s13375_s8 + $0x8] sm:$0xff]  }
 0x4ea   :  { %7554 = vmatprep.subr.bf16.mxu1 %v9037_v12  ;;  %v8980_v12 = vcombine.low %v4086_v47, %v4090_v0  ;;  %v9229_v6 = vcombine.high %v4334_v5, %v4338_v44  ;;  %v4286_v51 = vld [vmem:[%s13373_s6 + $0xc58] sm:$0xff] }
 0x4eb   :  { %v4278_v0 = vld [vmem:[%s13373_s6 + $0xc18] sm:$0xff] }
 0x4ec   :  { %7610 = vmatpush2.bf16.msra.mxu0 %v9108_v4  ;;  %v4326_v4 = vld [vmem:[%s13373_s6 + $0xd98] sm:$0xff] }
 0x4ed   :  { %7555 = vmatpush2.bf16.msra.mxu1 %v9036_v35  ;;  %9359 = vmatprep.subr.bf16.mxu0 %v9450_v8  ;;  %v4330_v35 = vld [vmem:[%s13373_s6 + $0xdb8] sm:$0xff]  ;;  %v9465_v8 = vld [vmem:[%s13375_s8] sm:$0xff]  }
 0x4ee   :  { %7556 = vmatprep.subr.bf16.mxu1 %v9029_v24  ;;  %v9228_v24 = vcombine.low %v4334_v5, %v4338_v44  ;;  %v9221_v53 = vcombine.high %v4326_v4, %v4330_v35  ;;  %v9220_v19 = vcombine.low %v4326_v4, %v4330_v35  ;;  %v4398_v44 = vld [vmem:[%s13373_s6 + $0xfd8] sm:$0xff] }
 0x4ef   :  { %v13025_v57 = vpop.f32.mrf.mxu0  ;;  %7612 = vmatmul.mubr.bf16.vlgmr.msra.gmra.mxu0 %v11887_v31  ;;  %v4110_v31 = vld [vmem:[%s13373_s6 + $0x6d8] sm:$0xff] }
 0x4f0   :  { %9360 = vmatpush3.bf16.msra.mxu0 %v9451_v43  ;;  %8228 = vmatprep.mubr.bf16.mxu0 %v7670_v2  ;;  %v9005_v22 = vcombine.high %v4110_v31, %v4114_v60  ;;  %v9004_v59 = vcombine.low %v4110_v31, %v4114_v60  ;;  %v4318_v43 = vld [vmem:[%s13373_s6 + $0xd58] sm:$0xff]  ;;  %v7669_v2 = vpack.c.bf16 %v7661_v54, %v7661_v54  ;;  %v9486_v31 = vld [vmem:[%s13375_s8 + $0x168] sm:$0xff]   ;;  %v9497_v54 = vld [vmem:[%s13375_s8 + $0x100] sm:$0xff]  }
 0x4f1   :  { %7557 = vmatpush2.bf16.msra.mxu1 %v9028_v3  ;;  %v13031_v20 = vpop.f32.mrf.mxu0  ;;  %9361 = vmatprep.subr.bf16.mxu0 %v9452_v52  ;;  %v4322_v3 = vld [vmem:[%s13373_s6 + $0xd78] sm:$0xff] }
 0x4f2   :  { %7558 = vmatprep.subr.bf16.mxu1 %v9021_v27  ;;  %v4390_v35 = vld [vmem:[%s13373_s6 + $0xf98] sm:$0xff] }
 0x4f3   :  { %v7371_v63 = vpop.f32.mrf.mxu0 }
 0x4f4   :  { %9362 = vmatpush3.bf16.msra.mxu0 %v9453_v61 }
 0x4f5   :  { %7559 = vmatpush2.bf16.msra.mxu1 %v9020_v38  ;;  %v7372_v15 = vpop.f32.mrf.mxu0  ;;  %9363 = vmatprep.subr.bf16.mxu0 %v9454_v41  ;;  %v4310_v38 = vld [vmem:[%s13373_s6 + $0xd18] sm:$0xff]  ;;  %v9485_v41 = vld [vmem:[%s13375_s8 + $0x130] sm:$0xff]  }
 0x4f6   :  { %7560 = vmatprep.subr.bf16.mxu1 %v9013_v49  ;;  %v9212_v49 = vcombine.low %v4318_v43, %v4322_v3  ;;  %v9487_v15 = vld [vmem:[%s13375_s8 + $0x128] sm:$0xff]  }
 0x4f8   :  { %9364 = vmatpush3.bf16.msra.mxu0 %v9455_v55  ;;  %v4302_v55 = vld [vmem:[%s13373_s6 + $0xcd8] sm:$0xff] }
 0x4f9   :  { %7561 = vmatpush2.bf16.msra.mxu1 %v9012_v28  ;;  %9365 = vmatprep.subr.bf16.mxu0 %v9456_v23  ;;  %v4306_v28 = vld [vmem:[%s13373_s6 + $0xcf8] sm:$0xff] }
 0x4fa   :  { %7562 = vmatprep.subr.bf16.mxu1 %v9005_v22  ;;  %v9488_v22 = vld [vmem:[%s13375_s8 + $0x160] sm:$0xff]   ;;  %v9197_v34 = vcombine.high %v4302_v55, %v4306_v28 }
 0x4fc   :  { %9366 = vmatpush3.bf16.msra.mxu0 %v9457_v14  ;;  %v4298_v14 = vld [vmem:[%s13373_s6 + $0xcb8] sm:$0xff] }
 0x4fd   :  { %7563 = vmatpush2.bf16.msra.mxu1 %v9004_v59  ;;  %9367 = vmatprep.subr.bf16.mxu0 %v9458_v45  ;;  %v9489_v59 = vld [vmem:[%s13375_s8 + $0x120] sm:$0xff]   ;;  %v9196_v45 = vcombine.low %v4302_v55, %v4306_v28  ;;  %v9189_v58 = vcombine.high %v4294_v1, %v4298_v14  ;;  %v4362_v55 = vld [vmem:[%s13373_s6 + $0xeb8] sm:$0xff] }
 0x4fe   :  { %7564 = vmatprep.subr.bf16.mxu1 %v8997_v18  ;;  %v9490_v18 = vld [vmem:[%s13375_s8 + $0x158] sm:$0xff]  }
 0x500   :  { %9368 = vmatpush3.bf16.msra.mxu0 %v9459_v25  ;;  %v4290_v25 = vld [vmem:[%s13373_s6 + $0xc78] sm:$0xff] }
 0x501   :  { %7565 = vmatpush2.bf16.msra.mxu1 %v8996_v32  ;;  %9369 = vmatprep.subr.bf16.mxu0 %v9460_v26  ;;  %v9491_v32 = vld [vmem:[%s13375_s8 + $0x118] sm:$0xff]   ;;  %v9188_v26 = vcombine.low %v4294_v1, %v4298_v14  ;;  %v9181_v47 = vcombine.high %v4286_v51, %v4290_v25 }
 0x502   :  { %7566 = vmatprep.subr.bf16.mxu1 %v8989_v29  ;;  %v9492_v29 = vld [vmem:[%s13375_s8 + $0x150] sm:$0xff]   ;;  %v4342_v14 = vld [vmem:[%s13373_s6 + $0xe18] sm:$0xff] }
 0x504   :  { %9370 = vmatpush3.bf16.msra.mxu0 %v9461_v30  ;;  %v4282_v30 = vld [vmem:[%s13373_s6 + $0xc38] sm:$0xff] }
 0x505   :  { %7567 = vmatpush2.bf16.msra.mxu1 %v8988_v42  ;;  %9371 = vmatprep.subr.bf16.mxu0 %v9462_v10  ;;  %v9493_v42 = vld [vmem:[%s13375_s8 + $0x110] sm:$0xff]   ;;  %v9180_v10 = vcombine.low %v4286_v51, %v4290_v25  ;;  %v9173_v5 = vcombine.high %v4278_v0, %v4282_v30  ;;  %v9466_v25 = vld [vmem:[%s13375_s8 + $0xf8] sm:$0xff]  }
 0x506   :  { %7568 = vmatprep.subr.bf16.mxu1 %v8981_v39  ;;  %v9494_v39 = vld [vmem:[%s13375_s8 + $0x148] sm:$0xff]  }
 0x508   :  { %9372 = vmatpush3.bf16.msra.mxu0 %v9463_v21  ;;  %v4402_v21 = vld [vmem:[%s13373_s6 + $0xff8] sm:$0xff] }
 0x509   :  { %7569 = vmatpush2.bf16.msra.mxu1 %v8980_v12  ;;  %9373 = vmatprep.subr.bf16.mxu0 %v9464_v62  ;;  %v9495_v12 = vld [vmem:[%s13375_s8 + $0x108] sm:$0xff]   ;;  %v9172_v62 = vcombine.low %v4278_v0, %v4282_v30  ;;  %v9293_v4 = vcombine.high %v4398_v44, %v4402_v21 }
 0x50a   :  { %7620 = vmatprep.subr.bf16.mxu1 %v9229_v6  ;;  %v9496_v6 = vld [vmem:[%s13375_s8 + $0x140] sm:$0xff]  }
 0x50c   :  { %v7326_v52 = vpop.f32.mrf.mxu1  ;;  %7571 = vmatmul.mubr.bf16.vlgmr.msra.gmra.mxu1 %v11709_v16  ;;  %9374 = vmatpush3.bf16.msra.mxu0 %v9465_v8  ;;  %v9213_v16 = vcombine.high %v4318_v43, %v4322_v3  ;;  %v4394_v8 = vld [vmem:[%s13373_s6 + $0xfb8] sm:$0xff] }
 0x50d   :  { %v13120_v27 = vadd.f32 %v7326_v52, %v12932_v36  ;;  %7621 = vmatpush1.bf16.msra.mxu1 %v9228_v24  ;;  %7652 = vmatprep.mubr.bf16.mxu1 %v12066_v7  ;;  %v4314_v36 = vld [vmem:[%s13373_s6 + $0xd38] sm:$0xff]  ;;  %v9292_v24 = vcombine.low %v4398_v44, %v4402_v21  ;;  %v9284_v3 = vcombine.low %v4390_v35, %v4394_v8 }
 0x50e   :  { %v13126_v61 = vpop.f32.mrf.mxu1  ;;  %7622 = vmatprep.subr.bf16.mxu1 %v9221_v53  ;;  %9403 = vmatprep.subr.bf16.mxu0 %v9482_v9  ;;  %v9205_v63 = vcombine.high %v4310_v38, %v4314_v36  ;;  %v9204_v23 = vcombine.low %v4310_v38, %v4314_v36  ;;  %v9285_v53 = vcombine.high %v4390_v35, %v4394_v8  ;;  %v4382_v9 = vld [vmem:[%s13373_s6 + $0xf58] sm:$0xff]  ;;  %v9476_v35 = vld [vmem:[%s13375_s8 + $0xd0] sm:$0xff]  }
 0x50f   :  { %8229 = vmatmul.mubr.bf16.vlgmr.msra.gmra.mxu0 %v7669_v2  ;;  %v4386_v43 = vld [vmem:[%s13373_s6 + $0xf78] sm:$0xff]  ;;  %v9477_v8 = vld [vmem:[%s13375_s8 + $0x90] sm:$0xff]  }
 0x510   :  { %v7330_v7 = vpop.f32.mrf.mxu1  ;;  %9404 = vmatpush3.bf16.msra.mxu0 %v9483_v46  ;;  %v9277_v52 = vcombine.high %v4382_v9, %v4386_v43  ;;  %v4374_v46 = vld [vmem:[%s13373_s6 + $0xf18] sm:$0xff] }
 0x511   :  { %7623 = vmatpush1.bf16.msra.mxu1 %v9220_v19  ;;  %9405 = vmatprep.subr.bf16.mxu0 %v9484_v13  ;;  %v4378_v2 = vld [vmem:[%s13373_s6 + $0xf38] sm:$0xff]  ;;  %v9276_v13 = vcombine.low %v4382_v9, %v4386_v43  ;;  %v9481_v9 = vld [vmem:[%s13375_s8 + $0x80] sm:$0xff]   ;;  %v7663_v43 = vmax.f32 %v13120_v27, 0.0  ;;  %v9501_v27 = vld [vmem:[%s13375_s8 + $0x1b0] sm:$0xff]  }
 0x512   :  { %v7331_v60 = vpop.f32.mrf.mxu1  ;;  %7624 = vmatprep.subr.bf16.mxu1 %v9213_v16  ;;  %v9269_v38 = vcombine.high %v4374_v46, %v4378_v2  ;;  %v4366_v36 = vld [vmem:[%s13373_s6 + $0xed8] sm:$0xff] }
 0x513   :  { %v4370_v7 = vld [vmem:[%s13373_s6 + $0xef8] sm:$0xff] }
 0x514   :  { %9406 = vmatpush3.bf16.msra.mxu0 %v9485_v41  ;;  %v9261_v60 = vcombine.high %v4366_v36, %v4370_v7  ;;  %v9260_v28 = vcombine.low %v4366_v36, %v4370_v7  ;;  %v9504_v36 = vld [vmem:[%s13375_s8 + $0x1e0] sm:$0xff]  }
 0x515   :  { %7625 = vmatpush1.bf16.msra.mxu1 %v9212_v49  ;;  %9407 = vmatprep.subr.bf16.mxu0 %v9486_v31  ;;  %v9268_v49 = vcombine.low %v4374_v46, %v4378_v2  ;;  %v7671_v46 = vpack.c.bf16 %v7663_v43, %v7663_v43  ;;  %v9500_v2 = vld [vmem:[%s13375_s8 + $0x1f0] sm:$0xff]  }
 0x516   :  { %7626 = vmatprep.subr.bf16.mxu1 %v9205_v63  ;;  %v4358_v63 = vld [vmem:[%s13373_s6 + $0xe98] sm:$0xff] }
 0x518   :  { %9408 = vmatpush3.bf16.msra.mxu0 %v9487_v15  ;;  %v9253_v15 = vcombine.high %v4358_v63, %v4362_v55 }
 0x519   :  { %7627 = vmatpush1.bf16.msra.mxu1 %v9204_v23  ;;  %9409 = vmatprep.subr.bf16.mxu0 %v9488_v22  ;;  %v4350_v23 = vld [vmem:[%s13373_s6 + $0xe58] sm:$0xff] }
 0x51a   :  { %7628 = vmatprep.subr.bf16.mxu1 %v9197_v34  ;;  %v4354_v22 = vld [vmem:[%s13373_s6 + $0xe78] sm:$0xff]  ;;  %v9252_v34 = vcombine.low %v4358_v63, %v4362_v55  ;;  %v9508_v63 = vld [vmem:[%s13375_s8 + $0x1d0] sm:$0xff]  }
 0x51b   :  { %v9245_v1 = vcombine.high %v4350_v23, %v4354_v22  ;;  %v9509_v55 = vld [vmem:[%s13375_s8 + $0x190] sm:$0xff]  }
 0x51c   :  { %9410 = vmatpush3.bf16.msra.mxu0 %v9489_v59  ;;  %v4346_v59 = vld [vmem:[%s13373_s6 + $0xe38] sm:$0xff] }
 0x51d   :  { %7629 = vmatpush1.bf16.msra.mxu1 %v9196_v45  ;;  %9411 = vmatprep.subr.bf16.mxu0 %v9490_v18  ;;  %v9244_v45 = vcombine.low %v4350_v23, %v4354_v22  ;;  %v9237_v18 = vcombine.high %v4342_v14, %v4346_v59  ;;  %v9236_v51 = vcombine.low %v4342_v14, %v4346_v59 }
 0x51e   :  { %7630 = vmatprep.subr.bf16.mxu1 %v9189_v58  ;;  %v7329_v58 = vadd.f32 %v13126_v61, %v12935_v33  ;;  %v9467_v33 = vld [vmem:[%s13375_s8 + $0xb8] sm:$0xff]   ;;  %v9468_v61 = vld [vmem:[%s13375_s8 + $0xf0] sm:$0xff]  }
 0x520   :  { %9412 = vmatpush3.bf16.msra.mxu0 %v9491_v32  ;;  %v4424_v32 = vrot.slane %v12886_v11, %v1233_v37 }
 0x521   :  { %7631 = vmatpush1.bf16.msra.mxu1 %v9188_v26  ;;  %9413 = vmatprep.subr.bf16.mxu0 %v9492_v29  ;;  %v7664_v26 = vmax.f32 %v7329_v58, 0.0  ;;  %v4428_v29 = vrot.slane %v12886_v11, %v1237_v48  ;;  %v9469_v48 = vld [vmem:[%s13375_s8 + $0xb0] sm:$0xff]   ;;  %v9511_v58 = vld [vmem:[%s13375_s8 + $0x188] sm:$0xff]  }
 0x522   :  { %7632 = vmatprep.subr.bf16.mxu1 %v9181_v47  ;;  %v7368_v47 = vadd.f32 %v13025_v57, %v4424_v32  ;;  %v9513_v32 = vld [vmem:[%s13375_s8 + $0x180] sm:$0xff]  }
 0x523   :  { %v7672_v0 = vpack.c.bf16 %v7664_v26, %v7664_v26  ;;  %v7370_v37 = vadd.f32 %v13031_v20, %v4428_v29 }
 0x524   :  { %9414 = vmatpush3.bf16.msra.mxu0 %v9493_v42 }
 0x525   :  { %7633 = vmatpush1.bf16.msra.mxu1 %v9180_v10  ;;  %9415 = vmatprep.subr.bf16.mxu0 %v9494_v39  ;;  %v9470_v39 = vld [vmem:[%s13375_s8 + $0xe8] sm:$0xff]  }
 0x526   :  { %7634 = vmatprep.subr.bf16.mxu1 %v9173_v5 }
 0x528   :  { %9416 = vmatpush3.bf16.msra.mxu0 %v9495_v12  ;;  %v9472_v12 = vld [vmem:[%s13375_s8 + $0xe0] sm:$0xff]  }
 0x529   :  { %7635 = vmatpush1.bf16.msra.mxu1 %v9172_v62  ;;  %9417 = vmatprep.subr.bf16.mxu0 %v9496_v6  ;;  %v9473_v62 = vld [vmem:[%s13375_s8 + $0xa0] sm:$0xff]   ;;  %v9474_v6 = vld [vmem:[%s13375_s8 + $0xd8] sm:$0xff]  }
 0x52a   :  { %7636 = vmatprep.subr.bf16.mxu1 %v9293_v4  ;;  %v9475_v4 = vld [vmem:[%s13375_s8 + $0x98] sm:$0xff]  }
 0x52c   :  { %9418 = vmatpush3.bf16.msra.mxu0 %v9497_v54  ;;  %v9478_v54 = vld [vmem:[%s13375_s8 + $0xc8] sm:$0xff]  }
 0x52d   :  { %7637 = vmatpush2.bf16.msra.mxu1 %v9292_v24  ;;  %v9479_v24 = vld [vmem:[%s13375_s8 + $0x88] sm:$0xff]  }
 0x52e   :  { %7638 = vmatprep.subr.bf16.mxu1 %v9285_v53  ;;  %v9480_v53 = vld [vmem:[%s13375_s8 + $0xc0] sm:$0xff]  }
 0x52f   :  { %v7449_v19 = vpop.f32.mrf.mxu0 }
 0x531   :  { %7639 = vmatpush2.bf16.msra.mxu1 %v9284_v3  ;;  %v7451_v16 = vpop.f32.mrf.mxu0  ;;  %v9498_v3 = vld [vmem:[%s13375_s8 + $0x1f8] sm:$0xff]  }
 0x532   :  { %7640 = vmatprep.subr.bf16.mxu1 %v9277_v52  ;;  %v9499_v52 = vld [vmem:[%s13375_s8 + $0x1b8] sm:$0xff]  }
 0x533   :  { %v7453_v41 = vpop.f32.mrf.mxu0 }
 0x535   :  { %7641 = vmatpush2.bf16.msra.mxu1 %v9276_v13  ;;  %v7454_v31 = vpop.f32.mrf.mxu0 }
 0x536   :  { %7642 = vmatprep.subr.bf16.mxu1 %v9269_v38  ;;  %v9503_v38 = vld [vmem:[%s13375_s8 + $0x1a8] sm:$0xff]   ;;  %v9506_v31 = vld [vmem:[%s13375_s8 + $0x1d8] sm:$0xff]  }
 0x539   :  { %7643 = vmatpush2.bf16.msra.mxu1 %v9268_v49  ;;  %v9505_v49 = vld [vmem:[%s13375_s8 + $0x1a0] sm:$0xff]  }
 0x53a   :  { %7644 = vmatprep.subr.bf16.mxu1 %v9261_v60  ;;  %v9507_v60 = vld [vmem:[%s13375_s8 + $0x198] sm:$0xff]  }
 0x53d   :  { %7645 = vmatpush2.bf16.msra.mxu1 %v9260_v28 }
 0x53e   :  { %7646 = vmatprep.subr.bf16.mxu1 %v9253_v15 }
 0x541   :  { %7647 = vmatpush2.bf16.msra.mxu1 %v9252_v34 }
 0x542   :  { %7648 = vmatprep.subr.bf16.mxu1 %v9245_v1 }
 0x545   :  { %7649 = vmatpush2.bf16.msra.mxu1 %v9244_v45 }
 0x546   :  { %7650 = vmatprep.subr.bf16.mxu1 %v9237_v18  ;;  %v9510_v18 = vld [vmem:[%s13375_s8 + $0x1c8] sm:$0xff]  }
 0x549   :  { %7651 = vmatpush2.bf16.msra.mxu1 %v9236_v51  ;;  %v9512_v51 = vld [vmem:[%s13375_s8 + $0x1c0] sm:$0xff]  }
 0x54a   :  { %9381 = vmatprep.subr.bf16.mxu1 %v9466_v25 }
 0x54c   :  { %v7408_v30 = vpop.f32.mrf.mxu1  ;;  %7653 = vmatmul.mubr.bf16.vlgmr.msra.gmra.mxu1 %v12068_v40  ;;  %v9471_v40 = vld [vmem:[%s13375_s8 + $0xa8] sm:$0xff]  }
 0x54d   :  { %v7409_v42 = vadd.f32 %v7408_v30, %v7368_v47  ;;  %9382 = vmatpush3.bf16.msra.mxu1 %v9467_v33  ;;  %8268 = vmatprep.mubr.bf16.mxu1 %v7672_v0  ;;  %v4432_v47 = vrot.slane %v12886_v11, %v1241_v50  ;;  %v4436_v0 = vrot.slane %v12886_v11, %v1245_v17 }
 0x54e   :  { %v7410_v10 = vpop.f32.mrf.mxu1  ;;  %9383 = vmatprep.subr.bf16.mxu1 %v9468_v61 }
 0x54f   :  { %v7411_v57 = vadd.f32 %v7410_v10, %v7370_v37  ;;  %v7450_v5 = vadd.f32 %v7449_v19, %v7409_v42  ;;  %v9502_v19 = vld [vmem:[%s13375_s8 + $0x1e8] sm:$0xff]  }
 0x550   :  { %v7412_v44 = vpop.f32.mrf.mxu1 }
 0x551   :  { %9384 = vmatpush3.bf16.msra.mxu1 %v9469_v48  ;;  %v7452_v20 = vadd.f32 %v7451_v16, %v7411_v57 }
 0x552   :  { %v7413_v21 = vpop.f32.mrf.mxu1  ;;  %9385 = vmatprep.subr.bf16.mxu1 %v9470_v39 }
 0x555   :  { %9386 = vmatpush3.bf16.msra.mxu1 %v9471_v40 }
 0x556   :  { %9387 = vmatprep.subr.bf16.mxu1 %v9472_v12 }
 0x559   :  { %9388 = vmatpush3.bf16.msra.mxu1 %v9473_v62 }
 0x55a   :  { %9389 = vmatprep.subr.bf16.mxu1 %v9474_v6 }
 0x55d   :  { %9390 = vmatpush3.bf16.msra.mxu1 %v9475_v4 }
 0x55e   :  { %9391 = vmatprep.subr.bf16.mxu1 %v9476_v35 }
 0x561   :  { %9392 = vmatpush3.bf16.msra.mxu1 %v9477_v8 }
 0x562   :  { %9393 = vmatprep.subr.bf16.mxu1 %v9478_v54 }
 0x565   :  { %9394 = vmatpush3.bf16.msra.mxu1 %v9479_v24 }
 0x566   :  { %9395 = vmatprep.subr.bf16.mxu1 %v9480_v53 }
 0x569   :  { %9396 = vmatpush3.bf16.msra.mxu1 %v9481_v9  ;;  %v9294_v9 = vld [vmem:[%s13376_s9] ss:$0 sm:$0xff] }
 0x56a   :  { %9425 = vmatprep.subr.bf16.mxu1 %v9498_v3 }
 0x56c   :  { %8269 = vmatmul.mubr.bf16.vlgmr.msra.gmra.mxu1 %v7671_v46 }
 0x56d   :  { %9426 = vmatpush3.bf16.msra.mxu1 %v9499_v52 }
 0x56e   :  { %9427 = vmatprep.subr.bf16.mxu1 %v9500_v2 }
 0x56f   :  { %v7531_v13 = vpop.f32.mrf.mxu0 }
 0x570   :  { %v7532_v30 = vadd.f32 %v7531_v13, %v4432_v47 }
 0x571   :  { %v7533_v16 = vpop.f32.mrf.mxu0  ;;  %9428 = vmatpush3.bf16.msra.mxu1 %v9501_v27 }
 0x572   :  { %9429 = vmatprep.subr.bf16.mxu1 %v9502_v19  ;;  %v7534_v42 = vadd.f32 %v7533_v16, %v4436_v0 }
 0x573   :  { %v7535_v7 = vpop.f32.mrf.mxu0 }
 0x575   :  { %v7536_v41 = vpop.f32.mrf.mxu0  ;;  %9430 = vmatpush3.bf16.msra.mxu1 %v9503_v38 }
 0x576   :  { %9431 = vmatprep.subr.bf16.mxu1 %v9504_v36 }
 0x579   :  { %9432 = vmatpush3.bf16.msra.mxu1 %v9505_v49 }
 0x57a   :  { %9433 = vmatprep.subr.bf16.mxu1 %v9506_v31  ;;  %v13381_v31 = vlaneseq }
 0x57d   :  { %9434 = vmatpush3.bf16.msra.mxu1 %v9507_v60  ;;  %v8357_v60 = vand.u32 127, %v13381_v31 }
 0x57e   :  { %9435 = vmatprep.subr.bf16.mxu1 %v9508_v63 }
 0x57f   :  { %vm8358_vm10 = vcmp.lt.s32.totalorder %v8357_v60, 10 }
 0x581   :  { %9436 = vmatpush3.bf16.msra.mxu1 %v9509_v55 }
 0x582   :  { %9437 = vmatprep.subr.bf16.mxu1 %v9510_v18 }
 0x585   :  { %9438 = vmatpush3.bf16.msra.mxu1 %v9511_v58 }
 0x586   :  { %9439 = vmatprep.subr.bf16.mxu1 %v9512_v51 }
 0x589   :  { %9440 = vmatpush3.bf16.msra.mxu1 %v9513_v32 }
 0x58c   :  { %v7490_v28 = vpop.f32.mrf.mxu1 }
 0x58d   :  { %v7491_v15 = vadd.f32 %v7490_v28, %v7450_v5 }
 0x58e   :  { %v7492_v23 = vpop.f32.mrf.mxu1 }
 0x58f   :  { %v7493_v22 = vadd.f32 %v7492_v23, %v7452_v20  ;;  %v7665_v34 = vmax.f32 %v7491_v15, 0.0 }
 0x590   :  { %v7494_v1 = vpop.f32.mrf.mxu1 }
 0x591   :  { %v7666_v14 = vmax.f32 %v7493_v22, 0.0  ;;  %v7673_v25 = vpack.c.bf16 %v7665_v34, %v7665_v34 }
 0x592   :  { %v7495_v59 = vpop.f32.mrf.mxu1 }
 0x593   :  { %v7674_v45 = vpack.c.bf16 %v7666_v14, %v7666_v14 }
 0x595   :  { %8308 = vmatprep.mubr.bf16.mxu0 %v7674_v45 }
 0x596   :  { %8309 = vmatmul.mubr.bf16.vlgmr.msra.gmra.mxu0 %v7673_v25 }
 0x5af   :  { %v7613_v26 = vpop.f32.mrf.mxu0 }
 0x5b1   :  { %v7615_v29 = vpop.f32.mrf.mxu0 }
 0x5b3   :  { %v7617_v33 = vpop.f32.mrf.mxu0 }
 0x5b5   :  { %v7618_v61 = vpop.f32.mrf.mxu0 }
 0x5cc   :  { %v7572_v37 = vpop.f32.mrf.mxu1 }
 0x5cd   :  { %v7573_v48 = vadd.f32 %v7572_v37, %v7532_v30 }
 0x5ce   :  { %v7574_v10 = vpop.f32.mrf.mxu1 }
 0x5cf   :  { %v7575_v39 = vadd.f32 %v7574_v10, %v7534_v42  ;;  %v9375_v57 = vpop.f32.mrf.mxu0  ;;  %v7614_v5 = vadd.f32 %v7613_v26, %v7573_v48 }
 0x5d0   :  { %v7576_v44 = vpop.f32.mrf.mxu1 }
 0x5d1   :  { %v9376_v40 = vpop.f32.mrf.mxu0  ;;  %v7616_v20 = vadd.f32 %v7615_v29, %v7575_v39 }
 0x5d2   :  { %v7577_v21 = vpop.f32.mrf.mxu1  ;;  %v9377_v12 = vadd.f32 %v9376_v40, %v9375_v57 }
 0x5d3   :  { %v9378_v62 = vpop.f32.mrf.mxu0 }
 0x5d4   :  { %v8231_v52 = vadd.f32 %v9377_v12, %v9294_v9 }
 0x5d5   :  { %v9379_v6 = vpop.f32.mrf.mxu0 }
 0x60c   :  { %v7654_v50 = vpop.f32.mrf.mxu1 }
 0x60d   :  { %v7655_v4 = vadd.f32 %v7654_v50, %v7614_v5 }
 0x60e   :  { %v7656_v56 = vpop.f32.mrf.mxu1 }
 0x60f   :  { %v7657_v35 = vadd.f32 %v7656_v56, %v7616_v20  ;;  %v7667_v17 = vmax.f32 %v7655_v4, 0.0 }
 0x610   :  { %v7658_v11 = vpop.f32.mrf.mxu1 }
 0x611   :  { %v7668_v8 = vmax.f32 %v7657_v35, 0.0  ;;  %v7675_v53 = vpack.c.bf16 %v7667_v17, %v7667_v17 }
 0x612   :  { %v7659_v54 = vpop.f32.mrf.mxu1 }
 0x613   :  { %v7676_v24 = vpack.c.bf16 %v7668_v8, %v7668_v8 }
 0x615   :  { %8348 = vmatprep.mubr.bf16.mxu1 %v7676_v24 }
 0x616   :  { %8349 = vmatmul.mubr.bf16.vlgmr.msra.gmra.mxu1 %v7675_v53 }
 0x62c   :  { %v9397_v43 = vpop.f32.mrf.mxu1 }
 0x62e   :  { %v9398_v3 = vpop.f32.mrf.mxu1 }
 0x62f   :  { %v9399_v46 = vadd.f32 %v9398_v3, %v9397_v43 }
 0x630   :  { %v9400_v2 = vpop.f32.mrf.mxu1 }
 0x631   :  { %v8271_v27 = vadd.f32 %v9399_v46, %v8231_v52 }
 0x632   :  { %v9401_v19 = vpop.f32.mrf.mxu1 }
 0x656   :  { %v9419_v13 = vpop.f32.mrf.mxu0 }
 0x658   :  { %v9420_v16 = vpop.f32.mrf.mxu0 }
 0x659   :  { %v9421_v38 = vadd.f32 %v9420_v16, %v9419_v13 }
 0x65a   :  { %v9422_v36 = vpop.f32.mrf.mxu0 }
 0x65b   :  { %v8311_v7 = vadd.f32 %v9421_v38, %v8271_v27 }
 0x65c   :  { %v9423_v41 = vpop.f32.mrf.mxu0 }
 0x6d6   :  { %v9441_v49 = vpop.f32.mrf.mxu1 }
 0x6d8   :  { %v9442_v63 = vpop.f32.mrf.mxu1 }
 0x6d9   :  { %v9443_v55 = vadd.f32 %v9442_v63, %v9441_v49 }
 0x6da   :  { %v9444_v28 = vpop.f32.mrf.mxu1 }
 0x6db   :  { %v8351_v15 = vadd.f32 %v9443_v55, %v8311_v7 }
 0x6dc   :  { %v9445_v23 = vpop.f32.mrf.mxu1 }
 0x6dd   :  { %v8359_v22 = vsel %vm8358_vm10, %v8351_v15, -inf }
 0x6de   :  { %v8361_v34 = vsel %vm8360_vm11, %v8359_v22, -inf }
 0x6df   :  { %8362 = vmax.xlane.f32.xlu0 %v8361_v34 }
 0x768   :  { %v8363_v1 = vpop.xlane.xlu0 %8362 }
 0x769   :  { %v8364_v14 = vsub.f32 %v8359_v22, %v8363_v1  ;;  %v8372_v25 = vsub.f32 %v8351_v15, %v8363_v1 }
 0x76b   :  { %v8365_v59 = vmul.f32 1.442695, %v8364_v14 }
 0x76d   :  { %9554 = vpow2.f32 %v8365_v59 }
 0x77a   :  { %v9555_v45 = vpop.eup %9554 }
 0x77b   :  { %v8367_v18 = vsel %vm8360_vm11, %v9555_v45, 0.0 }
 0x77c   :  { %8368 = vadd.xlane.f32.xlu1 %v8367_v18 }
 0x805   :  { %v8369_v58 = vpop.xlane.xlu1 %8368 }
 0x806   :  { %9556 = vlog2.f32 %v8369_v58 }
 0x813   :  { %v9557_v51 = vpop.eup %9556 }
 0x814   :  { %v8371_v32 = vmul.f32 0.6931472, %v9557_v51 }
 0x816   :  { %v8373_v26 = vsub.f32 %v8372_v25, %v8371_v32 }
 0x818   :  { %8374 = vst [vmem:[%s13377_s11] sm:$0x3f] %v8373_v26 }

</bundles_post_ra>
